<compile_context>
chip_gen: v7x
topology: tpu7x:2x2x1
jax: 0.10.0
libtpu: 0.0.40
codegen_flags: <defaults>
</compile_context>

<pallas_src>
import functools

import numpy as np
import jax
import jax.numpy as jnp
from jax import lax
from jax.experimental import pallas as pl
from jax.experimental.pallas import tpu as pltpu

K = 3  # all layers use 3x3 kernels


# ----------------------------------------------------------------------------
# Static plan: 0/1 gather/scatter matrices per layer (built once per shape).
# ----------------------------------------------------------------------------
def _conv_out_size(h, stride, pad, k=K):
    return (h + 2 * pad - k) // stride + 1


def _convT_out_size(h, stride, pad, opad, k=K):
    return (h - 1) * stride - 2 * pad + k + opad


def _conv_select_mats(N, H_in, W_in, stride, pad):
    """S[t] (M_in, M_out): S[t, m_in, m_out]=1 iff input pixel m_in feeds
    output pixel m_out under tap t=(kh,kw) of a stride/pad conv."""
    H_out = _conv_out_size(H_in, stride, pad)
    W_out = _conv_out_size(W_in, stride, pad)
    M_in, M_out = N * H_in * W_in, N * H_out * W_out
    S = np.zeros((K * K, M_in, M_out), np.float32)
    for kh in range(K):
        for kw in range(K):
            t = kh * K + kw
            for n in range(N):
                for ho in range(H_out):
                    hi = ho * stride - pad + kh
                    if hi < 0 or hi >= H_in:
                        continue
                    for wo in range(W_out):
                        wi = wo * stride - pad + kw
                        if wi < 0 or wi >= W_in:
                            continue
                        S[t, (n * H_in + hi) * W_in + wi,
                             (n * H_out + ho) * W_out + wo] = 1.0
    return S, H_out, W_out


def _convT_select_mats(N, H_in, W_in, stride, pad, opad):
    """Scatter matrices for ConvTranspose2d (PyTorch semantics):
    ho = hi*stride - pad + kh, wo = wi*stride - pad + kw."""
    H_out = _convT_out_size(H_in, stride, pad, opad)
    W_out = _convT_out_size(W_in, stride, pad, opad)
    M_in, M_out = N * H_in * W_in, N * H_out * W_out
    S = np.zeros((K * K, M_in, M_out), np.float32)
    for kh in range(K):
        for kw in range(K):
            t = kh * K + kw
            for n in range(N):
                for hi in range(H_in):
                    ho = hi * stride - pad + kh
                    if ho < 0 or ho >= H_out:
                        continue
                    for wi in range(W_in):
                        wo = wi * stride - pad + kw
                        if wo < 0 or wo >= W_out:
                            continue
                        S[t, (n * H_in + hi) * W_in + wi,
                             (n * H_out + ho) * W_out + wo] = 1.0
    return S, H_out, W_out


@functools.lru_cache(maxsize=None)
def _build_plan(N, H, W):
    S1, H1, W1 = _conv_select_mats(N, H, W, 2, 1)
    S2, H2, W2 = _conv_select_mats(N, H1, W1, 2, 1)
    S3, H3, W3 = _convT_select_mats(N, H2, W2, 2, 1, 1)
    S4, H4, W4 = _convT_select_mats(N, H3, W3, 2, 1, 1)
    assert (H4, W4) == (H, W)
    return S1, S2, S3, S4


# ----------------------------------------------------------------------------
# The single fused Pallas kernel.
# ----------------------------------------------------------------------------
def _fused_autoencoder_kernel(x_ref,
                              s1_ref, w1_ref, b1_ref,
                              s2_ref, w2_ref, b2_ref,
                              s3_ref, w3_ref, b3_ref,
                              s4_ref, w4_ref, b4_ref,
                              o_ref):
    def layer(a, s_ref, w_ref, b_ref, act):
        c_out = w_ref.shape[1]
        m_out = s_ref.shape[2]
        acc = jnp.zeros((c_out, m_out), jnp.float32)
        for t in range(K * K):  # static unroll over the 9 taps
            # gather (im2col) on the MXU: (C_in, M_in) @ (M_in, M_out)
            g = jnp.dot(a, s_ref[t], preferred_element_type=jnp.float32)
            # channel mix: (C_out, C_in) @ (C_in, M_out)
            acc = acc + jnp.dot(w_ref[t], g, preferred_element_type=jnp.float32)
        acc = acc + b_ref[...]  # (C_out, 1) broadcasts along lanes
        if act == "relu":
            return jnp.maximum(acc, 0.0)
        return jax.nn.sigmoid(acc)

    a = x_ref[...]
    a = layer(a, s1_ref, w1_ref, b1_ref, "relu")     # (32, N*8*8)
    a = layer(a, s2_ref, w2_ref, b2_ref, "relu")     # (64, N*4*4)
    a = layer(a, s3_ref, w3_ref, b3_ref, "relu")     # (32, N*8*8)
    a = layer(a, s4_ref, w4_ref, b4_ref, "sigmoid")  # (C,  N*16*16)
    o_ref[...] = a


# ----------------------------------------------------------------------------
# Forward wrapper.
# ----------------------------------------------------------------------------
def autoencoder_forward(params, x):
    N, C, H, W = x.shape
    S1, S2, S3, S4 = _build_plan(N, H, W)

    # NCHW -> channel-major lane-dense (C, N*H*W); only boundary transpose.
    x_cm = jnp.transpose(x, (1, 0, 2, 3)).reshape(C, N * H * W)

    def conv_taps(w):   # Conv2d weight (Cout, Cin, 3, 3) -> (9, Cout, Cin)
        co, ci = w.shape[0], w.shape[1]
        return jnp.transpose(w, (2, 3, 0, 1)).reshape(K * K, co, ci)

    def convT_taps(w):  # ConvTranspose2d weight (Cin, Cout, 3, 3) -> (9, Cout, Cin)
        ci, co = w.shape[0], w.shape[1]
        return jnp.transpose(w, (2, 3, 1, 0)).reshape(K * K, co, ci)

    w1, b1 = conv_taps(params["w1"]), params["b1"].reshape(-1, 1)
    w2, b2 = conv_taps(params["w2"]), params["b2"].reshape(-1, 1)
    w3, b3 = convT_taps(params["w3"]), params["b3"].reshape(-1, 1)
    w4, b4 = convT_taps(params["w4"]), params["b4"].reshape(-1, 1)

    M = N * H * W
    c_out = params["w4"].shape[1]
    vmem = pl.BlockSpec(memory_space=pltpu.MemorySpace.VMEM)

    y_cm = pl.pallas_call(
        _fused_autoencoder_kernel,
        out_shape=jax.ShapeDtypeStruct((c_out, M), jnp.float32),
        in_specs=[vmem] * 13,
        out_specs=vmem,
    )(x_cm, S1, w1, b1, S2, w2, b2, S3, w3, b3, S4, w4, b4)

    # (C, N*H*W) -> NCHW at the model boundary only.
    return jnp.transpose(y_cm.reshape(c_out, N, H, W), (1, 0, 2, 3))


# ----------------------------------------------------------------------------
# Params (PyTorch-default-style init).
# ----------------------------------------------------------------------------
def init_params(key, input_channels):
    def uniform(key, shape, fan_in):
        bound = 1.0 / jnp.sqrt(fan_in)
        return jax.random.uniform(key, shape, jnp.float32, -bound, bound)

    ks = jax.random.split(key, 8)
    p = {}
    p["w1"] = uniform(ks[0], (32, input_channels, 3, 3), input_channels * 9)
    p["b1"] = uniform(ks[1], (32,), input_channels * 9)
    p["w2"] = uniform(ks[2], (64, 32, 3, 3), 32 * 9)
    p["b2"] = uniform(ks[3], (64,), 32 * 9)
    # ConvTranspose2d weight layout: (C_in, C_out, kH, kW)
    p["w3"] = uniform(ks[4], (64, 32, 3, 3), 32 * 9)
    p["b3"] = uniform(ks[5], (32,), 32 * 9)
    p["w4"] = uniform(ks[6], (32, input_channels, 3, 3), input_channels * 9)
    p["b4"] = uniform(ks[7], (input_channels,), input_channels * 9)
    return p


# ----------------------------------------------------------------------------
# Pure-JAX (XLA conv) reference, for correctness check only.
# ----------------------------------------------------------------------------
def _ref_forward(params, x):
    dn = ("NCHW", "OIHW", "NCHW")

    def conv(x, w, b, stride, pad):
        y = lax.conv_general_dilated(x, w, (stride, stride),
                                     ((pad, pad), (pad, pad)),
                                     dimension_numbers=dn)
        return y + b.reshape(1, -1, 1, 1)

    def convT(x, w, b, stride, pad, opad):
        w_conv = jnp.flip(w, axis=(2, 3)).transpose(1, 0, 2, 3)
        lo, hi = 3 - 1 - pad, 3 - 1 - pad + opad
        y = lax.conv_general_dilated(x, w_conv, (1, 1), ((lo, hi), (lo, hi)),
                                     lhs_dilation=(stride, stride),
                                     dimension_numbers=dn)
        return y + b.reshape(1, -1, 1, 1)

    h = jax.nn.relu(conv(x, params["w1"], params["b1"], 2, 1))
    h = jax.nn.relu(conv(h, params["w2"], params["b2"], 2, 1))
    h = jax.nn.relu(convT(h, params["w3"], params["b3"], 2, 1, 1))
    return jax.nn.sigmoid(convT(h, params["w4"], params["b4"], 2, 1, 1))


if __name__ == "__main__":
    key = jax.random.PRNGKey(0)
    k_x, k_p = jax.random.split(key)

    N, C, H, W = 2, 4, 16, 16
    x = jax.random.uniform(k_x, (N, C, H, W), jnp.float32)
    params = init_params(k_p, C)

    fwd = jax.jit(autoencoder_forward)
    y = fwd(params, x)
    jax.block_until_ready(y)

    assert y.shape == (N, C, H, W), y.shape
    assert y.dtype == jnp.float32

    y_ref = _ref_forward(params, x)
    assert jnp.allclose(y, y_ref, rtol=1e-4, atol=1e-4), \
        float(jnp.max(jnp.abs(y - y_ref)))

    print("KERNEL_OK")
</pallas_src>

<mosaic_0001>
module attributes {stable_mosaic.version = 11 : i64} {
  func.func @_fused_autoencoder_kernel(%arg0: memref<4x512xf32, #tpu.memory_space<vmem>>, %arg1: memref<9x512x128xf32, #tpu.memory_space<vmem>>, %arg2: memref<9x32x4xf32, #tpu.memory_space<vmem>>, %arg3: memref<32x1xf32, #tpu.memory_space<vmem>>, %arg4: memref<9x128x32xf32, #tpu.memory_space<vmem>>, %arg5: memref<9x64x32xf32, #tpu.memory_space<vmem>>, %arg6: memref<64x1xf32, #tpu.memory_space<vmem>>, %arg7: memref<9x32x128xf32, #tpu.memory_space<vmem>>, %arg8: memref<9x32x64xf32, #tpu.memory_space<vmem>>, %arg9: memref<32x1xf32, #tpu.memory_space<vmem>>, %arg10: memref<9x128x512xf32, #tpu.memory_space<vmem>>, %arg11: memref<9x4x32xf32, #tpu.memory_space<vmem>>, %arg12: memref<4x1xf32, #tpu.memory_space<vmem>>, %arg13: memref<4x512xf32, #tpu.memory_space<vmem>>) attributes {dimension_semantics = [], scalar_prefetch = 0 : i64, scratch_operands = 0 : i64, tpu.core_type = #tpu.core_type<tc>} {
    %c0 = arith.constant 0 : index
    %c0_0 = arith.constant 0 : index
    %0 = vector.load %arg0[%c0, %c0_0] : memref<4x512xf32, #tpu.memory_space<vmem>>, vector<4x512xf32>
    %cst = arith.constant 0.000000e+00 : f32
    %1 = vector.broadcast %cst : f32 to vector<32x128xf32>
    %c0_1 = arith.constant 0 : index
    %c0_2 = arith.constant 0 : index
    %c0_3 = arith.constant 0 : index
    %2 = vector.load %arg1[%c0_1, %c0_2, %c0_3] : memref<9x512x128xf32, #tpu.memory_space<vmem>>, vector<1x512x128xf32>
    %3 = vector.shape_cast %2 : vector<1x512x128xf32> to vector<512x128xf32>
    %cst_4 = arith.constant dense<0.000000e+00> : vector<4x128xf32>
    %4 = tpu.matmul %0, %3, %cst_4 {dimension_numbers = #tpu.dot_dimension_numbers<[1], [0], [0], [1], [0, 0, 1, 1], [], []>} : vector<4x512xf32>, vector<512x128xf32>, vector<4x128xf32> -> vector<4x128xf32>
    %c0_5 = arith.constant 0 : index
    %c0_6 = arith.constant 0 : index
    %c0_7 = arith.constant 0 : index
    %5 = vector.load %arg2[%c0_5, %c0_6, %c0_7] : memref<9x32x4xf32, #tpu.memory_space<vmem>>, vector<1x32x4xf32>
    %6 = vector.shape_cast %5 : vector<1x32x4xf32> to vector<32x4xf32>
    %cst_8 = arith.constant dense<0.000000e+00> : vector<32x128xf32>
    %7 = tpu.matmul %6, %4, %cst_8 {dimension_numbers = #tpu.dot_dimension_numbers<[1], [0], [0], [1], [0, 0, 1, 1], [], []>} : vector<32x4xf32>, vector<4x128xf32>, vector<32x128xf32> -> vector<32x128xf32>
    %8 = arith.addf %1, %7 : vector<32x128xf32>
    %c1 = arith.constant 1 : index
    %c0_9 = arith.constant 0 : index
    %c0_10 = arith.constant 0 : index
    %9 = vector.load %arg1[%c1, %c0_9, %c0_10] : memref<9x512x128xf32, #tpu.memory_space<vmem>>, vector<1x512x128xf32>
    %10 = vector.shape_cast %9 : vector<1x512x128xf32> to vector<512x128xf32>
    %cst_11 = arith.constant dense<0.000000e+00> : vector<4x128xf32>
    %11 = tpu.matmul %0, %10, %cst_11 {dimension_numbers = #tpu.dot_dimension_numbers<[1], [0], [0], [1], [0, 0, 1, 1], [], []>} : vector<4x512xf32>, vector<512x128xf32>, vector<4x128xf32> -> vector<4x128xf32>
    %c1_12 = arith.constant 1 : index
    %c0_13 = arith.constant 0 : index
    %c0_14 = arith.constant 0 : index
    %12 = vector.load %arg2[%c1_12, %c0_13, %c0_14] : memref<9x32x4xf32, #tpu.memory_space<vmem>>, vector<1x32x4xf32>
    %13 = vector.shape_cast %12 : vector<1x32x4xf32> to vector<32x4xf32>
    %cst_15 = arith.constant dense<0.000000e+00> : vector<32x128xf32>
    %14 = tpu.matmul %13, %11, %cst_15 {dimension_numbers = #tpu.dot_dimension_numbers<[1], [0], [0], [1], [0, 0, 1, 1], [], []>} : vector<32x4xf32>, vector<4x128xf32>, vector<32x128xf32> -> vector<32x128xf32>
    %15 = arith.addf %8, %14 : vector<32x128xf32>
    %c2 = arith.constant 2 : index
    %c0_16 = arith.constant 0 : index
    %c0_17 = arith.constant 0 : index
    %16 = vector.load %arg1[%c2, %c0_16, %c0_17] : memref<9x512x128xf32, #tpu.memory_space<vmem>>, vector<1x512x128xf32>
    %17 = vector.shape_cast %16 : vector<1x512x128xf32> to vector<512x128xf32>
    %cst_18 = arith.constant dense<0.000000e+00> : vector<4x128xf32>
    %18 = tpu.matmul %0, %17, %cst_18 {dimension_numbers = #tpu.dot_dimension_numbers<[1], [0], [0], [1], [0, 0, 1, 1], [], []>} : vector<4x512xf32>, vector<512x128xf32>, vector<4x128xf32> -> vector<4x128xf32>
    %c2_19 = arith.constant 2 : index
    %c0_20 = arith.constant 0 : index
    %c0_21 = arith.constant 0 : index
    %19 = vector.load %arg2[%c2_19, %c0_20, %c0_21] : memref<9x32x4xf32, #tpu.memory_space<vmem>>, vector<1x32x4xf32>
    %20 = vector.shape_cast %19 : vector<1x32x4xf32> to vector<32x4xf32>
    %cst_22 = arith.constant dense<0.000000e+00> : vector<32x128xf32>
    %21 = tpu.matmul %20, %18, %cst_22 {dimension_numbers = #tpu.dot_dimension_numbers<[1], [0], [0], [1], [0, 0, 1, 1], [], []>} : vector<32x4xf32>, vector<4x128xf32>, vector<32x128xf32> -> vector<32x128xf32>
    %22 = arith.addf %15, %21 : vector<32x128xf32>
    %c3 = arith.constant 3 : index
    %c0_23 = arith.constant 0 : index
    %c0_24 = arith.constant 0 : index
    %23 = vector.load %arg1[%c3, %c0_23, %c0_24] : memref<9x512x128xf32, #tpu.memory_space<vmem>>, vector<1x512x128xf32>
    %24 = vector.shape_cast %23 : vector<1x512x128xf32> to vector<512x128xf32>
    %cst_25 = arith.constant dense<0.000000e+00> : vector<4x128xf32>
    %25 = tpu.matmul %0, %24, %cst_25 {dimension_numbers = #tpu.dot_dimension_numbers<[1], [0], [0], [1], [0, 0, 1, 1], [], []>} : vector<4x512xf32>, vector<512x128xf32>, vector<4x128xf32> -> vector<4x128xf32>
    %c3_26 = arith.constant 3 : index
    %c0_27 = arith.constant 0 : index
    %c0_28 = arith.constant 0 : index
    %26 = vector.load %arg2[%c3_26, %c0_27, %c0_28] : memref<9x32x4xf32, #tpu.memory_space<vmem>>, vector<1x32x4xf32>
    %27 = vector.shape_cast %26 : vector<1x32x4xf32> to vector<32x4xf32>
    %cst_29 = arith.constant dense<0.000000e+00> : vector<32x128xf32>
    %28 = tpu.matmul %27, %25, %cst_29 {dimension_numbers = #tpu.dot_dimension_numbers<[1], [0], [0], [1], [0, 0, 1, 1], [], []>} : vector<32x4xf32>, vector<4x128xf32>, vector<32x128xf32> -> vector<32x128xf32>
    %29 = arith.addf %22, %28 : vector<32x128xf32>
    %c4 = arith.constant 4 : index
    %c0_30 = arith.constant 0 : index
    %c0_31 = arith.constant 0 : index
    %30 = vector.load %arg1[%c4, %c0_30, %c0_31] : memref<9x512x128xf32, #tpu.memory_space<vmem>>, vector<1x512x128xf32>
    %31 = vector.shape_cast %30 : vector<1x512x128xf32> to vector<512x128xf32>
    %cst_32 = arith.constant dense<0.000000e+00> : vector<4x128xf32>
    %32 = tpu.matmul %0, %31, %cst_32 {dimension_numbers = #tpu.dot_dimension_numbers<[1], [0], [0], [1], [0, 0, 1, 1], [], []>} : vector<4x512xf32>, vector<512x128xf32>, vector<4x128xf32> -> vector<4x128xf32>
    %c4_33 = arith.constant 4 : index
    %c0_34 = arith.constant 0 : index
    %c0_35 = arith.constant 0 : index
    %33 = vector.load %arg2[%c4_33, %c0_34, %c0_35] : memref<9x32x4xf32, #tpu.memory_space<vmem>>, vector<1x32x4xf32>
    %34 = vector.shape_cast %33 : vector<1x32x4xf32> to vector<32x4xf32>
    %cst_36 = arith.constant dense<0.000000e+00> : vector<32x128xf32>
    %35 = tpu.matmul %34, %32, %cst_36 {dimension_numbers = #tpu.dot_dimension_numbers<[1], [0], [0], [1], [0, 0, 1, 1], [], []>} : vector<32x4xf32>, vector<4x128xf32>, vector<32x128xf32> -> vector<32x128xf32>
    %36 = arith.addf %29, %35 : vector<32x128xf32>
    %c5 = arith.constant 5 : index
    %c0_37 = arith.constant 0 : index
    %c0_38 = arith.constant 0 : index
    %37 = vector.load %arg1[%c5, %c0_37, %c0_38] : memref<9x512x128xf32, #tpu.memory_space<vmem>>, vector<1x512x128xf32>
    %38 = vector.shape_cast %37 : vector<1x512x128xf32> to vector<512x128xf32>
    %cst_39 = arith.constant dense<0.000000e+00> : vector<4x128xf32>
    %39 = tpu.matmul %0, %38, %cst_39 {dimension_numbers = #tpu.dot_dimension_numbers<[1], [0], [0], [1], [0, 0, 1, 1], [], []>} : vector<4x512xf32>, vector<512x128xf32>, vector<4x128xf32> -> vector<4x128xf32>
    %c5_40 = arith.constant 5 : index
    %c0_41 = arith.constant 0 : index
    %c0_42 = arith.constant 0 : index
    %40 = vector.load %arg2[%c5_40, %c0_41, %c0_42] : memref<9x32x4xf32, #tpu.memory_space<vmem>>, vector<1x32x4xf32>
    %41 = vector.shape_cast %40 : vector<1x32x4xf32> to vector<32x4xf32>
    %cst_43 = arith.constant dense<0.000000e+00> : vector<32x128xf32>
    %42 = tpu.matmul %41, %39, %cst_43 {dimension_numbers = #tpu.dot_dimension_numbers<[1], [0], [0], [1], [0, 0, 1, 1], [], []>} : vector<32x4xf32>, vector<4x128xf32>, vector<32x128xf32> -> vector<32x128xf32>
    %43 = arith.addf %36, %42 : vector<32x128xf32>
    %c6 = arith.constant 6 : index
    %c0_44 = arith.constant 0 : index
    %c0_45 = arith.constant 0 : index
    %44 = vector.load %arg1[%c6, %c0_44, %c0_45] : memref<9x512x128xf32, #tpu.memory_space<vmem>>, vector<1x512x128xf32>
    %45 = vector.shape_cast %44 : vector<1x512x128xf32> to vector<512x128xf32>
    %cst_46 = arith.constant dense<0.000000e+00> : vector<4x128xf32>
    %46 = tpu.matmul %0, %45, %cst_46 {dimension_numbers = #tpu.dot_dimension_numbers<[1], [0], [0], [1], [0, 0, 1, 1], [], []>} : vector<4x512xf32>, vector<512x128xf32>, vector<4x128xf32> -> vector<4x128xf32>
    %c6_47 = arith.constant 6 : index
    %c0_48 = arith.constant 0 : index
    %c0_49 = arith.constant 0 : index
    %47 = vector.load %arg2[%c6_47, %c0_48, %c0_49] : memref<9x32x4xf32, #tpu.memory_space<vmem>>, vector<1x32x4xf32>
    %48 = vector.shape_cast %47 : vector<1x32x4xf32> to vector<32x4xf32>
    %cst_50 = arith.constant dense<0.000000e+00> : vector<32x128xf32>
    %49 = tpu.matmul %48, %46, %cst_50 {dimension_numbers = #tpu.dot_dimension_numbers<[1], [0], [0], [1], [0, 0, 1, 1], [], []>} : vector<32x4xf32>, vector<4x128xf32>, vector<32x128xf32> -> vector<32x128xf32>
    %50 = arith.addf %43, %49 : vector<32x128xf32>
    %c7 = arith.constant 7 : index
    %c0_51 = arith.constant 0 : index
    %c0_52 = arith.constant 0 : index
    %51 = vector.load %arg1[%c7, %c0_51, %c0_52] : memref<9x512x128xf32, #tpu.memory_space<vmem>>, vector<1x512x128xf32>
    %52 = vector.shape_cast %51 : vector<1x512x128xf32> to vector<512x128xf32>
    %cst_53 = arith.constant dense<0.000000e+00> : vector<4x128xf32>
    %53 = tpu.matmul %0, %52, %cst_53 {dimension_numbers = #tpu.dot_dimension_numbers<[1], [0], [0], [1], [0, 0, 1, 1], [], []>} : vector<4x512xf32>, vector<512x128xf32>, vector<4x128xf32> -> vector<4x128xf32>
    %c7_54 = arith.constant 7 : index
    %c0_55 = arith.constant 0 : index
    %c0_56 = arith.constant 0 : index
    %54 = vector.load %arg2[%c7_54, %c0_55, %c0_56] : memref<9x32x4xf32, #tpu.memory_space<vmem>>, vector<1x32x4xf32>
    %55 = vector.shape_cast %54 : vector<1x32x4xf32> to vector<32x4xf32>
    %cst_57 = arith.constant dense<0.000000e+00> : vector<32x128xf32>
    %56 = tpu.matmul %55, %53, %cst_57 {dimension_numbers = #tpu.dot_dimension_numbers<[1], [0], [0], [1], [0, 0, 1, 1], [], []>} : vector<32x4xf32>, vector<4x128xf32>, vector<32x128xf32> -> vector<32x128xf32>
    %57 = arith.addf %50, %56 : vector<32x128xf32>
    %c8 = arith.constant 8 : index
    %c0_58 = arith.constant 0 : index
    %c0_59 = arith.constant 0 : index
    %58 = vector.load %arg1[%c8, %c0_58, %c0_59] : memref<9x512x128xf32, #tpu.memory_space<vmem>>, vector<1x512x128xf32>
    %59 = vector.shape_cast %58 : vector<1x512x128xf32> to vector<512x128xf32>
    %cst_60 = arith.constant dense<0.000000e+00> : vector<4x128xf32>
    %60 = tpu.matmul %0, %59, %cst_60 {dimension_numbers = #tpu.dot_dimension_numbers<[1], [0], [0], [1], [0, 0, 1, 1], [], []>} : vector<4x512xf32>, vector<512x128xf32>, vector<4x128xf32> -> vector<4x128xf32>
    %c8_61 = arith.constant 8 : index
    %c0_62 = arith.constant 0 : index
    %c0_63 = arith.constant 0 : index
    %61 = vector.load %arg2[%c8_61, %c0_62, %c0_63] : memref<9x32x4xf32, #tpu.memory_space<vmem>>, vector<1x32x4xf32>
    %62 = vector.shape_cast %61 : vector<1x32x4xf32> to vector<32x4xf32>
    %cst_64 = arith.constant dense<0.000000e+00> : vector<32x128xf32>
    %63 = tpu.matmul %62, %60, %cst_64 {dimension_numbers = #tpu.dot_dimension_numbers<[1], [0], [0], [1], [0, 0, 1, 1], [], []>} : vector<32x4xf32>, vector<4x128xf32>, vector<32x128xf32> -> vector<32x128xf32>
    %64 = arith.addf %57, %63 : vector<32x128xf32>
    %c0_65 = arith.constant 0 : index
    %c0_66 = arith.constant 0 : index
    %65 = vector.load %arg3[%c0_65, %c0_66] : memref<32x1xf32, #tpu.memory_space<vmem>>, vector<32x1xf32>
    %66 = vector.broadcast %65 : vector<32x1xf32> to vector<32x128xf32>
    %67 = arith.addf %64, %66 : vector<32x128xf32>
    %cst_67 = arith.constant 0.000000e+00 : f32
    %68 = vector.broadcast %cst_67 : f32 to vector<32x128xf32>
    %69 = arith.maximumf %67, %68 : vector<32x128xf32>
    %cst_68 = arith.constant 0.000000e+00 : f32
    %70 = vector.broadcast %cst_68 : f32 to vector<64x32xf32>
    %c0_69 = arith.constant 0 : index
    %c0_70 = arith.constant 0 : index
    %c0_71 = arith.constant 0 : index
    %71 = vector.load %arg4[%c0_69, %c0_70, %c0_71] : memref<9x128x32xf32, #tpu.memory_space<vmem>>, vector<1x128x32xf32>
    %72 = vector.shape_cast %71 : vector<1x128x32xf32> to vector<128x32xf32>
    %cst_72 = arith.constant dense<0.000000e+00> : vector<32x32xf32>
    %73 = tpu.matmul %69, %72, %cst_72 {dimension_numbers = #tpu.dot_dimension_numbers<[1], [0], [0], [1], [0, 0, 1, 1], [], []>} : vector<32x128xf32>, vector<128x32xf32>, vector<32x32xf32> -> vector<32x32xf32>
    %c0_73 = arith.constant 0 : index
    %c0_74 = arith.constant 0 : index
    %c0_75 = arith.constant 0 : index
    %74 = vector.load %arg5[%c0_73, %c0_74, %c0_75] : memref<9x64x32xf32, #tpu.memory_space<vmem>>, vector<1x64x32xf32>
    %75 = vector.shape_cast %74 : vector<1x64x32xf32> to vector<64x32xf32>
    %cst_76 = arith.constant dense<0.000000e+00> : vector<64x32xf32>
    %76 = tpu.matmul %75, %73, %cst_76 {dimension_numbers = #tpu.dot_dimension_numbers<[1], [0], [0], [1], [0, 0, 1, 1], [], []>} : vector<64x32xf32>, vector<32x32xf32>, vector<64x32xf32> -> vector<64x32xf32>
    %77 = arith.addf %70, %76 : vector<64x32xf32>
    %c1_77 = arith.constant 1 : index
    %c0_78 = arith.constant 0 : index
    %c0_79 = arith.constant 0 : index
    %78 = vector.load %arg4[%c1_77, %c0_78, %c0_79] : memref<9x128x32xf32, #tpu.memory_space<vmem>>, vector<1x128x32xf32>
    %79 = vector.shape_cast %78 : vector<1x128x32xf32> to vector<128x32xf32>
    %cst_80 = arith.constant dense<0.000000e+00> : vector<32x32xf32>
    %80 = tpu.matmul %69, %79, %cst_80 {dimension_numbers = #tpu.dot_dimension_numbers<[1], [0], [0], [1], [0, 0, 1, 1], [], []>} : vector<32x128xf32>, vector<128x32xf32>, vector<32x32xf32> -> vector<32x32xf32>
    %c1_81 = arith.constant 1 : index
    %c0_82 = arith.constant 0 : index
    %c0_83 = arith.constant 0 : index
    %81 = vector.load %arg5[%c1_81, %c0_82, %c0_83] : memref<9x64x32xf32, #tpu.memory_space<vmem>>, vector<1x64x32xf32>
    %82 = vector.shape_cast %81 : vector<1x64x32xf32> to vector<64x32xf32>
    %cst_84 = arith.constant dense<0.000000e+00> : vector<64x32xf32>
    %83 = tpu.matmul %82, %80, %cst_84 {dimension_numbers = #tpu.dot_dimension_numbers<[1], [0], [0], [1], [0, 0, 1, 1], [], []>} : vector<64x32xf32>, vector<32x32xf32>, vector<64x32xf32> -> vector<64x32xf32>
    %84 = arith.addf %77, %83 : vector<64x32xf32>
    %c2_85 = arith.constant 2 : index
    %c0_86 = arith.constant 0 : index
    %c0_87 = arith.constant 0 : index
    %85 = vector.load %arg4[%c2_85, %c0_86, %c0_87] : memref<9x128x32xf32, #tpu.memory_space<vmem>>, vector<1x128x32xf32>
    %86 = vector.shape_cast %85 : vector<1x128x32xf32> to vector<128x32xf32>
    %cst_88 = arith.constant dense<0.000000e+00> : vector<32x32xf32>
    %87 = tpu.matmul %69, %86, %cst_88 {dimension_numbers = #tpu.dot_dimension_numbers<[1], [0], [0], [1], [0, 0, 1, 1], [], []>} : vector<32x128xf32>, vector<128x32xf32>, vector<32x32xf32> -> vector<32x32xf32>
    %c2_89 = arith.constant 2 : index
    %c0_90 = arith.constant 0 : index
    %c0_91 = arith.constant 0 : index
    %88 = vector.load %arg5[%c2_89, %c0_90, %c0_91] : memref<9x64x32xf32, #tpu.memory_space<vmem>>, vector<1x64x32xf32>
    %89 = vector.shape_cast %88 : vector<1x64x32xf32> to vector<64x32xf32>
    %cst_92 = arith.constant dense<0.000000e+00> : vector<64x32xf32>
    %90 = tpu.matmul %89, %87, %cst_92 {dimension_numbers = #tpu.dot_dimension_numbers<[1], [0], [0], [1], [0, 0, 1, 1], [], []>} : vector<64x32xf32>, vector<32x32xf32>, vector<64x32xf32> -> vector<64x32xf32>
    %91 = arith.addf %84, %90 : vector<64x32xf32>
    %c3_93 = arith.constant 3 : index
    %c0_94 = arith.constant 0 : index
    %c0_95 = arith.constant 0 : index
    %92 = vector.load %arg4[%c3_93, %c0_94, %c0_95] : memref<9x128x32xf32, #tpu.memory_space<vmem>>, vector<1x128x32xf32>
    %93 = vector.shape_cast %92 : vector<1x128x32xf32> to vector<128x32xf32>
    %cst_96 = arith.constant dense<0.000000e+00> : vector<32x32xf32>
    %94 = tpu.matmul %69, %93, %cst_96 {dimension_numbers = #tpu.dot_dimension_numbers<[1], [0], [0], [1], [0, 0, 1, 1], [], []>} : vector<32x128xf32>, vector<128x32xf32>, vector<32x32xf32> -> vector<32x32xf32>
    %c3_97 = arith.constant 3 : index
    %c0_98 = arith.constant 0 : index
    %c0_99 = arith.constant 0 : index
    %95 = vector.load %arg5[%c3_97, %c0_98, %c0_99] : memref<9x64x32xf32, #tpu.memory_space<vmem>>, vector<1x64x32xf32>
    %96 = vector.shape_cast %95 : vector<1x64x32xf32> to vector<64x32xf32>
    %cst_100 = arith.constant dense<0.000000e+00> : vector<64x32xf32>
    %97 = tpu.matmul %96, %94, %cst_100 {dimension_numbers = #tpu.dot_dimension_numbers<[1], [0], [0], [1], [0, 0, 1, 1], [], []>} : vector<64x32xf32>, vector<32x32xf32>, vector<64x32xf32> -> vector<64x32xf32>
    %98 = arith.addf %91, %97 : vector<64x32xf32>
    %c4_101 = arith.constant 4 : index
    %c0_102 = arith.constant 0 : index
    %c0_103 = arith.constant 0 : index
    %99 = vector.load %arg4[%c4_101, %c0_102, %c0_103] : memref<9x128x32xf32, #tpu.memory_space<vmem>>, vector<1x128x32xf32>
    %100 = vector.shape_cast %99 : vector<1x128x32xf32> to vector<128x32xf32>
    %cst_104 = arith.constant dense<0.000000e+00> : vector<32x32xf32>
    %101 = tpu.matmul %69, %100, %cst_104 {dimension_numbers = #tpu.dot_dimension_numbers<[1], [0], [0], [1], [0, 0, 1, 1], [], []>} : vector<32x128xf32>, vector<128x32xf32>, vector<32x32xf32> -> vector<32x32xf32>
    %c4_105 = arith.constant 4 : index
    %c0_106 = arith.constant 0 : index
    %c0_107 = arith.constant 0 : index
    %102 = vector.load %arg5[%c4_105, %c0_106, %c0_107] : memref<9x64x32xf32, #tpu.memory_space<vmem>>, vector<1x64x32xf32>
    %103 = vector.shape_cast %102 : vector<1x64x32xf32> to vector<64x32xf32>
    %cst_108 = arith.constant dense<0.000000e+00> : vector<64x32xf32>
    %104 = tpu.matmul %103, %101, %cst_108 {dimension_numbers = #tpu.dot_dimension_numbers<[1], [0], [0], [1], [0, 0, 1, 1], [], []>} : vector<64x32xf32>, vector<32x32xf32>, vector<64x32xf32> -> vector<64x32xf32>
    %105 = arith.addf %98, %104 : vector<64x32xf32>
    %c5_109 = arith.constant 5 : index
    %c0_110 = arith.constant 0 : index
    %c0_111 = arith.constant 0 : index
    %106 = vector.load %arg4[%c5_109, %c0_110, %c0_111] : memref<9x128x32xf32, #tpu.memory_space<vmem>>, vector<1x128x32xf32>
    %107 = vector.shape_cast %106 : vector<1x128x32xf32> to vector<128x32xf32>
    %cst_112 = arith.constant dense<0.000000e+00> : vector<32x32xf32>
    %108 = tpu.matmul %69, %107, %cst_112 {dimension_numbers = #tpu.dot_dimension_numbers<[1], [0], [0], [1], [0, 0, 1, 1], [], []>} : vector<32x128xf32>, vector<128x32xf32>, vector<32x32xf32> -> vector<32x32xf32>
    %c5_113 = arith.constant 5 : index
    %c0_114 = arith.constant 0 : index
    %c0_115 = arith.constant 0 : index
    %109 = vector.load %arg5[%c5_113, %c0_114, %c0_115] : memref<9x64x32xf32, #tpu.memory_space<vmem>>, vector<1x64x32xf32>
    %110 = vector.shape_cast %109 : vector<1x64x32xf32> to vector<64x32xf32>
    %cst_116 = arith.constant dense<0.000000e+00> : vector<64x32xf32>
    %111 = tpu.matmul %110, %108, %cst_116 {dimension_numbers = #tpu.dot_dimension_numbers<[1], [0], [0], [1], [0, 0, 1, 1], [], []>} : vector<64x32xf32>, vector<32x32xf32>, vector<64x32xf32> -> vector<64x32xf32>
    %112 = arith.addf %105, %111 : vector<64x32xf32>
    %c6_117 = arith.constant 6 : index
    %c0_118 = arith.constant 0 : index
    %c0_119 = arith.constant 0 : index
    %113 = vector.load %arg4[%c6_117, %c0_118, %c0_119] : memref<9x128x32xf32, #tpu.memory_space<vmem>>, vector<1x128x32xf32>
    %114 = vector.shape_cast %113 : vector<1x128x32xf32> to vector<128x32xf32>
    %cst_120 = arith.constant dense<0.000000e+00> : vector<32x32xf32>
    %115 = tpu.matmul %69, %114, %cst_120 {dimension_numbers = #tpu.dot_dimension_numbers<[1], [0], [0], [1], [0, 0, 1, 1], [], []>} : vector<32x128xf32>, vector<128x32xf32>, vector<32x32xf32> -> vector<32x32xf32>
    %c6_121 = arith.constant 6 : index
    %c0_122 = arith.constant 0 : index
    %c0_123 = arith.constant 0 : index
    %116 = vector.load %arg5[%c6_121, %c0_122, %c0_123] : memref<9x64x32xf32, #tpu.memory_space<vmem>>, vector<1x64x32xf32>
    %117 = vector.shape_cast %116 : vector<1x64x32xf32> to vector<64x32xf32>
    %cst_124 = arith.constant dense<0.000000e+00> : vector<64x32xf32>
    %118 = tpu.matmul %117, %115, %cst_124 {dimension_numbers = #tpu.dot_dimension_numbers<[1], [0], [0], [1], [0, 0, 1, 1], [], []>} : vector<64x32xf32>, vector<32x32xf32>, vector<64x32xf32> -> vector<64x32xf32>
    %119 = arith.addf %112, %118 : vector<64x32xf32>
    %c7_125 = arith.constant 7 : index
    %c0_126 = arith.constant 0 : index
    %c0_127 = arith.constant 0 : index
    %120 = vector.load %arg4[%c7_125, %c0_126, %c0_127] : memref<9x128x32xf32, #tpu.memory_space<vmem>>, vector<1x128x32xf32>
    %121 = vector.shape_cast %120 : vector<1x128x32xf32> to vector<128x32xf32>
    %cst_128 = arith.constant dense<0.000000e+00> : vector<32x32xf32>
    %122 = tpu.matmul %69, %121, %cst_128 {dimension_numbers = #tpu.dot_dimension_numbers<[1], [0], [0], [1], [0, 0, 1, 1], [], []>} : vector<32x128xf32>, vector<128x32xf32>, vector<32x32xf32> -> vector<32x32xf32>
    %c7_129 = arith.constant 7 : index
    %c0_130 = arith.constant 0 : index
    %c0_131 = arith.constant 0 : index
    %123 = vector.load %arg5[%c7_129, %c0_130, %c0_131] : memref<9x64x32xf32, #tpu.memory_space<vmem>>, vector<1x64x32xf32>
    %124 = vector.shape_cast %123 : vector<1x64x32xf32> to vector<64x32xf32>
    %cst_132 = arith.constant dense<0.000000e+00> : vector<64x32xf32>
    %125 = tpu.matmul %124, %122, %cst_132 {dimension_numbers = #tpu.dot_dimension_numbers<[1], [0], [0], [1], [0, 0, 1, 1], [], []>} : vector<64x32xf32>, vector<32x32xf32>, vector<64x32xf32> -> vector<64x32xf32>
    %126 = arith.addf %119, %125 : vector<64x32xf32>
    %c8_133 = arith.constant 8 : index
    %c0_134 = arith.constant 0 : index
    %c0_135 = arith.constant 0 : index
    %127 = vector.load %arg4[%c8_133, %c0_134, %c0_135] : memref<9x128x32xf32, #tpu.memory_space<vmem>>, vector<1x128x32xf32>
    %128 = vector.shape_cast %127 : vector<1x128x32xf32> to vector<128x32xf32>
    %cst_136 = arith.constant dense<0.000000e+00> : vector<32x32xf32>
    %129 = tpu.matmul %69, %128, %cst_136 {dimension_numbers = #tpu.dot_dimension_numbers<[1], [0], [0], [1], [0, 0, 1, 1], [], []>} : vector<32x128xf32>, vector<128x32xf32>, vector<32x32xf32> -> vector<32x32xf32>
    %c8_137 = arith.constant 8 : index
    %c0_138 = arith.constant 0 : index
    %c0_139 = arith.constant 0 : index
    %130 = vector.load %arg5[%c8_137, %c0_138, %c0_139] : memref<9x64x32xf32, #tpu.memory_space<vmem>>, vector<1x64x32xf32>
    %131 = vector.shape_cast %130 : vector<1x64x32xf32> to vector<64x32xf32>
    %cst_140 = arith.constant dense<0.000000e+00> : vector<64x32xf32>
    %132 = tpu.matmul %131, %129, %cst_140 {dimension_numbers = #tpu.dot_dimension_numbers<[1], [0], [0], [1], [0, 0, 1, 1], [], []>} : vector<64x32xf32>, vector<32x32xf32>, vector<64x32xf32> -> vector<64x32xf32>
    %133 = arith.addf %126, %132 : vector<64x32xf32>
    %c0_141 = arith.constant 0 : index
    %c0_142 = arith.constant 0 : index
    %134 = vector.load %arg6[%c0_141, %c0_142] : memref<64x1xf32, #tpu.memory_space<vmem>>, vector<64x1xf32>
    %135 = vector.broadcast %134 : vector<64x1xf32> to vector<64x32xf32>
    %136 = arith.addf %133, %135 : vector<64x32xf32>
    %cst_143 = arith.constant 0.000000e+00 : f32
    %137 = vector.broadcast %cst_143 : f32 to vector<64x32xf32>
    %138 = arith.maximumf %136, %137 : vector<64x32xf32>
    %cst_144 = arith.constant 0.000000e+00 : f32
    %139 = vector.broadcast %cst_144 : f32 to vector<32x128xf32>
    %c0_145 = arith.constant 0 : index
    %c0_146 = arith.constant 0 : index
    %c0_147 = arith.constant 0 : index
    %140 = vector.load %arg7[%c0_145, %c0_146, %c0_147] : memref<9x32x128xf32, #tpu.memory_space<vmem>>, vector<1x32x128xf32>
    %141 = vector.shape_cast %140 : vector<1x32x128xf32> to vector<32x128xf32>
    %cst_148 = arith.constant dense<0.000000e+00> : vector<64x128xf32>
    %142 = tpu.matmul %138, %141, %cst_148 {dimension_numbers = #tpu.dot_dimension_numbers<[1], [0], [0], [1], [0, 0, 1, 1], [], []>} : vector<64x32xf32>, vector<32x128xf32>, vector<64x128xf32> -> vector<64x128xf32>
    %c0_149 = arith.constant 0 : index
    %c0_150 = arith.constant 0 : index
    %c0_151 = arith.constant 0 : index
    %143 = vector.load %arg8[%c0_149, %c0_150, %c0_151] : memref<9x32x64xf32, #tpu.memory_space<vmem>>, vector<1x32x64xf32>
    %144 = vector.shape_cast %143 : vector<1x32x64xf32> to vector<32x64xf32>
    %cst_152 = arith.constant dense<0.000000e+00> : vector<32x128xf32>
    %145 = tpu.matmul %144, %142, %cst_152 {dimension_numbers = #tpu.dot_dimension_numbers<[1], [0], [0], [1], [0, 0, 1, 1], [], []>} : vector<32x64xf32>, vector<64x128xf32>, vector<32x128xf32> -> vector<32x128xf32>
    %146 = arith.addf %139, %145 : vector<32x128xf32>
    %c1_153 = arith.constant 1 : index
    %c0_154 = arith.constant 0 : index
    %c0_155 = arith.constant 0 : index
    %147 = vector.load %arg7[%c1_153, %c0_154, %c0_155] : memref<9x32x128xf32, #tpu.memory_space<vmem>>, vector<1x32x128xf32>
    %148 = vector.shape_cast %147 : vector<1x32x128xf32> to vector<32x128xf32>
    %cst_156 = arith.constant dense<0.000000e+00> : vector<64x128xf32>
    %149 = tpu.matmul %138, %148, %cst_156 {dimension_numbers = #tpu.dot_dimension_numbers<[1], [0], [0], [1], [0, 0, 1, 1], [], []>} : vector<64x32xf32>, vector<32x128xf32>, vector<64x128xf32> -> vector<64x128xf32>
    %c1_157 = arith.constant 1 : index
    %c0_158 = arith.constant 0 : index
    %c0_159 = arith.constant 0 : index
    %150 = vector.load %arg8[%c1_157, %c0_158, %c0_159] : memref<9x32x64xf32, #tpu.memory_space<vmem>>, vector<1x32x64xf32>
    %151 = vector.shape_cast %150 : vector<1x32x64xf32> to vector<32x64xf32>
    %cst_160 = arith.constant dense<0.000000e+00> : vector<32x128xf32>
    %152 = tpu.matmul %151, %149, %cst_160 {dimension_numbers = #tpu.dot_dimension_numbers<[1], [0], [0], [1], [0, 0, 1, 1], [], []>} : vector<32x64xf32>, vector<64x128xf32>, vector<32x128xf32> -> vector<32x128xf32>
    %153 = arith.addf %146, %152 : vector<32x128xf32>
    %c2_161 = arith.constant 2 : index
    %c0_162 = arith.constant 0 : index
    %c0_163 = arith.constant 0 : index
    %154 = vector.load %arg7[%c2_161, %c0_162, %c0_163] : memref<9x32x128xf32, #tpu.memory_space<vmem>>, vector<1x32x128xf32>
    %155 = vector.shape_cast %154 : vector<1x32x128xf32> to vector<32x128xf32>
    %cst_164 = arith.constant dense<0.000000e+00> : vector<64x128xf32>
    %156 = tpu.matmul %138, %155, %cst_164 {dimension_numbers = #tpu.dot_dimension_numbers<[1], [0], [0], [1], [0, 0, 1, 1], [], []>} : vector<64x32xf32>, vector<32x128xf32>, vector<64x128xf32> -> vector<64x128xf32>
    %c2_165 = arith.constant 2 : index
    %c0_166 = arith.constant 0 : index
    %c0_167 = arith.constant 0 : index
    %157 = vector.load %arg8[%c2_165, %c0_166, %c0_167] : memref<9x32x64xf32, #tpu.memory_space<vmem>>, vector<1x32x64xf32>
    %158 = vector.shape_cast %157 : vector<1x32x64xf32> to vector<32x64xf32>
    %cst_168 = arith.constant dense<0.000000e+00> : vector<32x128xf32>
    %159 = tpu.matmul %158, %156, %cst_168 {dimension_numbers = #tpu.dot_dimension_numbers<[1], [0], [0], [1], [0, 0, 1, 1], [], []>} : vector<32x64xf32>, vector<64x128xf32>, vector<32x128xf32> -> vector<32x128xf32>
    %160 = arith.addf %153, %159 : vector<32x128xf32>
    %c3_169 = arith.constant 3 : index
    %c0_170 = arith.constant 0 : index
    %c0_171 = arith.constant 0 : index
    %161 = vector.load %arg7[%c3_169, %c0_170, %c0_171] : memref<9x32x128xf32, #tpu.memory_space<vmem>>, vector<1x32x128xf32>
    %162 = vector.shape_cast %161 : vector<1x32x128xf32> to vector<32x128xf32>
    %cst_172 = arith.constant dense<0.000000e+00> : vector<64x128xf32>
    %163 = tpu.matmul %138, %162, %cst_172 {dimension_numbers = #tpu.dot_dimension_numbers<[1], [0], [0], [1], [0, 0, 1, 1], [], []>} : vector<64x32xf32>, vector<32x128xf32>, vector<64x128xf32> -> vector<64x128xf32>
    %c3_173 = arith.constant 3 : index
    %c0_174 = arith.constant 0 : index
    %c0_175 = arith.constant 0 : index
    %164 = vector.load %arg8[%c3_173, %c0_174, %c0_175] : memref<9x32x64xf32, #tpu.memory_space<vmem>>, vector<1x32x64xf32>
    %165 = vector.shape_cast %164 : vector<1x32x64xf32> to vector<32x64xf32>
    %cst_176 = arith.constant dense<0.000000e+00> : vector<32x128xf32>
    %166 = tpu.matmul %165, %163, %cst_176 {dimension_numbers = #tpu.dot_dimension_numbers<[1], [0], [0], [1], [0, 0, 1, 1], [], []>} : vector<32x64xf32>, vector<64x128xf32>, vector<32x128xf32> -> vector<32x128xf32>
    %167 = arith.addf %160, %166 : vector<32x128xf32>
    %c4_177 = arith.constant 4 : index
    %c0_178 = arith.constant 0 : index
    %c0_179 = arith.constant 0 : index
    %168 = vector.load %arg7[%c4_177, %c0_178, %c0_179] : memref<9x32x128xf32, #tpu.memory_space<vmem>>, vector<1x32x128xf32>
    %169 = vector.shape_cast %168 : vector<1x32x128xf32> to vector<32x128xf32>
    %cst_180 = arith.constant dense<0.000000e+00> : vector<64x128xf32>
    %170 = tpu.matmul %138, %169, %cst_180 {dimension_numbers = #tpu.dot_dimension_numbers<[1], [0], [0], [1], [0, 0, 1, 1], [], []>} : vector<64x32xf32>, vector<32x128xf32>, vector<64x128xf32> -> vector<64x128xf32>
    %c4_181 = arith.constant 4 : index
    %c0_182 = arith.constant 0 : index
    %c0_183 = arith.constant 0 : index
    %171 = vector.load %arg8[%c4_181, %c0_182, %c0_183] : memref<9x32x64xf32, #tpu.memory_space<vmem>>, vector<1x32x64xf32>
    %172 = vector.shape_cast %171 : vector<1x32x64xf32> to vector<32x64xf32>
    %cst_184 = arith.constant dense<0.000000e+00> : vector<32x128xf32>
    %173 = tpu.matmul %172, %170, %cst_184 {dimension_numbers = #tpu.dot_dimension_numbers<[1], [0], [0], [1], [0, 0, 1, 1], [], []>} : vector<32x64xf32>, vector<64x128xf32>, vector<32x128xf32> -> vector<32x128xf32>
    %174 = arith.addf %167, %173 : vector<32x128xf32>
    %c5_185 = arith.constant 5 : index
    %c0_186 = arith.constant 0 : index
    %c0_187 = arith.constant 0 : index
    %175 = vector.load %arg7[%c5_185, %c0_186, %c0_187] : memref<9x32x128xf32, #tpu.memory_space<vmem>>, vector<1x32x128xf32>
    %176 = vector.shape_cast %175 : vector<1x32x128xf32> to vector<32x128xf32>
    %cst_188 = arith.constant dense<0.000000e+00> : vector<64x128xf32>
    %177 = tpu.matmul %138, %176, %cst_188 {dimension_numbers = #tpu.dot_dimension_numbers<[1], [0], [0], [1], [0, 0, 1, 1], [], []>} : vector<64x32xf32>, vector<32x128xf32>, vector<64x128xf32> -> vector<64x128xf32>
    %c5_189 = arith.constant 5 : index
    %c0_190 = arith.constant 0 : index
    %c0_191 = arith.constant 0 : index
    %178 = vector.load %arg8[%c5_189, %c0_190, %c0_191] : memref<9x32x64xf32, #tpu.memory_space<vmem>>, vector<1x32x64xf32>
    %179 = vector.shape_cast %178 : vector<1x32x64xf32> to vector<32x64xf32>
    %cst_192 = arith.constant dense<0.000000e+00> : vector<32x128xf32>
    %180 = tpu.matmul %179, %177, %cst_192 {dimension_numbers = #tpu.dot_dimension_numbers<[1], [0], [0], [1], [0, 0, 1, 1], [], []>} : vector<32x64xf32>, vector<64x128xf32>, vector<32x128xf32> -> vector<32x128xf32>
    %181 = arith.addf %174, %180 : vector<32x128xf32>
    %c6_193 = arith.constant 6 : index
    %c0_194 = arith.constant 0 : index
    %c0_195 = arith.constant 0 : index
    %182 = vector.load %arg7[%c6_193, %c0_194, %c0_195] : memref<9x32x128xf32, #tpu.memory_space<vmem>>, vector<1x32x128xf32>
    %183 = vector.shape_cast %182 : vector<1x32x128xf32> to vector<32x128xf32>
    %cst_196 = arith.constant dense<0.000000e+00> : vector<64x128xf32>
    %184 = tpu.matmul %138, %183, %cst_196 {dimension_numbers = #tpu.dot_dimension_numbers<[1], [0], [0], [1], [0, 0, 1, 1], [], []>} : vector<64x32xf32>, vector<32x128xf32>, vector<64x128xf32> -> vector<64x128xf32>
    %c6_197 = arith.constant 6 : index
    %c0_198 = arith.constant 0 : index
    %c0_199 = arith.constant 0 : index
    %185 = vector.load %arg8[%c6_197, %c0_198, %c0_199] : memref<9x32x64xf32, #tpu.memory_space<vmem>>, vector<1x32x64xf32>
    %186 = vector.shape_cast %185 : vector<1x32x64xf32> to vector<32x64xf32>
    %cst_200 = arith.constant dense<0.000000e+00> : vector<32x128xf32>
    %187 = tpu.matmul %186, %184, %cst_200 {dimension_numbers = #tpu.dot_dimension_numbers<[1], [0], [0], [1], [0, 0, 1, 1], [], []>} : vector<32x64xf32>, vector<64x128xf32>, vector<32x128xf32> -> vector<32x128xf32>
    %188 = arith.addf %181, %187 : vector<32x128xf32>
    %c7_201 = arith.constant 7 : index
    %c0_202 = arith.constant 0 : index
    %c0_203 = arith.constant 0 : index
    %189 = vector.load %arg7[%c7_201, %c0_202, %c0_203] : memref<9x32x128xf32, #tpu.memory_space<vmem>>, vector<1x32x128xf32>
    %190 = vector.shape_cast %189 : vector<1x32x128xf32> to vector<32x128xf32>
    %cst_204 = arith.constant dense<0.000000e+00> : vector<64x128xf32>
    %191 = tpu.matmul %138, %190, %cst_204 {dimension_numbers = #tpu.dot_dimension_numbers<[1], [0], [0], [1], [0, 0, 1, 1], [], []>} : vector<64x32xf32>, vector<32x128xf32>, vector<64x128xf32> -> vector<64x128xf32>
    %c7_205 = arith.constant 7 : index
    %c0_206 = arith.constant 0 : index
    %c0_207 = arith.constant 0 : index
    %192 = vector.load %arg8[%c7_205, %c0_206, %c0_207] : memref<9x32x64xf32, #tpu.memory_space<vmem>>, vector<1x32x64xf32>
    %193 = vector.shape_cast %192 : vector<1x32x64xf32> to vector<32x64xf32>
    %cst_208 = arith.constant dense<0.000000e+00> : vector<32x128xf32>
    %194 = tpu.matmul %193, %191, %cst_208 {dimension_numbers = #tpu.dot_dimension_numbers<[1], [0], [0], [1], [0, 0, 1, 1], [], []>} : vector<32x64xf32>, vector<64x128xf32>, vector<32x128xf32> -> vector<32x128xf32>
    %195 = arith.addf %188, %194 : vector<32x128xf32>
    %c8_209 = arith.constant 8 : index
    %c0_210 = arith.constant 0 : index
    %c0_211 = arith.constant 0 : index
    %196 = vector.load %arg7[%c8_209, %c0_210, %c0_211] : memref<9x32x128xf32, #tpu.memory_space<vmem>>, vector<1x32x128xf32>
    %197 = vector.shape_cast %196 : vector<1x32x128xf32> to vector<32x128xf32>
    %cst_212 = arith.constant dense<0.000000e+00> : vector<64x128xf32>
    %198 = tpu.matmul %138, %197, %cst_212 {dimension_numbers = #tpu.dot_dimension_numbers<[1], [0], [0], [1], [0, 0, 1, 1], [], []>} : vector<64x32xf32>, vector<32x128xf32>, vector<64x128xf32> -> vector<64x128xf32>
    %c8_213 = arith.constant 8 : index
    %c0_214 = arith.constant 0 : index
    %c0_215 = arith.constant 0 : index
    %199 = vector.load %arg8[%c8_213, %c0_214, %c0_215] : memref<9x32x64xf32, #tpu.memory_space<vmem>>, vector<1x32x64xf32>
    %200 = vector.shape_cast %199 : vector<1x32x64xf32> to vector<32x64xf32>
    %cst_216 = arith.constant dense<0.000000e+00> : vector<32x128xf32>
    %201 = tpu.matmul %200, %198, %cst_216 {dimension_numbers = #tpu.dot_dimension_numbers<[1], [0], [0], [1], [0, 0, 1, 1], [], []>} : vector<32x64xf32>, vector<64x128xf32>, vector<32x128xf32> -> vector<32x128xf32>
    %202 = arith.addf %195, %201 : vector<32x128xf32>
    %c0_217 = arith.constant 0 : index
    %c0_218 = arith.constant 0 : index
    %203 = vector.load %arg9[%c0_217, %c0_218] : memref<32x1xf32, #tpu.memory_space<vmem>>, vector<32x1xf32>
    %204 = vector.broadcast %203 : vector<32x1xf32> to vector<32x128xf32>
    %205 = arith.addf %202, %204 : vector<32x128xf32>
    %cst_219 = arith.constant 0.000000e+00 : f32
    %206 = vector.broadcast %cst_219 : f32 to vector<32x128xf32>
    %207 = arith.maximumf %205, %206 : vector<32x128xf32>
    %cst_220 = arith.constant 0.000000e+00 : f32
    %208 = vector.broadcast %cst_220 : f32 to vector<4x512xf32>
    %c0_221 = arith.constant 0 : index
    %c0_222 = arith.constant 0 : index
    %c0_223 = arith.constant 0 : index
    %209 = vector.load %arg10[%c0_221, %c0_222, %c0_223] : memref<9x128x512xf32, #tpu.memory_space<vmem>>, vector<1x128x512xf32>
    %210 = vector.shape_cast %209 : vector<1x128x512xf32> to vector<128x512xf32>
    %cst_224 = arith.constant dense<0.000000e+00> : vector<32x512xf32>
    %211 = tpu.matmul %207, %210, %cst_224 {dimension_numbers = #tpu.dot_dimension_numbers<[1], [0], [0], [1], [0, 0, 1, 1], [], []>} : vector<32x128xf32>, vector<128x512xf32>, vector<32x512xf32> -> vector<32x512xf32>
    %c0_225 = arith.constant 0 : index
    %c0_226 = arith.constant 0 : index
    %c0_227 = arith.constant 0 : index
    %212 = vector.load %arg11[%c0_225, %c0_226, %c0_227] : memref<9x4x32xf32, #tpu.memory_space<vmem>>, vector<1x4x32xf32>
    %213 = vector.shape_cast %212 : vector<1x4x32xf32> to vector<4x32xf32>
    %cst_228 = arith.constant dense<0.000000e+00> : vector<4x512xf32>
    %214 = tpu.matmul %213, %211, %cst_228 {dimension_numbers = #tpu.dot_dimension_numbers<[1], [0], [0], [1], [0, 0, 1, 1], [], []>} : vector<4x32xf32>, vector<32x512xf32>, vector<4x512xf32> -> vector<4x512xf32>
    %215 = arith.addf %208, %214 : vector<4x512xf32>
    %c1_229 = arith.constant 1 : index
    %c0_230 = arith.constant 0 : index
    %c0_231 = arith.constant 0 : index
    %216 = vector.load %arg10[%c1_229, %c0_230, %c0_231] : memref<9x128x512xf32, #tpu.memory_space<vmem>>, vector<1x128x512xf32>
    %217 = vector.shape_cast %216 : vector<1x128x512xf32> to vector<128x512xf32>
    %cst_232 = arith.constant dense<0.000000e+00> : vector<32x512xf32>
    %218 = tpu.matmul %207, %217, %cst_232 {dimension_numbers = #tpu.dot_dimension_numbers<[1], [0], [0], [1], [0, 0, 1, 1], [], []>} : vector<32x128xf32>, vector<128x512xf32>, vector<32x512xf32> -> vector<32x512xf32>
    %c1_233 = arith.constant 1 : index
    %c0_234 = arith.constant 0 : index
    %c0_235 = arith.constant 0 : index
    %219 = vector.load %arg11[%c1_233, %c0_234, %c0_235] : memref<9x4x32xf32, #tpu.memory_space<vmem>>, vector<1x4x32xf32>
    %220 = vector.shape_cast %219 : vector<1x4x32xf32> to vector<4x32xf32>
    %cst_236 = arith.constant dense<0.000000e+00> : vector<4x512xf32>
    %221 = tpu.matmul %220, %218, %cst_236 {dimension_numbers = #tpu.dot_dimension_numbers<[1], [0], [0], [1], [0, 0, 1, 1], [], []>} : vector<4x32xf32>, vector<32x512xf32>, vector<4x512xf32> -> vector<4x512xf32>
    %222 = arith.addf %215, %221 : vector<4x512xf32>
    %c2_237 = arith.constant 2 : index
    %c0_238 = arith.constant 0 : index
    %c0_239 = arith.constant 0 : index
    %223 = vector.load %arg10[%c2_237, %c0_238, %c0_239] : memref<9x128x512xf32, #tpu.memory_space<vmem>>, vector<1x128x512xf32>
    %224 = vector.shape_cast %223 : vector<1x128x512xf32> to vector<128x512xf32>
    %cst_240 = arith.constant dense<0.000000e+00> : vector<32x512xf32>
    %225 = tpu.matmul %207, %224, %cst_240 {dimension_numbers = #tpu.dot_dimension_numbers<[1], [0], [0], [1], [0, 0, 1, 1], [], []>} : vector<32x128xf32>, vector<128x512xf32>, vector<32x512xf32> -> vector<32x512xf32>
    %c2_241 = arith.constant 2 : index
    %c0_242 = arith.constant 0 : index
    %c0_243 = arith.constant 0 : index
    %226 = vector.load %arg11[%c2_241, %c0_242, %c0_243] : memref<9x4x32xf32, #tpu.memory_space<vmem>>, vector<1x4x32xf32>
    %227 = vector.shape_cast %226 : vector<1x4x32xf32> to vector<4x32xf32>
    %cst_244 = arith.constant dense<0.000000e+00> : vector<4x512xf32>
    %228 = tpu.matmul %227, %225, %cst_244 {dimension_numbers = #tpu.dot_dimension_numbers<[1], [0], [0], [1], [0, 0, 1, 1], [], []>} : vector<4x32xf32>, vector<32x512xf32>, vector<4x512xf32> -> vector<4x512xf32>
    %229 = arith.addf %222, %228 : vector<4x512xf32>
    %c3_245 = arith.constant 3 : index
    %c0_246 = arith.constant 0 : index
    %c0_247 = arith.constant 0 : index
    %230 = vector.load %arg10[%c3_245, %c0_246, %c0_247] : memref<9x128x512xf32, #tpu.memory_space<vmem>>, vector<1x128x512xf32>
    %231 = vector.shape_cast %230 : vector<1x128x512xf32> to vector<128x512xf32>
    %cst_248 = arith.constant dense<0.000000e+00> : vector<32x512xf32>
    %232 = tpu.matmul %207, %231, %cst_248 {dimension_numbers = #tpu.dot_dimension_numbers<[1], [0], [0], [1], [0, 0, 1, 1], [], []>} : vector<32x128xf32>, vector<128x512xf32>, vector<32x512xf32> -> vector<32x512xf32>
    %c3_249 = arith.constant 3 : index
    %c0_250 = arith.constant 0 : index
    %c0_251 = arith.constant 0 : index
    %233 = vector.load %arg11[%c3_249, %c0_250, %c0_251] : memref<9x4x32xf32, #tpu.memory_space<vmem>>, vector<1x4x32xf32>
    %234 = vector.shape_cast %233 : vector<1x4x32xf32> to vector<4x32xf32>
    %cst_252 = arith.constant dense<0.000000e+00> : vector<4x512xf32>
    %235 = tpu.matmul %234, %232, %cst_252 {dimension_numbers = #tpu.dot_dimension_numbers<[1], [0], [0], [1], [0, 0, 1, 1], [], []>} : vector<4x32xf32>, vector<32x512xf32>, vector<4x512xf32> -> vector<4x512xf32>
    %236 = arith.addf %229, %235 : vector<4x512xf32>
    %c4_253 = arith.constant 4 : index
    %c0_254 = arith.constant 0 : index
    %c0_255 = arith.constant 0 : index
    %237 = vector.load %arg10[%c4_253, %c0_254, %c0_255] : memref<9x128x512xf32, #tpu.memory_space<vmem>>, vector<1x128x512xf32>
    %238 = vector.shape_cast %237 : vector<1x128x512xf32> to vector<128x512xf32>
    %cst_256 = arith.constant dense<0.000000e+00> : vector<32x512xf32>
    %239 = tpu.matmul %207, %238, %cst_256 {dimension_numbers = #tpu.dot_dimension_numbers<[1], [0], [0], [1], [0, 0, 1, 1], [], []>} : vector<32x128xf32>, vector<128x512xf32>, vector<32x512xf32> -> vector<32x512xf32>
    %c4_257 = arith.constant 4 : index
    %c0_258 = arith.constant 0 : index
    %c0_259 = arith.constant 0 : index
    %240 = vector.load %arg11[%c4_257, %c0_258, %c0_259] : memref<9x4x32xf32, #tpu.memory_space<vmem>>, vector<1x4x32xf32>
    %241 = vector.shape_cast %240 : vector<1x4x32xf32> to vector<4x32xf32>
    %cst_260 = arith.constant dense<0.000000e+00> : vector<4x512xf32>
    %242 = tpu.matmul %241, %239, %cst_260 {dimension_numbers = #tpu.dot_dimension_numbers<[1], [0], [0], [1], [0, 0, 1, 1], [], []>} : vector<4x32xf32>, vector<32x512xf32>, vector<4x512xf32> -> vector<4x512xf32>
    %243 = arith.addf %236, %242 : vector<4x512xf32>
    %c5_261 = arith.constant 5 : index
    %c0_262 = arith.constant 0 : index
    %c0_263 = arith.constant 0 : index
    %244 = vector.load %arg10[%c5_261, %c0_262, %c0_263] : memref<9x128x512xf32, #tpu.memory_space<vmem>>, vector<1x128x512xf32>
    %245 = vector.shape_cast %244 : vector<1x128x512xf32> to vector<128x512xf32>
    %cst_264 = arith.constant dense<0.000000e+00> : vector<32x512xf32>
    %246 = tpu.matmul %207, %245, %cst_264 {dimension_numbers = #tpu.dot_dimension_numbers<[1], [0], [0], [1], [0, 0, 1, 1], [], []>} : vector<32x128xf32>, vector<128x512xf32>, vector<32x512xf32> -> vector<32x512xf32>
    %c5_265 = arith.constant 5 : index
    %c0_266 = arith.constant 0 : index
    %c0_267 = arith.constant 0 : index
    %247 = vector.load %arg11[%c5_265, %c0_266, %c0_267] : memref<9x4x32xf32, #tpu.memory_space<vmem>>, vector<1x4x32xf32>
    %248 = vector.shape_cast %247 : vector<1x4x32xf32> to vector<4x32xf32>
    %cst_268 = arith.constant dense<0.000000e+00> : vector<4x512xf32>
    %249 = tpu.matmul %248, %246, %cst_268 {dimension_numbers = #tpu.dot_dimension_numbers<[1], [0], [0], [1], [0, 0, 1, 1], [], []>} : vector<4x32xf32>, vector<32x512xf32>, vector<4x512xf32> -> vector<4x512xf32>
    %250 = arith.addf %243, %249 : vector<4x512xf32>
    %c6_269 = arith.constant 6 : index
    %c0_270 = arith.constant 0 : index
    %c0_271 = arith.constant 0 : index
    %251 = vector.load %arg10[%c6_269, %c0_270, %c0_271] : memref<9x128x512xf32, #tpu.memory_space<vmem>>, vector<1x128x512xf32>
    %252 = vector.shape_cast %251 : vector<1x128x512xf32> to vector<128x512xf32>
    %cst_272 = arith.constant dense<0.000000e+00> : vector<32x512xf32>
    %253 = tpu.matmul %207, %252, %cst_272 {dimension_numbers = #tpu.dot_dimension_numbers<[1], [0], [0], [1], [0, 0, 1, 1], [], []>} : vector<32x128xf32>, vector<128x512xf32>, vector<32x512xf32> -> vector<32x512xf32>
    %c6_273 = arith.constant 6 : index
    %c0_274 = arith.constant 0 : index
    %c0_275 = arith.constant 0 : index
    %254 = vector.load %arg11[%c6_273, %c0_274, %c0_275] : memref<9x4x32xf32, #tpu.memory_space<vmem>>, vector<1x4x32xf32>
    %255 = vector.shape_cast %254 : vector<1x4x32xf32> to vector<4x32xf32>
    %cst_276 = arith.constant dense<0.000000e+00> : vector<4x512xf32>
    %256 = tpu.matmul %255, %253, %cst_276 {dimension_numbers = #tpu.dot_dimension_numbers<[1], [0], [0], [1], [0, 0, 1, 1], [], []>} : vector<4x32xf32>, vector<32x512xf32>, vector<4x512xf32> -> vector<4x512xf32>
    %257 = arith.addf %250, %256 : vector<4x512xf32>
    %c7_277 = arith.constant 7 : index
    %c0_278 = arith.constant 0 : index
    %c0_279 = arith.constant 0 : index
    %258 = vector.load %arg10[%c7_277, %c0_278, %c0_279] : memref<9x128x512xf32, #tpu.memory_space<vmem>>, vector<1x128x512xf32>
    %259 = vector.shape_cast %258 : vector<1x128x512xf32> to vector<128x512xf32>
    %cst_280 = arith.constant dense<0.000000e+00> : vector<32x512xf32>
    %260 = tpu.matmul %207, %259, %cst_280 {dimension_numbers = #tpu.dot_dimension_numbers<[1], [0], [0], [1], [0, 0, 1, 1], [], []>} : vector<32x128xf32>, vector<128x512xf32>, vector<32x512xf32> -> vector<32x512xf32>
    %c7_281 = arith.constant 7 : index
    %c0_282 = arith.constant 0 : index
    %c0_283 = arith.constant 0 : index
    %261 = vector.load %arg11[%c7_281, %c0_282, %c0_283] : memref<9x4x32xf32, #tpu.memory_space<vmem>>, vector<1x4x32xf32>
    %262 = vector.shape_cast %261 : vector<1x4x32xf32> to vector<4x32xf32>
    %cst_284 = arith.constant dense<0.000000e+00> : vector<4x512xf32>
    %263 = tpu.matmul %262, %260, %cst_284 {dimension_numbers = #tpu.dot_dimension_numbers<[1], [0], [0], [1], [0, 0, 1, 1], [], []>} : vector<4x32xf32>, vector<32x512xf32>, vector<4x512xf32> -> vector<4x512xf32>
    %264 = arith.addf %257, %263 : vector<4x512xf32>
    %c8_285 = arith.constant 8 : index
    %c0_286 = arith.constant 0 : index
    %c0_287 = arith.constant 0 : index
    %265 = vector.load %arg10[%c8_285, %c0_286, %c0_287] : memref<9x128x512xf32, #tpu.memory_space<vmem>>, vector<1x128x512xf32>
    %266 = vector.shape_cast %265 : vector<1x128x512xf32> to vector<128x512xf32>
    %cst_288 = arith.constant dense<0.000000e+00> : vector<32x512xf32>
    %267 = tpu.matmul %207, %266, %cst_288 {dimension_numbers = #tpu.dot_dimension_numbers<[1], [0], [0], [1], [0, 0, 1, 1], [], []>} : vector<32x128xf32>, vector<128x512xf32>, vector<32x512xf32> -> vector<32x512xf32>
    %c8_289 = arith.constant 8 : index
    %c0_290 = arith.constant 0 : index
    %c0_291 = arith.constant 0 : index
    %268 = vector.load %arg11[%c8_289, %c0_290, %c0_291] : memref<9x4x32xf32, #tpu.memory_space<vmem>>, vector<1x4x32xf32>
    %269 = vector.shape_cast %268 : vector<1x4x32xf32> to vector<4x32xf32>
    %cst_292 = arith.constant dense<0.000000e+00> : vector<4x512xf32>
    %270 = tpu.matmul %269, %267, %cst_292 {dimension_numbers = #tpu.dot_dimension_numbers<[1], [0], [0], [1], [0, 0, 1, 1], [], []>} : vector<4x32xf32>, vector<32x512xf32>, vector<4x512xf32> -> vector<4x512xf32>
    %271 = arith.addf %264, %270 : vector<4x512xf32>
    %c0_293 = arith.constant 0 : index
    %c0_294 = arith.constant 0 : index
    %272 = vector.load %arg12[%c0_293, %c0_294] : memref<4x1xf32, #tpu.memory_space<vmem>>, vector<4x1xf32>
    %273 = vector.broadcast %272 : vector<4x1xf32> to vector<4x512xf32>
    %274 = arith.addf %271, %273 : vector<4x512xf32>
    %275 = arith.negf %274 : vector<4x512xf32>
    %276 = math.exp %275 : vector<4x512xf32>
    %cst_295 = arith.constant 1.000000e+00 : f32
    %277 = vector.broadcast %cst_295 : f32 to vector<4x512xf32>
    %278 = arith.addf %277, %276 : vector<4x512xf32>
    %279 = arith.divf %277, %278 : vector<4x512xf32>
    %c0_296 = arith.constant 0 : index
    %c0_297 = arith.constant 0 : index
    %280 = vector.load %arg13[%c0_296, %c0_297] : memref<4x512xf32, #tpu.memory_space<vmem>>, vector<4x512xf32>
    tpu.vector_store %arg13[%c0_296, %c0_297], %279 {strides = array<i32>} : memref<4x512xf32, #tpu.memory_space<vmem>>, vector<4x512xf32>,
    return
  }
}

</mosaic_0001>

<bundles_post_ra>
// kernel: autoencoder_forward.1
= control target key start
LH: loop header
LB: loop body
LE: loop exit
PB: predicated region body
PF: predicated region fallthrough
CT: control target
= control target key end

     0   :  { %18 = vsyncpa [#allocation3], 0  ;;  %s17221_s0 = inlined_call_operand.vmem [shape: f32[4,512], index: 0, kind: input, shape index: {}]   ;;  %s17222_s1 = inlined_call_operand.hbm [shape: f32[9,512,128], index: 1, kind: input, shape index: {}]   ;;  %s17223_s2 = inlined_call_operand.vmem [shape: f32[9,32,4], index: 2, kind: input, shape index: {}]   ;;  %s17224_s3 = inlined_call_operand.vmem [shape: f32[32,1], index: 3, kind: input, shape index: {}]   ;;  %s17225_s4 = inlined_call_operand.hbm [shape: f32[9,128,32], index: 4, kind: input, shape index: {}]   ;;  %s17226_s5 = inlined_call_operand.vmem [shape: f32[9,64,32], index: 5, kind: input, shape index: {}]   ;;  %s17227_s6 = inlined_call_operand.vmem [shape: f32[64,1], index: 6, kind: input, shape index: {}]   ;;  %s17228_s7 = inlined_call_operand.hbm [shape: f32[9,32,128], index: 7, kind: input, shape index: {}]   ;;  %s17229_s8 = inlined_call_operand.hbm [shape: f32[9,32,64], index: 8, kind: input, shape index: {}]   ;;  %s17230_s9 = inlined_call_operand.vmem [shape: f32[32,1], index: 9, kind: input, shape index: {}]   ;;  %s17231_s10 = inlined_call_operand.hbm [shape: f32[9,128,512], index: 10, kind: input, shape index: {}]   ;;  %s17232_s11 = inlined_call_operand.hbm [shape: f32[9,4,32], index: 11, kind: input, shape index: {}]   ;;  %s17233_s12 = inlined_call_operand.vmem [shape: f32[4,1], index: 12, kind: input, shape index: {}]   ;;  %s17234_s13 = inlined_call_operand.vmem [shape: f32[4,512], index: 13, kind: output, shape index: {}]  }
   0x1   :  { %19 = vsyncpa [#allocation5], 0 }
   0x2   :  { %20 = vsyncpa [#allocation8], 0 }
   0x3   :  { %21 = vsyncpa [#allocation11], 0  ;;  %s15545_s25 = smov [#allocation4]   ;;  %s15546_s27 = smov [#allocation7]  }
   0x4   :  { %s45_s26 = sshll.u32 %s15545_s25, 4  ;;  %s73_s28 = sshll.u32 %s15546_s27, 4  ;;  %s46_s26 = int_to_ptr.vmem [resolvable:$true] %s45_s26  ;;  %s15629_s28 = int_to_ptr.vmem [resolvable:$true] %s73_s28 }
   0x5   :  { %s15405_s14 = scalar_lea.hbm %s17225_s4, 18432 }
   0x6   :  { %p15406_p0 = scmp.ne.s32.totalorder %s17225_s4, %s15405_s14  ;;  %p15409_p1 = scmp.lt.u32.totalorder %s15405_s14, %s17225_s4 }
   0x8   :  { %p15411_p2 = pnand %p15409_p1, %p15406_p0 }
   0xa   :  { %15414 = shalt.err (!%p15411_p2)
}
   0xb   :  { %s15415_s19 = scalar_lea.vmem %s46_s26, 18432  ;;  %p15420_p4 = scmp.lt.s32.totalorder %s46_s26, %s46_s26 }
   0xc   :  { %p15416_p3 = scmp.ne.s32.totalorder %s46_s26, %s15415_s19  ;;  %p15421_p5 = scmp.lt.s32.totalorder %s15415_s19, %s15415_s19 }
   0xe   :  { %p15422_p6 = por %p15421_p5, %p15420_p4 }
  0x10   :  { %p15423_p7 = pnand %p15422_p6, %p15416_p3 }
  0x12   :  { %15426 = shalt.err (!%p15423_p7)
}
  0x13   :  { %s15547_s20 = smov 128   ;;  %s15548_s21 = smov 8  }
  0x14   :  { %51 = dma.hbm_to_vmem [thread:$0]  %s17225_s4, 18432, %s46_s26, [#allocation5], %s15547_s20, %s15547_s20, %s15548_s21  }
  0x15   :  { %s15427_s27 = scalar_lea.hbm %s17229_s8, 4608 }
  0x16   :  { %p15428_p8 = scmp.ne.s32.totalorder %s17229_s8, %s15427_s27  ;;  %p15431_p9 = scmp.lt.u32.totalorder %s15427_s27, %s17229_s8 }
  0x18   :  { %p15433_p10 = pnand %p15431_p9, %p15428_p8 }
  0x1a   :  { %15436 = shalt.err (!%p15433_p10)
}
  0x1b   :  { %s15437_s16 = scalar_lea.vmem %s15629_s28, 4608  ;;  %p15442_p12 = scmp.lt.s32.totalorder %s15629_s28, %s15629_s28 }
  0x1c   :  { %p15438_p11 = scmp.ne.s32.totalorder %s15629_s28, %s15437_s16  ;;  %p15443_p13 = scmp.lt.s32.totalorder %s15437_s16, %s15437_s16 }
  0x1e   :  { %p15444_p0 = por %p15443_p13, %p15442_p12 }
  0x20   :  { %p15445_p1 = pnand %p15444_p0, %p15438_p11 }
  0x22   :  { %15448 = shalt.err (!%p15445_p1)
}
  0x23   :  { %79 = dma.hbm_to_vmem [thread:$0]  %s17229_s8, 4608, %s15629_s28, [#allocation8], %s15547_s20, %s15547_s20, %s15548_s21  }
  0x24   :  { %s15549_s17 = smov [#allocation2]   ;;  %s15550_s19 = smov [#allocation6]  }
  0x25   :  { %s29_s18 = sshll.u32 %s15549_s17, 4  ;;  %s61_s22 = sshll.u32 %s15550_s19, 4  ;;  %s30_s18 = int_to_ptr.vmem [resolvable:$true] %s29_s18  ;;  %s15666_s22 = int_to_ptr.vmem [resolvable:$true] %s61_s22 }
  0x26   :  { %s15449_s25 = scalar_lea.hbm %s17222_s1, 73728 }
  0x27   :  { %p15450_p2 = scmp.ne.s32.totalorder %s17222_s1, %s15449_s25  ;;  %p15453_p3 = scmp.lt.u32.totalorder %s15449_s25, %s17222_s1 }
  0x29   :  { %p15455_p4 = pnand %p15453_p3, %p15450_p2 }
  0x2b   :  { %15458 = shalt.err (!%p15455_p4)
}
  0x2c   :  { %s15459_s8 = scalar_lea.vmem %s30_s18, 73728  ;;  %p15464_p6 = scmp.lt.s32.totalorder %s30_s18, %s30_s18 }
  0x2d   :  { %p15460_p5 = scmp.ne.s32.totalorder %s30_s18, %s15459_s8  ;;  %p15465_p7 = scmp.lt.s32.totalorder %s15459_s8, %s15459_s8 }
  0x2f   :  { %p15466_p8 = por %p15465_p7, %p15464_p6 }
  0x31   :  { %p15467_p9 = pnand %p15466_p8, %p15460_p5 }
  0x33   :  { %15470 = shalt.err (!%p15467_p9)
}
  0x34   :  { %35 = dma.hbm_to_vmem [thread:$0]  %s17222_s1, 73728, %s30_s18, [#allocation3], %s15547_s20, %s15547_s20, %s15548_s21  }
  0x35   :  { %s15471_s26 = scalar_lea.hbm %s17228_s7, 4608 }
  0x36   :  { %p15472_p10 = scmp.ne.s32.totalorder %s17228_s7, %s15471_s26  ;;  %p15475_p11 = scmp.lt.u32.totalorder %s15471_s26, %s17228_s7 }
  0x38   :  { %p15477_p12 = pnand %p15475_p11, %p15472_p10 }
  0x3a   :  { %15480 = shalt.err (!%p15477_p12)
}
  0x3b   :  { %s15481_s25 = scalar_lea.vmem %s15666_s22, 4608  ;;  %p15486_p0 = scmp.lt.s32.totalorder %s15666_s22, %s15666_s22 }
  0x3c   :  { %p15482_p13 = scmp.ne.s32.totalorder %s15666_s22, %s15481_s25  ;;  %p15487_p1 = scmp.lt.s32.totalorder %s15481_s25, %s15481_s25 }
  0x3e   :  { %p15488_p2 = por %p15487_p1, %p15486_p0 }
  0x40   :  { %p15489_p3 = pnand %p15488_p2, %p15482_p13 }
  0x42   :  { %15492 = shalt.err (!%p15489_p3)
}
  0x43   :  { %67 = dma.hbm_to_vmem [thread:$0]  %s17228_s7, 4608, %s15666_s22, [#allocation5], %s15547_s20, %s15547_s20, %s15548_s21  }
  0x44   :  { %s15551_s27 = smov [#allocation9]   ;;  %s15493_s8 = scalar_lea.hbm %s17231_s10, 73728 }
  0x45   :  { %s87_s29 = sshll.u32 %s15551_s27, 4  ;;  %p15494_p4 = scmp.ne.s32.totalorder %s17231_s10, %s15493_s8  ;;  %s88_s29 = int_to_ptr.vmem [resolvable:$true] %s87_s29 }
  0x46   :  { %p15497_p5 = scmp.lt.u32.totalorder %s15493_s8, %s17231_s10 }
  0x48   :  { %p15499_p6 = pnand %p15497_p5, %p15494_p4 }
  0x4a   :  { %15502 = shalt.err (!%p15499_p6)
}
  0x4b   :  { %s15503_s26 = scalar_lea.vmem %s88_s29, 73728  ;;  %p15508_p8 = scmp.lt.s32.totalorder %s88_s29, %s88_s29 }
  0x4c   :  { %p15504_p7 = scmp.ne.s32.totalorder %s88_s29, %s15503_s26  ;;  %p15509_p9 = scmp.lt.s32.totalorder %s15503_s26, %s15503_s26 }
  0x4e   :  { %p15510_p10 = por %p15509_p9, %p15508_p8 }
  0x50   :  { %p15511_p11 = pnand %p15510_p10, %p15504_p7 }
  0x52   :  { %15514 = shalt.err (!%p15511_p11)
}
  0x53   :  { %s15552_s7 = smov 512   ;;  %s15553_s20 = smov 32  }
  0x54   :  { %93 = dma.hbm_to_vmem [thread:$0]  %s17231_s10, 73728, %s88_s29, [#allocation8], %s15552_s7, %s15552_s7, %s15553_s20  }
  0x55   :  { %s15554_s17 = smov [#allocation10]   ;;  %s15515_s25 = scalar_lea.hbm %s17232_s11, 576 }
  0x56   :  { %s99_s19 = sshll.u32 %s15554_s17, 4  ;;  %p15516_p12 = scmp.ne.s32.totalorder %s17232_s11, %s15515_s25  ;;  %s100_s19 = int_to_ptr.vmem [resolvable:$true] %s99_s19 }
  0x57   :  { %p15519_p13 = scmp.lt.u32.totalorder %s15515_s25, %s17232_s11 }
  0x59   :  { %p15521_p0 = pnand %p15519_p13, %p15516_p12 }
  0x5b   :  { %15524 = shalt.err (!%p15521_p0)
}
  0x5c   :  { %s15525_s14 = scalar_lea.vmem %s100_s19, 576  ;;  %p15530_p2 = scmp.lt.s32.totalorder %s100_s19, %s100_s19 }
  0x5d   :  { %p15526_p1 = scmp.ne.s32.totalorder %s100_s19, %s15525_s14  ;;  %p15531_p3 = scmp.lt.s32.totalorder %s15525_s14, %s15525_s14 }
  0x5f   :  { %p15532_p4 = por %p15531_p3, %p15530_p2 }
  0x61   :  { %p15533_p5 = pnand %p15532_p4, %p15526_p1 }
  0x63   :  { %15536 = shalt.err (!%p15533_p5)
}
  0x64   :  { %s15555_s10 = smov 64   ;;  %s15556_s29 = smov 4  }
  0x65   :  { %105 = dma.hbm_to_vmem [thread:$0]  %s17232_s11, 576, %s100_s19, [#allocation11], %s15555_s10, %s15555_s10, %s15556_s29  }
  0x66   :  { %15537 = dma.done.wait [#allocation3], 73728  }
  0x67   :  { %15538 = vsyncadd [#allocation3], 4294893568 }
  0x68   :  { %15539 = dma.done.wait [#allocation5], 23040  }
  0x69   :  { %15540 = vsyncadd [#allocation5], 4294944256 }
  0x6a   :  { %15541 = dma.done.wait [#allocation8], 78336  }
  0x6b   :  { %15542 = vsyncadd [#allocation8], 4294888960 }
  0x6c   :  { %15543 = dma.done.wait [#allocation11], 576  }
  0x6d   :  { %15544 = vsyncadd [#allocation11], 4294966720  ;;  %v144_v0 = vld [vmem:[#allocation2 + $0x80] sm:$0xff]  ;;  %v145_v1 = vld [vmem:[#allocation2 + $0x88] sm:$0xff]  ;;  %vm552_vm0 = vcmask 31744   ;;  %vm565_vm1 = vcmask 1043456  }
  0x6e   :  { %v176_v2 = vld [vmem:[#allocation2 + $0x180] sm:$0xff]  ;;  %v13336_v3 = vpack.c.bf16 %v145_v1, %v144_v0  ;;  %v177_v4 = vld [vmem:[#allocation2 + $0x188] sm:$0xff]  ;;  %v146_v11 = vld [vmem:[#allocation2 + $0x90] sm:$0xff]  ;;  %vm3204_vm2 = vcmask 261120   ;;  %vm5515_vm3 = vcmask 523264  }
  0x6f   :  { %v128_v5 = vld [vmem:[#allocation2] sm:$0xff]  ;;  %v129_v6 = vld [vmem:[#allocation2 + $0x8] sm:$0xff]  ;;  %v13368_v7 = vpack.c.bf16 %v177_v4, %v176_v2  ;;  %v147_v13 = vld [vmem:[#allocation2 + $0x98] sm:$0xff] }
  0x70   :  { %v13338_v8 = vpack.c.bf16 %v129_v6, %v128_v5  ;;  %v160_v9 = vld [vmem:[#allocation2 + $0x100] sm:$0xff]  ;;  %v161_v10 = vld [vmem:[#allocation2 + $0x108] sm:$0xff]  ;;  %13337 = vmatprep.subr.bf16.mxu0 %v13336_v3  ;;  %v178_v14 = vld [vmem:[#allocation2 + $0x190] sm:$0xff]  ;;  %v13340_v16 = vpack.c.bf16 %v147_v13, %v146_v11 }
  0x71   :  { %v13370_v12 = vpack.c.bf16 %v161_v10, %v160_v9  ;;  %v179_v15 = vld [vmem:[#allocation2 + $0x198] sm:$0xff]  ;;  %13369 = vmatprep.subr.bf16.mxu1 %v13368_v7  ;;  %v130_v18 = vld [vmem:[#allocation2 + $0x10] sm:$0xff]  ;;  %v148_v23 = vld [vmem:[#allocation2 + $0xa0] sm:$0xff] }
  0x72   :  { %13339 = vmatpush3.bf16.msra.mxu0 %v13338_v8  ;;  %v13372_v17 = vpack.c.bf16 %v179_v15, %v178_v14  ;;  %v131_v19 = vld [vmem:[#allocation2 + $0x18] sm:$0xff]  ;;  %v162_v20 = vld [vmem:[#allocation2 + $0x110] sm:$0xff]  ;;  %v149_v24 = vld [vmem:[#allocation2 + $0xa8] sm:$0xff] }
  0x73   :  { %13371 = vmatpush3.bf16.msra.mxu1 %v13370_v12  ;;  %v13342_v21 = vpack.c.bf16 %v131_v19, %v130_v18  ;;  %v163_v22 = vld [vmem:[#allocation2 + $0x118] sm:$0xff]  ;;  %13341 = vmatprep.subr.bf16.mxu0 %v13340_v16  ;;  %v13344_v26 = vpack.c.bf16 %v149_v24, %v148_v23  ;;  %v180_v27 = vld [vmem:[#allocation2 + $0x1a0] sm:$0xff]  ;;  %v181_v28 = vld [vmem:[#allocation2 + $0x1a8] sm:$0xff] }
  0x74   :  { %13373 = vmatprep.subr.bf16.mxu1 %v13372_v17  ;;  %v13374_v25 = vpack.c.bf16 %v163_v22, %v162_v20  ;;  %v132_v29 = vld [vmem:[#allocation2 + $0x20] sm:$0xff]  ;;  %v13376_v30 = vpack.c.bf16 %v181_v28, %v180_v27  ;;  %v133_v31 = vld [vmem:[#allocation2 + $0x28] sm:$0xff]  ;;  %v150_v35 = vld [vmem:[#allocation2 + $0xb0] sm:$0xff] }
  0x75   :  { %v164_v32 = vld [vmem:[#allocation2 + $0x120] sm:$0xff]  ;;  %v165_v33 = vld [vmem:[#allocation2 + $0x128] sm:$0xff]  ;;  %v13346_v34 = vpack.c.bf16 %v133_v31, %v132_v29  ;;  %v151_v36 = vld [vmem:[#allocation2 + $0xb8] sm:$0xff] }
  0x76   :  { %13343 = vmatpush3.bf16.msra.mxu0 %v13342_v21  ;;  %v182_v37 = vld [vmem:[#allocation2 + $0x1b0] sm:$0xff]  ;;  %v13378_v38 = vpack.c.bf16 %v165_v33, %v164_v32  ;;  %v13348_v39 = vpack.c.bf16 %v151_v36, %v150_v35  ;;  %v183_v40 = vld [vmem:[#allocation2 + $0x1b8] sm:$0xff]  ;;  %v152_v46 = vld [vmem:[#allocation2 + $0xc0] sm:$0xff] }
  0x77   :  { %13375 = vmatpush3.bf16.msra.mxu1 %v13374_v25  ;;  %13345 = vmatprep.subr.bf16.mxu0 %v13344_v26  ;;  %v134_v41 = vld [vmem:[#allocation2 + $0x30] sm:$0xff]  ;;  %v135_v42 = vld [vmem:[#allocation2 + $0x38] sm:$0xff]  ;;  %v13380_v43 = vpack.c.bf16 %v183_v40, %v182_v37  ;;  %v153_v47 = vld [vmem:[#allocation2 + $0xc8] sm:$0xff] }
  0x78   :  { %13377 = vmatprep.subr.bf16.mxu1 %v13376_v30  ;;  %v166_v44 = vld [vmem:[#allocation2 + $0x130] sm:$0xff]  ;;  %v167_v45 = vld [vmem:[#allocation2 + $0x138] sm:$0xff]  ;;  %v184_v48 = vld [vmem:[#allocation2 + $0x1c0] sm:$0xff]  ;;  %v13350_v50 = vpack.c.bf16 %v135_v42, %v134_v41  ;;  %v13352_v52 = vpack.c.bf16 %v153_v47, %v152_v46 }
  0x79   :  { %v185_v49 = vld [vmem:[#allocation2 + $0x1c8] sm:$0xff]  ;;  %v13382_v51 = vpack.c.bf16 %v167_v45, %v166_v44  ;;  %v136_v53 = vld [vmem:[#allocation2 + $0x40] sm:$0xff]  ;;  %v154_v58 = vld [vmem:[#allocation2 + $0xd0] sm:$0xff] }
  0x7a   :  { %13347 = vmatpush3.bf16.msra.mxu0 %v13346_v34  ;;  %v137_v54 = vld [vmem:[#allocation2 + $0x48] sm:$0xff]  ;;  %v168_v55 = vld [vmem:[#allocation2 + $0x140] sm:$0xff]  ;;  %v13384_v56 = vpack.c.bf16 %v185_v49, %v184_v48  ;;  %v155_v59 = vld [vmem:[#allocation2 + $0xd8] sm:$0xff] }
  0x7b   :  { %13379 = vmatpush3.bf16.msra.mxu1 %v13378_v38  ;;  %13349 = vmatprep.subr.bf16.mxu0 %v13348_v39  ;;  %v169_v57 = vld [vmem:[#allocation2 + $0x148] sm:$0xff]  ;;  %v186_v60 = vld [vmem:[#allocation2 + $0x1d0] sm:$0xff]  ;;  %v187_v61 = vld [vmem:[#allocation2 + $0x1d8] sm:$0xff]  ;;  %v13354_v62 = vpack.c.bf16 %v137_v54, %v136_v53  ;;  %v13356_v0 = vpack.c.bf16 %v155_v59, %v154_v58 }
  0x7c   :  { %13381 = vmatprep.subr.bf16.mxu1 %v13380_v43  ;;  %v13386_v63 = vpack.c.bf16 %v169_v57, %v168_v55  ;;  %v138_v1 = vld [vmem:[#allocation2 + $0x50] sm:$0xff]  ;;  %v139_v2 = vld [vmem:[#allocation2 + $0x58] sm:$0xff]  ;;  %v13388_v4 = vpack.c.bf16 %v187_v61, %v186_v60  ;;  %v156_v6 = vld [vmem:[#allocation2 + $0xe0] sm:$0xff] }
  0x7d   :  { %v170_v3 = vld [vmem:[#allocation2 + $0x150] sm:$0xff]  ;;  %v171_v5 = vld [vmem:[#allocation2 + $0x158] sm:$0xff]  ;;  %v157_v7 = vld [vmem:[#allocation2 + $0xe8] sm:$0xff]  ;;  %v13358_v10 = vpack.c.bf16 %v139_v2, %v138_v1 }
  0x7e   :  { %13351 = vmatpush3.bf16.msra.mxu0 %v13350_v50  ;;  %v188_v8 = vld [vmem:[#allocation2 + $0x1e0] sm:$0xff]  ;;  %v189_v9 = vld [vmem:[#allocation2 + $0x1e8] sm:$0xff]  ;;  %v13390_v13 = vpack.c.bf16 %v171_v5, %v170_v3  ;;  %v13360_v14 = vpack.c.bf16 %v157_v7, %v156_v6  ;;  %v158_v20 = vld [vmem:[#allocation2 + $0xf0] sm:$0xff] }
  0x7f   :  { %13383 = vmatpush3.bf16.msra.mxu1 %v13382_v51  ;;  %13353 = vmatprep.subr.bf16.mxu0 %v13352_v52  ;;  %v140_v11 = vld [vmem:[#allocation2 + $0x60] sm:$0xff]  ;;  %v141_v12 = vld [vmem:[#allocation2 + $0x68] sm:$0xff]  ;;  %v13392_v18 = vpack.c.bf16 %v189_v9, %v188_v8  ;;  %v159_v21 = vld [vmem:[#allocation2 + $0xf8] sm:$0xff] }
  0x80   :  { %13385 = vmatprep.subr.bf16.mxu1 %v13384_v56  ;;  %v172_v15 = vld [vmem:[#allocation2 + $0x160] sm:$0xff]  ;;  %v15735_v17 = vld [vmem:[%s17221_s0 + $0x8] sm:$0xff]  ;;  %v190_v24 = vld [vmem:[#allocation2 + $0x1f0] sm:$0xff]  ;;  %v13362_v26 = vpack.c.bf16 %v141_v12, %v140_v11  ;;  %v13364_v28 = vpack.c.bf16 %v159_v21, %v158_v20 }
  0x81   :  { %v15730_v16 = vld [vmem:[%s17221_s0] sm:$0xff]  ;;  %v173_v19 = vld [vmem:[#allocation2 + $0x168] sm:$0xff]  ;;  %v15743_v23 = vcombine.high %v15735_v17, %v15735_v17  ;;  %v191_v25 = vld [vmem:[#allocation2 + $0x1f8] sm:$0xff] }
  0x82   :  { %13355 = vmatpush3.bf16.msra.mxu0 %v13354_v62  ;;  %v15739_v22 = vcombine.high %v15730_v16, %v15730_v16  ;;  %v13394_v27 = vpack.c.bf16 %v173_v19, %v172_v15  ;;  %v142_v29 = vld [vmem:[#allocation2 + $0x70] sm:$0xff]  ;;  %v143_v30 = vld [vmem:[#allocation2 + $0x78] sm:$0xff]  ;;  %v13396_v32 = vpack.c.bf16 %v191_v25, %v190_v24  ;;  %v359_v34 = vld [vmem:[#allocation2 + $0x280] sm:$0xff] }
  0x83   :  { %13387 = vmatpush3.bf16.msra.mxu1 %v13386_v63  ;;  %13357 = vmatprep.subr.bf16.mxu0 %v13356_v0  ;;  %v174_v31 = vld [vmem:[#allocation2 + $0x170] sm:$0xff]  ;;  %v175_v33 = vld [vmem:[#allocation2 + $0x178] sm:$0xff]  ;;  %v360_v35 = vld [vmem:[#allocation2 + $0x288] sm:$0xff]  ;;  %v13366_v38 = vpack.c.bf16 %v143_v30, %v142_v29 }
  0x84   :  { %13389 = vmatprep.subr.bf16.mxu1 %v13388_v4  ;;  %262 = vmatprep.mubr.f32.mxu0 %v15739_v22  ;;  %v391_v36 = vld [vmem:[#allocation2 + $0x380] sm:$0xff]  ;;  %v392_v37 = vld [vmem:[#allocation2 + $0x388] sm:$0xff]  ;;  %v13398_v39 = vpack.c.bf16 %v175_v33, %v174_v31  ;;  %v13400_v40 = vpack.c.bf16 %v360_v35, %v359_v34  ;;  %v361_v46 = vld [vmem:[#allocation2 + $0x290] sm:$0xff] }
  0x85   :  { %332 = vmatprep.mubr.f32.mxu1 %v15743_v23  ;;  %v343_v41 = vld [vmem:[#allocation2 + $0x200] sm:$0xff]  ;;  %v344_v42 = vld [vmem:[#allocation2 + $0x208] sm:$0xff]  ;;  %v13432_v44 = vpack.c.bf16 %v392_v37, %v391_v36  ;;  %v362_v47 = vld [vmem:[#allocation2 + $0x298] sm:$0xff] }
  0x86   :  { %13359 = vmatpush3.bf16.msra.mxu0 %v13358_v10  ;;  %v375_v43 = vld [vmem:[#allocation2 + $0x300] sm:$0xff]  ;;  %v376_v45 = vld [vmem:[#allocation2 + $0x308] sm:$0xff]  ;;  %v393_v48 = vld [vmem:[#allocation2 + $0x390] sm:$0xff]  ;;  %v13402_v50 = vpack.c.bf16 %v344_v42, %v343_v41  ;;  %v13404_v52 = vpack.c.bf16 %v362_v47, %v361_v46 }
  0x87   :  { %13391 = vmatpush3.bf16.msra.mxu1 %v13390_v13  ;;  %13361 = vmatprep.subr.bf16.mxu0 %v13360_v14  ;;  %v394_v49 = vld [vmem:[#allocation2 + $0x398] sm:$0xff]  ;;  %v13434_v51 = vpack.c.bf16 %v376_v45, %v375_v43  ;;  %v345_v53 = vld [vmem:[#allocation2 + $0x210] sm:$0xff]  ;;  %v363_v58 = vld [vmem:[#allocation2 + $0x2a0] sm:$0xff] }
  0x88   :  { %13393 = vmatprep.subr.bf16.mxu1 %v13392_v18  ;;  %v346_v54 = vld [vmem:[#allocation2 + $0x218] sm:$0xff]  ;;  %v377_v55 = vld [vmem:[#allocation2 + $0x310] sm:$0xff]  ;;  %v13436_v56 = vpack.c.bf16 %v394_v49, %v393_v48  ;;  %v364_v59 = vld [vmem:[#allocation2 + $0x2a8] sm:$0xff] }
  0x89   :  { %v378_v57 = vld [vmem:[#allocation2 + $0x318] sm:$0xff]  ;;  %v395_v60 = vld [vmem:[#allocation2 + $0x3a0] sm:$0xff]  ;;  %v396_v61 = vld [vmem:[#allocation2 + $0x3a8] sm:$0xff]  ;;  %v13406_v62 = vpack.c.bf16 %v346_v54, %v345_v53  ;;  %v13408_v0 = vpack.c.bf16 %v364_v59, %v363_v58 }
  0x8a   :  { %13363 = vmatpush3.bf16.msra.mxu0 %v13362_v26  ;;  %v13438_v63 = vpack.c.bf16 %v378_v57, %v377_v55  ;;  %v347_v1 = vld [vmem:[#allocation2 + $0x220] sm:$0xff]  ;;  %v348_v2 = vld [vmem:[#allocation2 + $0x228] sm:$0xff]  ;;  %v13440_v4 = vpack.c.bf16 %v396_v61, %v395_v60  ;;  %v365_v6 = vld [vmem:[#allocation2 + $0x2b0] sm:$0xff] }
  0x8b   :  { %13395 = vmatpush3.bf16.msra.mxu1 %v13394_v27  ;;  %13365 = vmatprep.subr.bf16.mxu0 %v13364_v28  ;;  %v379_v3 = vld [vmem:[#allocation2 + $0x320] sm:$0xff]  ;;  %v380_v5 = vld [vmem:[#allocation2 + $0x328] sm:$0xff]  ;;  %v366_v7 = vld [vmem:[#allocation2 + $0x2b8] sm:$0xff]  ;;  %v13410_v10 = vpack.c.bf16 %v348_v2, %v347_v1 }
  0x8c   :  { %13397 = vmatprep.subr.bf16.mxu1 %v13396_v32  ;;  %v397_v8 = vld [vmem:[#allocation2 + $0x3b0] sm:$0xff]  ;;  %v398_v9 = vld [vmem:[#allocation2 + $0x3b8] sm:$0xff]  ;;  %v13442_v11 = vpack.c.bf16 %v380_v5, %v379_v3  ;;  %v13412_v12 = vpack.c.bf16 %v366_v7, %v365_v6  ;;  %v367_v20 = vld [vmem:[#allocation2 + $0x2c0] sm:$0xff] }
  0x8d   :  { %v349_v13 = vld [vmem:[#allocation2 + $0x230] sm:$0xff]  ;;  %v350_v14 = vld [vmem:[#allocation2 + $0x238] sm:$0xff]  ;;  %v13444_v18 = vpack.c.bf16 %v398_v9, %v397_v8  ;;  %v368_v21 = vld [vmem:[#allocation2 + $0x2c8] sm:$0xff] }
  0x8e   :  { %13367 = vmatpush3.bf16.msra.mxu0 %v13366_v38  ;;  %v381_v15 = vld [vmem:[#allocation2 + $0x330] sm:$0xff]  ;;  %v382_v19 = vld [vmem:[#allocation2 + $0x338] sm:$0xff]  ;;  %v399_v24 = vld [vmem:[#allocation2 + $0x3c0] sm:$0xff]  ;;  %v13414_v26 = vpack.c.bf16 %v350_v14, %v349_v13  ;;  %v13416_v28 = vpack.c.bf16 %v368_v21, %v367_v20 }
  0x8f   :  { %13399 = vmatpush3.bf16.msra.mxu1 %v13398_v39  ;;  %13401 = vmatprep.subr.bf16.mxu0 %v13400_v40  ;;  %v400_v25 = vld [vmem:[#allocation2 + $0x3c8] sm:$0xff]  ;;  %v13446_v27 = vpack.c.bf16 %v382_v19, %v381_v15  ;;  %v351_v29 = vld [vmem:[#allocation2 + $0x240] sm:$0xff]  ;;  %v369_v34 = vld [vmem:[#allocation2 + $0x2d0] sm:$0xff] }
  0x90   :  { %13433 = vmatprep.subr.bf16.mxu1 %v13432_v44  ;;  %v352_v30 = vld [vmem:[#allocation2 + $0x248] sm:$0xff]  ;;  %v383_v31 = vld [vmem:[#allocation2 + $0x340] sm:$0xff]  ;;  %v13448_v32 = vpack.c.bf16 %v400_v25, %v399_v24  ;;  %v370_v35 = vld [vmem:[#allocation2 + $0x2d8] sm:$0xff] }
  0x91   :  { %263 = vmatmul.mubr.f32.vlgmr.msra.gmra.mrb[0].mxu0 %v15730_v16  ;;  %v384_v33 = vld [vmem:[#allocation2 + $0x348] sm:$0xff]  ;;  %v401_v36 = vld [vmem:[#allocation2 + $0x3d0] sm:$0xff]  ;;  %v402_v37 = vld [vmem:[#allocation2 + $0x3d8] sm:$0xff]  ;;  %v13418_v38 = vpack.c.bf16 %v352_v30, %v351_v29  ;;  %v13420_v40 = vpack.c.bf16 %v370_v35, %v369_v34 }
  0x92   :  { %333 = vmatmul.mubr.f32.vlgmr.msra.gmra.mrb[0].mxu1 %v15735_v17  ;;  %13403 = vmatpush3.bf16.msra.mxu0 %v13402_v50  ;;  %v13450_v39 = vpack.c.bf16 %v384_v33, %v383_v31  ;;  %v353_v41 = vld [vmem:[#allocation2 + $0x250] sm:$0xff]  ;;  %v354_v42 = vld [vmem:[#allocation2 + $0x258] sm:$0xff]  ;;  %v13452_v44 = vpack.c.bf16 %v402_v37, %v401_v36  ;;  %v371_v46 = vld [vmem:[#allocation2 + $0x2e0] sm:$0xff] }
  0x93   :  { %13435 = vmatpush3.bf16.msra.mxu1 %v13434_v51  ;;  %13405 = vmatprep.subr.bf16.mxu0 %v13404_v52  ;;  %v385_v43 = vld [vmem:[#allocation2 + $0x350] sm:$0xff]  ;;  %v386_v45 = vld [vmem:[#allocation2 + $0x358] sm:$0xff]  ;;  %v372_v47 = vld [vmem:[#allocation2 + $0x2e8] sm:$0xff]  ;;  %v13422_v50 = vpack.c.bf16 %v354_v42, %v353_v41 }
  0x94   :  { %13437 = vmatprep.subr.bf16.mxu1 %v13436_v56  ;;  %471 = vmatprep.mubr.f32.mxu0 %v15739_v22  ;;  %v403_v48 = vld [vmem:[#allocation2 + $0x3e0] sm:$0xff]  ;;  %v404_v49 = vld [vmem:[#allocation2 + $0x3e8] sm:$0xff]  ;;  %v13454_v51 = vpack.c.bf16 %v386_v45, %v385_v43  ;;  %v13424_v52 = vpack.c.bf16 %v372_v47, %v371_v46  ;;  %v373_v58 = vld [vmem:[#allocation2 + $0x2f0] sm:$0xff] }
  0x95   :  { %541 = vmatprep.mubr.f32.mxu1 %v15743_v23  ;;  %v355_v53 = vld [vmem:[#allocation2 + $0x260] sm:$0xff]  ;;  %v356_v54 = vld [vmem:[#allocation2 + $0x268] sm:$0xff]  ;;  %v13456_v56 = vpack.c.bf16 %v404_v49, %v403_v48  ;;  %v374_v59 = vld [vmem:[#allocation2 + $0x2f8] sm:$0xff] }
  0x96   :  { %13407 = vmatpush3.bf16.msra.mxu0 %v13406_v62  ;;  %v387_v55 = vld [vmem:[#allocation2 + $0x360] sm:$0xff]  ;;  %v388_v57 = vld [vmem:[#allocation2 + $0x368] sm:$0xff]  ;;  %v405_v60 = vld [vmem:[#allocation2 + $0x3f0] sm:$0xff]  ;;  %v13426_v62 = vpack.c.bf16 %v356_v54, %v355_v53 }
  0x97   :  { %13439 = vmatpush3.bf16.msra.mxu1 %v13438_v63  ;;  %13409 = vmatprep.subr.bf16.mxu0 %v13408_v0  ;;  %v406_v61 = vld [vmem:[#allocation2 + $0x3f8] sm:$0xff]  ;;  %v13458_v63 = vpack.c.bf16 %v388_v57, %v387_v55  ;;  %v13428_v0 = vpack.c.bf16 %v374_v59, %v373_v58  ;;  %v357_v1 = vld [vmem:[#allocation2 + $0x270] sm:$0xff]  ;;  %v10842_v8 = vld [vmem:[%s17223_s2 + $0x20] sm:$0xff] }
  0x98   :  { %13441 = vmatprep.subr.bf16.mxu1 %v13440_v4  ;;  %v358_v2 = vld [vmem:[#allocation2 + $0x278] sm:$0xff]  ;;  %v13460_v3 = vpack.c.bf16 %v406_v61, %v405_v60  ;;  %v389_v4 = vld [vmem:[#allocation2 + $0x370] sm:$0xff]  ;;  %v338_v9 = vld [vmem:[%s17223_s2] sm:$0xff] }
  0x99   :  { %v390_v5 = vld [vmem:[#allocation2 + $0x378] sm:$0xff]  ;;  %v13430_v6 = vpack.c.bf16 %v358_v2, %v357_v1  ;;  %v803_v15 = vld [vmem:[#allocation2 + $0x580] sm:$0xff]  ;;  %v788_v21 = vld [vmem:[#allocation2 + $0x508] sm:$0xff] }
  0x9a   :  { %13411 = vmatpush3.bf16.msra.mxu0 %v13410_v10  ;;  %v13462_v7 = vpack.c.bf16 %v390_v5, %v389_v4  ;;  %v787_v20 = vld [vmem:[#allocation2 + $0x500] sm:$0xff]  ;;  %v805_v24 = vld [vmem:[#allocation2 + $0x590] sm:$0xff]  ;;  %v806_v25 = vld [vmem:[#allocation2 + $0x598] sm:$0xff] }
  0x9b   :  { %13443 = vmatpush3.bf16.msra.mxu1 %v13442_v11  ;;  %13413 = vmatprep.subr.bf16.mxu0 %v13412_v12  ;;  %v13498_v29 = vpack.c.bf16 %v788_v21, %v787_v20  ;;  %v13500_v30 = vpack.c.bf16 %v806_v25, %v805_v24  ;;  %v789_v31 = vld [vmem:[#allocation2 + $0x510] sm:$0xff]  ;;  %v807_v34 = vld [vmem:[#allocation2 + $0x5a0] sm:$0xff]  ;;  %v808_v35 = vld [vmem:[#allocation2 + $0x5a8] sm:$0xff] }
  0x9c   :  { %13445 = vmatprep.subr.bf16.mxu1 %v13444_v18  ;;  %v804_v18 = vld [vmem:[#allocation2 + $0x588] sm:$0xff]  ;;  %v340_v33 = vld [vmem:[%s17223_s2 + $0x10] sm:$0xff]  ;;  %v341_v37 = vld [vmem:[%s17223_s2 + $0x18] sm:$0xff] }
  0x9d   :  { %v809_v41 = vld [vmem:[#allocation2 + $0x5b0] sm:$0xff]  ;;  %v810_v42 = vld [vmem:[#allocation2 + $0x5b8] sm:$0xff]  ;;  %v811_v47 = vld [vmem:[#allocation2 + $0x5c0] sm:$0xff] }
  0x9e   :  { %13415 = vmatpush3.bf16.msra.mxu0 %v13414_v26  ;;  %v793_v45 = vld [vmem:[#allocation2 + $0x530] sm:$0xff]  ;;  %v794_v46 = vld [vmem:[#allocation2 + $0x538] sm:$0xff]  ;;  %v812_v48 = vld [vmem:[#allocation2 + $0x5c8] sm:$0xff] }
  0x9f   :  { %13447 = vmatpush3.bf16.msra.mxu1 %v13446_v27  ;;  %13417 = vmatprep.subr.bf16.mxu0 %v13416_v28  ;;  %v13496_v27 = vpack.c.bf16 %v804_v18, %v803_v15  ;;  %v339_v28 = vld [vmem:[%s17223_s2 + $0x8] sm:$0xff]  ;;  %v13510_v49 = vpack.c.bf16 %v794_v46, %v793_v45  ;;  %v813_v53 = vld [vmem:[#allocation2 + $0x5d0] sm:$0xff]  ;;  %v814_v54 = vld [vmem:[#allocation2 + $0x5d8] sm:$0xff] }
  0xa0   :  { %13449 = vmatprep.subr.bf16.mxu1 %v13448_v32  ;;  %v790_v32 = vld [vmem:[#allocation2 + $0x518] sm:$0xff]  ;;  %v797_v57 = vld [vmem:[#allocation2 + $0x550] sm:$0xff]  ;;  %v815_v59 = vld [vmem:[#allocation2 + $0x5e0] sm:$0xff] }
  0xa1   :  { %v13502_v36 = vpack.c.bf16 %v790_v32, %v789_v31  ;;  %v798_v58 = vld [vmem:[#allocation2 + $0x558] sm:$0xff]  ;;  %v816_v60 = vld [vmem:[#allocation2 + $0x5e8] sm:$0xff]  ;;  %v817_v1 = vld [vmem:[#allocation2 + $0x5f0] sm:$0xff] }
  0xa2   :  { %13419 = vmatpush3.bf16.msra.mxu0 %v13418_v38  ;;  %v13504_v38 = vpack.c.bf16 %v808_v35, %v807_v34  ;;  %v13518_v61 = vpack.c.bf16 %v798_v58, %v797_v57  ;;  %v818_v2 = vld [vmem:[#allocation2 + $0x5f8] sm:$0xff]  ;;  %v801_v5 = vld [vmem:[#allocation2 + $0x570] sm:$0xff]  ;;  %v755_v18 = vld [vmem:[#allocation2 + $0x400] sm:$0xff] }
  0xa3   :  { %13451 = vmatpush3.bf16.msra.mxu1 %v13450_v39  ;;  %13421 = vmatprep.subr.bf16.mxu0 %v13420_v40  ;;  %v791_v39 = vld [vmem:[#allocation2 + $0x520] sm:$0xff]  ;;  %v792_v40 = vld [vmem:[#allocation2 + $0x528] sm:$0xff]  ;;  %v13524_v4 = vpack.c.bf16 %v818_v2, %v817_v1  ;;  %v773_v20 = vld [vmem:[#allocation2 + $0x490] sm:$0xff] }
  0xa4   :  { %13453 = vmatprep.subr.bf16.mxu1 %v13452_v44  ;;  %v13506_v43 = vpack.c.bf16 %v792_v40, %v791_v39  ;;  %v13508_v44 = vpack.c.bf16 %v810_v42, %v809_v41  ;;  %v774_v21 = vld [vmem:[#allocation2 + $0x498] sm:$0xff]  ;;  %v10844_v31 = vld [vmem:[%s17223_s2 + $0x30] sm:$0xff]  ;;  %v775_v32 = vld [vmem:[#allocation2 + $0x4a0] sm:$0xff] }
  0xa5   :  { %v10845_v35 = vld [vmem:[%s17223_s2 + $0x38] sm:$0xff]  ;;  %v777_v39 = vld [vmem:[#allocation2 + $0x4b0] sm:$0xff]  ;;  %v779_v45 = vld [vmem:[#allocation2 + $0x4c0] sm:$0xff] }
  0xa6   :  { %13423 = vmatpush3.bf16.msra.mxu0 %v13422_v50  ;;  %v13512_v50 = vpack.c.bf16 %v812_v48, %v811_v47  ;;  %v778_v40 = vld [vmem:[#allocation2 + $0x4b8] sm:$0xff]  ;;  %v780_v46 = vld [vmem:[#allocation2 + $0x4c8] sm:$0xff]  ;;  %v783_v57 = vld [vmem:[#allocation2 + $0x4e0] sm:$0xff] }
  0xa7   :  { %13455 = vmatpush3.bf16.msra.mxu1 %v13454_v51  ;;  %13425 = vmatprep.subr.bf16.mxu0 %v13424_v52  ;;  %v795_v51 = vld [vmem:[#allocation2 + $0x540] sm:$0xff]  ;;  %v796_v52 = vld [vmem:[#allocation2 + $0x548] sm:$0xff]  ;;  %v13476_v42 = vpack.c.bf16 %v778_v40, %v777_v39  ;;  %v13480_v48 = vpack.c.bf16 %v780_v46, %v779_v45  ;;  %v1080_v45 = vld [vmem:[#allocation2 + $0x658] sm:$0xff] }
  0xa8   :  { %13457 = vmatprep.subr.bf16.mxu1 %v13456_v56  ;;  %v13514_v55 = vpack.c.bf16 %v796_v52, %v795_v51  ;;  %v13516_v56 = vpack.c.bf16 %v814_v54, %v813_v53  ;;  %v781_v51 = vld [vmem:[#allocation2 + $0x4d0] sm:$0xff]  ;;  %v782_v52 = vld [vmem:[#allocation2 + $0x4d8] sm:$0xff]  ;;  %v784_v58 = vld [vmem:[#allocation2 + $0x4e8] sm:$0xff] }
  0xa9   :  { %v13484_v54 = vpack.c.bf16 %v782_v52, %v781_v51  ;;  %v1078_v39 = vld [vmem:[#allocation2 + $0x648] sm:$0xff] }
  0xaa   :  { %13427 = vmatpush3.bf16.msra.mxu0 %v13426_v62  ;;  %v13520_v62 = vpack.c.bf16 %v816_v60, %v815_v59  ;;  %v13488_v60 = vpack.c.bf16 %v784_v58, %v783_v57  ;;  %v1082_v51 = vld [vmem:[#allocation2 + $0x668] sm:$0xff]  ;;  %v1084_v57 = vld [vmem:[#allocation2 + $0x678] sm:$0xff] }
  0xab   :  { %13459 = vmatpush3.bf16.msra.mxu1 %v13458_v63  ;;  %13429 = vmatprep.subr.bf16.mxu0 %v13428_v0  ;;  %v799_v63 = vld [vmem:[#allocation2 + $0x560] sm:$0xff]  ;;  %v800_v0 = vld [vmem:[#allocation2 + $0x568] sm:$0xff] }
  0xac   :  { %13461 = vmatprep.subr.bf16.mxu1 %v13460_v3  ;;  %v13522_v3 = vpack.c.bf16 %v800_v0, %v799_v63  ;;  %v785_v63 = vld [vmem:[#allocation2 + $0x4f0] sm:$0xff]  ;;  %v786_v0 = vld [vmem:[#allocation2 + $0x4f8] sm:$0xff] }
  0xad   :  { %v13492_v2 = vpack.c.bf16 %v786_v0, %v785_v63 }
  0xae   :  { %13431 = vmatpush3.bf16.msra.mxu0 %v13430_v6  ;;  %v802_v6 = vld [vmem:[#allocation2 + $0x578] sm:$0xff] }
  0xaf   :  { %13463 = vmatpush3.bf16.msra.mxu1 %v13462_v7 }
  0xb1   :  { %472 = vmatmul.mubr.f32.vlgmr.msra.gmra.mrb[2].mxu0 %v15730_v16 }
  0xb2   :  { %542 = vmatmul.mubr.f32.vlgmr.msra.gmra.mrb[2].mxu1 %v15735_v17  ;;  %12374 = vmatprep.mubr.msk.f32.mxu0 %vm552_vm0, %v338_v9 }
  0xb3   :  { %12366 = vmatprep.mubr.msk.f32.mxu1 %vm552_vm0, %v10842_v8 }
 0x164   :  { %v11217_v10 = vpop.f32.mrb[0].mxu0 }
 0x165   :  { %v11252_v11 = vpop.f32.mrb[0].mxu1  ;;  %v11218_v12 = vpop.f32.mrb[1].mxu0 }
 0x166   :  { %v11219_v13 = vadd.f32 %v11218_v12, %v11217_v10  ;;  %v11253_v14 = vpop.f32.mrb[1].mxu1  ;;  %v771_v12 = vld [vmem:[#allocation2 + $0x480] sm:$0xff] }
 0x167   :  { %v11254_v19 = vadd.f32 %v11253_v14, %v11252_v11  ;;  %v13526_v14 = vpack.c.bf16 %v802_v6, %v801_v5  ;;  %v1085_v6 = vld [vmem:[#allocation2 + $0x680] sm:$0xff] }
 0x169   :  { %v335_v26 = vadd.f32 %v11254_v19, %v11219_v13  ;;  %v772_v13 = vld [vmem:[#allocation2 + $0x488] sm:$0xff] }
 0x16a   :  { %v756_v19 = vld [vmem:[#allocation2 + $0x408] sm:$0xff]  ;;  %v13464_v25 = vpack.c.bf16 %v772_v13, %v771_v12  ;;  %v10856_v12 = vld [vmem:[%s17223_s2 + $0x40] sm:$0xff]  ;;  %v1087_v13 = vld [vmem:[#allocation2 + $0x690] sm:$0xff] }
 0x16b   :  { %12372 = vmatprep.subr.msk.mxu0 %vm565_vm1, %v335_v26 }
 0x16c   :  { %12373 = vmatpush3.msk.msra.mxu0 %vm565_vm1, %v335_v26  ;;  %v10843_v26 = vld [vmem:[%s17223_s2 + $0x28] sm:$0xff] }
 0x16d   :  { %13497 = vmatprep.subr.bf16.mxu0 %v13496_v27  ;;  %12375 = vmatmul.mubr.msk.f32.vlgmr.msra.gmra.mrb[4].mxu0 %vm552_vm0, %v339_v28  ;;  %v13466_v27 = vpack.c.bf16 %v756_v19, %v755_v18  ;;  %v13468_v28 = vpack.c.bf16 %v774_v21, %v773_v20  ;;  %v1071_v18 = vld [vmem:[#allocation2 + $0x610] sm:$0xff]  ;;  %v1072_v19 = vld [vmem:[#allocation2 + $0x618] sm:$0xff]  ;;  %v1089_v21 = vld [vmem:[#allocation2 + $0x6a0] sm:$0xff] }
 0x16e   :  { %13499 = vmatpush3.bf16.msra.mxu0 %v13498_v29  ;;  %12377 = vmatprep.mubr.msk.f32.mxu0 %vm552_vm0, %v340_v33  ;;  %v757_v29 = vld [vmem:[#allocation2 + $0x410] sm:$0xff]  ;;  %v776_v33 = vld [vmem:[#allocation2 + $0x4a8] sm:$0xff]  ;;  %v13534_v20 = vpack.c.bf16 %v1072_v19, %v1071_v18  ;;  %v1104_v18 = vld [vmem:[#allocation2 + $0x718] sm:$0xff] }
 0x16f   :  { %13501 = vmatprep.subr.bf16.mxu0 %v13500_v30  ;;  %v758_v30 = vld [vmem:[#allocation2 + $0x418] sm:$0xff]  ;;  %v10858_v19 = vld [vmem:[%s17223_s2 + $0x50] sm:$0xff] }
 0x170   :  { %v13470_v34 = vpack.c.bf16 %v758_v30, %v757_v29  ;;  %v1091_v29 = vld [vmem:[#allocation2 + $0x6b0] sm:$0xff]  ;;  %v1092_v30 = vld [vmem:[#allocation2 + $0x6b8] sm:$0xff] }
 0x171   :  { %12378 = vmatmul.mubr.msk.f32.gmra.mrb[6].mxu0 %vm552_vm0, %v341_v37  ;;  %v759_v37 = vld [vmem:[#allocation2 + $0x420] sm:$0xff] }
 0x172   :  { %13503 = vmatpush3.bf16.msra.mxu0 %v13502_v36  ;;  %953 = vmatprep.mubr.f32.mxu0 %v15743_v23  ;;  %v13472_v36 = vpack.c.bf16 %v776_v33, %v775_v32  ;;  %v1075_v32 = vld [vmem:[#allocation2 + $0x630] sm:$0xff]  ;;  %v1076_v33 = vld [vmem:[#allocation2 + $0x638] sm:$0xff] }
 0x173   :  { %13505 = vmatprep.subr.bf16.mxu0 %v13504_v38  ;;  %v760_v38 = vld [vmem:[#allocation2 + $0x428] sm:$0xff] }
 0x174   :  { %v13474_v41 = vpack.c.bf16 %v760_v38, %v759_v37  ;;  %v1077_v38 = vld [vmem:[#allocation2 + $0x640] sm:$0xff] }
 0x175   :  { %v13546_v40 = vpack.c.bf16 %v1078_v39, %v1077_v38  ;;  %v1109_v39 = vld [vmem:[#allocation2 + $0x740] sm:$0xff] }
 0x176   :  { %13507 = vmatpush3.bf16.msra.mxu0 %v13506_v43  ;;  %v761_v43 = vld [vmem:[#allocation2 + $0x430] sm:$0xff] }
 0x177   :  { %13509 = vmatprep.subr.bf16.mxu0 %v13508_v44  ;;  %v762_v44 = vld [vmem:[#allocation2 + $0x438] sm:$0xff] }
 0x178   :  { %v13478_v47 = vpack.c.bf16 %v762_v44, %v761_v43  ;;  %v1079_v44 = vld [vmem:[#allocation2 + $0x650] sm:$0xff] }
 0x179   :  { %v13550_v46 = vpack.c.bf16 %v1080_v45, %v1079_v44  ;;  %v1111_v45 = vld [vmem:[#allocation2 + $0x750] sm:$0xff] }
 0x17a   :  { %13511 = vmatpush3.bf16.msra.mxu0 %v13510_v49  ;;  %v763_v49 = vld [vmem:[#allocation2 + $0x440] sm:$0xff] }
 0x17b   :  { %13513 = vmatprep.subr.bf16.mxu0 %v13512_v50  ;;  %v764_v50 = vld [vmem:[#allocation2 + $0x448] sm:$0xff] }
 0x17c   :  { %v13482_v53 = vpack.c.bf16 %v764_v50, %v763_v49  ;;  %v1081_v50 = vld [vmem:[#allocation2 + $0x660] sm:$0xff] }
 0x17d   :  { %v13554_v52 = vpack.c.bf16 %v1082_v51, %v1081_v50  ;;  %v1113_v51 = vld [vmem:[#allocation2 + $0x760] sm:$0xff] }
 0x17e   :  { %13515 = vmatpush3.bf16.msra.mxu0 %v13514_v55  ;;  %v765_v55 = vld [vmem:[#allocation2 + $0x450] sm:$0xff] }
 0x17f   :  { %13517 = vmatprep.subr.bf16.mxu0 %v13516_v56  ;;  %v766_v56 = vld [vmem:[#allocation2 + $0x458] sm:$0xff] }
 0x180   :  { %v13486_v59 = vpack.c.bf16 %v766_v56, %v765_v55  ;;  %v1083_v56 = vld [vmem:[#allocation2 + $0x670] sm:$0xff] }
 0x181   :  { %v13558_v58 = vpack.c.bf16 %v1084_v57, %v1083_v56  ;;  %v1115_v57 = vld [vmem:[#allocation2 + $0x770] sm:$0xff] }
 0x182   :  { %13519 = vmatpush3.bf16.msra.mxu0 %v13518_v61  ;;  %v767_v61 = vld [vmem:[#allocation2 + $0x460] sm:$0xff] }
 0x183   :  { %13521 = vmatprep.subr.bf16.mxu0 %v13520_v62  ;;  %v768_v62 = vld [vmem:[#allocation2 + $0x468] sm:$0xff] }
 0x184   :  { %v11287_v7 = vpop.f32.mrb[2].mxu0  ;;  %v13490_v1 = vpack.c.bf16 %v768_v62, %v767_v61 }
 0x185   :  { %v11322_v8 = vpop.f32.mrb[2].mxu1  ;;  %v11288_v9 = vpop.f32.mrb[3].mxu0 }
 0x186   :  { %v11289_v10 = vadd.f32 %v11288_v9, %v11287_v7  ;;  %v11323_v11 = vpop.f32.mrb[3].mxu1  ;;  %13523 = vmatpush3.bf16.msra.mxu0 %v13522_v3  ;;  %v769_v3 = vld [vmem:[#allocation2 + $0x470] sm:$0xff]  ;;  %v1086_v7 = vld [vmem:[#allocation2 + $0x688] sm:$0xff]  ;;  %v1069_v9 = vld [vmem:[#allocation2 + $0x600] sm:$0xff] }
 0x187   :  { %v11324_v15 = vadd.f32 %v11323_v11, %v11322_v8  ;;  %13525 = vmatprep.subr.bf16.mxu0 %v13524_v4  ;;  %v770_v4 = vld [vmem:[#allocation2 + $0x478] sm:$0xff]  ;;  %v13528_v8 = vpack.c.bf16 %v1086_v7, %v1085_v6  ;;  %v1101_v7 = vld [vmem:[#allocation2 + $0x700] sm:$0xff] }
 0x188   :  { %v13494_v5 = vpack.c.bf16 %v770_v4, %v769_v3  ;;  %v1117_v4 = vld [vmem:[#allocation2 + $0x780] sm:$0xff] }
 0x189   :  { %v544_v24 = vadd.f32 %v11324_v15, %v11289_v10  ;;  %v1070_v10 = vld [vmem:[#allocation2 + $0x608] sm:$0xff] }
 0x18a   :  { %13527 = vmatpush3.bf16.msra.mxu0 %v13526_v14  ;;  %v13530_v11 = vpack.c.bf16 %v1070_v10, %v1069_v9  ;;  %v1088_v14 = vld [vmem:[#allocation2 + $0x698] sm:$0xff] }
 0x18b   :  { %12364 = vmatprep.subr.msk.mxu1 %vm565_vm1, %v544_v24  ;;  %v13532_v15 = vpack.c.bf16 %v1088_v14, %v1087_v13  ;;  %v1120_v9 = vld [vmem:[#allocation2 + $0x798] sm:$0xff] }
 0x18c   :  { %12365 = vmatpush3.msk.msra.mxu1 %vm565_vm1, %v544_v24  ;;  %v1090_v24 = vld [vmem:[#allocation2 + $0x6a8] sm:$0xff] }
 0x18d   :  { %12367 = vmatmul.mubr.msk.f32.vlgmr.msra.gmra.mrb[4].mxu1 %vm552_vm0, %v10843_v26  ;;  %13465 = vmatprep.subr.bf16.mxu1 %v13464_v25  ;;  %v13536_v25 = vpack.c.bf16 %v1090_v24, %v1089_v21  ;;  %v1073_v26 = vld [vmem:[#allocation2 + $0x620] sm:$0xff]  ;;  %v1122_v21 = vld [vmem:[#allocation2 + $0x7a8] sm:$0xff] }
 0x18e   :  { %13467 = vmatpush3.bf16.msra.mxu1 %v13466_v27  ;;  %12369 = vmatprep.mubr.msk.f32.mxu1 %vm552_vm0, %v10844_v31  ;;  %v1074_v27 = vld [vmem:[#allocation2 + $0x628] sm:$0xff]  ;;  %v13540_v31 = vpack.c.bf16 %v1092_v30, %v1091_v29  ;;  %v1123_v29 = vld [vmem:[#allocation2 + $0x7b0] sm:$0xff]  ;;  %v1124_v30 = vld [vmem:[#allocation2 + $0x7b8] sm:$0xff] }
 0x18f   :  { %13469 = vmatprep.subr.bf16.mxu1 %v13468_v28  ;;  %954 = vmatmul.mubr.f32.vlgmr.msra.gmra.mrb[8].mxu0 %v15735_v17  ;;  %v13538_v28 = vpack.c.bf16 %v1074_v27, %v1073_v26  ;;  %v1105_v27 = vld [vmem:[#allocation2 + $0x720] sm:$0xff] }
 0x190   :  { %12382 = vmatprep.mubr.msk.f32.mxu0 %vm552_vm0, %v10856_v12  ;;  %v10857_v12 = vld [vmem:[%s17223_s2 + $0x48] sm:$0xff] }
 0x191   :  { %12370 = vmatmul.mubr.msk.f32.gmra.mrb[6].mxu1 %vm552_vm0, %v10845_v35  ;;  %v1093_v35 = vld [vmem:[#allocation2 + $0x6c0] sm:$0xff] }
 0x192   :  { %13471 = vmatpush3.bf16.msra.mxu1 %v13470_v34  ;;  %883 = vmatprep.mubr.f32.mxu1 %v15739_v22  ;;  %v13542_v34 = vpack.c.bf16 %v1076_v33, %v1075_v32  ;;  %v13572_v32 = vpack.c.bf16 %v1124_v30, %v1123_v29  ;;  %v1107_v33 = vld [vmem:[#allocation2 + $0x730] sm:$0xff]  ;;  %v1407_v30 = vld [vmem:[#allocation2 + $0x8c0] sm:$0xff] }
 0x193   :  { %13473 = vmatprep.subr.bf16.mxu1 %v13472_v36  ;;  %v1094_v36 = vld [vmem:[#allocation2 + $0x6c8] sm:$0xff] }
 0x194   :  { %v13544_v37 = vpack.c.bf16 %v1094_v36, %v1093_v35  ;;  %v1125_v35 = vld [vmem:[#allocation2 + $0x7c0] sm:$0xff]  ;;  %v1126_v36 = vld [vmem:[#allocation2 + $0x7c8] sm:$0xff] }
 0x195   :  { %v13576_v38 = vpack.c.bf16 %v1126_v36, %v1125_v35  ;;  %v1409_v36 = vld [vmem:[#allocation2 + $0x8d0] sm:$0xff] }
 0x196   :  { %13475 = vmatpush3.bf16.msra.mxu1 %v13474_v41  ;;  %v1095_v41 = vld [vmem:[#allocation2 + $0x6d0] sm:$0xff] }
 0x197   :  { %13477 = vmatprep.subr.bf16.mxu1 %v13476_v42  ;;  %v1096_v42 = vld [vmem:[#allocation2 + $0x6d8] sm:$0xff] }
 0x198   :  { %v13548_v43 = vpack.c.bf16 %v1096_v42, %v1095_v41  ;;  %v1127_v41 = vld [vmem:[#allocation2 + $0x7d0] sm:$0xff]  ;;  %v1128_v42 = vld [vmem:[#allocation2 + $0x7d8] sm:$0xff] }
 0x199   :  { %v13580_v44 = vpack.c.bf16 %v1128_v42, %v1127_v41  ;;  %v1411_v42 = vld [vmem:[#allocation2 + $0x8e0] sm:$0xff] }
 0x19a   :  { %13479 = vmatpush3.bf16.msra.mxu1 %v13478_v47  ;;  %v1097_v47 = vld [vmem:[#allocation2 + $0x6e0] sm:$0xff] }
 0x19b   :  { %13481 = vmatprep.subr.bf16.mxu1 %v13480_v48  ;;  %v1098_v48 = vld [vmem:[#allocation2 + $0x6e8] sm:$0xff] }
 0x19c   :  { %v13552_v49 = vpack.c.bf16 %v1098_v48, %v1097_v47  ;;  %v1129_v47 = vld [vmem:[#allocation2 + $0x7e0] sm:$0xff]  ;;  %v1130_v48 = vld [vmem:[#allocation2 + $0x7e8] sm:$0xff] }
 0x19d   :  { %v13584_v50 = vpack.c.bf16 %v1130_v48, %v1129_v47  ;;  %v1413_v48 = vld [vmem:[#allocation2 + $0x8f0] sm:$0xff] }
 0x19e   :  { %13483 = vmatpush3.bf16.msra.mxu1 %v13482_v53  ;;  %v1099_v53 = vld [vmem:[#allocation2 + $0x6f0] sm:$0xff] }
 0x19f   :  { %13485 = vmatprep.subr.bf16.mxu1 %v13484_v54  ;;  %v1100_v54 = vld [vmem:[#allocation2 + $0x6f8] sm:$0xff] }
 0x1a0   :  { %v13556_v55 = vpack.c.bf16 %v1100_v54, %v1099_v53  ;;  %v1131_v53 = vld [vmem:[#allocation2 + $0x7f0] sm:$0xff]  ;;  %v1132_v54 = vld [vmem:[#allocation2 + $0x7f8] sm:$0xff] }
 0x1a1   :  { %v13588_v56 = vpack.c.bf16 %v1132_v54, %v1131_v53  ;;  %v15833_v54 = vld [vmem:[%s17221_s0] sm:$0xff] }
 0x1a2   :  { %13487 = vmatpush3.bf16.msra.mxu1 %v13486_v59 }
 0x1a3   :  { %13489 = vmatprep.subr.bf16.mxu1 %v13488_v60 }
 0x1a6   :  { %13491 = vmatpush3.bf16.msra.mxu1 %v13490_v1 }
 0x1a7   :  { %13493 = vmatprep.subr.bf16.mxu1 %v13492_v2 }
 0x1aa   :  { %13495 = vmatpush3.bf16.msra.mxu1 %v13494_v5  ;;  %v1118_v5 = vld [vmem:[#allocation2 + $0x788] sm:$0xff] }
 0x1ab   :  { %13529 = vmatprep.subr.bf16.mxu1 %v13528_v8  ;;  %v1119_v8 = vld [vmem:[#allocation2 + $0x790] sm:$0xff] }
 0x1ac   :  { %v13564_v14 = vpack.c.bf16 %v1120_v9, %v1119_v8  ;;  %v10865_v8 = vld [vmem:[%s17223_s2 + $0x60] sm:$0xff]  ;;  %v1401_v9 = vld [vmem:[#allocation2 + $0x890] sm:$0xff] }
 0x1ad   :  { %884 = vmatmul.mubr.f32.vlgmr.msra.gmra.mrb[8].mxu1 %v15730_v16 }
 0x1ae   :  { %1197 = vmatprep.mubr.f32.mxu1 %v15739_v22  ;;  %13531 = vmatpush3.bf16.msra.mxu1 %v13530_v11  ;;  %v13560_v11 = vpack.c.bf16 %v1118_v5, %v1117_v4  ;;  %v1400_v4 = vld [vmem:[#allocation2 + $0x888] sm:$0xff] }
 0x1af   :  { %13533 = vmatprep.subr.bf16.mxu1 %v13532_v15  ;;  %v1103_v15 = vld [vmem:[#allocation2 + $0x710] sm:$0xff] }
 0x1b0   :  { %v13566_v24 = vpack.c.bf16 %v1104_v18, %v1103_v15  ;;  %v1404_v15 = vld [vmem:[#allocation2 + $0x8a8] sm:$0xff] }
 0x1b2   :  { %13535 = vmatpush3.bf16.msra.mxu1 %v13534_v20  ;;  %v1121_v20 = vld [vmem:[#allocation2 + $0x7a0] sm:$0xff] }
 0x1b3   :  { %13537 = vmatprep.subr.bf16.mxu1 %v13536_v25  ;;  %v10859_v25 = vld [vmem:[%s17223_s2 + $0x58] sm:$0xff]  ;;  %v13568_v26 = vpack.c.bf16 %v1122_v21, %v1121_v20  ;;  %v1388_v20 = vld [vmem:[#allocation2 + $0x828] sm:$0xff] }
 0x1b6   :  { %13539 = vmatpush3.bf16.msra.mxu1 %v13538_v28  ;;  %v1106_v28 = vld [vmem:[#allocation2 + $0x728] sm:$0xff] }
 0x1b7   :  { %13541 = vmatprep.subr.bf16.mxu1 %v13540_v31  ;;  %v13570_v31 = vpack.c.bf16 %v1106_v28, %v1105_v27  ;;  %v1389_v27 = vld [vmem:[#allocation2 + $0x830] sm:$0xff]  ;;  %v1390_v28 = vld [vmem:[#allocation2 + $0x838] sm:$0xff] }
 0x1b8   :  { %v13606_v29 = vpack.c.bf16 %v1390_v28, %v1389_v27  ;;  %v1439_v27 = vld [vmem:[#allocation2 + $0x9c0] sm:$0xff]  ;;  %v1440_v28 = vld [vmem:[#allocation2 + $0x9c8] sm:$0xff] }
 0x1ba   :  { %13543 = vmatpush3.bf16.msra.mxu1 %v13542_v34  ;;  %v1108_v34 = vld [vmem:[#allocation2 + $0x738] sm:$0xff] }
 0x1bb   :  { %13545 = vmatprep.subr.bf16.mxu1 %v13544_v37  ;;  %v13574_v37 = vpack.c.bf16 %v1108_v34, %v1107_v33  ;;  %v1391_v33 = vld [vmem:[#allocation2 + $0x840] sm:$0xff]  ;;  %v1392_v34 = vld [vmem:[#allocation2 + $0x848] sm:$0xff] }
 0x1bc   :  { %v13610_v35 = vpack.c.bf16 %v1392_v34, %v1391_v33  ;;  %v1441_v33 = vld [vmem:[#allocation2 + $0x9d0] sm:$0xff]  ;;  %v1442_v34 = vld [vmem:[#allocation2 + $0x9d8] sm:$0xff] }
 0x1be   :  { %13547 = vmatpush3.bf16.msra.mxu1 %v13546_v40  ;;  %v1110_v40 = vld [vmem:[#allocation2 + $0x748] sm:$0xff] }
 0x1bf   :  { %13549 = vmatprep.subr.bf16.mxu1 %v13548_v43  ;;  %v13578_v43 = vpack.c.bf16 %v1110_v40, %v1109_v39  ;;  %v1393_v39 = vld [vmem:[#allocation2 + $0x850] sm:$0xff]  ;;  %v1394_v40 = vld [vmem:[#allocation2 + $0x858] sm:$0xff] }
 0x1c0   :  { %v13614_v41 = vpack.c.bf16 %v1394_v40, %v1393_v39  ;;  %v1443_v39 = vld [vmem:[#allocation2 + $0x9e0] sm:$0xff]  ;;  %v1444_v40 = vld [vmem:[#allocation2 + $0x9e8] sm:$0xff] }
 0x1c2   :  { %13551 = vmatpush3.bf16.msra.mxu1 %v13550_v46  ;;  %v1112_v46 = vld [vmem:[#allocation2 + $0x758] sm:$0xff] }
 0x1c3   :  { %13553 = vmatprep.subr.bf16.mxu1 %v13552_v49  ;;  %v13582_v49 = vpack.c.bf16 %v1112_v46, %v1111_v45  ;;  %v1395_v45 = vld [vmem:[#allocation2 + $0x860] sm:$0xff]  ;;  %v1396_v46 = vld [vmem:[#allocation2 + $0x868] sm:$0xff] }
 0x1c4   :  { %v13618_v47 = vpack.c.bf16 %v1396_v46, %v1395_v45  ;;  %v1445_v45 = vld [vmem:[#allocation2 + $0x9f0] sm:$0xff]  ;;  %v1446_v46 = vld [vmem:[#allocation2 + $0x9f8] sm:$0xff] }
 0x1c6   :  { %13555 = vmatpush3.bf16.msra.mxu1 %v13554_v52  ;;  %v1114_v52 = vld [vmem:[#allocation2 + $0x768] sm:$0xff] }
 0x1c7   :  { %13557 = vmatprep.subr.bf16.mxu1 %v13556_v55  ;;  %v13586_v55 = vpack.c.bf16 %v1114_v52, %v1113_v51  ;;  %v1397_v51 = vld [vmem:[#allocation2 + $0x870] sm:$0xff]  ;;  %v1398_v52 = vld [vmem:[#allocation2 + $0x878] sm:$0xff] }
 0x1c8   :  { %v13622_v53 = vpack.c.bf16 %v1398_v52, %v1397_v51  ;;  %v15856_v52 = vld [vmem:[%s17221_s0 + $0x8] sm:$0xff] }
 0x1ca   :  { %13559 = vmatpush3.bf16.msra.mxu1 %v13558_v58  ;;  %v1116_v58 = vld [vmem:[#allocation2 + $0x778] sm:$0xff] }
 0x1cd   :  { %1198 = vmatmul.mubr.f32.vlgmr.msra.gmra.mrb[10].mxu1 %v15730_v16  ;;  %v1102_v16 = vld [vmem:[#allocation2 + $0x708] sm:$0xff] }
 0x1ce   :  { %1511 = vmatprep.mubr.f32.mxu1 %v15739_v22  ;;  %v13562_v13 = vpack.c.bf16 %v1102_v16, %v1101_v7  ;;  %v1384_v7 = vld [vmem:[#allocation2 + $0x808] sm:$0xff] }
 0x260   :  { %v15800_v59 = vpop.f32.mrb[4].mxu1 }
 0x261   :  { %v15802_v60 = vpop.f32.mrb[5].mxu1 }
 0x262   :  { %v11402_v61 = vpop.f32.mrb[8].mxu0 }
 0x263   :  { %v11403_v62 = vpop.f32.mrb[9].mxu0 }
 0x264   :  { %v15804_v63 = vpop.f32.mrb[6].mxu1  ;;  %v11404_v0 = vadd.f32 %v11403_v62, %v11402_v61  ;;  %v13590_v61 = vpack.c.bf16 %v1116_v58, %v1115_v57  ;;  %v1431_v57 = vld [vmem:[#allocation2 + $0x980] sm:$0xff]  ;;  %v1432_v58 = vld [vmem:[#allocation2 + $0x988] sm:$0xff] }
 0x265   :  { %v15806_v1 = vpop.f32.mrb[7].mxu1 }
 0x280   :  { %v11367_v2 = vpop.f32.mrb[8].mxu1 }
 0x281   :  { %v11368_v3 = vpop.f32.mrb[9].mxu1 }
 0x282   :  { %v11369_v6 = vadd.f32 %v11368_v3, %v11367_v2  ;;  %v1399_v3 = vld [vmem:[#allocation2 + $0x880] sm:$0xff] }
 0x283   :  { %v13592_v5 = vpack.c.bf16 %v1400_v4, %v1399_v3  ;;  %v1433_v3 = vld [vmem:[#allocation2 + $0x990] sm:$0xff]  ;;  %v1434_v4 = vld [vmem:[#allocation2 + $0x998] sm:$0xff] }
 0x284   :  { %v956_v10 = vadd.f32 %v11404_v0, %v11369_v6  ;;  %v1383_v6 = vld [vmem:[#allocation2 + $0x800] sm:$0xff] }
 0x285   :  { %v13594_v16 = vpack.c.bf16 %v1384_v7, %v1383_v6  ;;  %13593 = vmatprep.subr.bf16.mxu1 %v13592_v5  ;;  %v13624_v6 = vpack.c.bf16 %v1432_v58, %v1431_v57  ;;  %v10866_v7 = vld [vmem:[%s17223_s2 + $0x68] sm:$0xff]  ;;  %v1713_v57 = vld [vmem:[#allocation2 + $0xa80] sm:$0xff] }
 0x286   :  { %12380 = vmatprep.subr.msk.mxu0 %vm565_vm1, %v956_v10  ;;  %v1714_v58 = vld [vmem:[#allocation2 + $0xa88] sm:$0xff] }
 0x287   :  { %12381 = vmatpush3.msk.msra.mxu0 %vm565_vm1, %v956_v10  ;;  %13595 = vmatpush3.bf16.msra.mxu1 %v13594_v16 }
 0x288   :  { %13561 = vmatprep.subr.bf16.mxu0 %v13560_v11  ;;  %12383 = vmatmul.mubr.msk.f32.vlgmr.msra.gmra.mrb[4].mxu0 %vm552_vm0, %v10857_v12  ;;  %v1385_v11 = vld [vmem:[#allocation2 + $0x810] sm:$0xff]  ;;  %v1386_v12 = vld [vmem:[#allocation2 + $0x818] sm:$0xff] }
 0x289   :  { %13563 = vmatpush3.bf16.msra.mxu0 %v13562_v13  ;;  %12385 = vmatprep.mubr.msk.f32.mxu0 %vm552_vm0, %v10858_v19  ;;  %v13598_v13 = vpack.c.bf16 %v1386_v12, %v1385_v11  ;;  %v1387_v19 = vld [vmem:[#allocation2 + $0x820] sm:$0xff]  ;;  %v1436_v12 = vld [vmem:[#allocation2 + $0x9a8] sm:$0xff] }
 0x28a   :  { %13565 = vmatprep.subr.bf16.mxu0 %v13564_v14  ;;  %v1403_v14 = vld [vmem:[#allocation2 + $0x8a0] sm:$0xff]  ;;  %v13602_v21 = vpack.c.bf16 %v1388_v20, %v1387_v19  ;;  %v1437_v19 = vld [vmem:[#allocation2 + $0x9b0] sm:$0xff]  ;;  %v1438_v20 = vld [vmem:[#allocation2 + $0x9b8] sm:$0xff] }
 0x28b   :  { %v13600_v18 = vpack.c.bf16 %v1404_v15, %v1403_v14  ;;  %v1435_v11 = vld [vmem:[#allocation2 + $0x9a0] sm:$0xff] }
 0x28c   :  { %12386 = vmatmul.mubr.msk.f32.gmra.mrb[6].mxu0 %vm552_vm0, %v10859_v25  ;;  %v1406_v25 = vld [vmem:[#allocation2 + $0x8b8] sm:$0xff]  ;;  %v13632_v14 = vpack.c.bf16 %v1436_v12, %v1435_v11  ;;  %v1419_v15 = vld [vmem:[#allocation2 + $0x920] sm:$0xff] }
 0x28d   :  { %13567 = vmatpush3.bf16.msra.mxu0 %v13566_v24  ;;  %1267 = vmatprep.mubr.f32.mxu0 %v15743_v23  ;;  %v1405_v24 = vld [vmem:[#allocation2 + $0x8b0] sm:$0xff]  ;;  %v1701_v12 = vld [vmem:[#allocation2 + $0xa20] sm:$0xff] }
 0x28e   :  { %13569 = vmatprep.subr.bf16.mxu0 %v13568_v26  ;;  %v13604_v26 = vpack.c.bf16 %v1406_v25, %v1405_v24  ;;  %v13636_v24 = vpack.c.bf16 %v1438_v20, %v1437_v19  ;;  %v1421_v25 = vld [vmem:[#allocation2 + $0x930] sm:$0xff]  ;;  %v1704_v20 = vld [vmem:[#allocation2 + $0xa38] sm:$0xff] }
 0x28f   :  { %v1703_v19 = vld [vmem:[#allocation2 + $0xa30] sm:$0xff] }
 0x291   :  { %13571 = vmatpush3.bf16.msra.mxu0 %v13570_v31  ;;  %v1408_v31 = vld [vmem:[#allocation2 + $0x8c8] sm:$0xff] }
 0x292   :  { %13573 = vmatprep.subr.bf16.mxu0 %v13572_v32  ;;  %v13608_v32 = vpack.c.bf16 %v1408_v31, %v1407_v30  ;;  %v13640_v30 = vpack.c.bf16 %v1440_v28, %v1439_v27  ;;  %v1423_v31 = vld [vmem:[#allocation2 + $0x940] sm:$0xff]  ;;  %v1706_v28 = vld [vmem:[#allocation2 + $0xa48] sm:$0xff] }
 0x293   :  { %v1705_v27 = vld [vmem:[#allocation2 + $0xa40] sm:$0xff] }
 0x295   :  { %13575 = vmatpush3.bf16.msra.mxu0 %v13574_v37  ;;  %v1410_v37 = vld [vmem:[#allocation2 + $0x8d8] sm:$0xff] }
 0x296   :  { %13577 = vmatprep.subr.bf16.mxu0 %v13576_v38  ;;  %v13612_v38 = vpack.c.bf16 %v1410_v37, %v1409_v36  ;;  %v13644_v36 = vpack.c.bf16 %v1442_v34, %v1441_v33  ;;  %v1425_v37 = vld [vmem:[#allocation2 + $0x950] sm:$0xff]  ;;  %v1708_v34 = vld [vmem:[#allocation2 + $0xa58] sm:$0xff] }
 0x297   :  { %v1707_v33 = vld [vmem:[#allocation2 + $0xa50] sm:$0xff] }
 0x299   :  { %13579 = vmatpush3.bf16.msra.mxu0 %v13578_v43  ;;  %v1412_v43 = vld [vmem:[#allocation2 + $0x8e8] sm:$0xff] }
 0x29a   :  { %13581 = vmatprep.subr.bf16.mxu0 %v13580_v44  ;;  %v13616_v44 = vpack.c.bf16 %v1412_v43, %v1411_v42  ;;  %v13648_v42 = vpack.c.bf16 %v1444_v40, %v1443_v39  ;;  %v1427_v43 = vld [vmem:[#allocation2 + $0x960] sm:$0xff]  ;;  %v1710_v40 = vld [vmem:[#allocation2 + $0xa68] sm:$0xff] }
 0x29b   :  { %v1709_v39 = vld [vmem:[#allocation2 + $0xa60] sm:$0xff] }
 0x29d   :  { %13583 = vmatpush3.bf16.msra.mxu0 %v13582_v49  ;;  %v1414_v49 = vld [vmem:[#allocation2 + $0x8f8] sm:$0xff] }
 0x29e   :  { %13585 = vmatprep.subr.bf16.mxu0 %v13584_v50  ;;  %v13620_v50 = vpack.c.bf16 %v1414_v49, %v1413_v48  ;;  %v13652_v48 = vpack.c.bf16 %v1446_v46, %v1445_v45  ;;  %v1429_v49 = vld [vmem:[#allocation2 + $0x970] sm:$0xff]  ;;  %v1712_v46 = vld [vmem:[#allocation2 + $0xa78] sm:$0xff] }
 0x29f   :  { %v1711_v45 = vld [vmem:[#allocation2 + $0xa70] sm:$0xff] }
 0x2a0   :  { %v11442_v62 = vpop.f32.mrb[10].mxu1 }
 0x2a1   :  { %13587 = vmatpush3.bf16.msra.mxu0 %v13586_v55  ;;  %v11443_v0 = vpop.f32.mrb[11].mxu1 }
 0x2a2   :  { %13589 = vmatprep.subr.bf16.mxu0 %v13588_v56  ;;  %v15824_v2 = vadd.f32 %v11443_v0, %v11442_v62  ;;  %v1415_v62 = vld [vmem:[#allocation2 + $0x900] sm:$0xff]  ;;  %v1416_v0 = vld [vmem:[#allocation2 + $0x908] sm:$0xff] }
 0x2a3   :  { %v13626_v16 = vpack.c.bf16 %v1416_v0, %v1415_v62  ;;  %v1697_v62 = vld [vmem:[#allocation2 + $0xa00] sm:$0xff]  ;;  %v1698_v0 = vld [vmem:[#allocation2 + $0xa08] sm:$0xff] }
 0x2a5   :  { %13591 = vmatpush3.bf16.msra.mxu0 %v13590_v61 }
 0x2a8   :  { %1268 = vmatmul.mubr.f32.vlgmr.msra.gmra.mrb[10].mxu0 %v15735_v17  ;;  %v1402_v17 = vld [vmem:[#allocation2 + $0x898] sm:$0xff] }
 0x2a9   :  { %12390 = vmatprep.mubr.msk.f32.mxu0 %vm552_vm0, %v10865_v8  ;;  %v13596_v10 = vpack.c.bf16 %v1402_v17, %v1401_v9  ;;  %v13628_v8 = vpack.c.bf16 %v1434_v4, %v1433_v3  ;;  %v1417_v9 = vld [vmem:[#allocation2 + $0x910] sm:$0xff]  ;;  %v1418_v17 = vld [vmem:[#allocation2 + $0x918] sm:$0xff]  ;;  %v13658_v3 = vpack.c.bf16 %v1698_v0, %v1697_v62  ;;  %v10874_v4 = vld [vmem:[%s17223_s2 + $0x80] sm:$0xff] }
 0x2ab   :  { %13597 = vmatprep.subr.bf16.mxu1 %v13596_v10  ;;  %v10867_v10 = vld [vmem:[%s17223_s2 + $0x70] sm:$0xff] }
 0x2ac   :  { %13599 = vmatpush3.bf16.msra.mxu1 %v13598_v13  ;;  %v10868_v13 = vld [vmem:[%s17223_s2 + $0x78] sm:$0xff] }
 0x2ad   :  { %13601 = vmatprep.subr.bf16.mxu1 %v13600_v18  ;;  %v1420_v18 = vld [vmem:[#allocation2 + $0x928] sm:$0xff] }
 0x2b0   :  { %13603 = vmatpush3.bf16.msra.mxu1 %v13602_v21  ;;  %v13634_v21 = vpack.c.bf16 %v1420_v18, %v1419_v15  ;;  %v1720_v15 = vld [vmem:[#allocation2 + $0xab8] sm:$0xff] }
 0x2b1   :  { %13605 = vmatprep.subr.bf16.mxu1 %v13604_v26  ;;  %v1422_v26 = vld [vmem:[#allocation2 + $0x938] sm:$0xff] }
 0x2b4   :  { %13607 = vmatpush3.bf16.msra.mxu1 %v13606_v29  ;;  %v13638_v29 = vpack.c.bf16 %v1422_v26, %v1421_v25  ;;  %v1722_v25 = vld [vmem:[#allocation2 + $0xac8] sm:$0xff] }
 0x2b5   :  { %13609 = vmatprep.subr.bf16.mxu1 %v13608_v32  ;;  %v1424_v32 = vld [vmem:[#allocation2 + $0x948] sm:$0xff] }
 0x2b8   :  { %13611 = vmatpush3.bf16.msra.mxu1 %v13610_v35  ;;  %v13642_v35 = vpack.c.bf16 %v1424_v32, %v1423_v31  ;;  %v1724_v31 = vld [vmem:[#allocation2 + $0xad8] sm:$0xff] }
 0x2b9   :  { %13613 = vmatprep.subr.bf16.mxu1 %v13612_v38  ;;  %v1426_v38 = vld [vmem:[#allocation2 + $0x958] sm:$0xff] }
 0x2bc   :  { %13615 = vmatpush3.bf16.msra.mxu1 %v13614_v41  ;;  %v13646_v41 = vpack.c.bf16 %v1426_v38, %v1425_v37  ;;  %v1726_v37 = vld [vmem:[#allocation2 + $0xae8] sm:$0xff] }
 0x2bd   :  { %13617 = vmatprep.subr.bf16.mxu1 %v13616_v44  ;;  %v1428_v44 = vld [vmem:[#allocation2 + $0x968] sm:$0xff] }
 0x2c0   :  { %13619 = vmatpush3.bf16.msra.mxu1 %v13618_v47  ;;  %v13650_v47 = vpack.c.bf16 %v1428_v44, %v1427_v43  ;;  %v1728_v43 = vld [vmem:[#allocation2 + $0xaf8] sm:$0xff] }
 0x2c1   :  { %13621 = vmatprep.subr.bf16.mxu1 %v13620_v50  ;;  %v1430_v50 = vld [vmem:[#allocation2 + $0x978] sm:$0xff] }
 0x2c2   :  { %v13654_v51 = vpack.c.bf16 %v1430_v50, %v1429_v49  ;;  %v1745_v50 = vld [vmem:[#allocation2 + $0xb80] sm:$0xff] }
 0x2c4   :  { %13623 = vmatpush3.bf16.msra.mxu1 %v13622_v53 }
 0x2c7   :  { %1512 = vmatmul.mubr.f32.vlgmr.msra.gmra.mrb[12].mxu1 %v15833_v54 }
 0x2c8   :  { %1825 = vmatprep.mubr.f32.mxu1 %v15739_v22 }
 0x37b   :  { %v11477_v55 = vpop.f32.mrb[10].mxu0 }
 0x37c   :  { %v11478_v56 = vpop.f32.mrb[11].mxu0 }
 0x37d   :  { %v11479_v61 = vadd.f32 %v11478_v56, %v11477_v55 }
 0x37f   :  { %v1270_v5 = vadd.f32 %v11479_v61, %v15824_v2  ;;  %v13630_v2 = vpack.c.bf16 %v1418_v17, %v1417_v9  ;;  %v13656_v61 = vpack.c.bf16 %v1714_v58, %v1713_v57  ;;  %v1717_v17 = vld [vmem:[#allocation2 + $0xaa0] sm:$0xff]  ;;  %v1730_v57 = vld [vmem:[#allocation2 + $0xb08] sm:$0xff]  ;;  %v1747_v58 = vld [vmem:[#allocation2 + $0xb90] sm:$0xff] }
 0x381   :  { %12388 = vmatprep.subr.msk.mxu0 %vm565_vm1, %v1270_v5  ;;  %13657 = vmatprep.subr.bf16.mxu1 %v13656_v61  ;;  %v1748_v61 = vld [vmem:[#allocation2 + $0xb98] sm:$0xff] }
 0x382   :  { %12389 = vmatpush3.msk.msra.mxu0 %vm565_vm1, %v1270_v5  ;;  %13659 = vmatpush3.bf16.msra.mxu1 %v13658_v3  ;;  %v1715_v5 = vld [vmem:[#allocation2 + $0xa90] sm:$0xff]  ;;  %v10875_v3 = vld [vmem:[%s17223_s2 + $0x88] sm:$0xff] }
 0x383   :  { %13625 = vmatprep.subr.bf16.mxu0 %v13624_v6  ;;  %12391 = vmatmul.mubr.msk.f32.vlgmr.msra.gmra.mrb[4].mxu0 %vm552_vm0, %v10866_v7  ;;  %v1716_v6 = vld [vmem:[#allocation2 + $0xa98] sm:$0xff] }
 0x384   :  { %13627 = vmatpush3.bf16.msra.mxu0 %v13626_v16  ;;  %12393 = vmatprep.mubr.msk.f32.mxu0 %vm552_vm0, %v10867_v10  ;;  %v13660_v7 = vpack.c.bf16 %v1716_v6, %v1715_v5  ;;  %v1699_v16 = vld [vmem:[#allocation2 + $0xa10] sm:$0xff]  ;;  %v1718_v10 = vld [vmem:[#allocation2 + $0xaa8] sm:$0xff]  ;;  %v13692_v5 = vpack.c.bf16 %v1748_v61, %v1747_v58  ;;  %v10883_v61 = vld [vmem:[%s17223_s2 + $0xa0] sm:$0xff] }
 0x385   :  { %13629 = vmatprep.subr.bf16.mxu0 %v13628_v8  ;;  %v1700_v8 = vld [vmem:[#allocation2 + $0xa18] sm:$0xff]  ;;  %v13664_v11 = vpack.c.bf16 %v1718_v10, %v1717_v17  ;;  %v1731_v6 = vld [vmem:[#allocation2 + $0xb10] sm:$0xff] }
 0x386   :  { %v13662_v9 = vpack.c.bf16 %v1700_v8, %v1699_v16  ;;  %13661 = vmatprep.subr.bf16.mxu1 %v13660_v7  ;;  %v1732_v7 = vld [vmem:[#allocation2 + $0xb18] sm:$0xff]  ;;  %v10876_v16 = vld [vmem:[%s17223_s2 + $0x90] sm:$0xff]  ;;  %v1749_v8 = vld [vmem:[#allocation2 + $0xba0] sm:$0xff] }
 0x387   :  { %12394 = vmatmul.mubr.msk.f32.gmra.mrb[6].mxu0 %vm552_vm0, %v10868_v13  ;;  %v10877_v17 = vld [vmem:[%s17223_s2 + $0x98] sm:$0xff] }
 0x388   :  { %13631 = vmatpush3.bf16.msra.mxu0 %v13630_v2  ;;  %1581 = vmatprep.mubr.f32.mxu0 %v15743_v23  ;;  %v1702_v2 = vld [vmem:[#allocation2 + $0xa28] sm:$0xff] }
 0x389   :  { %13633 = vmatprep.subr.bf16.mxu0 %v13632_v14  ;;  %13663 = vmatpush3.bf16.msra.mxu1 %v13662_v9  ;;  %v13666_v13 = vpack.c.bf16 %v1702_v2, %v1701_v12  ;;  %v1719_v14 = vld [vmem:[#allocation2 + $0xab0] sm:$0xff]  ;;  %v1750_v9 = vld [vmem:[#allocation2 + $0xba8] sm:$0xff] }
 0x38a   :  { %13665 = vmatprep.subr.bf16.mxu1 %v13664_v11  ;;  %v13668_v18 = vpack.c.bf16 %v1720_v15, %v1719_v14  ;;  %v13696_v10 = vpack.c.bf16 %v1750_v9, %v1749_v8  ;;  %v1733_v11 = vld [vmem:[#allocation2 + $0xb20] sm:$0xff]  ;;  %v1734_v12 = vld [vmem:[#allocation2 + $0xb28] sm:$0xff]  ;;  %v1751_v2 = vld [vmem:[#allocation2 + $0xbb0] sm:$0xff] }
 0x38b   :  { %v13698_v14 = vpack.c.bf16 %v1734_v12, %v1733_v11  ;;  %v2015_v9 = vld [vmem:[#allocation2 + $0xc20] sm:$0xff]  ;;  %v2034_v11 = vld [vmem:[#allocation2 + $0xcb8] sm:$0xff] }
 0x38c   :  { %13635 = vmatpush3.bf16.msra.mxu0 %v13634_v21  ;;  %v13670_v21 = vpack.c.bf16 %v1704_v20, %v1703_v19  ;;  %v1736_v19 = vld [vmem:[#allocation2 + $0xb38] sm:$0xff]  ;;  %v1753_v20 = vld [vmem:[#allocation2 + $0xbc0] sm:$0xff] }
 0x38d   :  { %13637 = vmatprep.subr.bf16.mxu0 %v13636_v24  ;;  %13667 = vmatpush3.bf16.msra.mxu1 %v13666_v13  ;;  %v1721_v24 = vld [vmem:[#allocation2 + $0xac0] sm:$0xff]  ;;  %v1752_v13 = vld [vmem:[#allocation2 + $0xbb8] sm:$0xff] }
 0x38e   :  { %13669 = vmatprep.subr.bf16.mxu1 %v13668_v18  ;;  %v13672_v26 = vpack.c.bf16 %v1722_v25, %v1721_v24  ;;  %v13700_v15 = vpack.c.bf16 %v1752_v13, %v1751_v2  ;;  %v1735_v18 = vld [vmem:[#allocation2 + $0xb30] sm:$0xff]  ;;  %v2018_v13 = vld [vmem:[#allocation2 + $0xc38] sm:$0xff] }
 0x38f   :  { %v13702_v24 = vpack.c.bf16 %v1736_v19, %v1735_v18  ;;  %v2017_v2 = vld [vmem:[#allocation2 + $0xc30] sm:$0xff]  ;;  %v2036_v18 = vld [vmem:[#allocation2 + $0xcc8] sm:$0xff] }
 0x390   :  { %13639 = vmatpush3.bf16.msra.mxu0 %v13638_v29  ;;  %v13674_v29 = vpack.c.bf16 %v1706_v28, %v1705_v27  ;;  %v1738_v27 = vld [vmem:[#allocation2 + $0xb48] sm:$0xff]  ;;  %v1755_v28 = vld [vmem:[#allocation2 + $0xbd0] sm:$0xff] }
 0x391   :  { %13641 = vmatprep.subr.bf16.mxu0 %v13640_v30  ;;  %13671 = vmatpush3.bf16.msra.mxu1 %v13670_v21  ;;  %v1723_v30 = vld [vmem:[#allocation2 + $0xad0] sm:$0xff]  ;;  %v1754_v21 = vld [vmem:[#allocation2 + $0xbc8] sm:$0xff] }
 0x392   :  { %13673 = vmatprep.subr.bf16.mxu1 %v13672_v26  ;;  %v13676_v32 = vpack.c.bf16 %v1724_v31, %v1723_v30  ;;  %v13704_v25 = vpack.c.bf16 %v1754_v21, %v1753_v20  ;;  %v1737_v26 = vld [vmem:[#allocation2 + $0xb40] sm:$0xff]  ;;  %v2020_v21 = vld [vmem:[#allocation2 + $0xc48] sm:$0xff] }
 0x393   :  { %v13706_v30 = vpack.c.bf16 %v1738_v27, %v1737_v26  ;;  %v2019_v20 = vld [vmem:[#allocation2 + $0xc40] sm:$0xff]  ;;  %v2038_v26 = vld [vmem:[#allocation2 + $0xcd8] sm:$0xff] }
 0x394   :  { %13643 = vmatpush3.bf16.msra.mxu0 %v13642_v35  ;;  %v13678_v35 = vpack.c.bf16 %v1708_v34, %v1707_v33  ;;  %v1740_v33 = vld [vmem:[#allocation2 + $0xb58] sm:$0xff]  ;;  %v1757_v34 = vld [vmem:[#allocation2 + $0xbe0] sm:$0xff] }
 0x395   :  { %13645 = vmatprep.subr.bf16.mxu0 %v13644_v36  ;;  %13675 = vmatpush3.bf16.msra.mxu1 %v13674_v29  ;;  %v1725_v36 = vld [vmem:[#allocation2 + $0xae0] sm:$0xff]  ;;  %v1756_v29 = vld [vmem:[#allocation2 + $0xbd8] sm:$0xff] }
 0x396   :  { %13677 = vmatprep.subr.bf16.mxu1 %v13676_v32  ;;  %v13680_v38 = vpack.c.bf16 %v1726_v37, %v1725_v36  ;;  %v13708_v31 = vpack.c.bf16 %v1756_v29, %v1755_v28  ;;  %v1739_v32 = vld [vmem:[#allocation2 + $0xb50] sm:$0xff]  ;;  %v2022_v29 = vld [vmem:[#allocation2 + $0xc58] sm:$0xff] }
 0x397   :  { %v13710_v36 = vpack.c.bf16 %v1740_v33, %v1739_v32  ;;  %v2021_v28 = vld [vmem:[#allocation2 + $0xc50] sm:$0xff]  ;;  %v2040_v32 = vld [vmem:[#allocation2 + $0xce8] sm:$0xff] }
 0x398   :  { %13647 = vmatpush3.bf16.msra.mxu0 %v13646_v41  ;;  %v13682_v41 = vpack.c.bf16 %v1710_v40, %v1709_v39  ;;  %v1742_v39 = vld [vmem:[#allocation2 + $0xb68] sm:$0xff]  ;;  %v1759_v40 = vld [vmem:[#allocation2 + $0xbf0] sm:$0xff] }
 0x399   :  { %13649 = vmatprep.subr.bf16.mxu0 %v13648_v42  ;;  %13679 = vmatpush3.bf16.msra.mxu1 %v13678_v35  ;;  %v1727_v42 = vld [vmem:[#allocation2 + $0xaf0] sm:$0xff]  ;;  %v1758_v35 = vld [vmem:[#allocation2 + $0xbe8] sm:$0xff] }
 0x39a   :  { %v11517_v53 = vpop.f32.mrb[12].mxu1  ;;  %13681 = vmatprep.subr.bf16.mxu1 %v13680_v38  ;;  %v13684_v44 = vpack.c.bf16 %v1728_v43, %v1727_v42  ;;  %v13712_v37 = vpack.c.bf16 %v1758_v35, %v1757_v34  ;;  %v1741_v38 = vld [vmem:[#allocation2 + $0xb60] sm:$0xff]  ;;  %v2024_v35 = vld [vmem:[#allocation2 + $0xc68] sm:$0xff] }
 0x39b   :  { %v11518_v55 = vpop.f32.mrb[13].mxu1  ;;  %v13714_v42 = vpack.c.bf16 %v1742_v39, %v1741_v38  ;;  %v2023_v34 = vld [vmem:[#allocation2 + $0xc60] sm:$0xff]  ;;  %v2042_v38 = vld [vmem:[#allocation2 + $0xcf8] sm:$0xff] }
 0x39c   :  { %13651 = vmatpush3.bf16.msra.mxu0 %v13650_v47  ;;  %v15859_v56 = vadd.f32 %v11518_v55, %v11517_v53  ;;  %v13686_v47 = vpack.c.bf16 %v1712_v46, %v1711_v45  ;;  %v1729_v55 = vld [vmem:[#allocation2 + $0xb00] sm:$0xff]  ;;  %v1744_v45 = vld [vmem:[#allocation2 + $0xb78] sm:$0xff] }
 0x39d   :  { %13653 = vmatprep.subr.bf16.mxu0 %v13652_v48  ;;  %13683 = vmatpush3.bf16.msra.mxu1 %v13682_v41  ;;  %v1760_v41 = vld [vmem:[#allocation2 + $0xbf8] sm:$0xff] }
 0x39e   :  { %13685 = vmatprep.subr.bf16.mxu1 %v13684_v44  ;;  %v13716_v43 = vpack.c.bf16 %v1760_v41, %v1759_v40  ;;  %v1743_v44 = vld [vmem:[#allocation2 + $0xb70] sm:$0xff]  ;;  %v2026_v41 = vld [vmem:[#allocation2 + $0xc78] sm:$0xff] }
 0x39f   :  { %v13718_v46 = vpack.c.bf16 %v1744_v45, %v1743_v44  ;;  %v2025_v40 = vld [vmem:[#allocation2 + $0xc70] sm:$0xff]  ;;  %v2342_v44 = vld [vmem:[#allocation2 + $0xe88] sm:$0xff]  ;;  %v2325_v45 = vld [vmem:[#allocation2 + $0xe00] sm:$0xff] }
 0x3a0   :  { %13655 = vmatpush3.bf16.msra.mxu0 %v13654_v51  ;;  %v1746_v51 = vld [vmem:[#allocation2 + $0xb88] sm:$0xff] }
 0x3a1   :  { %13687 = vmatpush3.bf16.msra.mxu1 %v13686_v47  ;;  %v13688_v0 = vpack.c.bf16 %v1746_v51, %v1745_v50  ;;  %v2027_v50 = vld [vmem:[#allocation2 + $0xc80] sm:$0xff]  ;;  %v2028_v51 = vld [vmem:[#allocation2 + $0xc88] sm:$0xff] }
 0x3a3   :  { %1582 = vmatmul.mubr.f32.vlgmr.msra.gmra.mrb[12].mxu0 %v15856_v52 }
 0x3a4   :  { %12398 = vmatprep.mubr.msk.f32.mxu0 %vm552_vm0, %v10874_v4  ;;  %1826 = vmatmul.mubr.f32.vlgmr.msra.gmra.mrb[14].mxu1 %v15833_v54  ;;  %v13690_v4 = vpack.c.bf16 %v1730_v57, %v1729_v55  ;;  %v2011_v55 = vld [vmem:[#allocation2 + $0xc00] sm:$0xff]  ;;  %v2012_v57 = vld [vmem:[#allocation2 + $0xc08] sm:$0xff] }
 0x3a5   :  { %2139 = vmatprep.mubr.f32.mxu1 %v15739_v22  ;;  %v13722_v58 = vpack.c.bf16 %v2012_v57, %v2011_v55  ;;  %v2327_v55 = vld [vmem:[#allocation2 + $0xe10] sm:$0xff]  ;;  %v2328_v57 = vld [vmem:[#allocation2 + $0xe18] sm:$0xff] }
 0x476   :  { %v11552_v48 = vpop.f32.mrb[12].mxu0 }
 0x477   :  { %v11553_v49 = vpop.f32.mrb[13].mxu0  ;;  %v11592_v47 = vpop.f32.mrb[14].mxu1 }
 0x478   :  { %v11554_v53 = vadd.f32 %v11553_v49, %v11552_v48  ;;  %v11593_v48 = vpop.f32.mrb[15].mxu1 }
 0x479   :  { %v15884_v49 = vadd.f32 %v11593_v48, %v11592_v47  ;;  %v2326_v47 = vld [vmem:[#allocation2 + $0xe08] sm:$0xff]  ;;  %v2343_v48 = vld [vmem:[#allocation2 + $0xe90] sm:$0xff] }
 0x47a   :  { %v1584_v62 = vadd.f32 %v11554_v53, %v15859_v56  ;;  %v13694_v56 = vpack.c.bf16 %v1732_v7, %v1731_v6  ;;  %v13720_v53 = vpack.c.bf16 %v2028_v51, %v2027_v50  ;;  %v2031_v7 = vld [vmem:[#allocation2 + $0xca0] sm:$0xff]  ;;  %v2344_v50 = vld [vmem:[#allocation2 + $0xe98] sm:$0xff]  ;;  %v13786_v51 = vpack.c.bf16 %v2326_v47, %v2325_v45  ;;  %v2641_v45 = vld [vmem:[#allocation2 + $0x1010] sm:$0xff] }
 0x47b   :  { %v2659_v47 = vld [vmem:[#allocation2 + $0x10a0] sm:$0xff] }
 0x47c   :  { %12396 = vmatprep.subr.msk.mxu0 %vm565_vm1, %v1584_v62  ;;  %13721 = vmatprep.subr.bf16.mxu1 %v13720_v53  ;;  %v13788_v53 = vpack.c.bf16 %v2344_v50, %v2343_v48  ;;  %v2660_v48 = vld [vmem:[#allocation2 + $0x10a8] sm:$0xff] }
 0x47d   :  { %12397 = vmatpush3.msk.msra.mxu0 %vm565_vm1, %v1584_v62  ;;  %13723 = vmatpush3.bf16.msra.mxu1 %v13722_v58  ;;  %v2029_v62 = vld [vmem:[#allocation2 + $0xc90] sm:$0xff]  ;;  %v2345_v58 = vld [vmem:[#allocation2 + $0xea0] sm:$0xff] }
 0x47e   :  { %13689 = vmatprep.subr.bf16.mxu0 %v13688_v0  ;;  %12399 = vmatmul.mubr.msk.f32.vlgmr.msra.gmra.mrb[4].mxu0 %vm552_vm0, %v10875_v3  ;;  %v2030_v0 = vld [vmem:[#allocation2 + $0xc98] sm:$0xff] }
 0x47f   :  { %13691 = vmatpush3.bf16.msra.mxu0 %v13690_v4  ;;  %12401 = vmatprep.mubr.msk.f32.mxu0 %vm552_vm0, %v10876_v16  ;;  %v13724_v3 = vpack.c.bf16 %v2030_v0, %v2029_v62  ;;  %v2013_v4 = vld [vmem:[#allocation2 + $0xc10] sm:$0xff]  ;;  %v2032_v16 = vld [vmem:[#allocation2 + $0xca8] sm:$0xff]  ;;  %v13790_v62 = vpack.c.bf16 %v2328_v57, %v2327_v55 }
 0x480   :  { %13693 = vmatprep.subr.bf16.mxu0 %v13692_v5  ;;  %v2014_v5 = vld [vmem:[#allocation2 + $0xc18] sm:$0xff]  ;;  %v13728_v8 = vpack.c.bf16 %v2032_v16, %v2031_v7  ;;  %v2644_v55 = vld [vmem:[#allocation2 + $0x1028] sm:$0xff]  ;;  %v2661_v57 = vld [vmem:[#allocation2 + $0x10b0] sm:$0xff] }
 0x481   :  { %v13726_v6 = vpack.c.bf16 %v2014_v5, %v2013_v4  ;;  %13725 = vmatprep.subr.bf16.mxu1 %v13724_v3  ;;  %v2329_v3 = vld [vmem:[#allocation2 + $0xe20] sm:$0xff]  ;;  %v2330_v4 = vld [vmem:[#allocation2 + $0xe28] sm:$0xff]  ;;  %v2347_v5 = vld [vmem:[#allocation2 + $0xeb0] sm:$0xff] }
 0x482   :  { %12402 = vmatmul.mubr.msk.f32.gmra.mrb[6].mxu0 %vm552_vm0, %v10877_v17  ;;  %v13794_v7 = vpack.c.bf16 %v2330_v4, %v2329_v3  ;;  %v2646_v3 = vld [vmem:[#allocation2 + $0x1038] sm:$0xff]  ;;  %v2663_v4 = vld [vmem:[#allocation2 + $0x10c0] sm:$0xff] }
 0x483   :  { %13695 = vmatpush3.bf16.msra.mxu0 %v13694_v56  ;;  %1895 = vmatprep.mubr.f32.mxu0 %v15743_v23  ;;  %v2016_v56 = vld [vmem:[#allocation2 + $0xc28] sm:$0xff] }
 0x484   :  { %13697 = vmatprep.subr.bf16.mxu0 %v13696_v10  ;;  %13727 = vmatpush3.bf16.msra.mxu1 %v13726_v6  ;;  %v13730_v17 = vpack.c.bf16 %v2016_v56, %v2015_v9  ;;  %v2033_v10 = vld [vmem:[#allocation2 + $0xcb0] sm:$0xff]  ;;  %v2348_v6 = vld [vmem:[#allocation2 + $0xeb8] sm:$0xff]  ;;  %v2349_v56 = vld [vmem:[#allocation2 + $0xec0] sm:$0xff] }
 0x485   :  { %13729 = vmatprep.subr.bf16.mxu1 %v13728_v8  ;;  %v13732_v12 = vpack.c.bf16 %v2034_v11, %v2033_v10  ;;  %v13796_v16 = vpack.c.bf16 %v2348_v6, %v2347_v5  ;;  %v2331_v8 = vld [vmem:[#allocation2 + $0xe30] sm:$0xff]  ;;  %v2332_v9 = vld [vmem:[#allocation2 + $0xe38] sm:$0xff]  ;;  %v2664_v5 = vld [vmem:[#allocation2 + $0x10c8] sm:$0xff] }
 0x486   :  { %v13798_v10 = vpack.c.bf16 %v2332_v9, %v2331_v8  ;;  %v2665_v8 = vld [vmem:[#allocation2 + $0x10d0] sm:$0xff]  ;;  %v2666_v9 = vld [vmem:[#allocation2 + $0x10d8] sm:$0xff] }
 0x487   :  { %13699 = vmatpush3.bf16.msra.mxu0 %v13698_v14  ;;  %v13734_v14 = vpack.c.bf16 %v2018_v13, %v2017_v2  ;;  %v2334_v2 = vld [vmem:[#allocation2 + $0xe48] sm:$0xff]  ;;  %v2351_v13 = vld [vmem:[#allocation2 + $0xed0] sm:$0xff] }
 0x488   :  { %13701 = vmatprep.subr.bf16.mxu0 %v13700_v15  ;;  %13731 = vmatpush3.bf16.msra.mxu1 %v13730_v17  ;;  %v2035_v15 = vld [vmem:[#allocation2 + $0xcc0] sm:$0xff]  ;;  %v2350_v17 = vld [vmem:[#allocation2 + $0xec8] sm:$0xff] }
 0x489   :  { %13733 = vmatprep.subr.bf16.mxu1 %v13732_v12  ;;  %v13736_v19 = vpack.c.bf16 %v2036_v18, %v2035_v15  ;;  %v13800_v11 = vpack.c.bf16 %v2350_v17, %v2349_v56  ;;  %v2333_v12 = vld [vmem:[#allocation2 + $0xe40] sm:$0xff]  ;;  %v13868_v17 = vpack.c.bf16 %v2666_v9, %v2665_v8  ;;  %v2045_v8 = vld [vmem:[#allocation2 + $0xd10] sm:$0xff]  ;;  %v2046_v9 = vld [vmem:[#allocation2 + $0xd18] sm:$0xff] }
 0x48a   :  { %v13802_v15 = vpack.c.bf16 %v2334_v2, %v2333_v12  ;;  %v2667_v12 = vld [vmem:[#allocation2 + $0x10e0] sm:$0xff]  ;;  %v2668_v2 = vld [vmem:[#allocation2 + $0x10e8] sm:$0xff] }
 0x48b   :  { %13703 = vmatpush3.bf16.msra.mxu0 %v13702_v24  ;;  %v13738_v24 = vpack.c.bf16 %v2020_v21, %v2019_v20  ;;  %v2336_v20 = vld [vmem:[#allocation2 + $0xe58] sm:$0xff]  ;;  %v2353_v21 = vld [vmem:[#allocation2 + $0xee0] sm:$0xff] }
 0x48c   :  { %13705 = vmatprep.subr.bf16.mxu0 %v13704_v25  ;;  %13735 = vmatpush3.bf16.msra.mxu1 %v13734_v14  ;;  %v2037_v25 = vld [vmem:[#allocation2 + $0xcd0] sm:$0xff]  ;;  %v2352_v14 = vld [vmem:[#allocation2 + $0xed8] sm:$0xff] }
 0x48d   :  { %13737 = vmatprep.subr.bf16.mxu1 %v13736_v19  ;;  %v13740_v27 = vpack.c.bf16 %v2038_v26, %v2037_v25  ;;  %v13804_v18 = vpack.c.bf16 %v2352_v14, %v2351_v13  ;;  %v2335_v19 = vld [vmem:[#allocation2 + $0xe50] sm:$0xff]  ;;  %v13872_v14 = vpack.c.bf16 %v2668_v2, %v2667_v12  ;;  %v2047_v2 = vld [vmem:[#allocation2 + $0xd20] sm:$0xff] }
 0x48e   :  { %v13806_v25 = vpack.c.bf16 %v2336_v20, %v2335_v19  ;;  %v2669_v19 = vld [vmem:[#allocation2 + $0x10f0] sm:$0xff]  ;;  %v2670_v20 = vld [vmem:[#allocation2 + $0x10f8] sm:$0xff] }
 0x48f   :  { %13707 = vmatpush3.bf16.msra.mxu0 %v13706_v30  ;;  %v13742_v30 = vpack.c.bf16 %v2022_v29, %v2021_v28  ;;  %v2338_v28 = vld [vmem:[#allocation2 + $0xe68] sm:$0xff]  ;;  %v2355_v29 = vld [vmem:[#allocation2 + $0xef0] sm:$0xff] }
 0x490   :  { %13709 = vmatprep.subr.bf16.mxu0 %v13708_v31  ;;  %13739 = vmatpush3.bf16.msra.mxu1 %v13738_v24  ;;  %v2039_v31 = vld [vmem:[#allocation2 + $0xce0] sm:$0xff]  ;;  %v2354_v24 = vld [vmem:[#allocation2 + $0xee8] sm:$0xff] }
 0x491   :  { %13741 = vmatprep.subr.bf16.mxu1 %v13740_v27  ;;  %v13744_v33 = vpack.c.bf16 %v2040_v32, %v2039_v31  ;;  %v13808_v26 = vpack.c.bf16 %v2354_v24, %v2353_v21  ;;  %v2337_v27 = vld [vmem:[#allocation2 + $0xe60] sm:$0xff]  ;;  %v13876_v24 = vpack.c.bf16 %v2670_v20, %v2669_v19  ;;  %v2049_v20 = vld [vmem:[#allocation2 + $0xd30] sm:$0xff] }
 0x492   :  { %v13810_v31 = vpack.c.bf16 %v2338_v28, %v2337_v27  ;;  %v2687_v27 = vld [vmem:[#allocation2 + $0x1180] sm:$0xff]  ;;  %v2688_v28 = vld [vmem:[#allocation2 + $0x1188] sm:$0xff] }
 0x493   :  { %13711 = vmatpush3.bf16.msra.mxu0 %v13710_v36  ;;  %v13746_v36 = vpack.c.bf16 %v2024_v35, %v2023_v34  ;;  %v2340_v34 = vld [vmem:[#allocation2 + $0xe78] sm:$0xff]  ;;  %v2655_v35 = vld [vmem:[#allocation2 + $0x1080] sm:$0xff] }
 0x494   :  { %13713 = vmatprep.subr.bf16.mxu0 %v13712_v37  ;;  %13743 = vmatpush3.bf16.msra.mxu1 %v13742_v30  ;;  %v2041_v37 = vld [vmem:[#allocation2 + $0xcf0] sm:$0xff]  ;;  %v2356_v30 = vld [vmem:[#allocation2 + $0xef8] sm:$0xff] }
 0x495   :  { %13745 = vmatprep.subr.bf16.mxu1 %v13744_v33  ;;  %v13748_v39 = vpack.c.bf16 %v2042_v38, %v2041_v37  ;;  %v13812_v32 = vpack.c.bf16 %v2356_v30, %v2355_v29  ;;  %v2339_v33 = vld [vmem:[#allocation2 + $0xe70] sm:$0xff]  ;;  %v13880_v30 = vpack.c.bf16 %v2688_v28, %v2687_v27  ;;  %v2051_v28 = vld [vmem:[#allocation2 + $0xd40] sm:$0xff] }
 0x496   :  { %v13814_v37 = vpack.c.bf16 %v2340_v34, %v2339_v33  ;;  %v2689_v33 = vld [vmem:[#allocation2 + $0x1190] sm:$0xff]  ;;  %v2690_v34 = vld [vmem:[#allocation2 + $0x1198] sm:$0xff] }
 0x497   :  { %13715 = vmatpush3.bf16.msra.mxu0 %v13714_v42  ;;  %v13750_v42 = vpack.c.bf16 %v2026_v41, %v2025_v40  ;;  %v2640_v40 = vld [vmem:[#allocation2 + $0x1008] sm:$0xff]  ;;  %v2657_v41 = vld [vmem:[#allocation2 + $0x1090] sm:$0xff] }
 0x498   :  { %13717 = vmatprep.subr.bf16.mxu0 %v13716_v43  ;;  %13747 = vmatpush3.bf16.msra.mxu1 %v13746_v36  ;;  %v2341_v43 = vld [vmem:[#allocation2 + $0xe80] sm:$0xff]  ;;  %v2656_v36 = vld [vmem:[#allocation2 + $0x1088] sm:$0xff] }
 0x499   :  { %13749 = vmatprep.subr.bf16.mxu1 %v13748_v39  ;;  %v13848_v38 = vpack.c.bf16 %v2656_v36, %v2655_v35  ;;  %v2639_v39 = vld [vmem:[#allocation2 + $0x1000] sm:$0xff]  ;;  %v13884_v36 = vpack.c.bf16 %v2690_v34, %v2689_v33  ;;  %v2053_v34 = vld [vmem:[#allocation2 + $0xd50] sm:$0xff] }
 0x49b   :  { %13719 = vmatpush3.bf16.msra.mxu0 %v13718_v46  ;;  %v13784_v46 = vpack.c.bf16 %v2342_v44, %v2341_v43  ;;  %v13850_v43 = vpack.c.bf16 %v2640_v40, %v2639_v39  ;;  %v2691_v39 = vld [vmem:[#allocation2 + $0x11a0] sm:$0xff]  ;;  %v2692_v40 = vld [vmem:[#allocation2 + $0x11a8] sm:$0xff] }
 0x49c   :  { %13751 = vmatpush3.bf16.msra.mxu1 %v13750_v42  ;;  %v2658_v42 = vld [vmem:[#allocation2 + $0x1098] sm:$0xff] }
 0x49d   :  { %13785 = vmatprep.subr.bf16.mxu1 %v13784_v46  ;;  %v13852_v44 = vpack.c.bf16 %v2658_v42, %v2657_v41  ;;  %v2642_v46 = vld [vmem:[#allocation2 + $0x1018] sm:$0xff]  ;;  %v13888_v42 = vpack.c.bf16 %v2692_v40, %v2691_v39  ;;  %v2055_v40 = vld [vmem:[#allocation2 + $0xd60] sm:$0xff] }
 0x49e   :  { %1896 = vmatmul.mubr.f32.vlgmr.msra.gmra.mrb[14].mxu0 %v15856_v52  ;;  %v13854_v50 = vpack.c.bf16 %v2642_v46, %v2641_v45  ;;  %v2693_v45 = vld [vmem:[#allocation2 + $0x11b0] sm:$0xff]  ;;  %v2694_v46 = vld [vmem:[#allocation2 + $0x11b8] sm:$0xff] }
 0x49f   :  { %12406 = vmatprep.mubr.msk.f32.mxu0 %vm552_vm0, %v10883_v61  ;;  %2140 = vmatmul.mubr.f32.vlgmr.msra.gmra.mrb[16].mxu1 %v15833_v54  ;;  %v2346_v61 = vld [vmem:[#allocation2 + $0xea8] sm:$0xff] }
 0x4a0   :  { %2453 = vmatprep.mubr.f32.mxu1 %v15739_v22  ;;  %13787 = vmatpush3.bf16.msra.mxu1 %v13786_v51  ;;  %v13792_v0 = vpack.c.bf16 %v2346_v61, %v2345_v58  ;;  %v13856_v51 = vpack.c.bf16 %v2660_v48, %v2659_v47  ;;  %v2662_v58 = vld [vmem:[#allocation2 + $0x10b8] sm:$0xff]  ;;  %v13892_v48 = vpack.c.bf16 %v2694_v46, %v2693_v45  ;;  %v2057_v46 = vld [vmem:[#allocation2 + $0xd70] sm:$0xff] }
 0x4a1   :  { %13789 = vmatprep.subr.bf16.mxu1 %v13788_v53  ;;  %v2643_v53 = vld [vmem:[#allocation2 + $0x1020] sm:$0xff] }
 0x4a2   :  { %v13858_v61 = vpack.c.bf16 %v2644_v55, %v2643_v53 }
 0x4a4   :  { %13791 = vmatpush3.bf16.msra.mxu1 %v13790_v62  ;;  %v13860_v62 = vpack.c.bf16 %v2662_v58, %v2661_v57  ;;  %v2059_v57 = vld [vmem:[#allocation2 + $0xd80] sm:$0xff]  ;;  %v2060_v58 = vld [vmem:[#allocation2 + $0xd88] sm:$0xff] }
 0x4a5   :  { %13793 = vmatprep.subr.bf16.mxu1 %v13792_v0  ;;  %v2645_v0 = vld [vmem:[#allocation2 + $0x1030] sm:$0xff] }
 0x4a6   :  { %v13862_v6 = vpack.c.bf16 %v2646_v3, %v2645_v0  ;;  %v2044_v0 = vld [vmem:[#allocation2 + $0xd08] sm:$0xff]  ;;  %v2061_v3 = vld [vmem:[#allocation2 + $0xd90] sm:$0xff] }
 0x4a8   :  { %13795 = vmatpush3.bf16.msra.mxu1 %v13794_v7  ;;  %v13864_v7 = vpack.c.bf16 %v2664_v5, %v2663_v4  ;;  %v2062_v4 = vld [vmem:[#allocation2 + $0xd98] sm:$0xff] }
 0x4a9   :  { %13797 = vmatprep.subr.bf16.mxu1 %v13796_v16  ;;  %v2647_v16 = vld [vmem:[#allocation2 + $0x1040] sm:$0xff] }
 0x4ac   :  { %13799 = vmatpush3.bf16.msra.mxu1 %v13798_v10  ;;  %v2649_v10 = vld [vmem:[#allocation2 + $0x1050] sm:$0xff] }
 0x4ad   :  { %13801 = vmatprep.subr.bf16.mxu1 %v13800_v11  ;;  %v2650_v11 = vld [vmem:[#allocation2 + $0x1058] sm:$0xff] }
 0x4ae   :  { %v13870_v13 = vpack.c.bf16 %v2650_v11, %v2649_v10  ;;  %v2064_v10 = vld [vmem:[#allocation2 + $0xda8] sm:$0xff]  ;;  %v10886_v11 = vld [vmem:[%s17223_s2 + $0xb8] sm:$0xff] }
 0x4b0   :  { %13803 = vmatpush3.bf16.msra.mxu1 %v13802_v15  ;;  %v2651_v15 = vld [vmem:[#allocation2 + $0x1060] sm:$0xff] }
 0x4b1   :  { %13805 = vmatprep.subr.bf16.mxu1 %v13804_v18  ;;  %v2652_v18 = vld [vmem:[#allocation2 + $0x1068] sm:$0xff] }
 0x4b2   :  { %v13874_v21 = vpack.c.bf16 %v2652_v18, %v2651_v15  ;;  %v2066_v15 = vld [vmem:[#allocation2 + $0xdb8] sm:$0xff] }
 0x4b4   :  { %13807 = vmatpush3.bf16.msra.mxu1 %v13806_v25  ;;  %v2653_v25 = vld [vmem:[#allocation2 + $0x1070] sm:$0xff] }
 0x4b5   :  { %13809 = vmatprep.subr.bf16.mxu1 %v13808_v26  ;;  %v2654_v26 = vld [vmem:[#allocation2 + $0x1078] sm:$0xff] }
 0x4b6   :  { %v13878_v29 = vpack.c.bf16 %v2654_v26, %v2653_v25  ;;  %v2068_v25 = vld [vmem:[#allocation2 + $0xdc8] sm:$0xff] }
 0x4b8   :  { %13811 = vmatpush3.bf16.msra.mxu1 %v13810_v31  ;;  %v2671_v31 = vld [vmem:[#allocation2 + $0x1100] sm:$0xff] }
 0x4b9   :  { %13813 = vmatprep.subr.bf16.mxu1 %v13812_v32  ;;  %v2672_v32 = vld [vmem:[#allocation2 + $0x1108] sm:$0xff] }
 0x4ba   :  { %v13882_v35 = vpack.c.bf16 %v2672_v32, %v2671_v31  ;;  %v2070_v31 = vld [vmem:[#allocation2 + $0xdd8] sm:$0xff] }
 0x4bc   :  { %13815 = vmatpush3.bf16.msra.mxu1 %v13814_v37  ;;  %v2673_v37 = vld [vmem:[#allocation2 + $0x1110] sm:$0xff] }
 0x4bd   :  { %13849 = vmatprep.subr.bf16.mxu1 %v13848_v38  ;;  %v2674_v38 = vld [vmem:[#allocation2 + $0x1118] sm:$0xff] }
 0x4be   :  { %v13886_v41 = vpack.c.bf16 %v2674_v38, %v2673_v37  ;;  %v2072_v37 = vld [vmem:[#allocation2 + $0xde8] sm:$0xff] }
 0x4bf   :  { %2454 = vmatmul.mubr.f32.vlgmr.msra.gmra.mrb[18].mxu1 %v15833_v54 }
 0x4c0   :  { %13851 = vmatpush3.bf16.msra.mxu1 %v13850_v43  ;;  %2767 = vmatprep.mubr.f32.mxu1 %v15739_v22  ;;  %v2648_v22 = vld [vmem:[#allocation2 + $0x1048] sm:$0xff]  ;;  %v2675_v43 = vld [vmem:[#allocation2 + $0x1120] sm:$0xff] }
 0x4c1   :  { %13853 = vmatprep.subr.bf16.mxu1 %v13852_v44  ;;  %v13866_v56 = vpack.c.bf16 %v2648_v22, %v2647_v16  ;;  %v2676_v44 = vld [vmem:[#allocation2 + $0x1128] sm:$0xff]  ;;  %v13756_v22 = vpack.c.bf16 %v2062_v4, %v2061_v3 }
 0x4c2   :  { %v13890_v47 = vpack.c.bf16 %v2676_v44, %v2675_v43  ;;  %v2074_v43 = vld [vmem:[#allocation2 + $0xdf8] sm:$0xff] }
 0x4c4   :  { %13855 = vmatpush3.bf16.msra.mxu1 %v13854_v50  ;;  %v2677_v50 = vld [vmem:[#allocation2 + $0x1130] sm:$0xff] }
 0x4c5   :  { %13857 = vmatprep.subr.bf16.mxu1 %v13856_v51  ;;  %v2678_v51 = vld [vmem:[#allocation2 + $0x1138] sm:$0xff] }
 0x4c6   :  { %v13894_v53 = vpack.c.bf16 %v2678_v51, %v2677_v50  ;;  %v2695_v50 = vld [vmem:[#allocation2 + $0x11c0] sm:$0xff]  ;;  %v2696_v51 = vld [vmem:[#allocation2 + $0x11c8] sm:$0xff] }
 0x4c8   :  { %13859 = vmatpush3.bf16.msra.mxu1 %v13858_v61 }
 0x4c9   :  { %13861 = vmatprep.subr.bf16.mxu1 %v13860_v62  ;;  %v2043_v62 = vld [vmem:[#allocation2 + $0xd00] sm:$0xff] }
 0x4ca   :  { %v13754_v16 = vpack.c.bf16 %v2044_v0, %v2043_v62  ;;  %v2697_v62 = vld [vmem:[#allocation2 + $0x11d0] sm:$0xff]  ;;  %v2698_v0 = vld [vmem:[#allocation2 + $0x11d8] sm:$0xff] }
 0x4cb   :  { %v13900_v4 = vpack.c.bf16 %v2698_v0, %v2697_v62  ;;  %v2365_v0 = vld [vmem:[#allocation2 + $0xf40] sm:$0xff] }
 0x4cc   :  { %13863 = vmatpush3.bf16.msra.mxu1 %v13862_v6  ;;  %v13752_v6 = vpack.c.bf16 %v2060_v58, %v2059_v57 }
 0x4cd   :  { %13865 = vmatprep.subr.bf16.mxu1 %v13864_v7  ;;  %v10884_v7 = vld [vmem:[%s17223_s2 + $0xa8] sm:$0xff] }
 0x4d0   :  { %13867 = vmatpush3.bf16.msra.mxu1 %v13866_v56  ;;  %v10885_v56 = vld [vmem:[%s17223_s2 + $0xb0] sm:$0xff] }
 0x4d1   :  { %13869 = vmatprep.subr.bf16.mxu1 %v13868_v17  ;;  %v2063_v17 = vld [vmem:[#allocation2 + $0xda0] sm:$0xff] }
 0x4d2   :  { %v13760_v12 = vpack.c.bf16 %v2064_v10, %v2063_v17  ;;  %v2684_v17 = vld [vmem:[#allocation2 + $0x1168] sm:$0xff] }
 0x4d4   :  { %13871 = vmatpush3.bf16.msra.mxu1 %v13870_v13  ;;  %v2048_v13 = vld [vmem:[#allocation2 + $0xd28] sm:$0xff] }
 0x4d5   :  { %13873 = vmatprep.subr.bf16.mxu1 %v13872_v14  ;;  %v2065_v14 = vld [vmem:[#allocation2 + $0xdb0] sm:$0xff]  ;;  %v13762_v18 = vpack.c.bf16 %v2048_v13, %v2047_v2  ;;  %v2686_v13 = vld [vmem:[#allocation2 + $0x1178] sm:$0xff] }
 0x4d6   :  { %v13764_v19 = vpack.c.bf16 %v2066_v15, %v2065_v14  ;;  %v2685_v2 = vld [vmem:[#allocation2 + $0x1170] sm:$0xff] }
 0x4d7   :  { %v13910_v14 = vpack.c.bf16 %v2686_v13, %v2685_v2  ;;  %v2371_v13 = vld [vmem:[#allocation2 + $0xf70] sm:$0xff] }
 0x4d8   :  { %13875 = vmatpush3.bf16.msra.mxu1 %v13874_v21  ;;  %v2050_v21 = vld [vmem:[#allocation2 + $0xd38] sm:$0xff] }
 0x4d9   :  { %13877 = vmatprep.subr.bf16.mxu1 %v13876_v24  ;;  %v2067_v24 = vld [vmem:[#allocation2 + $0xdc0] sm:$0xff]  ;;  %v13766_v26 = vpack.c.bf16 %v2050_v21, %v2049_v20 }
 0x4da   :  { %v13768_v27 = vpack.c.bf16 %v2068_v25, %v2067_v24 }
 0x4dc   :  { %13879 = vmatpush3.bf16.msra.mxu1 %v13878_v29  ;;  %v2052_v29 = vld [vmem:[#allocation2 + $0xd48] sm:$0xff] }
 0x4dd   :  { %13881 = vmatprep.subr.bf16.mxu1 %v13880_v30  ;;  %v2069_v30 = vld [vmem:[#allocation2 + $0xdd0] sm:$0xff]  ;;  %v13770_v32 = vpack.c.bf16 %v2052_v29, %v2051_v28  ;;  %v2374_v28 = vld [vmem:[#allocation2 + $0xf88] sm:$0xff] }
 0x4de   :  { %v13772_v33 = vpack.c.bf16 %v2070_v31, %v2069_v30  ;;  %v2357_v30 = vld [vmem:[#allocation2 + $0xf00] sm:$0xff]  ;;  %v2358_v31 = vld [vmem:[#allocation2 + $0xf08] sm:$0xff] }
 0x4df   :  { %2768 = vmatmul.mubr.f32.vlgmr.msra.gmra.mrb[20].mxu1 %v15833_v54 }
 0x4e0   :  { %13883 = vmatpush3.bf16.msra.mxu1 %v13882_v35  ;;  %2837 = vmatprep.mubr.f32.mxu1 %v15743_v23  ;;  %v2054_v35 = vld [vmem:[#allocation2 + $0xd58] sm:$0xff] }
 0x4e1   :  { %13885 = vmatprep.subr.bf16.mxu1 %v13884_v36  ;;  %v2071_v36 = vld [vmem:[#allocation2 + $0xde0] sm:$0xff]  ;;  %v13774_v38 = vpack.c.bf16 %v2054_v35, %v2053_v34 }
 0x4e2   :  { %v13776_v39 = vpack.c.bf16 %v2072_v37, %v2071_v36  ;;  %v13818_v36 = vpack.c.bf16 %v2358_v31, %v2357_v30  ;;  %v15557_v30 = vmov 0   ;;  %v2955_v31 = vld [vmem:[%s17224_s3 + $0x18] sm:$0xff] }
 0x4e3   :  { %15382 = vset.pattern.permute.xlu0 %v15557_v30  ;;  %15383 = vset.pattern.permute.xlu1 %v15557_v30  ;;  %v2994_v30 = vld [vmem:[#allocation4 + $0x50] sm:$0xff] }
 0x4e4   :  { %13887 = vmatpush3.bf16.msra.mxu1 %v13886_v41  ;;  %v2056_v41 = vld [vmem:[#allocation2 + $0xd68] sm:$0xff] }
 0x4e5   :  { %13889 = vmatprep.subr.bf16.mxu1 %v13888_v42  ;;  %v2073_v42 = vld [vmem:[#allocation2 + $0xdf0] sm:$0xff]  ;;  %v13778_v44 = vpack.c.bf16 %v2056_v41, %v2055_v40  ;;  %v2377_v41 = vld [vmem:[#allocation2 + $0xfa0] sm:$0xff] }
 0x4e6   :  { %v13780_v45 = vpack.c.bf16 %v2074_v43, %v2073_v42  ;;  %v10894_v40 = vld [vmem:[%s17223_s2 + $0xd0] sm:$0xff]  ;;  %v2378_v42 = vld [vmem:[#allocation2 + $0xfa8] sm:$0xff] }
 0x4e8   :  { %13891 = vmatpush3.bf16.msra.mxu1 %v13890_v47  ;;  %v2058_v47 = vld [vmem:[#allocation2 + $0xd78] sm:$0xff] }
 0x4e9   :  { %13893 = vmatprep.subr.bf16.mxu1 %v13892_v48  ;;  %v13782_v48 = vpack.c.bf16 %v2058_v47, %v2057_v46  ;;  %v2361_v46 = vld [vmem:[#allocation2 + $0xf20] sm:$0xff]  ;;  %v2362_v47 = vld [vmem:[#allocation2 + $0xf28] sm:$0xff] }
 0x4ec   :  { %13895 = vmatpush3.bf16.msra.mxu1 %v13894_v53  ;;  %v13896_v53 = vpack.c.bf16 %v2696_v51, %v2695_v50  ;;  %v2380_v50 = vld [vmem:[#allocation2 + $0xfb8] sm:$0xff]  ;;  %v13826_v51 = vpack.c.bf16 %v2362_v47, %v2361_v46 }
 0x4ed   :  { %v5206_v46 = vld [vmem:[%s17227_s6 + $0x38] sm:$0xff] }
 0x4ee   :  { %13897 = vmatprep.subr.bf16.mxu1 %v13896_v53 }
 0x571   :  { %v11627_v54 = vpop.f32.mrb[14].mxu0 }
 0x572   :  { %v11628_v55 = vpop.f32.mrb[15].mxu0  ;;  %v11667_v58 = vpop.f32.mrb[16].mxu1 }
 0x573   :  { %v11629_v61 = vadd.f32 %v11628_v55, %v11627_v54  ;;  %v2679_v54 = vld [vmem:[#allocation2 + $0x1140] sm:$0xff]  ;;  %v2680_v55 = vld [vmem:[#allocation2 + $0x1148] sm:$0xff] }
 0x574   :  { %v13898_v57 = vpack.c.bf16 %v2680_v55, %v2679_v54  ;;  %v2363_v54 = vld [vmem:[#allocation2 + $0xf30] sm:$0xff]  ;;  %v2364_v55 = vld [vmem:[#allocation2 + $0xf38] sm:$0xff] }
 0x575   :  { %v1898_v5 = vadd.f32 %v11629_v61, %v15884_v49  ;;  %v13758_v49 = vpack.c.bf16 %v2046_v9, %v2045_v8  ;;  %v11668_v61 = vpop.f32.mrb[17].mxu1  ;;  %v10892_v8 = vld [vmem:[%s17223_s2 + $0xc0] sm:$0xff] }
 0x576   :  { %13899 = vmatpush3.bf16.msra.mxu1 %v13898_v57  ;;  %v11669_v3 = vadd.f32 %v11668_v61, %v11667_v58  ;;  %v2381_v57 = vld [vmem:[#allocation2 + $0xfc0] sm:$0xff]  ;;  %v2382_v58 = vld [vmem:[#allocation2 + $0xfc8] sm:$0xff]  ;;  %v13830_v61 = vpack.c.bf16 %v2364_v55, %v2363_v54 }
 0x577   :  { %12404 = vmatprep.subr.msk.mxu0 %vm565_vm1, %v1898_v5  ;;  %13901 = vmatprep.subr.bf16.mxu1 %v13900_v4  ;;  %v13832_v62 = vpack.c.bf16 %v2382_v58, %v2381_v57  ;;  %v2383_v4 = vld [vmem:[#allocation2 + $0xfd0] sm:$0xff]  ;;  %v3102_v55 = vld [vmem:[#allocation4 + $0xc0] sm:$0xff]  ;;  %v3103_v57 = vld [vmem:[#allocation4 + $0xc8] sm:$0xff] }
 0x578   :  { %12405 = vmatpush3.msk.msra.mxu0 %vm565_vm1, %v1898_v5  ;;  %v2681_v5 = vld [vmem:[#allocation2 + $0x1150] sm:$0xff] }
 0x579   :  { %13753 = vmatprep.subr.bf16.mxu0 %v13752_v6  ;;  %12407 = vmatmul.mubr.msk.f32.vlgmr.msra.gmra.mrb[4].mxu0 %vm552_vm0, %v10884_v7  ;;  %v2682_v6 = vld [vmem:[#allocation2 + $0x1158] sm:$0xff]  ;;  %v7224_v58 = vld [vmem:[%s17230_s9 + $0x10] sm:$0xff] }
 0x57a   :  { %13755 = vmatpush3.bf16.msra.mxu0 %v13754_v16  ;;  %12409 = vmatprep.mubr.msk.f32.mxu0 %vm552_vm0, %v10885_v56  ;;  %v13902_v7 = vpack.c.bf16 %v2682_v6, %v2681_v5  ;;  %v2699_v16 = vld [vmem:[#allocation2 + $0x11e0] sm:$0xff]  ;;  %v2384_v5 = vld [vmem:[#allocation2 + $0xfd8] sm:$0xff] }
 0x57b   :  { %13757 = vmatprep.subr.bf16.mxu0 %v13756_v22  ;;  %v2700_v22 = vld [vmem:[#allocation2 + $0x11e8] sm:$0xff]  ;;  %v2683_v56 = vld [vmem:[#allocation2 + $0x1160] sm:$0xff] }
 0x57c   :  { %13903 = vmatpush3.bf16.msra.mxu1 %v13902_v7  ;;  %v13904_v9 = vpack.c.bf16 %v2700_v22, %v2699_v16  ;;  %v13906_v10 = vpack.c.bf16 %v2684_v17, %v2683_v56  ;;  %v13836_v7 = vpack.c.bf16 %v2384_v5, %v2383_v4  ;;  %v2367_v16 = vld [vmem:[#allocation2 + $0xf50] sm:$0xff]  ;;  %v2385_v22 = vld [vmem:[#allocation2 + $0xfe0] sm:$0xff] }
 0x57d   :  { %12410 = vmatmul.mubr.msk.f32.gmra.mrb[6].mxu0 %vm552_vm0, %v10886_v11  ;;  %v2702_v11 = vld [vmem:[#allocation2 + $0x11f8] sm:$0xff]  ;;  %v2369_v17 = vld [vmem:[#allocation2 + $0xf60] sm:$0xff] }
 0x57e   :  { %13759 = vmatpush3.bf16.msra.mxu0 %v13758_v49  ;;  %2209 = vmatprep.mubr.f32.mxu0 %v15743_v23  ;;  %v2701_v49 = vld [vmem:[#allocation2 + $0x11f0] sm:$0xff]  ;;  %v10790_v4 = vld [vmem:[%s17233_s12] sm:$0xf] }
 0x57f   :  { %13761 = vmatprep.subr.bf16.mxu0 %v13760_v12  ;;  %13905 = vmatprep.subr.bf16.mxu1 %v13904_v9  ;;  %v13908_v12 = vpack.c.bf16 %v2702_v11, %v2701_v49  ;;  %v2387_v49 = vld [vmem:[#allocation2 + $0xff0] sm:$0xff]  ;;  %v2388_v11 = vld [vmem:[#allocation2 + $0xff8] sm:$0xff] }
 0x580   :  { %13907 = vmatpush3.bf16.msra.mxu1 %v13906_v10  ;;  %v2370_v10 = vld [vmem:[#allocation2 + $0xf68] sm:$0xff]  ;;  %v13844_v2 = vpack.c.bf16 %v2388_v11, %v2387_v49  ;;  %v2986_v49 = vld [vmem:[#allocation4 + $0x10] sm:$0xff]  ;;  %v2987_v11 = vld [vmem:[#allocation4 + $0x18] sm:$0xff] }
 0x581   :  { %13909 = vmatprep.subr.bf16.mxu1 %v13908_v12  ;;  %v13842_v12 = vpack.c.bf16 %v2370_v10, %v2369_v17  ;;  %v10910_v10 = vld [vmem:[%s17223_s2 + $0x100] sm:$0xff] }
 0x582   :  { %13763 = vmatpush3.bf16.msra.mxu0 %v13762_v18 }
 0x583   :  { %13765 = vmatprep.subr.bf16.mxu0 %v13764_v19 }
 0x584   :  { %13911 = vmatpush3.bf16.msra.mxu1 %v13910_v14  ;;  %v2372_v14 = vld [vmem:[#allocation2 + $0xf78] sm:$0xff] }
 0x586   :  { %13767 = vmatpush3.bf16.msra.mxu0 %v13766_v26 }
 0x587   :  { %13769 = vmatprep.subr.bf16.mxu0 %v13768_v27  ;;  %2838 = vmatmul.mubr.f32.vlgmr.msra.gmra.mrb[22].mxu1 %v15856_v52  ;;  %v2373_v27 = vld [vmem:[#allocation2 + $0xf80] sm:$0xff] }
 0x588   :  { %v13816_v35 = vpack.c.bf16 %v2374_v28, %v2373_v27  ;;  %v10901_v27 = vld [vmem:[%s17223_s2 + $0xe0] sm:$0xff] }
 0x589   :  { %v2952_v28 = vld [vmem:[%s17224_s3] sm:$0xff] }
 0x58a   :  { %13771 = vmatpush3.bf16.msra.mxu0 %v13770_v32  ;;  %v2375_v32 = vld [vmem:[#allocation2 + $0xf90] sm:$0xff]  ;;  %2958 = vperm.xlu0 %15382, %v2952_v28   ;;  %v2993_v28 = vld [vmem:[#allocation4 + $0x48] sm:$0xff] }
 0x58b   :  { %13773 = vmatprep.subr.bf16.mxu0 %v13772_v33  ;;  %v2376_v33 = vld [vmem:[#allocation2 + $0xf98] sm:$0xff] }
 0x58c   :  { %v13820_v37 = vpack.c.bf16 %v2376_v33, %v2375_v32  ;;  %v5199_v32 = vld [vmem:[%s17227_s6] sm:$0xff]  ;;  %v5200_v33 = vld [vmem:[%s17227_s6 + $0x8] sm:$0xff] }
 0x58e   :  { %13775 = vmatpush3.bf16.msra.mxu0 %v13774_v38  ;;  %v2359_v38 = vld [vmem:[#allocation2 + $0xf10] sm:$0xff] }
 0x58f   :  { %13777 = vmatprep.subr.bf16.mxu0 %v13776_v39  ;;  %v2360_v39 = vld [vmem:[#allocation2 + $0xf18] sm:$0xff] }
 0x590   :  { %v13822_v43 = vpack.c.bf16 %v2360_v39, %v2359_v38  ;;  %v3096_v38 = vld [vmem:[#allocation4 + $0x90] sm:$0xff]  ;;  %v3097_v39 = vld [vmem:[#allocation4 + $0x98] sm:$0xff] }
 0x592   :  { %13779 = vmatpush3.bf16.msra.mxu0 %v13778_v44  ;;  %v11742_v15 = vpop.f32.mrb[18].mxu1  ;;  %v10895_v44 = vld [vmem:[%s17223_s2 + $0xd8] sm:$0xff] }
 0x593   :  { %13781 = vmatprep.subr.bf16.mxu0 %v13780_v45  ;;  %v11743_v18 = vpop.f32.mrb[19].mxu1  ;;  %v13824_v45 = vpack.c.bf16 %v2378_v42, %v2377_v41  ;;  %v5204_v41 = vld [vmem:[%s17227_s6 + $0x28] sm:$0xff]  ;;  %v13948_v42 = vpack.c.bf16 %v3097_v39, %v3096_v38  ;;  %v2999_v38 = vld [vmem:[#allocation4 + $0x78] sm:$0xff]  ;;  %v3108_v39 = vld [vmem:[#allocation4 + $0xf0] sm:$0xff] }
 0x594   :  { %v15918_v19 = vadd.f32 %v11743_v18, %v11742_v15  ;;  %v13846_v15 = vpack.c.bf16 %v2372_v14, %v2371_v13  ;;  %v15404_v18 = vld [vmem:[%s17221_s0 + $0x8] sm:$0xff]  ;;  %v13916_v13 = vpack.c.bf16 %v2987_v11, %v2986_v49  ;;  %v2988_v14 = vld [vmem:[#allocation4 + $0x20] sm:$0xff] }
 0x596   :  { %13783 = vmatpush3.bf16.msra.mxu0 %v13782_v48  ;;  %v2379_v48 = vld [vmem:[#allocation2 + $0xfb0] sm:$0xff] }
 0x597   :  { %v13828_v53 = vpack.c.bf16 %v2380_v50, %v2379_v48  ;;  %v3100_v48 = vld [vmem:[#allocation4 + $0xb0] sm:$0xff]  ;;  %v3101_v50 = vld [vmem:[#allocation4 + $0xb8] sm:$0xff] }
 0x598   :  { %v13956_v54 = vpack.c.bf16 %v3101_v50, %v3100_v48 }
 0x599   :  { %2210 = vmatmul.mubr.f32.vlgmr.msra.gmra.mrb[16].mxu0 %v15856_v52  ;;  %v10893_v52 = vld [vmem:[%s17223_s2 + $0xc8] sm:$0xff] }
 0x59a   :  { %12414 = vmatprep.mubr.msk.f32.mxu0 %vm552_vm0, %v10892_v8  ;;  %v2386_v8 = vld [vmem:[#allocation2 + $0xfe8] sm:$0xff] }
 0x59b   :  { %v13840_v56 = vpack.c.bf16 %v2386_v8, %v2385_v22  ;;  %v2985_v22 = vld [vmem:[#allocation4 + $0x8] sm:$0xff] }
 0x5b2   :  { %v11817_v20 = vpop.f32.mrb[20].mxu1 }
 0x5b3   :  { %v11818_v21 = vpop.f32.mrb[21].mxu1 }
 0x5b4   :  { %v15920_v24 = vadd.f32 %v11818_v21, %v11817_v20 }
 0x65a   :  { %v11852_v20 = vpop.f32.mrb[22].mxu1 }
 0x65b   :  { %v11853_v21 = vpop.f32.mrb[23].mxu1 }
 0x66c   :  { %v11702_v25 = vpop.f32.mrb[16].mxu0 }
 0x66d   :  { %v11703_v26 = vpop.f32.mrb[17].mxu0 }
 0x66e   :  { %v11704_v29 = vadd.f32 %v11703_v26, %v11702_v25  ;;  %v11854_v25 = vadd.f32 %v11853_v21, %v11852_v20  ;;  %v2990_v21 = vld [vmem:[#allocation4 + $0x30] sm:$0xff] }
 0x670   :  { %v2212_v34 = vadd.f32 %v11704_v29, %v11669_v3  ;;  %v2366_v3 = vld [vmem:[#allocation2 + $0xf48] sm:$0xff]  ;;  %v15941_v26 = vadd.f32 %v11854_v25, %v15920_v24  ;;  %v2954_v29 = vld [vmem:[%s17224_s3 + $0x10] sm:$0xff]  ;;  %v2991_v25 = vld [vmem:[#allocation4 + $0x38] sm:$0xff] }
 0x671   :  { %v13834_v6 = vpack.c.bf16 %v2366_v3, %v2365_v0  ;;  %2968 = vperm.xlu1 %15383, %v2954_v29   ;;  %v2953_v24 = vld [vmem:[%s17224_s3 + $0x8] sm:$0xff]  ;;  %v3104_v0 = vld [vmem:[#allocation4 + $0xd0] sm:$0xff]  ;;  %v3105_v3 = vld [vmem:[#allocation4 + $0xd8] sm:$0xff] }
 0x672   :  { %12412 = vmatprep.subr.msk.mxu0 %vm565_vm1, %v2212_v34  ;;  %2963 = vperm.xlu0 %15382, %v2953_v24   ;;  %v13964_v5 = vpack.c.bf16 %v3105_v3, %v3104_v0  ;;  %v2995_v24 = vld [vmem:[#allocation4 + $0x58] sm:$0xff] }
 0x673   :  { %12413 = vmatpush3.msk.msra.mxu0 %vm565_vm1, %v2212_v34  ;;  %v3094_v34 = vld [vmem:[#allocation4 + $0x80] sm:$0xff] }
 0x674   :  { %13817 = vmatprep.subr.bf16.mxu0 %v13816_v35  ;;  %12415 = vmatmul.mubr.msk.f32.vlgmr.msra.gmra.mrb[4].mxu0 %vm552_vm0, %v10893_v52  ;;  %v3095_v35 = vld [vmem:[#allocation4 + $0x88] sm:$0xff]  ;;  %v5201_v52 = vld [vmem:[%s17227_s6 + $0x10] sm:$0xff] }
 0x675   :  { %13819 = vmatpush3.bf16.msra.mxu0 %v13818_v36  ;;  %12417 = vmatprep.mubr.msk.f32.mxu0 %vm552_vm0, %v10894_v40  ;;  %v5202_v36 = vld [vmem:[%s17227_s6 + $0x18] sm:$0xff]  ;;  %v5203_v40 = vld [vmem:[%s17227_s6 + $0x20] sm:$0xff] }
 0x676   :  { %13821 = vmatprep.subr.bf16.mxu0 %v13820_v37  ;;  %2973 = vperm.xlu1 %15383, %v2955_v31   ;;  %v13944_v37 = vpack.c.bf16 %v3095_v35, %v3094_v34  ;;  %v13932_v31 = vpack.c.bf16 %v2995_v24, %v2994_v30  ;;  %v3106_v34 = vld [vmem:[#allocation4 + $0xe0] sm:$0xff]  ;;  %v10925_v30 = vld [vmem:[%s17226_s5 + $0x70] sm:$0xff] }
 0x677   :  { %5209 = vperm.xlu0 %15382, %v5199_v32   ;;  %v2996_v32 = vld [vmem:[#allocation4 + $0x60] sm:$0xff] }
 0x678   :  { %12418 = vmatmul.mubr.msk.f32.gmra.mrb[6].mxu0 %vm552_vm0, %v10895_v44  ;;  %13945 = vmatprep.subr.bf16.mxu1 %v13944_v37  ;;  %v3099_v44 = vld [vmem:[#allocation4 + $0xa8] sm:$0xff] }
 0x679   :  { %13823 = vmatpush3.bf16.msra.mxu0 %v13822_v43  ;;  %2523 = vmatprep.mubr.f32.mxu0 %v15743_v23  ;;  %v2368_v23 = vld [vmem:[#allocation2 + $0xf58] sm:$0xff]  ;;  %v3098_v43 = vld [vmem:[#allocation4 + $0xa0] sm:$0xff] }
 0x67a   :  { %13825 = vmatprep.subr.bf16.mxu0 %v13824_v45  ;;  %v13838_v9 = vpack.c.bf16 %v2368_v23, %v2367_v16  ;;  %5214 = vperm.xlu1 %15383, %v5200_v33   ;;  %v5205_v45 = vld [vmem:[%s17227_s6 + $0x30] sm:$0xff]  ;;  %v13952_v47 = vpack.c.bf16 %v3099_v44, %v3098_v43  ;;  %v2984_v23 = vld [vmem:[#allocation4] sm:$0xff]  ;;  %v2997_v33 = vld [vmem:[#allocation4 + $0x68] sm:$0xff]  ;;  %v2959_v43 = vpop.permute.xlu0 %2958 }
 0x67b   :  { %5219 = vperm.xlu0 %15382, %v5201_v52   ;;  %13947 = vmatpush3.bf16.msra.mxu1 %v13944_v37  ;;  %v13912_v17 = vpack.c.bf16 %v2985_v22, %v2984_v23  ;;  %v13936_v35 = vpack.c.bf16 %v2997_v33, %v2996_v32  ;;  %v3107_v52 = vld [vmem:[#allocation4 + $0xe8] sm:$0xff]  ;;  %v2998_v37 = vld [vmem:[#allocation4 + $0x70] sm:$0xff]  ;;  %v3464_v22 = vld [vmem:[#allocation4 + $0x100] sm:$0xff] }
 0x67c   :  { %13949 = vmatprep.subr.bf16.mxu1 %v13948_v42  ;;  %v3473_v32 = vld [vmem:[#allocation4 + $0x148] sm:$0xff]  ;;  %v10926_v33 = vld [vmem:[%s17226_s5 + $0x78] sm:$0xff] }
 0x67d   :  { %13827 = vmatpush3.bf16.msra.mxu0 %v13826_v51  ;;  %v7222_v51 = vld [vmem:[%s17230_s9] sm:$0xff] }
 0x67e   :  { %13829 = vmatprep.subr.bf16.mxu0 %v13828_v53  ;;  %5224 = vperm.xlu1 %15383, %v5202_v36   ;;  %v7223_v53 = vld [vmem:[%s17230_s9 + $0x8] sm:$0xff]  ;;  %v13968_v36 = vpack.c.bf16 %v3107_v52, %v3106_v34  ;;  %v3475_v52 = vld [vmem:[#allocation4 + $0x158] sm:$0xff] }
 0x67f   :  { %5229 = vperm.xlu0 %15382, %v5203_v40   ;;  %13951 = vmatpush3.bf16.msra.mxu1 %v13948_v42  ;;  %v13940_v40 = vpack.c.bf16 %v2999_v38, %v2998_v37  ;;  %v3476_v37 = vld [vmem:[#allocation4 + $0x160] sm:$0xff]  ;;  %v3477_v38 = vld [vmem:[#allocation4 + $0x168] sm:$0xff] }
 0x680   :  { %13953 = vmatprep.subr.bf16.mxu1 %v13952_v47 }
 0x681   :  { %13831 = vmatpush3.bf16.msra.mxu0 %v13830_v61  ;;  %v7225_v61 = vld [vmem:[%s17230_s9 + $0x18] sm:$0xff] }
 0x682   :  { %13833 = vmatprep.subr.bf16.mxu0 %v13832_v62  ;;  %5234 = vperm.xlu1 %15383, %v5204_v41   ;;  %v13960_v62 = vpack.c.bf16 %v3103_v57, %v3102_v55  ;;  %v3109_v41 = vld [vmem:[#allocation4 + $0xf8] sm:$0xff] }
 0x683   :  { %5239 = vperm.xlu0 %15382, %v5205_v45   ;;  %13955 = vmatpush3.bf16.msra.mxu1 %v13952_v47  ;;  %v13972_v42 = vpack.c.bf16 %v3109_v41, %v3108_v39  ;;  %v14016_v39 = vpack.c.bf16 %v3477_v38, %v3476_v37  ;;  %v3479_v41 = vld [vmem:[#allocation4 + $0x178] sm:$0xff]  ;;  %v4708_v37 = vld [vmem:[#allocation4 + $0x3a0] sm:$0xff]  ;;  %v4709_v38 = vld [vmem:[#allocation4 + $0x3a8] sm:$0xff] }
 0x684   :  { %13957 = vmatprep.subr.bf16.mxu1 %v13956_v54 }
 0x685   :  { %13835 = vmatpush3.bf16.msra.mxu0 %v13834_v6 }
 0x686   :  { %13837 = vmatprep.subr.bf16.mxu0 %v13836_v7  ;;  %5244 = vperm.xlu1 %15383, %v5206_v46  }
 0x687   :  { %7228 = vperm.xlu0 %15382, %v7222_v51   ;;  %13959 = vmatpush3.bf16.msra.mxu1 %v13956_v54 }
 0x688   :  { %13961 = vmatprep.subr.bf16.mxu1 %v13960_v62 }
 0x689   :  { %13839 = vmatpush3.bf16.msra.mxu0 %v13838_v9  ;;  %v10902_v9 = vld [vmem:[%s17223_s2 + $0xe8] sm:$0xff] }
 0x68a   :  { %13841 = vmatprep.subr.bf16.mxu0 %v13840_v56  ;;  %7233 = vperm.xlu1 %15383, %v7223_v53   ;;  %v10903_v56 = vld [vmem:[%s17223_s2 + $0xf0] sm:$0xff] }
 0x68b   :  { %7238 = vperm.xlu0 %15382, %v7224_v58   ;;  %13963 = vmatpush3.bf16.msra.mxu1 %v13960_v62 }
 0x68c   :  { %13965 = vmatprep.subr.bf16.mxu1 %v13964_v5 }
 0x68d   :  { %13843 = vmatpush3.bf16.msra.mxu0 %v13842_v12  ;;  %v10911_v12 = vld [vmem:[%s17223_s2 + $0x108] sm:$0xff] }
 0x68e   :  { %13845 = vmatprep.subr.bf16.mxu0 %v13844_v2  ;;  %7243 = vperm.xlu1 %15383, %v7225_v61   ;;  %v10912_v2 = vld [vmem:[%s17223_s2 + $0x110] sm:$0xff] }
 0x68f   :  { %10793 = vperm.xlu0 %15382, %v10790_v4   ;;  %13967 = vmatpush3.bf16.msra.mxu1 %v13964_v5 }
 0x690   :  { %13969 = vmatprep.subr.bf16.mxu1 %v13968_v36 }
 0x691   :  { %13847 = vmatpush3.bf16.msra.mxu0 %v13846_v15  ;;  %v2989_v15 = vld [vmem:[#allocation4 + $0x28] sm:$0xff] }
 0x692   :  { %v13920_v20 = vpack.c.bf16 %v2989_v15, %v2988_v14  ;;  %v10921_v14 = vld [vmem:[%s17226_s5 + $0x50] sm:$0xff] }
 0x693   :  { %13971 = vmatpush3.bf16.msra.mxu1 %v13968_v36 }
 0x694   :  { %2524 = vmatmul.mubr.f32.vlgmr.msra.gmra.mrb[18].mxu0 %v15404_v18  ;;  %v10913_v18 = vld [vmem:[%s17223_s2 + $0x118] sm:$0xff]  ;;  %13973 = vmatprep.subr.bf16.mxu1 %v13972_v42 }
 0x695   :  { %12422 = vmatprep.mubr.msk.f32.mxu0 %vm552_vm0, %v10901_v27  ;;  %v2992_v27 = vld [vmem:[#allocation4 + $0x40] sm:$0xff] }
 0x696   :  { %v13928_v29 = vpack.c.bf16 %v2993_v28, %v2992_v27  ;;  %v3470_v27 = vld [vmem:[#allocation4 + $0x130] sm:$0xff]  ;;  %v3471_v28 = vld [vmem:[#allocation4 + $0x138] sm:$0xff] }
 0x697   :  { %13975 = vmatpush3.bf16.msra.mxu1 %v13972_v42  ;;  %v14004_v24 = vpack.c.bf16 %v3471_v28, %v3470_v27  ;;  %v4220_v27 = vld [vmem:[#allocation4 + $0x2e0] sm:$0xff]  ;;  %v4221_v28 = vld [vmem:[#allocation4 + $0x2e8] sm:$0xff] }
 0x6f0   :  { %v2969_v44 = vpop.permute.xlu1 %2968 }
 0x6f1   :  { %v2964_v48 = vpop.permute.xlu0 %2963 }
 0x6f5   :  { %v2974_v58 = vpop.permute.xlu1 %2973 }
 0x767   :  { %v11777_v6 = vpop.f32.mrb[18].mxu0 }
 0x768   :  { %v11778_v7 = vpop.f32.mrb[19].mxu0 }
 0x769   :  { %v11779_v16 = vadd.f32 %v11778_v7, %v11777_v6 }
 0x76b   :  { %v2526_v8 = vadd.f32 %v11779_v16, %v15918_v19  ;;  %v10904_v19 = vld [vmem:[%s17223_s2 + $0xf8] sm:$0xff] }
 0x76d   :  { %12420 = vmatprep.subr.msk.mxu0 %vm565_vm1, %v2526_v8 }
 0x76e   :  { %12421 = vmatpush3.msk.msra.mxu0 %vm565_vm1, %v2526_v8  ;;  %v3465_v8 = vld [vmem:[#allocation4 + $0x108] sm:$0xff] }
 0x76f   :  { %12423 = vmatmul.mubr.msk.f32.vlgmr.msra.gmra.mrb[4].mxu0 %vm552_vm0, %v10902_v9  ;;  %12428 = vmatprep.subr.msk.mxu0 %vm565_vm1, %v15941_v26  ;;  %v13992_v11 = vpack.c.bf16 %v3465_v8, %v3464_v22  ;;  %v4208_v8 = vld [vmem:[#allocation4 + $0x280] sm:$0xff] }
 0x770   :  { %12429 = vmatpush3.msk.msra.mxu0 %vm565_vm1, %v15941_v26  ;;  %12425 = vmatprep.mubr.msk.f32.mxu0 %vm552_vm0, %v10903_v56  ;;  %v13924_v26 = vpack.c.bf16 %v2991_v25, %v2990_v21  ;;  %v10922_v21 = vld [vmem:[%s17226_s5 + $0x58] sm:$0xff]  ;;  %v10923_v25 = vld [vmem:[%s17226_s5 + $0x60] sm:$0xff] }
 0x771   :  { %13913 = vmatprep.subr.bf16.mxu0 %v13912_v17 }
 0x773   :  { %12426 = vmatmul.mubr.msk.f32.gmra.mrb[6].mxu0 %vm552_vm0, %v10904_v19 }
 0x774   :  { %12430 = vmatprep.mubr.msk.f32.mxu0 %vm552_vm0, %v10910_v10 }
 0x777   :  { %12431 = vmatmul.mubr.msk.f32.vlgmr.msra.gmra.mrb[4].mxu0 %vm552_vm0, %v10911_v12  ;;  %v3466_v12 = vld [vmem:[#allocation4 + $0x110] sm:$0xff] }
 0x778   :  { %12433 = vmatprep.mubr.msk.f32.mxu0 %vm552_vm0, %v10912_v2  ;;  %13915 = vmatpush3.bf16.msra.mxu0 %v13912_v17  ;;  %v3467_v2 = vld [vmem:[#allocation4 + $0x118] sm:$0xff] }
 0x779   :  { %13917 = vmatprep.subr.bf16.mxu0 %v13916_v13  ;;  %v13996_v15 = vpack.c.bf16 %v3467_v2, %v3466_v12  ;;  %v4214_v2 = vld [vmem:[#allocation4 + $0x2b0] sm:$0xff] }
 0x77b   :  { %12434 = vmatmul.mubr.msk.f32.gmra.mrb[6].mxu0 %vm552_vm0, %v10913_v18  ;;  %v3468_v18 = vld [vmem:[#allocation4 + $0x120] sm:$0xff] }
 0x77c   :  { %13919 = vmatpush3.bf16.msra.mxu0 %v13916_v13  ;;  %v10920_v13 = vld [vmem:[%s17226_s5 + $0x48] sm:$0xff] }
 0x77d   :  { %13921 = vmatprep.subr.bf16.mxu0 %v13920_v20 }
 0x780   :  { %13923 = vmatpush3.bf16.msra.mxu0 %v13920_v20  ;;  %v3469_v20 = vld [vmem:[#allocation4 + $0x128] sm:$0xff] }
 0x781   :  { %13925 = vmatprep.subr.bf16.mxu0 %v13924_v26 }
 0x784   :  { %13927 = vmatpush3.bf16.msra.mxu0 %v13924_v26  ;;  %v14000_v26 = vpack.c.bf16 %v3469_v20, %v3468_v18  ;;  %v4217_v18 = vld [vmem:[#allocation4 + $0x2c8] sm:$0xff] }
 0x785   :  { %13929 = vmatprep.subr.bf16.mxu0 %v13928_v29 }
 0x788   :  { %13931 = vmatpush3.bf16.msra.mxu0 %v13928_v29  ;;  %v10924_v29 = vld [vmem:[%s17226_s5 + $0x68] sm:$0xff] }
 0x789   :  { %13933 = vmatprep.subr.bf16.mxu0 %v13932_v31 }
 0x78c   :  { %13935 = vmatpush3.bf16.msra.mxu0 %v13932_v31  ;;  %v3472_v31 = vld [vmem:[#allocation4 + $0x140] sm:$0xff] }
 0x78d   :  { %13937 = vmatprep.subr.bf16.mxu0 %v13936_v35  ;;  %v14008_v34 = vpack.c.bf16 %v3473_v32, %v3472_v31  ;;  %v4704_v32 = vld [vmem:[#allocation4 + $0x380] sm:$0xff] }
 0x790   :  { %13939 = vmatpush3.bf16.msra.mxu0 %v13936_v35  ;;  %v3474_v35 = vld [vmem:[#allocation4 + $0x150] sm:$0xff] }
 0x791   :  { %13941 = vmatprep.subr.bf16.mxu0 %v13940_v40  ;;  %v14012_v36 = vpack.c.bf16 %v3475_v52, %v3474_v35  ;;  %v4706_v35 = vld [vmem:[#allocation4 + $0x390] sm:$0xff]  ;;  %v4707_v52 = vld [vmem:[#allocation4 + $0x398] sm:$0xff] }
 0x794   :  { %13943 = vmatpush3.bf16.msra.mxu0 %v13940_v40  ;;  %v3478_v40 = vld [vmem:[#allocation4 + $0x170] sm:$0xff] }
 0x795   :  { %v14020_v42 = vpack.c.bf16 %v3479_v41, %v3478_v40  ;;  %v3086_v40 = vld [vmem:[%s17226_s5 + $0x8] sm:$0xff]  ;;  %v3087_v41 = vld [vmem:[%s17226_s5 + $0x10] sm:$0xff] }
 0x84a   :  { %v12432_v45 = vpop.f32.mrb[4].mxu0 }
 0x84b   :  { %v15208_v46 = vadd.f32 %v12432_v45, %v15800_v59  ;;  %v2929_v47 = vpop.f32.mrb[5].mxu0 }
 0x84c   :  { %v15209_v50 = vadd.f32 %v2929_v47, %v15802_v60  ;;  %v3963_v47 = vld [vmem:[#allocation4 + $0x218] sm:$0xff] }
 0x84d   :  { %v2977_v51 = vadd.f32 %v15208_v46, %v2964_v48  ;;  %v3962_v46 = vld [vmem:[#allocation4 + $0x210] sm:$0xff] }
 0x84e   :  { %v2976_v53 = vadd.f32 %v15209_v50, %v2959_v43  ;;  %v12435_v54 = vpop.f32.mrb[6].mxu0  ;;  %v3960_v43 = vld [vmem:[#allocation4 + $0x200] sm:$0xff]  ;;  %v14076_v48 = vpack.c.bf16 %v3963_v47, %v3962_v46 }
 0x84f   :  { %v15210_v55 = vadd.f32 %v12435_v54, %v15804_v63  ;;  %v2939_v57 = vpop.f32.mrb[7].mxu0  ;;  %v16039_v0 = vmax.f32 %v2977_v51, 0.0  ;;  %v10919_v63 = vld [vmem:[%s17226_s5 + $0x40] sm:$0xff]  ;;  %v3965_v51 = vld [vmem:[#allocation4 + $0x228] sm:$0xff]  ;;  %v3966_v54 = vld [vmem:[#allocation4 + $0x230] sm:$0xff] }
 0x850   :  { %v16036_v61 = vmax.f32 %v2976_v53, 0.0  ;;  %v15211_v62 = vadd.f32 %v2939_v57, %v15806_v1  ;;  %v3964_v50 = vld [vmem:[#allocation4 + $0x220] sm:$0xff] }
 0x851   :  { %v2979_v3 = vadd.f32 %v15210_v55, %v2974_v58  ;;  %v14080_v53 = vpack.c.bf16 %v3965_v51, %v3964_v50  ;;  %v3967_v55 = vld [vmem:[#allocation4 + $0x238] sm:$0xff]  ;;  %v3968_v58 = vld [vmem:[#allocation4 + $0x240] sm:$0xff]  ;;  %v4714_v51 = vld [vmem:[#allocation4 + $0x3d0] sm:$0xff] }
 0x852   :  { %v2978_v4 = vadd.f32 %v15211_v62, %v2969_v44  ;;  %12468 = vmatprep.mubr.f32.mxu0 %v16036_v61  ;;  %12506 = vmatprep.mubr.f32.mxu1 %v16036_v61  ;;  %v3961_v44 = vld [vmem:[#allocation4 + $0x208] sm:$0xff]  ;;  %v14084_v57 = vpack.c.bf16 %v3967_v55, %v3966_v54  ;;  %v4712_v47 = vld [vmem:[#allocation4 + $0x3c0] sm:$0xff] }
 0x853   :  { %12469 = vmatmul.mubr.f32.vlgmr.msra.gmra.mrb[20].mxu0 %v16039_v0  ;;  %12507 = vmatmul.mubr.f32.vlgmr.msra.gmra.mrb[24].mxu1 %v16039_v0  ;;  %v16047_v60 = vmax.f32 %v2979_v3, 0.0  ;;  %v14072_v45 = vpack.c.bf16 %v3961_v44, %v3960_v43  ;;  %v3969_v62 = vld [vmem:[#allocation4 + $0x248] sm:$0xff]  ;;  %v4710_v43 = vld [vmem:[#allocation4 + $0x3b0] sm:$0xff]  ;;  %v4711_v44 = vld [vmem:[#allocation4 + $0x3b8] sm:$0xff] }
 0x854   :  { %v16045_v59 = vmax.f32 %v2978_v4, 0.0  ;;  %v14088_v3 = vpack.c.bf16 %v3969_v62, %v3968_v58  ;;  %v3970_v4 = vld [vmem:[#allocation4 + $0x250] sm:$0xff]  ;;  %v14204_v46 = vpack.c.bf16 %v4711_v44, %v4710_v43  ;;  %v4716_v55 = vld [vmem:[#allocation4 + $0x3e0] sm:$0xff] }
 0x855   :  { %v4718_v62 = vld [vmem:[#allocation4 + $0x3f0] sm:$0xff] }
 0x856   :  { %12471 = vmatprep.mubr.f32.mxu0 %v16045_v59  ;;  %12509 = vmatprep.mubr.f32.mxu1 %v16045_v59 }
 0x857   :  { %12472 = vmatmul.mubr.f32.gmra.mrb[22].mxu0 %v16047_v60  ;;  %12510 = vmatmul.mubr.f32.gmra.mrb[26].mxu1 %v16047_v60 }
 0x858   :  { %12520 = vmatprep.mubr.msk.f32.mxu1 %vm3204_vm2, %v10919_v63  ;;  %v3971_v63 = vld [vmem:[#allocation4 + $0x258] sm:$0xff] }
 0x926   :  { %v12470_v1 = vpop.f32.mrb[20].mxu0  ;;  %v12508_v5 = vpop.f32.mrb[24].mxu1 }
 0x927   :  { %v3066_v6 = vpop.f32.mrb[21].mxu0  ;;  %v3176_v7 = vpop.f32.mrb[25].mxu1 }
 0x928   :  { %v13984_v16 = vpack.c.bf16 %v12470_v1, %v3066_v6  ;;  %v13976_v23 = vpack.c.bf16 %v12508_v5, %v3176_v7  ;;  %v14092_v1 = vpack.c.bf16 %v3971_v63, %v3970_v4  ;;  %v3972_v5 = vld [vmem:[#allocation4 + $0x260] sm:$0xff]  ;;  %v3973_v6 = vld [vmem:[#allocation4 + $0x268] sm:$0xff] }
 0x929   :  { %v14096_v7 = vpack.c.bf16 %v3973_v6, %v3972_v5  ;;  %v3089_v4 = vld [vmem:[%s17226_s5 + $0x20] sm:$0xff]  ;;  %v3090_v63 = vld [vmem:[%s17226_s5 + $0x28] sm:$0xff] }
 0x92a   :  { %v12473_v9 = vpop.f32.mrb[22].mxu0  ;;  %v12511_v56 = vpop.f32.mrb[26].mxu1  ;;  %13977 = vmatprep.subr.bf16.mxu1 %v13976_v23  ;;  %13985 = vmatprep.subr.bf16.mxu0 %v13984_v16  ;;  %v4952_v5 = vld [vmem:[#allocation4 + $0x400] sm:$0xff]  ;;  %v4953_v6 = vld [vmem:[#allocation4 + $0x408] sm:$0xff] }
 0x92b   :  { %v3076_v17 = vpop.f32.mrb[23].mxu0  ;;  %v3186_v19 = vpop.f32.mrb[27].mxu1  ;;  %13979 = vmatpush3.bf16.msra.mxu1 %v13976_v23  ;;  %13987 = vmatpush3.bf16.msra.mxu0 %v13984_v16  ;;  %v3974_v16 = vld [vmem:[#allocation4 + $0x270] sm:$0xff]  ;;  %v3975_v23 = vld [vmem:[#allocation4 + $0x278] sm:$0xff] }
 0x92c   :  { %v13988_v10 = vpack.c.bf16 %v12473_v9, %v3076_v17  ;;  %v13980_v49 = vpack.c.bf16 %v12511_v56, %v3186_v19  ;;  %v14100_v22 = vpack.c.bf16 %v3975_v23, %v3974_v16  ;;  %v4209_v9 = vld [vmem:[#allocation4 + $0x288] sm:$0xff]  ;;  %v4210_v17 = vld [vmem:[#allocation4 + $0x290] sm:$0xff]  ;;  %v4211_v19 = vld [vmem:[#allocation4 + $0x298] sm:$0xff]  ;;  %v14232_v23 = vpack.c.bf16 %v4953_v6, %v4952_v5 }
 0x92d   :  { %v14112_v56 = vpack.c.bf16 %v4209_v9, %v4208_v8  ;;  %v3092_v16 = vld [vmem:[%s17226_s5 + $0x38] sm:$0xff]  ;;  %v10943_v9 = vld [vmem:[%s17226_s5 + $0x80] sm:$0xff]  ;;  %v3721_v5 = vld [vmem:[#allocation4 + $0x1c8] sm:$0xff] }
 0x92e   :  { %13981 = vmatprep.subr.bf16.mxu1 %v13980_v49  ;;  %13989 = vmatprep.subr.bf16.mxu0 %v13988_v10  ;;  %v4955_v8 = vld [vmem:[#allocation4 + $0x418] sm:$0xff] }
 0x92f   :  { %13983 = vmatpush3.bf16.msra.mxu1 %v13980_v49  ;;  %13991 = vmatpush3.bf16.msra.mxu0 %v13988_v10  ;;  %v14116_v10 = vpack.c.bf16 %v4211_v19, %v4210_v17  ;;  %v4212_v49 = vld [vmem:[#allocation4 + $0x2a0] sm:$0xff]  ;;  %v4957_v19 = vld [vmem:[#allocation4 + $0x428] sm:$0xff]  ;;  %v10950_v6 = vld [vmem:[%s17226_s5 + $0xb8] sm:$0xff] }
 0x930   :  { %13993 = vmatprep.subr.bf16.mxu1 %v13992_v11  ;;  %v4956_v17 = vld [vmem:[#allocation4 + $0x420] sm:$0xff] }
 0x932   :  { %12521 = vmatmul.mubr.msk.f32.vlgmr.msra.gmra.mrb[28].mxu1 %vm3204_vm2, %v10920_v13  ;;  %v4215_v13 = vld [vmem:[#allocation4 + $0x2b8] sm:$0xff] }
 0x933   :  { %13995 = vmatpush3.bf16.msra.mxu1 %v13992_v11  ;;  %12523 = vmatprep.mubr.msk.f32.mxu1 %vm3204_vm2, %v10921_v14  ;;  %v4213_v11 = vld [vmem:[#allocation4 + $0x2a8] sm:$0xff]  ;;  %v14124_v14 = vpack.c.bf16 %v4215_v13, %v4214_v2  ;;  %v4960_v2 = vld [vmem:[#allocation4 + $0x440] sm:$0xff] }
 0x934   :  { %13997 = vmatprep.subr.bf16.mxu1 %v13996_v15  ;;  %v14120_v12 = vpack.c.bf16 %v4213_v11, %v4212_v49  ;;  %v4958_v49 = vld [vmem:[#allocation4 + $0x430] sm:$0xff]  ;;  %v4959_v11 = vld [vmem:[#allocation4 + $0x438] sm:$0xff]  ;;  %v4961_v13 = vld [vmem:[#allocation4 + $0x448] sm:$0xff] }
 0x936   :  { %12524 = vmatmul.mubr.msk.f32.gmra.mrb[30].mxu1 %vm3204_vm2, %v10922_v21  ;;  %v4218_v21 = vld [vmem:[#allocation4 + $0x2d0] sm:$0xff] }
 0x937   :  { %13999 = vmatpush3.bf16.msra.mxu1 %v13996_v15  ;;  %12526 = vmatprep.mubr.msk.f32.mxu1 %vm3204_vm2, %v10923_v25  ;;  %v4216_v15 = vld [vmem:[#allocation4 + $0x2c0] sm:$0xff]  ;;  %v4219_v25 = vld [vmem:[#allocation4 + $0x2d8] sm:$0xff] }
 0x938   :  { %14001 = vmatprep.subr.bf16.mxu1 %v14000_v26  ;;  %v14128_v20 = vpack.c.bf16 %v4217_v18, %v4216_v15  ;;  %v4962_v15 = vld [vmem:[#allocation4 + $0x450] sm:$0xff]  ;;  %v4963_v18 = vld [vmem:[#allocation4 + $0x458] sm:$0xff] }
 0x93a   :  { %12527 = vmatmul.mubr.msk.f32.gmra.mrb[32].mxu1 %vm3204_vm2, %v10924_v29  ;;  %v14136_v29 = vpack.c.bf16 %v4221_v28, %v4220_v27  ;;  %v4966_v27 = vld [vmem:[#allocation4 + $0x470] sm:$0xff]  ;;  %v4967_v28 = vld [vmem:[#allocation4 + $0x478] sm:$0xff] }
 0x93b   :  { %14003 = vmatpush3.bf16.msra.mxu1 %v14000_v26  ;;  %12529 = vmatprep.mubr.msk.f32.mxu1 %vm3204_vm2, %v10925_v30  ;;  %v14132_v26 = vpack.c.bf16 %v4219_v25, %v4218_v21  ;;  %v4222_v30 = vld [vmem:[#allocation4 + $0x2f0] sm:$0xff]  ;;  %v4964_v21 = vld [vmem:[#allocation4 + $0x460] sm:$0xff]  ;;  %v4965_v25 = vld [vmem:[#allocation4 + $0x468] sm:$0xff] }
 0x93c   :  { %14005 = vmatprep.subr.bf16.mxu1 %v14004_v24 }
 0x93e   :  { %12530 = vmatmul.mubr.msk.f32.gmra.mrb[34].mxu1 %vm3204_vm2, %v10926_v33  ;;  %v4705_v33 = vld [vmem:[#allocation4 + $0x388] sm:$0xff] }
 0x93f   :  { %14007 = vmatpush3.bf16.msra.mxu1 %v14004_v24  ;;  %12584 = vmatprep.mubr.f32.mxu1 %v16036_v61  ;;  %v4223_v24 = vld [vmem:[#allocation4 + $0x2f8] sm:$0xff] }
 0x940   :  { %14009 = vmatprep.subr.bf16.mxu1 %v14008_v34  ;;  %v14140_v31 = vpack.c.bf16 %v4223_v24, %v4222_v30 }
 0x943   :  { %14011 = vmatpush3.bf16.msra.mxu1 %v14008_v34  ;;  %v14192_v34 = vpack.c.bf16 %v4705_v33, %v4704_v32 }
 0x944   :  { %14013 = vmatprep.subr.bf16.mxu1 %v14012_v36 }
 0x947   :  { %14015 = vmatpush3.bf16.msra.mxu1 %v14012_v36  ;;  %v14196_v36 = vpack.c.bf16 %v4707_v52, %v4706_v35 }
 0x948   :  { %14017 = vmatprep.subr.bf16.mxu1 %v14016_v39 }
 0x94b   :  { %14019 = vmatpush3.bf16.msra.mxu1 %v14016_v39  ;;  %v3085_v39 = vld [vmem:[%s17226_s5] sm:$0xff] }
 0x94c   :  { %14021 = vmatprep.subr.bf16.mxu1 %v14020_v42  ;;  %12540 = vmatprep.mubr.msk.f32.mxu0 %vm3204_vm2, %v3085_v39  ;;  %v3712_v39 = vld [vmem:[#allocation4 + $0x180] sm:$0xff] }
 0x94d   :  { %12541 = vmatmul.mubr.msk.f32.vlgmr.msra.gmra.mrb[24].mxu0 %vm3204_vm2, %v3086_v40  ;;  %v3713_v40 = vld [vmem:[#allocation4 + $0x188] sm:$0xff] }
 0x94e   :  { %12543 = vmatprep.mubr.msk.f32.mxu0 %vm3204_vm2, %v3087_v41  ;;  %v14032_v44 = vpack.c.bf16 %v3713_v40, %v3712_v39 }
 0x94f   :  { %14023 = vmatpush3.bf16.msra.mxu1 %v14020_v42  ;;  %v14200_v42 = vpack.c.bf16 %v4709_v38, %v4708_v37 }
 0x950   :  { %14073 = vmatprep.subr.bf16.mxu1 %v14072_v45 }
 0x952   :  { %12585 = vmatmul.mubr.f32.vlgmr.msra.gmra.mrb[36].mxu1 %v16039_v0 }
 0x953   :  { %12587 = vmatprep.mubr.f32.mxu1 %v16045_v59  ;;  %14075 = vmatpush3.bf16.msra.mxu1 %v14072_v45  ;;  %v3088_v45 = vld [vmem:[%s17226_s5 + $0x18] sm:$0xff] }
 0x954   :  { %14077 = vmatprep.subr.bf16.mxu1 %v14076_v48  ;;  %12544 = vmatmul.mubr.msk.f32.gmra.mrb[26].mxu0 %vm3204_vm2, %v3088_v45  ;;  %v3714_v45 = vld [vmem:[#allocation4 + $0x190] sm:$0xff] }
 0x955   :  { %12546 = vmatprep.mubr.msk.f32.mxu0 %vm3204_vm2, %v3089_v4  ;;  %v10949_v4 = vld [vmem:[%s17226_s5 + $0xb0] sm:$0xff] }
 0x956   :  { %12588 = vmatmul.mubr.f32.gmra.mrb[38].mxu1 %v16047_v60 }
 0x957   :  { %14079 = vmatpush3.bf16.msra.mxu1 %v14076_v48  ;;  %12700 = vmatprep.mubr.f32.mxu1 %v16036_v61  ;;  %v4713_v48 = vld [vmem:[#allocation4 + $0x3c8] sm:$0xff] }
 0x958   :  { %14081 = vmatprep.subr.bf16.mxu1 %v14080_v53  ;;  %v14208_v50 = vpack.c.bf16 %v4713_v48, %v4712_v47  ;;  %12547 = vmatmul.mubr.msk.f32.gmra.mrb[28].mxu0 %vm3204_vm2, %v3090_v63  ;;  %v10944_v47 = vld [vmem:[%s17226_s5 + $0x88] sm:$0xff]  ;;  %v10945_v48 = vld [vmem:[%s17226_s5 + $0x90] sm:$0xff] }
 0x95b   :  { %14083 = vmatpush3.bf16.msra.mxu1 %v14080_v53  ;;  %v4715_v53 = vld [vmem:[#allocation4 + $0x3d8] sm:$0xff] }
 0x95c   :  { %14085 = vmatprep.subr.bf16.mxu1 %v14084_v57  ;;  %v14212_v54 = vpack.c.bf16 %v4715_v53, %v4714_v51  ;;  %v3716_v51 = vld [vmem:[#allocation4 + $0x1a0] sm:$0xff]  ;;  %v3717_v53 = vld [vmem:[#allocation4 + $0x1a8] sm:$0xff] }
 0x95f   :  { %14087 = vmatpush3.bf16.msra.mxu1 %v14084_v57  ;;  %v4717_v57 = vld [vmem:[#allocation4 + $0x3e8] sm:$0xff] }
 0x960   :  { %14089 = vmatprep.subr.bf16.mxu1 %v14088_v3  ;;  %v14216_v58 = vpack.c.bf16 %v4717_v57, %v4716_v55  ;;  %v10947_v55 = vld [vmem:[%s17226_s5 + $0xa0] sm:$0xff]  ;;  %v14040_v57 = vpack.c.bf16 %v3717_v53, %v3716_v51 }
 0x963   :  { %14091 = vmatpush3.bf16.msra.mxu1 %v14088_v3  ;;  %v4719_v3 = vld [vmem:[#allocation4 + $0x3f8] sm:$0xff] }
 0x964   :  { %14093 = vmatprep.subr.bf16.mxu1 %v14092_v1 }
 0x967   :  { %14095 = vmatpush3.bf16.msra.mxu1 %v14092_v1  ;;  %v14220_v1 = vpack.c.bf16 %v4719_v3, %v4718_v62  ;;  %v3719_v62 = vld [vmem:[#allocation4 + $0x1b8] sm:$0xff]  ;;  %v10948_v3 = vld [vmem:[%s17226_s5 + $0xa8] sm:$0xff] }
 0x968   :  { %14097 = vmatprep.subr.bf16.mxu1 %v14096_v7 }
 0x96b   :  { %14099 = vmatpush3.bf16.msra.mxu1 %v14096_v7  ;;  %v3091_v7 = vld [vmem:[%s17226_s5 + $0x30] sm:$0xff] }
 0x96c   :  { %14101 = vmatprep.subr.bf16.mxu1 %v14100_v22  ;;  %12549 = vmatprep.mubr.msk.f32.mxu0 %vm3204_vm2, %v3091_v7 }
 0x96d   :  { %12550 = vmatmul.mubr.msk.f32.gmra.mrb[30].mxu0 %vm3204_vm2, %v3092_v16  ;;  %v3722_v16 = vld [vmem:[#allocation4 + $0x1d0] sm:$0xff] }
 0x96e   :  { %12598 = vmatprep.mubr.msk.f32.mxu0 %vm3204_vm2, %v10943_v9  ;;  %v3725_v9 = vld [vmem:[#allocation4 + $0x1e8] sm:$0xff] }
 0x96f   :  { %14103 = vmatpush3.bf16.msra.mxu1 %v14100_v22  ;;  %v4954_v22 = vld [vmem:[#allocation4 + $0x410] sm:$0xff] }
 0x970   :  { %14113 = vmatprep.subr.bf16.mxu1 %v14112_v56 }
 0x972   :  { %12701 = vmatmul.mubr.f32.vlgmr.msra.gmra.mrb[40].mxu1 %v16039_v0 }
 0x973   :  { %12703 = vmatprep.mubr.f32.mxu1 %v16045_v59  ;;  %14115 = vmatpush3.bf16.msra.mxu1 %v14112_v56  ;;  %v14236_v56 = vpack.c.bf16 %v4955_v8, %v4954_v22  ;;  %v3724_v8 = vld [vmem:[#allocation4 + $0x1e0] sm:$0xff] }
 0x974   :  { %14117 = vmatprep.subr.bf16.mxu1 %v14116_v10 }
 0x976   :  { %12704 = vmatmul.mubr.f32.gmra.mrb[42].mxu1 %v16047_v60 }
 0x977   :  { %14119 = vmatpush3.bf16.msra.mxu1 %v14116_v10  ;;  %12758 = vmatprep.mubr.f32.mxu1 %v16036_v61  ;;  %v14240_v10 = vpack.c.bf16 %v4957_v19, %v4956_v17  ;;  %v3726_v17 = vld [vmem:[#allocation4 + $0x1f0] sm:$0xff]  ;;  %v3727_v19 = vld [vmem:[#allocation4 + $0x1f8] sm:$0xff] }
 0x978   :  { %14121 = vmatprep.subr.bf16.mxu1 %v14120_v12 }
 0x97b   :  { %14123 = vmatpush3.bf16.msra.mxu1 %v14120_v12  ;;  %v14244_v12 = vpack.c.bf16 %v4959_v11, %v4958_v49 }
 0x97c   :  { %14125 = vmatprep.subr.bf16.mxu1 %v14124_v14 }
 0x97f   :  { %14127 = vmatpush3.bf16.msra.mxu1 %v14124_v14  ;;  %v14248_v14 = vpack.c.bf16 %v4961_v13, %v4960_v2 }
 0x980   :  { %14129 = vmatprep.subr.bf16.mxu1 %v14128_v20 }
 0x983   :  { %14131 = vmatpush3.bf16.msra.mxu1 %v14128_v20  ;;  %v14252_v20 = vpack.c.bf16 %v4963_v18, %v4962_v15 }
 0x984   :  { %14133 = vmatprep.subr.bf16.mxu1 %v14132_v26 }
 0x987   :  { %14135 = vmatpush3.bf16.msra.mxu1 %v14132_v26  ;;  %v14256_v26 = vpack.c.bf16 %v4965_v25, %v4964_v21 }
 0x988   :  { %14137 = vmatprep.subr.bf16.mxu1 %v14136_v29 }
 0x98b   :  { %14139 = vmatpush3.bf16.msra.mxu1 %v14136_v29  ;;  %v14260_v29 = vpack.c.bf16 %v4967_v28, %v4966_v27 }
 0x98c   :  { %14141 = vmatprep.subr.bf16.mxu1 %v14140_v31 }
 0x98f   :  { %14143 = vmatpush3.bf16.msra.mxu1 %v14140_v31 }
 0x990   :  { %14193 = vmatprep.subr.bf16.mxu1 %v14192_v34 }
 0x992   :  { %12759 = vmatmul.mubr.f32.vlgmr.msra.gmra.mrb[44].mxu1 %v16039_v0 }
 0x993   :  { %12761 = vmatprep.mubr.f32.mxu1 %v16045_v59  ;;  %14195 = vmatpush3.bf16.msra.mxu1 %v14192_v34 }
 0x994   :  { %14197 = vmatprep.subr.bf16.mxu1 %v14196_v36 }
 0x996   :  { %12762 = vmatmul.mubr.f32.gmra.mrb[46].mxu1 %v16047_v60 }
 0x997   :  { %14199 = vmatpush3.bf16.msra.mxu1 %v14196_v36  ;;  %12874 = vmatprep.mubr.f32.mxu1 %v16036_v61 }
 0x998   :  { %14201 = vmatprep.subr.bf16.mxu1 %v14200_v42 }
 0x99b   :  { %14203 = vmatpush3.bf16.msra.mxu1 %v14200_v42 }
 0x99c   :  { %14205 = vmatprep.subr.bf16.mxu1 %v14204_v46 }
 0x99f   :  { %14207 = vmatpush3.bf16.msra.mxu1 %v14204_v46  ;;  %v3715_v46 = vld [vmem:[#allocation4 + $0x198] sm:$0xff] }
 0x9a0   :  { %14209 = vmatprep.subr.bf16.mxu1 %v14208_v50 }
 0x9a3   :  { %14211 = vmatpush3.bf16.msra.mxu1 %v14208_v50  ;;  %v14036_v50 = vpack.c.bf16 %v3715_v46, %v3714_v45  ;;  %v10959_v45 = vld [vmem:[%s17226_s5 + $0xc0] sm:$0xff] }
 0x9a4   :  { %14213 = vmatprep.subr.bf16.mxu1 %v14212_v54 }
 0x9a7   :  { %14215 = vmatpush3.bf16.msra.mxu1 %v14212_v54  ;;  %v10946_v54 = vld [vmem:[%s17226_s5 + $0x98] sm:$0xff] }
 0x9a8   :  { %14217 = vmatprep.subr.bf16.mxu1 %v14216_v58 }
 0x9ab   :  { %14219 = vmatpush3.bf16.msra.mxu1 %v14216_v58  ;;  %v3718_v58 = vld [vmem:[#allocation4 + $0x1b0] sm:$0xff] }
 0x9ac   :  { %14221 = vmatprep.subr.bf16.mxu1 %v14220_v1  ;;  %v14044_v63 = vpack.c.bf16 %v3719_v62, %v3718_v58  ;;  %v10963_v58 = vld [vmem:[%s17226_s5 + $0xe0] sm:$0xff]  ;;  %v10964_v62 = vld [vmem:[%s17226_s5 + $0xe8] sm:$0xff] }
 0x9af   :  { %14223 = vmatpush3.bf16.msra.mxu1 %v14220_v1  ;;  %v3720_v1 = vld [vmem:[#allocation4 + $0x1c0] sm:$0xff] }
 0x9b0   :  { %14233 = vmatprep.subr.bf16.mxu1 %v14232_v23  ;;  %v14048_v7 = vpack.c.bf16 %v3721_v5, %v3720_v1  ;;  %v10976_v1 = vld [vmem:[%s17226_s5 + $0x108] sm:$0xff]  ;;  %v10977_v5 = vld [vmem:[%s17226_s5 + $0x110] sm:$0xff] }
 0x9b2   :  { %12875 = vmatmul.mubr.f32.vlgmr.msra.gmra.mrb[48].mxu1 %v16039_v0 }
 0x9b3   :  { %12877 = vmatprep.mubr.f32.mxu1 %v16045_v59  ;;  %14235 = vmatpush3.bf16.msra.mxu1 %v14232_v23  ;;  %v3723_v23 = vld [vmem:[#allocation4 + $0x1d8] sm:$0xff] }
 0x9b4   :  { %14237 = vmatprep.subr.bf16.mxu1 %v14236_v56  ;;  %v14052_v22 = vpack.c.bf16 %v3723_v23, %v3722_v16  ;;  %v10978_v16 = vld [vmem:[%s17226_s5 + $0x118] sm:$0xff]  ;;  %v10979_v23 = vld [vmem:[%s17226_s5 + $0x120] sm:$0xff] }
 0x9b6   :  { %12878 = vmatmul.mubr.f32.gmra.mrb[50].mxu1 %v16047_v60 }
 0x9b7   :  { %14239 = vmatpush3.bf16.msra.mxu1 %v14236_v56  ;;  %12932 = vmatprep.mubr.f32.mxu1 %v16036_v61  ;;  %v14056_v56 = vpack.c.bf16 %v3725_v9, %v3724_v8  ;;  %v10980_v8 = vld [vmem:[%s17226_s5 + $0x128] sm:$0xff]  ;;  %v10981_v9 = vld [vmem:[%s17226_s5 + $0x130] sm:$0xff] }
 0x9b8   :  { %14241 = vmatprep.subr.bf16.mxu1 %v14240_v10 }
 0x9bb   :  { %14243 = vmatpush3.bf16.msra.mxu1 %v14240_v10 }
 0x9bc   :  { %14245 = vmatprep.subr.bf16.mxu1 %v14244_v12 }
 0x9bf   :  { %14247 = vmatpush3.bf16.msra.mxu1 %v14244_v12  ;;  %v14060_v12 = vpack.c.bf16 %v3727_v19, %v3726_v17  ;;  %v10991_v17 = vld [vmem:[%s17226_s5 + $0x140] sm:$0xff]  ;;  %v4458_v19 = vld [vmem:[#allocation4 + $0x310] sm:$0xff] }
 0x9c0   :  { %14249 = vmatprep.subr.bf16.mxu1 %v14248_v14 }
 0x9c3   :  { %14251 = vmatpush3.bf16.msra.mxu1 %v14248_v14 }
 0x9c4   :  { %14253 = vmatprep.subr.bf16.mxu1 %v14252_v20 }
 0x9c7   :  { %14255 = vmatpush3.bf16.msra.mxu1 %v14252_v20 }
 0x9c8   :  { %14257 = vmatprep.subr.bf16.mxu1 %v14256_v26 }
 0x9cb   :  { %14259 = vmatpush3.bf16.msra.mxu1 %v14256_v26 }
 0x9cc   :  { %14261 = vmatprep.subr.bf16.mxu1 %v14260_v29 }
 0x9cf   :  { %14263 = vmatpush3.bf16.msra.mxu1 %v14260_v29 }
 0x9d2   :  { %12933 = vmatmul.mubr.f32.vlgmr.msra.gmra.mrb[52].mxu1 %v16039_v0 }
 0x9d3   :  { %12935 = vmatprep.mubr.f32.mxu1 %v16045_v59 }
 0x9d6   :  { %12936 = vmatmul.mubr.f32.gmra.mrb[54].mxu1 %v16047_v60 }
 0xa05   :  { %v16141_v30 = vpop.f32.mrb[28].mxu1 }
 0xa06   :  { %v16143_v24 = vpop.f32.mrb[29].mxu1 }
 0xa09   :  { %v16145_v31 = vpop.f32.mrb[30].mxu1 }
 0xa0a   :  { %v16147_v32 = vpop.f32.mrb[31].mxu1 }
 0xa0d   :  { %v16149_v33 = vpop.f32.mrb[32].mxu1 }
 0xa0e   :  { %v16151_v34 = vpop.f32.mrb[33].mxu1 }
 0xa11   :  { %v16153_v35 = vpop.f32.mrb[34].mxu1 }
 0xa12   :  { %v16155_v52 = vpop.f32.mrb[35].mxu1 }
 0xa25   :  { %v12586_v36 = vpop.f32.mrb[36].mxu1 }
 0xa26   :  { %v3546_v37 = vpop.f32.mrb[37].mxu1 }
 0xa27   :  { %v14024_v38 = vpack.c.bf16 %v12586_v36, %v3546_v37 }
 0xa29   :  { %v12589_v41 = vpop.f32.mrb[38].mxu1  ;;  %14025 = vmatprep.subr.bf16.mxu0 %v14024_v38 }
 0xa2a   :  { %v3556_v42 = vpop.f32.mrb[39].mxu1  ;;  %14027 = vmatpush3.bf16.msra.mxu0 %v14024_v38 }
 0xa2b   :  { %v14028_v43 = vpack.c.bf16 %v12589_v41, %v3556_v42 }
 0xa2d   :  { %14029 = vmatprep.subr.bf16.mxu0 %v14028_v43 }
 0xa2e   :  { %14031 = vmatpush3.bf16.msra.mxu0 %v14028_v43 }
 0xa2f   :  { %14033 = vmatprep.subr.bf16.mxu0 %v14032_v44 }
 0xa31   :  { %12599 = vmatmul.mubr.msk.f32.vlgmr.msra.gmra.mrb[24].mxu0 %vm3204_vm2, %v10944_v47 }
 0xa32   :  { %14035 = vmatpush3.bf16.msra.mxu0 %v14032_v44  ;;  %12601 = vmatprep.mubr.msk.f32.mxu0 %vm3204_vm2, %v10945_v48 }
 0xa33   :  { %14037 = vmatprep.subr.bf16.mxu0 %v14036_v50 }
 0xa35   :  { %12602 = vmatmul.mubr.msk.f32.gmra.mrb[26].mxu0 %vm3204_vm2, %v10946_v54  ;;  %v10960_v54 = vld [vmem:[%s17226_s5 + $0xc8] sm:$0xff] }
 0xa36   :  { %14039 = vmatpush3.bf16.msra.mxu0 %v14036_v50  ;;  %12604 = vmatprep.mubr.msk.f32.mxu0 %vm3204_vm2, %v10947_v55  ;;  %v10961_v55 = vld [vmem:[%s17226_s5 + $0xd0] sm:$0xff] }
 0xa37   :  { %14041 = vmatprep.subr.bf16.mxu0 %v14040_v57 }
 0xa39   :  { %12605 = vmatmul.mubr.msk.f32.gmra.mrb[28].mxu0 %vm3204_vm2, %v10948_v3  ;;  %v10965_v3 = vld [vmem:[%s17226_s5 + $0xf0] sm:$0xff] }
 0xa3a   :  { %14043 = vmatpush3.bf16.msra.mxu0 %v14040_v57  ;;  %12607 = vmatprep.mubr.msk.f32.mxu0 %vm3204_vm2, %v10949_v4  ;;  %v10962_v57 = vld [vmem:[%s17226_s5 + $0xd8] sm:$0xff] }
 0xa3b   :  { %14045 = vmatprep.subr.bf16.mxu0 %v14044_v63  ;;  %v10966_v4 = vld [vmem:[%s17226_s5 + $0xf8] sm:$0xff] }
 0xa3d   :  { %12608 = vmatmul.mubr.msk.f32.gmra.mrb[30].mxu0 %vm3204_vm2, %v10950_v6  ;;  %v4456_v6 = vld [vmem:[#allocation4 + $0x300] sm:$0xff] }
 0xa3e   :  { %14047 = vmatpush3.bf16.msra.mxu0 %v14044_v63  ;;  %12642 = vmatprep.mubr.f32.mxu0 %v16036_v61  ;;  %v10975_v63 = vld [vmem:[%s17226_s5 + $0x100] sm:$0xff] }
 0xa3f   :  { %14049 = vmatprep.subr.bf16.mxu0 %v14048_v7 }
 0xa42   :  { %14051 = vmatpush3.bf16.msra.mxu0 %v14048_v7  ;;  %v4457_v7 = vld [vmem:[#allocation4 + $0x308] sm:$0xff] }
 0xa43   :  { %14053 = vmatprep.subr.bf16.mxu0 %v14052_v22 }
 0xa45   :  { %v12702_v10 = vpop.f32.mrb[40].mxu1 }
 0xa46   :  { %14055 = vmatpush3.bf16.msra.mxu0 %v14052_v22  ;;  %v4042_v49 = vpop.f32.mrb[41].mxu1  ;;  %v14152_v22 = vpack.c.bf16 %v4457_v7, %v4456_v6  ;;  %v11026_v6 = vld [vmem:[%s17226_s5 + $0x1d8] sm:$0xff]  ;;  %v11027_v7 = vld [vmem:[%s17226_s5 + $0x1e0] sm:$0xff] }
 0xa47   :  { %v14104_v11 = vpack.c.bf16 %v12702_v10, %v4042_v49  ;;  %14057 = vmatprep.subr.bf16.mxu0 %v14056_v56  ;;  %v4459_v10 = vld [vmem:[#allocation4 + $0x318] sm:$0xff]  ;;  %v10992_v49 = vld [vmem:[%s17226_s5 + $0x148] sm:$0xff] }
 0xa49   :  { %v12705_v2 = vpop.f32.mrb[42].mxu1 }
 0xa4a   :  { %14059 = vmatpush3.bf16.msra.mxu0 %v14056_v56  ;;  %v4052_v13 = vpop.f32.mrb[43].mxu1  ;;  %v10982_v56 = vld [vmem:[%s17226_s5 + $0x138] sm:$0xff] }
 0xa4b   :  { %v14108_v14 = vpack.c.bf16 %v12705_v2, %v4052_v13  ;;  %14061 = vmatprep.subr.bf16.mxu0 %v14060_v12  ;;  %v4460_v2 = vld [vmem:[#allocation4 + $0x320] sm:$0xff]  ;;  %v4461_v13 = vld [vmem:[#allocation4 + $0x328] sm:$0xff] }
 0xa4e   :  { %14063 = vmatpush3.bf16.msra.mxu0 %v14060_v12  ;;  %v14156_v12 = vpack.c.bf16 %v4459_v10, %v4458_v19  ;;  %v11045_v19 = vld [vmem:[%s17226_s5 + $0x230] sm:$0xff]  ;;  %v11046_v10 = vld [vmem:[%s17226_s5 + $0x238] sm:$0xff] }
 0xa51   :  { %12643 = vmatmul.mubr.f32.vlgmr.msra.gmra.mrb[32].mxu0 %v16039_v0 }
 0xa52   :  { %12645 = vmatprep.mubr.f32.mxu0 %v16045_v59 }
 0xa55   :  { %12646 = vmatmul.mubr.f32.gmra.mrb[34].mxu0 %v16047_v60 }
 0xa56   :  { %12656 = vmatprep.mubr.msk.f32.mxu0 %vm3204_vm2, %v10959_v45  ;;  %v4468_v45 = vld [vmem:[#allocation4 + $0x360] sm:$0xff] }
 0xa65   :  { %v12760_v15 = vpop.f32.mrb[44].mxu1 }
 0xa66   :  { %v4290_v18 = vpop.f32.mrb[45].mxu1 }
 0xa67   :  { %v14144_v20 = vpack.c.bf16 %v12760_v15, %v4290_v18  ;;  %v10995_v15 = vld [vmem:[%s17226_s5 + $0x160] sm:$0xff]  ;;  %v14160_v18 = vpack.c.bf16 %v4461_v13, %v4460_v2  ;;  %v5264_v13 = vld [vmem:[#allocation6 + $0x8] sm:$0xff] }
 0xa69   :  { %v12763_v21 = vpop.f32.mrb[46].mxu1 }
 0xa6a   :  { %v4300_v25 = vpop.f32.mrb[47].mxu1 }
 0xa6b   :  { %v14148_v26 = vpack.c.bf16 %v12763_v21, %v4300_v25  ;;  %v4463_v21 = vld [vmem:[#allocation4 + $0x338] sm:$0xff]  ;;  %v10996_v25 = vld [vmem:[%s17226_s5 + $0x168] sm:$0xff] }
 0xa85   :  { %v12876_v27 = vpop.f32.mrb[48].mxu1 }
 0xa86   :  { %v4786_v28 = vpop.f32.mrb[49].mxu1 }
 0xa87   :  { %v16189_v29 = vpack.c.bf16 %v12876_v27, %v4786_v28  ;;  %v4464_v28 = vld [vmem:[#allocation4 + $0x340] sm:$0xff] }
 0xa89   :  { %v12879_v36 = vpop.f32.mrb[50].mxu1 }
 0xa8a   :  { %v4796_v37 = vpop.f32.mrb[51].mxu1 }
 0xa8b   :  { %v16191_v38 = vpack.c.bf16 %v12879_v36, %v4796_v37  ;;  %v4465_v36 = vld [vmem:[#allocation4 + $0x348] sm:$0xff]  ;;  %v10998_v37 = vld [vmem:[%s17226_s5 + $0x178] sm:$0xff] }
 0xaa5   :  { %v12934_v39 = vpop.f32.mrb[52].mxu1 }
 0xaa6   :  { %v5034_v40 = vpop.f32.mrb[53].mxu1 }
 0xaa7   :  { %v16193_v41 = vpack.c.bf16 %v12934_v39, %v5034_v40  ;;  %v14168_v39 = vpack.c.bf16 %v4465_v36, %v4464_v28  ;;  %v4466_v40 = vld [vmem:[#allocation4 + $0x350] sm:$0xff]  ;;  %v5712_v28 = vld [vmem:[#allocation6 + $0x48] sm:$0xff] }
 0xaa9   :  { %v12937_v42 = vpop.f32.mrb[54].mxu1 }
 0xaaa   :  { %v5044_v43 = vpop.f32.mrb[55].mxu1 }
 0xaab   :  { %v16195_v44 = vpack.c.bf16 %v12937_v42, %v5044_v43  ;;  %v4467_v42 = vld [vmem:[#allocation4 + $0x358] sm:$0xff] }
 0xaac   :  { %v14172_v43 = vpack.c.bf16 %v4467_v42, %v4466_v40 }
 0xb24   :  { %v12644_v46 = vpop.f32.mrb[32].mxu0 }
 0xb25   :  { %v3794_v47 = vpop.f32.mrb[33].mxu0 }
 0xb26   :  { %v14064_v48 = vpack.c.bf16 %v12644_v46, %v3794_v47  ;;  %v4469_v46 = vld [vmem:[#allocation4 + $0x368] sm:$0xff] }
 0xb27   :  { %v14176_v47 = vpack.c.bf16 %v4469_v46, %v4468_v45 }
 0xb28   :  { %v12647_v50 = vpop.f32.mrb[34].mxu0  ;;  %14065 = vmatprep.subr.bf16.mxu0 %v14064_v48 }
 0xb29   :  { %v3804_v51 = vpop.f32.mrb[35].mxu0  ;;  %14067 = vmatpush3.bf16.msra.mxu0 %v14064_v48  ;;  %v4470_v48 = vld [vmem:[#allocation4 + $0x370] sm:$0xff] }
 0xb2a   :  { %v14068_v53 = vpack.c.bf16 %v12647_v50, %v3804_v51  ;;  %v4471_v50 = vld [vmem:[#allocation4 + $0x378] sm:$0xff] }
 0xb2b   :  { %v14180_v51 = vpack.c.bf16 %v4471_v50, %v4470_v48 }
 0xb2c   :  { %14069 = vmatprep.subr.bf16.mxu0 %v14068_v53 }
 0xb2d   :  { %14071 = vmatpush3.bf16.msra.mxu0 %v14068_v53 }
 0xb2e   :  { %14105 = vmatprep.subr.bf16.mxu0 %v14104_v11 }
 0xb30   :  { %12657 = vmatmul.mubr.msk.f32.vlgmr.msra.gmra.mrb[24].mxu0 %vm3204_vm2, %v10960_v54 }
 0xb31   :  { %14107 = vmatpush3.bf16.msra.mxu0 %v14104_v11  ;;  %12659 = vmatprep.mubr.msk.f32.mxu0 %vm3204_vm2, %v10961_v55  ;;  %v10993_v11 = vld [vmem:[%s17226_s5 + $0x150] sm:$0xff] }
 0xb32   :  { %14109 = vmatprep.subr.bf16.mxu0 %v14108_v14 }
 0xb34   :  { %12660 = vmatmul.mubr.msk.f32.gmra.mrb[26].mxu0 %vm3204_vm2, %v10962_v57 }
 0xb35   :  { %14111 = vmatpush3.bf16.msra.mxu0 %v14108_v14  ;;  %12662 = vmatprep.mubr.msk.f32.mxu0 %vm3204_vm2, %v10963_v58  ;;  %v10994_v14 = vld [vmem:[%s17226_s5 + $0x158] sm:$0xff] }
 0xb36   :  { %14145 = vmatprep.subr.bf16.mxu0 %v14144_v20 }
 0xb38   :  { %12663 = vmatmul.mubr.msk.f32.gmra.mrb[28].mxu0 %vm3204_vm2, %v10964_v62 }
 0xb39   :  { %12665 = vmatprep.mubr.msk.f32.mxu0 %vm3204_vm2, %v10965_v3  ;;  %v11011_v3 = vld [vmem:[%s17226_s5 + $0x1a0] sm:$0xff] }
 0xb3c   :  { %12666 = vmatmul.mubr.msk.f32.gmra.mrb[30].mxu0 %vm3204_vm2, %v10966_v4  ;;  %v11013_v4 = vld [vmem:[%s17226_s5 + $0x1b0] sm:$0xff] }
 0xb3d   :  { %12714 = vmatprep.mubr.msk.f32.mxu0 %vm3204_vm2, %v10975_v63  ;;  %v11023_v63 = vld [vmem:[%s17226_s5 + $0x1c0] sm:$0xff] }
 0xb40   :  { %12715 = vmatmul.mubr.msk.f32.vlgmr.msra.gmra.mrb[24].mxu0 %vm3204_vm2, %v10976_v1  ;;  %v11024_v1 = vld [vmem:[%s17226_s5 + $0x1c8] sm:$0xff] }
 0xb41   :  { %14147 = vmatpush3.bf16.msra.mxu0 %v14144_v20  ;;  %12717 = vmatprep.mubr.msk.f32.mxu0 %vm3204_vm2, %v10977_v5  ;;  %v4462_v20 = vld [vmem:[#allocation4 + $0x330] sm:$0xff] }
 0xb42   :  { %14149 = vmatprep.subr.bf16.mxu0 %v14148_v26  ;;  %v14164_v27 = vpack.c.bf16 %v4463_v21, %v4462_v20  ;;  %v11025_v5 = vld [vmem:[%s17226_s5 + $0x1d0] sm:$0xff] }
 0xb43   :  { %v5403_v20 = vld [vmem:[#allocation6 + $0x30] sm:$0xff] }
 0xb44   :  { %12718 = vmatmul.mubr.msk.f32.gmra.mrb[26].mxu0 %vm3204_vm2, %v10978_v16  ;;  %v11029_v16 = vld [vmem:[%s17226_s5 + $0x1f0] sm:$0xff] }
 0xb45   :  { %14151 = vmatpush3.bf16.msra.mxu0 %v14148_v26  ;;  %12720 = vmatprep.mubr.msk.f32.mxu0 %vm3204_vm2, %v10979_v23  ;;  %v10997_v26 = vld [vmem:[%s17226_s5 + $0x170] sm:$0xff]  ;;  %v11030_v23 = vld [vmem:[%s17226_s5 + $0x1f8] sm:$0xff] }
 0xb46   :  { %14153 = vmatprep.subr.bf16.mxu0 %v14152_v22 }
 0xb48   :  { %12721 = vmatmul.mubr.msk.f32.gmra.mrb[28].mxu0 %vm3204_vm2, %v10980_v8  ;;  %v11041_v8 = vld [vmem:[%s17226_s5 + $0x210] sm:$0xff] }
 0xb49   :  { %12723 = vmatprep.mubr.msk.f32.mxu0 %vm3204_vm2, %v10981_v9  ;;  %v11042_v9 = vld [vmem:[%s17226_s5 + $0x218] sm:$0xff] }
 0xb4c   :  { %12724 = vmatmul.mubr.msk.f32.gmra.mrb[30].mxu0 %vm3204_vm2, %v10982_v56  ;;  %v11043_v56 = vld [vmem:[%s17226_s5 + $0x220] sm:$0xff] }
 0xb4d   :  { %12772 = vmatprep.mubr.msk.f32.mxu0 %vm3204_vm2, %v10991_v17  ;;  %v11044_v17 = vld [vmem:[%s17226_s5 + $0x228] sm:$0xff] }
 0xb50   :  { %12773 = vmatmul.mubr.msk.f32.vlgmr.msra.gmra.mrb[24].mxu0 %vm3204_vm2, %v10992_v49  ;;  %v5401_v49 = vld [vmem:[#allocation6 + $0x20] sm:$0xff] }
 0xb51   :  { %14155 = vmatpush3.bf16.msra.mxu0 %v14152_v22  ;;  %12775 = vmatprep.mubr.msk.f32.mxu0 %vm3204_vm2, %v10993_v11  ;;  %v11040_v22 = vld [vmem:[%s17226_s5 + $0x208] sm:$0xff] }
 0xb52   :  { %14157 = vmatprep.subr.bf16.mxu0 %v14156_v12  ;;  %v5402_v11 = vld [vmem:[#allocation6 + $0x28] sm:$0xff] }
 0xb53   :  { %v14280_v2 = vpack.c.bf16 %v5402_v11, %v5401_v49  ;;  %v6143_v49 = vld [vmem:[#allocation6 + $0x80] sm:$0xff]  ;;  %v6144_v11 = vld [vmem:[#allocation6 + $0x88] sm:$0xff] }
 0xb54   :  { %12776 = vmatmul.mubr.msk.f32.gmra.mrb[26].mxu0 %vm3204_vm2, %v10994_v14 }
 0xb55   :  { %14159 = vmatpush3.bf16.msra.mxu0 %v14156_v12  ;;  %12778 = vmatprep.mubr.msk.f32.mxu0 %vm3204_vm2, %v10995_v15  ;;  %v5263_v12 = vld [vmem:[#allocation6] sm:$0xff]  ;;  %v5265_v15 = vld [vmem:[#allocation6 + $0x10] sm:$0xff] }
 0xb56   :  { %14161 = vmatprep.subr.bf16.mxu0 %v14160_v18  ;;  %v14272_v14 = vpack.c.bf16 %v5264_v13, %v5263_v12  ;;  %v14368_v12 = vpack.c.bf16 %v6144_v11, %v6143_v49  ;;  %v6146_v13 = vld [vmem:[#allocation6 + $0x98] sm:$0xff]  ;;  %v5396_v49 = vld [vmem:[#allocation7] sm:$0xff] }
 0xb58   :  { %12779 = vmatmul.mubr.msk.f32.gmra.mrb[28].mxu0 %vm3204_vm2, %v10996_v25  ;;  %14273 = vmatprep.subr.bf16.mxu1 %v14272_v14  ;;  %v5404_v25 = vld [vmem:[#allocation6 + $0x38] sm:$0xff] }
 0xb59   :  { %14163 = vmatpush3.bf16.msra.mxu0 %v14160_v18  ;;  %12781 = vmatprep.mubr.msk.f32.mxu0 %vm3204_vm2, %v10997_v26  ;;  %v5266_v18 = vld [vmem:[#allocation6 + $0x18] sm:$0xff]  ;;  %v14284_v26 = vpack.c.bf16 %v5404_v25, %v5403_v20 }
 0xb5a   :  { %14165 = vmatprep.subr.bf16.mxu0 %v14164_v27  ;;  %14275 = vmatpush3.bf16.msra.mxu1 %v14272_v14  ;;  %v14276_v21 = vpack.c.bf16 %v5266_v18, %v5265_v15  ;;  %v6359_v15 = vld [vmem:[#allocation6 + $0xa0] sm:$0xff]  ;;  %v6360_v18 = vld [vmem:[#allocation6 + $0xa8] sm:$0xff]  ;;  %v6362_v25 = vld [vmem:[#allocation6 + $0xb8] sm:$0xff] }
 0xb5b   :  { %v14392_v20 = vpack.c.bf16 %v6360_v18, %v6359_v15  ;;  %v7254_v15 = vld [vmem:[#allocation9] sm:$0xff] }
 0xb5c   :  { %12782 = vmatmul.mubr.msk.f32.gmra.mrb[30].mxu0 %vm3204_vm2, %v10998_v37  ;;  %14277 = vmatprep.subr.bf16.mxu1 %v14276_v21  ;;  %v5215_v37 = vpop.permute.xlu1 %5214  ;;  %v7258_v18 = vld [vmem:[#allocation9 + $0x20] sm:$0xff] }
 0xb5d   :  { %14167 = vmatpush3.bf16.msra.mxu0 %v14164_v27  ;;  %12816 = vmatprep.mubr.f32.mxu0 %v16036_v61  ;;  %v11007_v61 = vld [vmem:[%s17226_s5 + $0x180] sm:$0xff] }
 0xb5e   :  { %14169 = vmatprep.subr.bf16.mxu0 %v14168_v39  ;;  %14279 = vmatpush3.bf16.msra.mxu1 %v14276_v21  ;;  %v5711_v27 = vld [vmem:[#allocation6 + $0x40] sm:$0xff]  ;;  %v6361_v21 = vld [vmem:[#allocation6 + $0xb0] sm:$0xff] }
 0xb5f   :  { %v14320_v36 = vpack.c.bf16 %v5712_v28, %v5711_v27  ;;  %v6575_v27 = vld [vmem:[#allocation6 + $0xc0] sm:$0xff]  ;;  %v6576_v28 = vld [vmem:[#allocation6 + $0xc8] sm:$0xff] }
 0xb60   :  { %v5225_v45 = vpop.permute.xlu1 %5224 }
 0xb61   :  { %14171 = vmatpush3.bf16.msra.mxu0 %v14168_v39  ;;  %v5210_v39 = vpop.permute.xlu0 %5209 }
 0xb62   :  { %14173 = vmatprep.subr.bf16.mxu0 %v14172_v43 }
 0xb65   :  { %14175 = vmatpush3.bf16.msra.mxu0 %v14172_v43 }
 0xb66   :  { %14177 = vmatprep.subr.bf16.mxu0 %v14176_v47 }
 0xb69   :  { %14179 = vmatpush3.bf16.msra.mxu0 %v14176_v47  ;;  %v5220_v47 = vpop.permute.xlu0 %5219 }
 0xb6a   :  { %14181 = vmatprep.subr.bf16.mxu0 %v14180_v51 }
 0xb6d   :  { %14183 = vmatpush3.bf16.msra.mxu0 %v14180_v51 }
 0xb70   :  { %12817 = vmatmul.mubr.f32.vlgmr.msra.gmra.mrb[36].mxu0 %v16039_v0  ;;  %v11008_v0 = vld [vmem:[%s17226_s5 + $0x188] sm:$0xff] }
 0xb71   :  { %12819 = vmatprep.mubr.f32.mxu0 %v16045_v59  ;;  %v11009_v59 = vld [vmem:[%s17226_s5 + $0x190] sm:$0xff] }
 0xb74   :  { %12820 = vmatmul.mubr.f32.gmra.mrb[38].mxu0 %v16047_v60  ;;  %v11010_v60 = vld [vmem:[%s17226_s5 + $0x198] sm:$0xff] }
 0xb75   :  { %12830 = vmatprep.mubr.msk.f32.mxu0 %vm3204_vm2, %v11007_v61  ;;  %v5713_v61 = vld [vmem:[#allocation6 + $0x50] sm:$0xff] }
 0xc43   :  { %v12818_v53 = vpop.f32.mrb[36].mxu0 }
 0xc44   :  { %v4538_v54 = vpop.f32.mrb[37].mxu0 }
 0xc45   :  { %v14184_v55 = vpack.c.bf16 %v12818_v53, %v4538_v54  ;;  %v5714_v53 = vld [vmem:[#allocation6 + $0x58] sm:$0xff] }
 0xc47   :  { %v12821_v57 = vpop.f32.mrb[38].mxu0  ;;  %14185 = vmatprep.subr.bf16.mxu0 %v14184_v55 }
 0xc48   :  { %v4548_v58 = vpop.f32.mrb[39].mxu0  ;;  %14187 = vmatpush3.bf16.msra.mxu0 %v14184_v55 }
 0xc49   :  { %v14188_v62 = vpack.c.bf16 %v12821_v57, %v4548_v58 }
 0xc4b   :  { %14189 = vmatprep.subr.bf16.mxu0 %v14188_v62 }
 0xc4c   :  { %14191 = vmatpush3.bf16.msra.mxu0 %v14188_v62 }
 0xc4d   :  { %14225 = vmatprep.subr.bf16.mxu0 %v16189_v29 }
 0xc4f   :  { %12831 = vmatmul.mubr.msk.f32.vlgmr.msra.gmra.mrb[24].mxu0 %vm3204_vm2, %v11008_v0  ;;  %v14324_v0 = vpack.c.bf16 %v5714_v53, %v5713_v61  ;;  %v7009_v53 = vld [vmem:[#allocation6 + $0x110] sm:$0xff] }
 0xc50   :  { %14227 = vmatpush3.bf16.msra.mxu0 %v16189_v29  ;;  %12833 = vmatprep.mubr.msk.f32.mxu0 %vm3204_vm2, %v11009_v59  ;;  %v11012_v29 = vld [vmem:[%s17226_s5 + $0x1a8] sm:$0xff]  ;;  %v5235_v59 = vpop.permute.xlu1 %5234 }
 0xc51   :  { %14229 = vmatprep.subr.bf16.mxu0 %v16191_v38 }
 0xc53   :  { %12834 = vmatmul.mubr.msk.f32.gmra.mrb[26].mxu0 %vm3204_vm2, %v11010_v60 }
 0xc54   :  { %14231 = vmatpush3.bf16.msra.mxu0 %v16191_v38  ;;  %12836 = vmatprep.mubr.msk.f32.mxu0 %vm3204_vm2, %v11011_v3  ;;  %v11014_v38 = vld [vmem:[%s17226_s5 + $0x1b8] sm:$0xff]  ;;  %v5927_v3 = vld [vmem:[#allocation6 + $0x60] sm:$0xff] }
 0xc55   :  { %14265 = vmatprep.subr.bf16.mxu0 %v16193_v41 }
 0xc57   :  { %12837 = vmatmul.mubr.msk.f32.gmra.mrb[28].mxu0 %vm3204_vm2, %v11012_v29  ;;  %v5230_v29 = vpop.permute.xlu0 %5229 }
 0xc58   :  { %12839 = vmatprep.mubr.msk.f32.mxu0 %vm3204_vm2, %v11013_v4 }
 0xc5b   :  { %12840 = vmatmul.mubr.msk.f32.gmra.mrb[30].mxu0 %vm3204_vm2, %v11014_v38 }
 0xc5c   :  { %12888 = vmatprep.mubr.msk.f32.mxu0 %vm3204_vm2, %v11023_v63 }
 0xc5f   :  { %12889 = vmatmul.mubr.msk.f32.vlgmr.msra.gmra.mrb[24].mxu0 %vm3204_vm2, %v11024_v1 }
 0xc60   :  { %14267 = vmatpush3.bf16.msra.mxu0 %v16193_v41  ;;  %12891 = vmatprep.mubr.msk.f32.mxu0 %vm3204_vm2, %v11025_v5  ;;  %v11028_v41 = vld [vmem:[%s17226_s5 + $0x1e8] sm:$0xff] }
 0xc61   :  { %14269 = vmatprep.subr.bf16.mxu0 %v16195_v44 }
 0xc63   :  { %12892 = vmatmul.mubr.msk.f32.gmra.mrb[26].mxu0 %vm3204_vm2, %v11026_v6 }
 0xc64   :  { %14271 = vmatpush3.bf16.msra.mxu0 %v16195_v44  ;;  %12894 = vmatprep.mubr.msk.f32.mxu0 %vm3204_vm2, %v11027_v7  ;;  %v11039_v44 = vld [vmem:[%s17226_s5 + $0x200] sm:$0xff] }
 0xc65   :  { %14281 = vmatprep.subr.bf16.mxu0 %v14280_v2 }
 0xc67   :  { %12895 = vmatmul.mubr.msk.f32.gmra.mrb[28].mxu0 %vm3204_vm2, %v11028_v41 }
 0xc68   :  { %12897 = vmatprep.mubr.msk.f32.mxu0 %vm3204_vm2, %v11029_v16 }
 0xc6b   :  { %12898 = vmatmul.mubr.msk.f32.gmra.mrb[30].mxu0 %vm3204_vm2, %v11030_v23 }
 0xc6c   :  { %12946 = vmatprep.mubr.msk.f32.mxu0 %vm3204_vm2, %v11039_v44 }
 0xc6f   :  { %12947 = vmatmul.mubr.msk.f32.vlgmr.msra.gmra.mrb[24].mxu0 %vm3204_vm2, %v11040_v22  ;;  %v5240_v22 = vpop.permute.xlu0 %5239 }
 0xc70   :  { %12949 = vmatprep.mubr.msk.f32.mxu0 %vm3204_vm2, %v11041_v8  ;;  %14283 = vmatpush3.bf16.msra.mxu0 %v14280_v2  ;;  %v6145_v2 = vld [vmem:[#allocation6 + $0x90] sm:$0xff] }
 0xc71   :  { %14285 = vmatprep.subr.bf16.mxu0 %v14284_v26  ;;  %v14372_v14 = vpack.c.bf16 %v6146_v13, %v6145_v2  ;;  %v7259_v2 = vld [vmem:[#allocation9 + $0x28] sm:$0xff] }
 0xc73   :  { %12950 = vmatmul.mubr.msk.f32.gmra.mrb[26].mxu0 %vm3204_vm2, %v11042_v9 }
 0xc74   :  { %12952 = vmatprep.mubr.msk.f32.mxu0 %vm3204_vm2, %v11043_v56  ;;  %14287 = vmatpush3.bf16.msra.mxu0 %v14284_v26  ;;  %v14396_v26 = vpack.c.bf16 %v6362_v25, %v6361_v21  ;;  %v14490_v21 = vpack.c.bf16 %v7258_v18, %v7254_v15  ;;  %v7263_v25 = vld [vmem:[#allocation9 + $0x48] sm:$0xff] }
 0xc75   :  { %14321 = vmatprep.subr.bf16.mxu0 %v14320_v36 }
 0xc77   :  { %12953 = vmatmul.mubr.msk.f32.gmra.mrb[28].mxu0 %vm3204_vm2, %v11044_v17  ;;  %v5929_v17 = vld [vmem:[#allocation6 + $0x70] sm:$0xff] }
 0xc78   :  { %12955 = vmatprep.mubr.msk.f32.mxu0 %vm3204_vm2, %v11045_v19  ;;  %v5930_v19 = vld [vmem:[#allocation6 + $0x78] sm:$0xff] }
 0xc7b   :  { %12956 = vmatmul.mubr.msk.f32.gmra.mrb[30].mxu0 %vm3204_vm2, %v11046_v10  ;;  %v14348_v10 = vpack.c.bf16 %v5930_v19, %v5929_v17  ;;  %v5514_v19 = vld [vmem:[#allocation7 + $0x38] sm:$0xff] }
 0xd42   :  { %v12948_v40 = vpop.f32.mrb[24].mxu0 }
 0xd43   :  { %v15212_v42 = vadd.f32 %v12948_v40, %v16141_v30  ;;  %v5152_v43 = vpop.f32.mrb[25].mxu0 }
 0xd44   :  { %v15213_v46 = vadd.f32 %v5152_v43, %v16143_v24  ;;  %v6792_v43 = vld [vmem:[#allocation6 + $0xe8] sm:$0xff] }
 0xd45   :  { %v5248_v48 = vadd.f32 %v15212_v42, %v5215_v37  ;;  %v6577_v37 = vld [vmem:[#allocation6 + $0xd0] sm:$0xff]  ;;  %v6791_v42 = vld [vmem:[#allocation6 + $0xe0] sm:$0xff] }
 0xd46   :  { %v5247_v50 = vadd.f32 %v15213_v46, %v5210_v39  ;;  %v12951_v51 = vpop.f32.mrb[26].mxu0  ;;  %v6578_v39 = vld [vmem:[#allocation6 + $0xd8] sm:$0xff]  ;;  %v6793_v46 = vld [vmem:[#allocation6 + $0xf0] sm:$0xff] }
 0xd47   :  { %v15214_v54 = vadd.f32 %v12951_v51, %v16145_v31  ;;  %v5162_v55 = vpop.f32.mrb[27].mxu0  ;;  %v16407_v62 = vmax.f32 %v5248_v48, 0.0  ;;  %v5928_v31 = vld [vmem:[#allocation6 + $0x68] sm:$0xff]  ;;  %v14420_v40 = vpack.c.bf16 %v6578_v39, %v6577_v37  ;;  %v7266_v37 = vld [vmem:[#allocation9 + $0x60] sm:$0xff] }
 0xd48   :  { %v16404_v57 = vmax.f32 %v5247_v50, 0.0  ;;  %v15215_v58 = vadd.f32 %v5162_v55, %v16147_v32  ;;  %v14344_v6 = vpack.c.bf16 %v5928_v31, %v5927_v3  ;;  %v7007_v50 = vld [vmem:[#allocation6 + $0x100] sm:$0xff]  ;;  %v7008_v51 = vld [vmem:[#allocation6 + $0x108] sm:$0xff] }
 0xd49   :  { %v5250_v30 = vadd.f32 %v15214_v54, %v5225_v45  ;;  %v14440_v45 = vpack.c.bf16 %v6792_v43, %v6791_v42  ;;  %v14464_v61 = vpack.c.bf16 %v7008_v51, %v7007_v50  ;;  %v7010_v54 = vld [vmem:[#allocation6 + $0x118] sm:$0xff]  ;;  %v7271_v42 = vld [vmem:[#allocation9 + $0x88] sm:$0xff] }
 0xd4a   :  { %v5249_v60 = vadd.f32 %v15215_v58, %v5220_v47  ;;  %v12954_v24 = vpop.f32.mrb[28].mxu0  ;;  %12966 = vmatprep.mubr.msk.f32.mxu1 %vm3204_vm2, %v16404_v57  ;;  %12986 = vmatprep.mubr.msk.f32.mxu0 %vm3204_vm2, %v16404_v57  ;;  %v6794_v47 = vld [vmem:[#allocation6 + $0xf8] sm:$0xff]  ;;  %v14468_v55 = vpack.c.bf16 %v7010_v54, %v7009_v53  ;;  %v5511_v58 = vld [vmem:[#allocation7 + $0x20] sm:$0xff]  ;;  %v7275_v43 = vld [vmem:[#allocation9 + $0xa8] sm:$0xff] }
 0xd4b   :  { %v15216_v4 = vadd.f32 %v12954_v24, %v16149_v33  ;;  %v5172_v38 = vpop.f32.mrb[29].mxu0  ;;  %12967 = vmatmul.mubr.msk.f32.vlgmr.msra.gmra.mrb[56].mxu1 %vm3204_vm2, %v16407_v62  ;;  %12987 = vmatmul.mubr.msk.f32.vlgmr.msra.gmra.mrb[40].mxu0 %vm3204_vm2, %v16407_v62  ;;  %v16421_v1 = vmax.f32 %v5250_v30, 0.0  ;;  %v14444_v48 = vpack.c.bf16 %v6794_v47, %v6793_v46  ;;  %v14496_v46 = vpack.c.bf16 %v7275_v43, %v7271_v42  ;;  %v7270_v47 = vld [vmem:[#allocation9 + $0x80] sm:$0xff]  ;;  %v7283_v53 = vld [vmem:[#allocation9 + $0xe8] sm:$0xff] }
 0xd4c   :  { %v16418_v32 = vmax.f32 %v5249_v60, 0.0  ;;  %v15217_v63 = vadd.f32 %v5172_v38, %v16151_v34  ;;  %14323 = vmatpush3.bf16.msra.mxu0 %v14320_v36  ;;  %v5245_v34 = vpop.permute.xlu1 %5244  ;;  %v14416_v36 = vpack.c.bf16 %v6576_v28, %v6575_v27  ;;  %v6038_v43 = vld [vmem:[#allocation7 + $0x68] sm:$0xff] }
 0xd4d   :  { %v5252_v5 = vadd.f32 %v15216_v4, %v5235_v59  ;;  %14325 = vmatprep.subr.bf16.mxu0 %v14324_v0 }
 0xd4e   :  { %v5251_v7 = vadd.f32 %v15217_v63, %v5230_v29  ;;  %v12957_v41 = vpop.f32.mrb[30].mxu0  ;;  %12969 = vmatprep.mubr.msk.f32.mxu1 %vm3204_vm2, %v16418_v32  ;;  %12989 = vmatprep.mubr.msk.f32.mxu0 %vm3204_vm2, %v16418_v32 }
 0xd4f   :  { %v15218_v33 = vadd.f32 %v12957_v41, %v16153_v35  ;;  %v5182_v16 = vpop.f32.mrb[31].mxu0  ;;  %12970 = vmatmul.mubr.msk.f32.gmra.mrb[58].mxu1 %vm3204_vm2, %v16421_v1  ;;  %12990 = vmatmul.mubr.msk.f32.gmra.mrb[42].mxu0 %vm3204_vm2, %v16421_v1  ;;  %v16435_v8 = vmax.f32 %v5252_v5, 0.0 }
 0xd50   :  { %v16432_v23 = vmax.f32 %v5251_v7, 0.0  ;;  %v15219_v44 = vadd.f32 %v5182_v16, %v16155_v52  ;;  %14327 = vmatpush3.bf16.msra.mxu0 %v14324_v0 }
 0xd51   :  { %v5254_v9 = vadd.f32 %v15218_v33, %v5245_v34  ;;  %14345 = vmatprep.subr.bf16.mxu0 %v14344_v6 }
 0xd52   :  { %v5253_v56 = vadd.f32 %v15219_v44, %v5240_v22  ;;  %12972 = vmatprep.mubr.msk.f32.mxu1 %vm3204_vm2, %v16432_v23  ;;  %12992 = vmatprep.mubr.msk.f32.mxu0 %vm3204_vm2, %v16432_v23 }
 0xd53   :  { %12973 = vmatmul.mubr.msk.f32.gmra.mrb[60].mxu1 %vm3204_vm2, %v16435_v8  ;;  %12993 = vmatmul.mubr.msk.f32.gmra.mrb[44].mxu0 %vm3204_vm2, %v16435_v8  ;;  %v16447_v52 = vmax.f32 %v5254_v9, 0.0  ;;  %v5512_v9 = vld [vmem:[#allocation7 + $0x28] sm:$0xff] }
 0xd54   :  { %v16445_v35 = vmax.f32 %v5253_v56, 0.0 }
 0xd56   :  { %12975 = vmatprep.mubr.msk.f32.mxu1 %vm3204_vm2, %v16445_v35  ;;  %12995 = vmatprep.mubr.msk.f32.mxu0 %vm3204_vm2, %v16445_v35 }
 0xd57   :  { %12976 = vmatmul.mubr.msk.f32.gmra.mrb[62].mxu1 %vm3204_vm2, %v16447_v52  ;;  %12996 = vmatmul.mubr.msk.f32.gmra.mrb[46].mxu0 %vm3204_vm2, %v16447_v52 }
 0xd58   :  { %13050 = vmatprep.mubr.msk.f32.mxu0 %vm3204_vm2, %v16404_v57  ;;  %13014 = vmatprep.mubr.msk.f32.mxu1 %vm5515_vm3, %v5511_v58  ;;  %v7278_v58 = vld [vmem:[#allocation9 + $0xc0] sm:$0xff] }
 0xd5b   :  { %13051 = vmatmul.mubr.msk.f32.vlgmr.msra.gmra.mrb[48].mxu0 %vm3204_vm2, %v16407_v62 }
 0xd5c   :  { %13053 = vmatprep.mubr.msk.f32.mxu0 %vm3204_vm2, %v16418_v32  ;;  %14347 = vmatpush3.bf16.msra.mxu0 %v14344_v6 }
 0xd5d   :  { %14349 = vmatprep.subr.bf16.mxu0 %v14348_v10 }
 0xd5f   :  { %13054 = vmatmul.mubr.msk.f32.gmra.mrb[50].mxu0 %vm3204_vm2, %v16421_v1 }
 0xd60   :  { %13056 = vmatprep.mubr.msk.f32.mxu0 %vm3204_vm2, %v16432_v23  ;;  %14351 = vmatpush3.bf16.msra.mxu0 %v14348_v10 }
 0xd61   :  { %14369 = vmatprep.subr.bf16.mxu0 %v14368_v12 }
 0xd63   :  { %13057 = vmatmul.mubr.msk.f32.gmra.mrb[52].mxu0 %vm3204_vm2, %v16435_v8 }
 0xd64   :  { %13059 = vmatprep.mubr.msk.f32.mxu0 %vm3204_vm2, %v16445_v35 }
 0xd67   :  { %13060 = vmatmul.mubr.msk.f32.gmra.mrb[54].mxu0 %vm3204_vm2, %v16447_v52 }
 0xd68   :  { %13092 = vmatprep.mubr.msk.f32.mxu0 %vm3204_vm2, %v16404_v57 }
 0xd6b   :  { %13093 = vmatmul.mubr.msk.f32.vlgmr.msra.gmra.mrb[56].mxu0 %vm3204_vm2, %v16407_v62 }
 0xd6c   :  { %13095 = vmatprep.mubr.msk.f32.mxu0 %vm3204_vm2, %v16418_v32  ;;  %14371 = vmatpush3.bf16.msra.mxu0 %v14368_v12  ;;  %v7255_v12 = vld [vmem:[#allocation9 + $0x8] sm:$0xff] }
 0xd6d   :  { %14373 = vmatprep.subr.bf16.mxu0 %v14372_v14 }
 0xd6f   :  { %13096 = vmatmul.mubr.msk.f32.gmra.mrb[58].mxu0 %vm3204_vm2, %v16421_v1 }
 0xd70   :  { %13098 = vmatprep.mubr.msk.f32.mxu0 %vm3204_vm2, %v16432_v23  ;;  %14375 = vmatpush3.bf16.msra.mxu0 %v14372_v14  ;;  %v14488_v14 = vpack.c.bf16 %v7259_v2, %v7255_v12  ;;  %v5822_v2 = vld [vmem:[#allocation7 + $0x48] sm:$0xff] }
 0xd71   :  { %14393 = vmatprep.subr.bf16.mxu0 %v14392_v20 }
 0xd73   :  { %13099 = vmatmul.mubr.msk.f32.gmra.mrb[60].mxu0 %vm3204_vm2, %v16435_v8 }
 0xd74   :  { %13101 = vmatprep.mubr.msk.f32.mxu0 %vm3204_vm2, %v16445_v35 }
 0xd77   :  { %13102 = vmatmul.mubr.msk.f32.gmra.mrb[62].mxu0 %vm3204_vm2, %v16447_v52 }
 0xd78   :  { %13134 = vmatprep.mubr.msk.f32.mxu0 %vm3204_vm2, %v16404_v57 }
 0xd7b   :  { %13135 = vmatmul.mubr.msk.f32.vlgmr.msra.gmra.mrb[64].mxu0 %vm3204_vm2, %v16407_v62 }
 0xd7c   :  { %13137 = vmatprep.mubr.msk.f32.mxu0 %vm3204_vm2, %v16418_v32  ;;  %14395 = vmatpush3.bf16.msra.mxu0 %v14392_v20 }
 0xd7d   :  { %14397 = vmatprep.subr.bf16.mxu0 %v14396_v26 }
 0xd7f   :  { %13138 = vmatmul.mubr.msk.f32.gmra.mrb[66].mxu0 %vm3204_vm2, %v16421_v1 }
 0xd80   :  { %13140 = vmatprep.mubr.msk.f32.mxu0 %vm3204_vm2, %v16432_v23  ;;  %14399 = vmatpush3.bf16.msra.mxu0 %v14396_v26  ;;  %v7267_v26 = vld [vmem:[#allocation9 + $0x68] sm:$0xff] }
 0xd81   :  { %14417 = vmatprep.subr.bf16.mxu0 %v14416_v36  ;;  %v14492_v28 = vpack.c.bf16 %v7267_v26, %v7263_v25  ;;  %v6037_v25 = vld [vmem:[#allocation7 + $0x60] sm:$0xff] }
 0xd83   :  { %13141 = vmatmul.mubr.msk.f32.gmra.mrb[68].mxu0 %vm3204_vm2, %v16435_v8 }
 0xd84   :  { %13143 = vmatprep.mubr.msk.f32.mxu0 %vm3204_vm2, %v16445_v35 }
 0xd87   :  { %13144 = vmatmul.mubr.msk.f32.gmra.mrb[70].mxu0 %vm3204_vm2, %v16447_v52 }
 0xd88   :  { %13176 = vmatprep.mubr.msk.f32.mxu0 %vm3204_vm2, %v16404_v57 }
 0xd8b   :  { %13177 = vmatmul.mubr.msk.f32.vlgmr.msra.gmra.mrb[72].mxu0 %vm3204_vm2, %v16407_v62 }
 0xd8c   :  { %13179 = vmatprep.mubr.msk.f32.mxu0 %vm3204_vm2, %v16418_v32  ;;  %14419 = vmatpush3.bf16.msra.mxu0 %v14416_v36  ;;  %v7262_v36 = vld [vmem:[#allocation9 + $0x40] sm:$0xff] }
 0xd8d   :  { %14421 = vmatprep.subr.bf16.mxu0 %v14420_v40 }
 0xd8f   :  { %13180 = vmatmul.mubr.msk.f32.gmra.mrb[74].mxu0 %vm3204_vm2, %v16421_v1 }
 0xd90   :  { %13182 = vmatprep.mubr.msk.f32.mxu0 %vm3204_vm2, %v16432_v23  ;;  %14423 = vmatpush3.bf16.msra.mxu0 %v14420_v40  ;;  %v14494_v40 = vpack.c.bf16 %v7266_v37, %v7262_v36 }
 0xd91   :  { %14441 = vmatprep.subr.bf16.mxu0 %v14440_v45 }
 0xd93   :  { %13183 = vmatmul.mubr.msk.f32.gmra.mrb[76].mxu0 %vm3204_vm2, %v16435_v8 }
 0xd94   :  { %13185 = vmatprep.mubr.msk.f32.mxu0 %vm3204_vm2, %v16445_v35 }
 0xd97   :  { %13186 = vmatmul.mubr.msk.f32.gmra.mrb[78].mxu0 %vm3204_vm2, %v16447_v52 }
 0xd98   :  { %13218 = vmatprep.mubr.msk.f32.mxu0 %vm3204_vm2, %v16404_v57 }
 0xd9b   :  { %13219 = vmatmul.mubr.msk.f32.vlgmr.msra.gmra.mrb[80].mxu0 %vm3204_vm2, %v16407_v62 }
 0xd9c   :  { %13221 = vmatprep.mubr.msk.f32.mxu0 %vm3204_vm2, %v16418_v32  ;;  %14443 = vmatpush3.bf16.msra.mxu0 %v14440_v45 }
 0xd9d   :  { %14445 = vmatprep.subr.bf16.mxu0 %v14444_v48 }
 0xd9f   :  { %13222 = vmatmul.mubr.msk.f32.gmra.mrb[82].mxu0 %vm3204_vm2, %v16421_v1 }
 0xda0   :  { %13224 = vmatprep.mubr.msk.f32.mxu0 %vm3204_vm2, %v16432_v23  ;;  %14447 = vmatpush3.bf16.msra.mxu0 %v14444_v48  ;;  %v7274_v48 = vld [vmem:[#allocation9 + $0xa0] sm:$0xff] }
 0xda1   :  { %14465 = vmatprep.subr.bf16.mxu0 %v14464_v61  ;;  %v14498_v51 = vpack.c.bf16 %v7274_v48, %v7270_v47 }
 0xda3   :  { %13225 = vmatmul.mubr.msk.f32.gmra.mrb[84].mxu0 %vm3204_vm2, %v16435_v8 }
 0xda4   :  { %13227 = vmatprep.mubr.msk.f32.mxu0 %vm3204_vm2, %v16445_v35 }
 0xda7   :  { %13228 = vmatmul.mubr.msk.f32.gmra.mrb[86].mxu0 %vm3204_vm2, %v16447_v52 }
 0xda8   :  { %13260 = vmatprep.mubr.msk.f32.mxu0 %vm3204_vm2, %v16404_v57 }
 0xdab   :  { %13261 = vmatmul.mubr.msk.f32.vlgmr.msra.gmra.mrb[88].mxu0 %vm3204_vm2, %v16407_v62 }
 0xdac   :  { %13263 = vmatprep.mubr.msk.f32.mxu0 %vm3204_vm2, %v16418_v32  ;;  %14467 = vmatpush3.bf16.msra.mxu0 %v14464_v61  ;;  %v7279_v61 = vld [vmem:[#allocation9 + $0xc8] sm:$0xff] }
 0xdad   :  { %14469 = vmatprep.subr.bf16.mxu0 %v14468_v55 }
 0xdaf   :  { %13264 = vmatmul.mubr.msk.f32.gmra.mrb[90].mxu0 %vm3204_vm2, %v16421_v1 }
 0xdb0   :  { %13266 = vmatprep.mubr.msk.f32.mxu0 %vm3204_vm2, %v16432_v23  ;;  %14471 = vmatpush3.bf16.msra.mxu0 %v14468_v55  ;;  %v5397_v55 = vld [vmem:[#allocation7 + $0x8] sm:$0xff] }
 0xdb1   :  { %14489 = vmatprep.subr.bf16.mxu0 %v14488_v14  ;;  %v5823_v14 = vld [vmem:[#allocation7 + $0x50] sm:$0xff] }
 0xdb3   :  { %13267 = vmatmul.mubr.msk.f32.gmra.mrb[92].mxu0 %vm3204_vm2, %v16435_v8 }
 0xdb4   :  { %13269 = vmatprep.mubr.msk.f32.mxu0 %vm3204_vm2, %v16445_v35 }
 0xdb7   :  { %13270 = vmatmul.mubr.msk.f32.gmra.mrb[94].mxu0 %vm3204_vm2, %v16447_v52 }
 0xdb8   :  { %13302 = vmatprep.mubr.msk.f32.mxu0 %vm3204_vm2, %v16404_v57 }
 0xdbb   :  { %13303 = vmatmul.mubr.msk.f32.vlgmr.msra.gmra.mrb[96].mxu0 %vm3204_vm2, %v16407_v62 }
 0xdbc   :  { %13305 = vmatprep.mubr.msk.f32.mxu0 %vm3204_vm2, %v16418_v32  ;;  %14491 = vmatpush1.bf16.msra.mxu0 %v14490_v21 }
 0xdbd   :  { %14493 = vmatprep.subr.bf16.mxu0 %v14492_v28 }
 0xdbf   :  { %13306 = vmatmul.mubr.msk.f32.gmra.mrb[98].mxu0 %vm3204_vm2, %v16421_v1 }
 0xdc0   :  { %13308 = vmatprep.mubr.msk.f32.mxu0 %vm3204_vm2, %v16432_v23  ;;  %14495 = vmatpush1.bf16.msra.mxu0 %v14494_v40 }
 0xdc1   :  { %14497 = vmatprep.subr.bf16.mxu0 %v14496_v46  ;;  %v6039_v46 = vld [vmem:[#allocation7 + $0x70] sm:$0xff] }
 0xdc3   :  { %13309 = vmatmul.mubr.msk.f32.gmra.mrb[100].mxu0 %vm3204_vm2, %v16435_v8 }
 0xdc4   :  { %13311 = vmatprep.mubr.msk.f32.mxu0 %vm3204_vm2, %v16445_v35  ;;  %v5513_v35 = vld [vmem:[#allocation7 + $0x30] sm:$0xff]  ;;  %14499 = vmatpush1.bf16.msra.mxu0 %v14498_v51 }
 0xdc7   :  { %13312 = vmatmul.mubr.msk.f32.gmra.mrb[102].mxu0 %vm3204_vm2, %v16447_v52 }
 0xe1e   :  { %v12968_v57 = vpop.f32.mrb[56].mxu1  ;;  %v12988_v62 = vpop.f32.mrb[40].mxu0 }
 0xe1f   :  { %v5357_v30 = vpop.f32.mrb[57].mxu1  ;;  %v5471_v0 = vpop.f32.mrb[41].mxu0 }
 0xe20   :  { %v14304_v59 = vpack.c.bf16 %v12968_v57, %v5357_v30  ;;  %v14288_v60 = vpack.c.bf16 %v12988_v62, %v5471_v0  ;;  %v7282_v57 = vld [vmem:[#allocation9 + $0xe0] sm:$0xff]  ;;  %v5398_v30 = vld [vmem:[#allocation7 + $0x10] sm:$0xff]  ;;  %v14500_v0 = vpack.c.bf16 %v7283_v53, %v7279_v61 }
 0xe21   :  { %v6253_v61 = vld [vmem:[#allocation7 + $0x80] sm:$0xff] }
 0xe22   :  { %v12971_v24 = vpop.f32.mrb[58].mxu1  ;;  %v12991_v3 = vpop.f32.mrb[42].mxu0  ;;  %14289 = vmatprep.subr.bf16.mxu1 %v14288_v60  ;;  %14501 = vmatprep.subr.bf16.mxu0 %v14500_v0 }
 0xe23   :  { %v5367_v31 = vpop.f32.mrb[59].mxu1  ;;  %v5481_v29 = vpop.f32.mrb[43].mxu0  ;;  %14291 = vmatpush3.bf16.msra.mxu1 %v14288_v60  ;;  %v7291_v60 = vld [vmem:[#allocation9 + $0x128] sm:$0xff] }
 0xe24   :  { %v14308_v4 = vpack.c.bf16 %v12971_v24, %v5367_v31  ;;  %v14292_v38 = vpack.c.bf16 %v12991_v3, %v5481_v29  ;;  %v14502_v3 = vpack.c.bf16 %v7282_v57, %v7278_v58  ;;  %v5399_v29 = vld [vmem:[#allocation7 + $0x18] sm:$0xff] }
 0xe26   :  { %v12974_v32 = vpop.f32.mrb[60].mxu1  ;;  %v12994_v63 = vpop.f32.mrb[44].mxu0  ;;  %14293 = vmatprep.subr.bf16.mxu1 %v14292_v38  ;;  %14503 = vmatpush1.bf16.msra.mxu0 %v14502_v3 }
 0xe27   :  { %v5377_v1 = vpop.f32.mrb[61].mxu1  ;;  %v5491_v5 = vpop.f32.mrb[45].mxu0  ;;  %14295 = vmatpush3.bf16.msra.mxu1 %v14292_v38  ;;  %v7290_v38 = vld [vmem:[#allocation9 + $0x120] sm:$0xff] }
 0xe28   :  { %v14312_v6 = vpack.c.bf16 %v12974_v32, %v5377_v1  ;;  %v14296_v7 = vpack.c.bf16 %v12994_v63, %v5491_v5  ;;  %v5821_v63 = vld [vmem:[#allocation7 + $0x40] sm:$0xff]  ;;  %v7295_v5 = vld [vmem:[#allocation9 + $0x148] sm:$0xff] }
 0xe2a   :  { %v12977_v41 = vpop.f32.mrb[62].mxu1  ;;  %v12997_v33 = vpop.f32.mrb[46].mxu0  ;;  %14297 = vmatprep.subr.bf16.mxu1 %v14296_v7 }
 0xe2b   :  { %v5387_v16 = vpop.f32.mrb[63].mxu1  ;;  %v5501_v34 = vpop.f32.mrb[47].mxu0  ;;  %14299 = vmatpush3.bf16.msra.mxu1 %v14296_v7 }
 0xe2c   :  { %v14316_v23 = vpack.c.bf16 %v12977_v41, %v5387_v16  ;;  %v14300_v44 = vpack.c.bf16 %v12997_v33, %v5501_v34  ;;  %v7294_v34 = vld [vmem:[#allocation9 + $0x140] sm:$0xff] }
 0xe2e   :  { %14301 = vmatprep.subr.bf16.mxu1 %v14300_v44  ;;  %v13052_v22 = vpop.f32.mrb[48].mxu0 }
 0xe2f   :  { %14303 = vmatpush3.bf16.msra.mxu1 %v14300_v44  ;;  %v5781_v8 = vpop.f32.mrb[49].mxu0 }
 0xe30   :  { %v16570_v56 = vpack.c.bf16 %v13052_v22, %v5781_v8  ;;  %14305 = vmatprep.subr.bf16.mxu1 %v14304_v59  ;;  %v7303_v22 = vld [vmem:[#allocation9 + $0x188] sm:$0xff] }
 0xe31   :  { %v7307_v8 = vld [vmem:[#allocation9 + $0x1a8] sm:$0xff] }
 0xe32   :  { %v13055_v52 = vpop.f32.mrb[50].mxu0  ;;  %13015 = vmatmul.mubr.msk.f32.vlgmr.msra.gmra.mrb[64].mxu1 %vm5515_vm3, %v5512_v9 }
 0xe33   :  { %14307 = vmatpush3.bf16.msra.mxu1 %v14304_v59  ;;  %v5791_v17 = vpop.f32.mrb[51].mxu0  ;;  %13017 = vmatprep.mubr.msk.f32.mxu1 %vm5515_vm3, %v5513_v35  ;;  %v7287_v59 = vld [vmem:[#allocation9 + $0x108] sm:$0xff] }
 0xe34   :  { %v16574_v10 = vpack.c.bf16 %v13055_v52, %v5791_v17  ;;  %14309 = vmatprep.subr.bf16.mxu1 %v14308_v4  ;;  %v14504_v1 = vpack.c.bf16 %v7291_v60, %v7287_v59  ;;  %v14512_v52 = vpack.c.bf16 %v7307_v8, %v7303_v22  ;;  %v7302_v17 = vld [vmem:[#allocation9 + $0x180] sm:$0xff]  ;;  %v6254_v59 = vld [vmem:[#allocation7 + $0x88] sm:$0xff]  ;;  %v6472_v8 = vld [vmem:[#allocation7 + $0xb8] sm:$0xff] }
 0xe36   :  { %v13058_v11 = vpop.f32.mrb[52].mxu0  ;;  %13018 = vmatmul.mubr.msk.f32.gmra.mrb[66].mxu1 %vm5515_vm3, %v5514_v19  ;;  %14505 = vmatprep.subr.bf16.mxu0 %v14504_v1  ;;  %v7306_v19 = vld [vmem:[#allocation9 + $0x1a0] sm:$0xff] }
 0xe37   :  { %14311 = vmatpush3.bf16.msra.mxu1 %v14308_v4  ;;  %v5801_v13 = vpop.f32.mrb[53].mxu0  ;;  %13036 = vmatprep.mubr.msk.f32.mxu1 %vm5515_vm3, %v5396_v49  ;;  %v7286_v4 = vld [vmem:[#allocation9 + $0x100] sm:$0xff] }
 0xe38   :  { %v16578_v20 = vpack.c.bf16 %v13058_v11, %v5801_v13  ;;  %14313 = vmatprep.subr.bf16.mxu1 %v14312_v6  ;;  %v14506_v41 = vpack.c.bf16 %v7290_v38, %v7286_v4  ;;  %v14514_v11 = vpack.c.bf16 %v7306_v19, %v7302_v17  ;;  %v6469_v38 = vld [vmem:[#allocation7 + $0xa0] sm:$0xff] }
 0xe3a   :  { %v13061_v27 = vpop.f32.mrb[54].mxu0  ;;  %14507 = vmatpush1.bf16.msra.mxu0 %v14506_v41 }
 0xe3b   :  { %14315 = vmatpush3.bf16.msra.mxu1 %v14312_v6  ;;  %v5811_v39 = vpop.f32.mrb[55].mxu0  ;;  %v7299_v6 = vld [vmem:[#allocation9 + $0x168] sm:$0xff] }
 0xe3c   :  { %v16580_v45 = vpack.c.bf16 %v13061_v27, %v5811_v39  ;;  %14317 = vmatprep.subr.bf16.mxu1 %v14316_v23  ;;  %v14508_v16 = vpack.c.bf16 %v7299_v6, %v7295_v5 }
 0xe3e   :  { %v13094_v50 = vpop.f32.mrb[56].mxu0  ;;  %14509 = vmatprep.subr.bf16.mxu0 %v14508_v16  ;;  %v6470_v16 = vld [vmem:[#allocation7 + $0xa8] sm:$0xff] }
 0xe3f   :  { %14319 = vmatpush3.bf16.msra.mxu1 %v14316_v23  ;;  %v5997_v54 = vpop.f32.mrb[57].mxu0  ;;  %v7298_v23 = vld [vmem:[#allocation9 + $0x160] sm:$0xff] }
 0xe40   :  { %v14352_v62 = vpack.c.bf16 %v13094_v50, %v5997_v54  ;;  %14329 = vmatprep.subr.bf16.mxu1 %v16570_v56  ;;  %v6040_v50 = vld [vmem:[#allocation7 + $0x78] sm:$0xff] }
 0xe42   :  { %v13097_v24 = vpop.f32.mrb[58].mxu0  ;;  %13037 = vmatmul.mubr.msk.f32.vlgmr.msra.gmra.mrb[64].mxu1 %vm5515_vm3, %v5397_v55 }
 0xe43   :  { %14331 = vmatpush3.bf16.msra.mxu1 %v16570_v56  ;;  %v6007_v31 = vpop.f32.mrb[59].mxu0  ;;  %13039 = vmatprep.mubr.msk.f32.mxu1 %vm5515_vm3, %v5398_v30  ;;  %v14510_v56 = vpack.c.bf16 %v7298_v23, %v7294_v34  ;;  %v6471_v23 = vld [vmem:[#allocation7 + $0xb0] sm:$0xff] }
 0xe44   :  { %v14356_v32 = vpack.c.bf16 %v13097_v24, %v6007_v31  ;;  %14333 = vmatprep.subr.bf16.mxu1 %v16574_v10  ;;  %v6255_v24 = vld [vmem:[#allocation7 + $0x90] sm:$0xff] }
 0xe45   :  { %14511 = vmatpush1.bf16.msra.mxu0 %v14510_v56  ;;  %v6685_v56 = vld [vmem:[#allocation7 + $0xc0] sm:$0xff] }
 0xe46   :  { %v13100_v7 = vpop.f32.mrb[60].mxu0  ;;  %13040 = vmatmul.mubr.msk.f32.gmra.mrb[66].mxu1 %vm5515_vm3, %v5399_v29  ;;  %14513 = vmatprep.subr.bf16.mxu0 %v14512_v52  ;;  %v6256_v29 = vld [vmem:[#allocation7 + $0x98] sm:$0xff] }
 0xe47   :  { %14335 = vmatpush3.bf16.msra.mxu1 %v16574_v10  ;;  %v6017_v33 = vpop.f32.mrb[61].mxu0  ;;  %13078 = vmatprep.mubr.msk.f32.mxu1 %vm5515_vm3, %v5821_v63 }
 0xe48   :  { %v14360_v44 = vpack.c.bf16 %v13100_v7, %v6017_v33  ;;  %14337 = vmatprep.subr.bf16.mxu1 %v16578_v20 }
 0xe49   :  { %14515 = vmatpush1.bf16.msra.mxu0 %v14514_v11 }
 0xe4a   :  { %v13103_v9 = vpop.f32.mrb[62].mxu0 }
 0xe4b   :  { %14339 = vmatpush3.bf16.msra.mxu1 %v16578_v20  ;;  %v6027_v35 = vpop.f32.mrb[63].mxu0  ;;  %v5824_v20 = vld [vmem:[#allocation7 + $0x58] sm:$0xff] }
 0xe4c   :  { %v14364_v10 = vpack.c.bf16 %v13103_v9, %v6027_v35  ;;  %14341 = vmatprep.subr.bf16.mxu1 %v16580_v45 }
 0xe4e   :  { %v13136_v49 = vpop.f32.mrb[64].mxu0 }
 0xe4f   :  { %14343 = vmatpush3.bf16.msra.mxu1 %v16580_v45  ;;  %v6213_v12 = vpop.f32.mrb[65].mxu0 }
 0xe50   :  { %v14376_v13 = vpack.c.bf16 %v13136_v49, %v6213_v12  ;;  %14353 = vmatprep.subr.bf16.mxu1 %v14352_v62 }
 0xe52   :  { %v13139_v15 = vpop.f32.mrb[66].mxu0  ;;  %13079 = vmatmul.mubr.msk.f32.vlgmr.msra.gmra.mrb[64].mxu1 %vm5515_vm3, %v5822_v2  ;;  %v6686_v2 = vld [vmem:[#allocation7 + $0xc8] sm:$0xff] }
 0xe53   :  { %14355 = vmatpush3.bf16.msra.mxu1 %v14352_v62  ;;  %v6223_v18 = vpop.f32.mrb[67].mxu0  ;;  %13081 = vmatprep.mubr.msk.f32.mxu1 %vm5515_vm3, %v5823_v14  ;;  %v6687_v14 = vld [vmem:[#allocation7 + $0xd0] sm:$0xff] }
 0xe54   :  { %v14380_v21 = vpack.c.bf16 %v13139_v15, %v6223_v18  ;;  %14357 = vmatprep.subr.bf16.mxu1 %v14356_v32 }
 0xe56   :  { %v13142_v26 = vpop.f32.mrb[68].mxu0  ;;  %13082 = vmatmul.mubr.msk.f32.gmra.mrb[66].mxu1 %vm5515_vm3, %v5824_v20  ;;  %v6688_v20 = vld [vmem:[#allocation7 + $0xd8] sm:$0xff] }
 0xe57   :  { %14359 = vmatpush3.bf16.msra.mxu1 %v14356_v32  ;;  %v6233_v27 = vpop.f32.mrb[69].mxu0  ;;  %13120 = vmatprep.mubr.msk.f32.mxu1 %vm5515_vm3, %v6037_v25  ;;  %v6901_v25 = vld [vmem:[#allocation7 + $0xe0] sm:$0xff] }
 0xe58   :  { %v14384_v28 = vpack.c.bf16 %v13142_v26, %v6233_v27  ;;  %14361 = vmatprep.subr.bf16.mxu1 %v14360_v44 }
 0xe5a   :  { %v13145_v36 = vpop.f32.mrb[70].mxu0 }
 0xe5b   :  { %14363 = vmatpush3.bf16.msra.mxu1 %v14360_v44  ;;  %v6243_v37 = vpop.f32.mrb[71].mxu0 }
 0xe5c   :  { %v14388_v39 = vpack.c.bf16 %v13145_v36, %v6243_v37  ;;  %14365 = vmatprep.subr.bf16.mxu1 %v14364_v10 }
 0xe5e   :  { %v13178_v40 = vpop.f32.mrb[72].mxu0 }
 0xe5f   :  { %14367 = vmatpush3.bf16.msra.mxu1 %v14364_v10  ;;  %v6429_v42 = vpop.f32.mrb[73].mxu0 }
 0xe60   :  { %v14400_v45 = vpack.c.bf16 %v13178_v40, %v6429_v42  ;;  %14377 = vmatprep.subr.bf16.mxu1 %v14376_v13  ;;  %v6902_v40 = vld [vmem:[#allocation7 + $0xe8] sm:$0xff]  ;;  %v6903_v42 = vld [vmem:[#allocation7 + $0xf0] sm:$0xff] }
 0xe62   :  { %v13181_v47 = vpop.f32.mrb[74].mxu0  ;;  %13121 = vmatmul.mubr.msk.f32.vlgmr.msra.gmra.mrb[64].mxu1 %vm5515_vm3, %v6038_v43  ;;  %v6904_v43 = vld [vmem:[#allocation7 + $0xf8] sm:$0xff] }
 0xe63   :  { %14379 = vmatpush3.bf16.msra.mxu1 %v14376_v13  ;;  %v6439_v48 = vpop.f32.mrb[75].mxu0  ;;  %13123 = vmatprep.mubr.msk.f32.mxu1 %vm5515_vm3, %v6039_v46  ;;  %v7257_v46 = vld [vmem:[#allocation9 + $0x18] sm:$0xff] }
 0xe64   :  { %v14404_v51 = vpack.c.bf16 %v13181_v47, %v6439_v48  ;;  %14381 = vmatprep.subr.bf16.mxu1 %v14380_v21  ;;  %v7261_v47 = vld [vmem:[#allocation9 + $0x38] sm:$0xff] }
 0xe65   :  { %v14520_v48 = vpack.c.bf16 %v7261_v47, %v7257_v46  ;;  %v7498_v46 = vld [vmem:[#allocation9 + $0x200] sm:$0xff] }
 0xe66   :  { %v13184_v53 = vpop.f32.mrb[76].mxu0  ;;  %13124 = vmatmul.mubr.msk.f32.gmra.mrb[66].mxu1 %vm5515_vm3, %v6040_v50  ;;  %v7256_v50 = vld [vmem:[#allocation9 + $0x10] sm:$0xff] }
 0xe67   :  { %14383 = vmatpush3.bf16.msra.mxu1 %v14380_v21  ;;  %v6449_v54 = vpop.f32.mrb[77].mxu0  ;;  %13162 = vmatprep.mubr.msk.f32.mxu1 %vm5515_vm3, %v6253_v61  ;;  %v7265_v61 = vld [vmem:[#allocation9 + $0x58] sm:$0xff] }
 0xe68   :  { %v14408_v55 = vpack.c.bf16 %v13184_v53, %v6449_v54  ;;  %14385 = vmatprep.subr.bf16.mxu1 %v14384_v28  ;;  %v7269_v53 = vld [vmem:[#allocation9 + $0x78] sm:$0xff]  ;;  %v7118_v54 = vld [vmem:[#allocation7 + $0x108] sm:$0xff] }
 0xe6a   :  { %v13187_v58 = vpop.f32.mrb[78].mxu0 }
 0xe6b   :  { %14387 = vmatpush3.bf16.msra.mxu1 %v14384_v28  ;;  %v6459_v57 = vpop.f32.mrb[79].mxu0 }
 0xe6c   :  { %v14412_v62 = vpack.c.bf16 %v13187_v58, %v6459_v57  ;;  %14389 = vmatprep.subr.bf16.mxu1 %v14388_v39  ;;  %v7119_v58 = vld [vmem:[#allocation7 + $0x110] sm:$0xff]  ;;  %v14524_v57 = vpack.c.bf16 %v7269_v53, %v7265_v61  ;;  %v7229_v61 = vpop.permute.xlu0 %7228 }
 0xe6e   :  { %v13220_v30 = vpop.f32.mrb[80].mxu0 }
 0xe6f   :  { %14391 = vmatpush3.bf16.msra.mxu1 %v14388_v39  ;;  %v6645_v0 = vpop.f32.mrb[81].mxu0 }
 0xe70   :  { %v14424_v60 = vpack.c.bf16 %v13220_v30, %v6645_v0  ;;  %14401 = vmatprep.subr.bf16.mxu1 %v14400_v45  ;;  %v7268_v30 = vld [vmem:[#allocation9 + $0x70] sm:$0xff]  ;;  %v7273_v0 = vld [vmem:[#allocation9 + $0x98] sm:$0xff] }
 0xe72   :  { %v13223_v3 = vpop.f32.mrb[82].mxu0  ;;  %13163 = vmatmul.mubr.msk.f32.vlgmr.msra.gmra.mrb[64].mxu1 %vm5515_vm3, %v6254_v59  ;;  %v7277_v59 = vld [vmem:[#allocation9 + $0xb8] sm:$0xff] }
 0xe73   :  { %14403 = vmatpush3.bf16.msra.mxu1 %v14400_v45  ;;  %v6655_v31 = vpop.f32.mrb[83].mxu0  ;;  %13165 = vmatprep.mubr.msk.f32.mxu1 %vm5515_vm3, %v6255_v24  ;;  %v7117_v45 = vld [vmem:[#allocation7 + $0x100] sm:$0xff] }
 0xe74   :  { %v14428_v4 = vpack.c.bf16 %v13223_v3, %v6655_v31  ;;  %14405 = vmatprep.subr.bf16.mxu1 %v14404_v51  ;;  %v14528_v3 = vpack.c.bf16 %v7277_v59, %v7273_v0  ;;  %v7272_v31 = vld [vmem:[#allocation9 + $0x90] sm:$0xff] }
 0xe76   :  { %v13226_v32 = vpop.f32.mrb[84].mxu0  ;;  %13166 = vmatmul.mubr.msk.f32.gmra.mrb[66].mxu1 %vm5515_vm3, %v6256_v29  ;;  %v7276_v29 = vld [vmem:[#allocation9 + $0xb0] sm:$0xff] }
 0xe77   :  { %14407 = vmatpush3.bf16.msra.mxu1 %v14404_v51  ;;  %v6665_v63 = vpop.f32.mrb[85].mxu0  ;;  %13204 = vmatprep.mubr.msk.f32.mxu1 %vm5515_vm3, %v6469_v38  ;;  %v7260_v51 = vld [vmem:[#allocation9 + $0x30] sm:$0xff]  ;;  %v7285_v38 = vld [vmem:[#allocation9 + $0xf8] sm:$0xff] }
 0xe78   :  { %v14432_v1 = vpack.c.bf16 %v13226_v32, %v6665_v63  ;;  %14409 = vmatprep.subr.bf16.mxu1 %v14408_v55  ;;  %v14530_v32 = vpack.c.bf16 %v7276_v29, %v7272_v31  ;;  %v7510_v29 = vld [vmem:[#allocation9 + $0x260] sm:$0xff] }
 0xe7a   :  { %v13229_v5 = vpop.f32.mrb[86].mxu0 }
 0xe7b   :  { %14411 = vmatpush3.bf16.msra.mxu1 %v14408_v55  ;;  %v6675_v6 = vpop.f32.mrb[87].mxu0  ;;  %v14522_v55 = vpack.c.bf16 %v7260_v51, %v7256_v50  ;;  %v7500_v50 = vld [vmem:[#allocation9 + $0x210] sm:$0xff] }
 0xe7c   :  { %v14436_v7 = vpack.c.bf16 %v13229_v5, %v6675_v6  ;;  %14413 = vmatprep.subr.bf16.mxu1 %v14412_v62  ;;  %v7284_v5 = vld [vmem:[#allocation9 + $0xf0] sm:$0xff]  ;;  %v7289_v6 = vld [vmem:[#allocation9 + $0x118] sm:$0xff] }
 0xe7d   :  { %v7504_v51 = vld [vmem:[#allocation9 + $0x230] sm:$0xff] }
 0xe7e   :  { %v13262_v41 = vpop.f32.mrb[88].mxu0  ;;  %v14586_v59 = vpack.c.bf16 %v7504_v51, %v7500_v50  ;;  %v7532_v50 = vld [vmem:[#allocation9 + $0x310] sm:$0xff] }
 0xe7f   :  { %14415 = vmatpush3.bf16.msra.mxu1 %v14412_v62  ;;  %v6861_v33 = vpop.f32.mrb[89].mxu0  ;;  %v7264_v62 = vld [vmem:[#allocation9 + $0x50] sm:$0xff] }
 0xe80   :  { %v14448_v34 = vpack.c.bf16 %v13262_v41, %v6861_v33  ;;  %14425 = vmatprep.subr.bf16.mxu1 %v14424_v60  ;;  %v14526_v24 = vpack.c.bf16 %v7268_v30, %v7264_v62  ;;  %v7513_v62 = vld [vmem:[#allocation9 + $0x278] sm:$0xff]  ;;  %v7234_v30 = vpop.permute.xlu1 %7233  ;;  %v7536_v51 = vld [vmem:[#allocation9 + $0x330] sm:$0xff] }
 0xe82   :  { %v13265_v44 = vpop.f32.mrb[90].mxu0  ;;  %13205 = vmatmul.mubr.msk.f32.vlgmr.msra.gmra.mrb[64].mxu1 %vm5515_vm3, %v6470_v16  ;;  %v7288_v16 = vld [vmem:[#allocation9 + $0x110] sm:$0xff] }
 0xe83   :  { %14427 = vmatpush3.bf16.msra.mxu1 %v14424_v60  ;;  %v6871_v22 = vpop.f32.mrb[91].mxu0  ;;  %13207 = vmatprep.mubr.msk.f32.mxu1 %vm5515_vm3, %v6471_v23  ;;  %v7120_v60 = vld [vmem:[#allocation7 + $0x118] sm:$0xff] }
 0xe84   :  { %v14452_v9 = vpack.c.bf16 %v13265_v44, %v6871_v22  ;;  %14429 = vmatprep.subr.bf16.mxu1 %v14428_v4  ;;  %v7297_v23 = vld [vmem:[#allocation9 + $0x158] sm:$0xff] }
 0xe85   :  { %v7301_v44 = vld [vmem:[#allocation9 + $0x178] sm:$0xff] }
 0xe86   :  { %v13268_v35 = vpop.f32.mrb[92].mxu0  ;;  %13208 = vmatmul.mubr.msk.f32.gmra.mrb[66].mxu1 %vm5515_vm3, %v6472_v8  ;;  %v14540_v8 = vpack.c.bf16 %v7301_v44, %v7297_v23  ;;  %v7514_v23 = vld [vmem:[#allocation9 + $0x280] sm:$0xff] }
 0xe87   :  { %14431 = vmatpush3.bf16.msra.mxu1 %v14428_v4  ;;  %v6881_v52 = vpop.f32.mrb[93].mxu0  ;;  %13246 = vmatprep.mubr.msk.f32.mxu1 %vm5515_vm3, %v6685_v56  ;;  %v7281_v4 = vld [vmem:[#allocation9 + $0xd8] sm:$0xff]  ;;  %v7300_v56 = vld [vmem:[#allocation9 + $0x170] sm:$0xff] }
 0xe88   :  { %v14456_v17 = vpack.c.bf16 %v13268_v35, %v6881_v52  ;;  %14433 = vmatprep.subr.bf16.mxu1 %v14432_v1  ;;  %v14532_v63 = vpack.c.bf16 %v7285_v38, %v7281_v4  ;;  %v7305_v35 = vld [vmem:[#allocation9 + $0x198] sm:$0xff]  ;;  %v7508_v4 = vld [vmem:[#allocation9 + $0x250] sm:$0xff] }
 0xe89   :  { %v7309_v52 = vld [vmem:[#allocation9 + $0x1b8] sm:$0xff]  ;;  %v7512_v38 = vld [vmem:[#allocation9 + $0x270] sm:$0xff] }
 0xe8a   :  { %v13271_v19 = vpop.f32.mrb[94].mxu0 }
 0xe8b   :  { %14435 = vmatpush3.bf16.msra.mxu1 %v14432_v1  ;;  %v6891_v10 = vpop.f32.mrb[95].mxu0  ;;  %v7280_v1 = vld [vmem:[#allocation9 + $0xd0] sm:$0xff] }
 0xe8c   :  { %v14460_v49 = vpack.c.bf16 %v13271_v19, %v6891_v10  ;;  %14437 = vmatprep.subr.bf16.mxu1 %v14436_v7  ;;  %v14534_v41 = vpack.c.bf16 %v7284_v5, %v7280_v1  ;;  %v14544_v19 = vpack.c.bf16 %v7309_v52, %v7305_v35  ;;  %v7304_v10 = vld [vmem:[#allocation9 + $0x190] sm:$0xff]  ;;  %v7515_v5 = vld [vmem:[#allocation9 + $0x288] sm:$0xff] }
 0xe8e   :  { %v13304_v11 = vpop.f32.mrb[96].mxu0 }
 0xe8f   :  { %14439 = vmatpush3.bf16.msra.mxu1 %v14436_v7  ;;  %v7077_v12 = vpop.f32.mrb[97].mxu0  ;;  %v7293_v7 = vld [vmem:[#allocation9 + $0x138] sm:$0xff] }
 0xe90   :  { %v14472_v13 = vpack.c.bf16 %v13304_v11, %v7077_v12  ;;  %14449 = vmatprep.subr.bf16.mxu1 %v14448_v34  ;;  %v14536_v33 = vpack.c.bf16 %v7293_v7, %v7289_v6  ;;  %v7311_v12 = vld [vmem:[#allocation9 + $0x1c8] sm:$0xff]  ;;  %v7517_v7 = vld [vmem:[#allocation9 + $0x298] sm:$0xff] }
 0xe91   :  { %v7519_v6 = vld [vmem:[#allocation9 + $0x2a8] sm:$0xff] }
 0xe92   :  { %v13307_v15 = vpop.f32.mrb[98].mxu0  ;;  %13247 = vmatmul.mubr.msk.f32.vlgmr.msra.gmra.mrb[64].mxu1 %vm5515_vm3, %v6686_v2  ;;  %v7315_v2 = vld [vmem:[#allocation9 + $0x1e8] sm:$0xff]  ;;  %v14560_v35 = vpack.c.bf16 %v7519_v6, %v7515_v5  ;;  %v7550_v5 = vld [vmem:[#allocation9 + $0x3a0] sm:$0xff] }
 0xe93   :  { %14451 = vmatpush3.bf16.msra.mxu1 %v14448_v34  ;;  %v7087_v18 = vpop.f32.mrb[99].mxu0  ;;  %13249 = vmatprep.mubr.msk.f32.mxu1 %vm5515_vm3, %v6687_v14  ;;  %v7292_v34 = vld [vmem:[#allocation9 + $0x130] sm:$0xff]  ;;  %v14516_v14 = vpack.c.bf16 %v7315_v2, %v7311_v12 }
 0xe94   :  { %v14476_v21 = vpack.c.bf16 %v13307_v15, %v7087_v18  ;;  %14453 = vmatprep.subr.bf16.mxu1 %v14452_v9  ;;  %v14538_v22 = vpack.c.bf16 %v7292_v34, %v7288_v16  ;;  %v7317_v15 = vld [vmem:[#allocation9 + $0x1f8] sm:$0xff]  ;;  %v7310_v18 = vld [vmem:[#allocation9 + $0x1c0] sm:$0xff]  ;;  %v14590_v34 = vpack.c.bf16 %v7512_v38, %v7508_v4 }
 0xe95   :  { %14517 = vmatprep.subr.bf16.mxu0 %v14516_v14  ;;  %v7526_v14 = vld [vmem:[#allocation9 + $0x2e0] sm:$0xff]  ;;  %v7549_v4 = vld [vmem:[#allocation9 + $0x398] sm:$0xff] }
 0xe96   :  { %v13310_v26 = vpop.f32.mrb[100].mxu0  ;;  %13250 = vmatmul.mubr.msk.f32.gmra.mrb[66].mxu1 %vm5515_vm3, %v6688_v20  ;;  %v7314_v20 = vld [vmem:[#allocation9 + $0x1e0] sm:$0xff]  ;;  %v7553_v38 = vld [vmem:[#allocation9 + $0x3b8] sm:$0xff] }
 0xe97   :  { %14455 = vmatpush3.bf16.msra.mxu1 %v14452_v9  ;;  %v7097_v27 = vpop.f32.mrb[101].mxu0  ;;  %13288 = vmatprep.mubr.msk.f32.mxu1 %vm5515_vm3, %v6901_v25  ;;  %v7296_v9 = vld [vmem:[#allocation9 + $0x150] sm:$0xff]  ;;  %v14518_v25 = vpack.c.bf16 %v7314_v20, %v7310_v18 }
 0xe98   :  { %v14480_v28 = vpack.c.bf16 %v13310_v26, %v7097_v27  ;;  %14457 = vmatprep.subr.bf16.mxu1 %v14456_v17  ;;  %v7312_v26 = vld [vmem:[#allocation9 + $0x1d0] sm:$0xff] }
 0xe99   :  { %v7316_v27 = vld [vmem:[#allocation9 + $0x1f0] sm:$0xff]  ;;  %14519 = vmatpush1.bf16.msra.mxu0 %v14518_v25  ;;  %v7531_v25 = vld [vmem:[#allocation9 + $0x308] sm:$0xff] }
 0xe9a   :  { %v13313_v36 = vpop.f32.mrb[102].mxu0  ;;  %v7524_v20 = vld [vmem:[#allocation9 + $0x2d0] sm:$0xff] }
 0xe9b   :  { %14459 = vmatpush3.bf16.msra.mxu1 %v14456_v17  ;;  %v7107_v37 = vpop.f32.mrb[103].mxu0  ;;  %v14542_v17 = vpack.c.bf16 %v7300_v56, %v7296_v9  ;;  %v7516_v9 = vld [vmem:[#allocation9 + $0x290] sm:$0xff] }
 0xe9c   :  { %v14484_v39 = vpack.c.bf16 %v13313_v36, %v7107_v37  ;;  %14461 = vmatprep.subr.bf16.mxu1 %v14460_v49  ;;  %v7499_v36 = vld [vmem:[#allocation9 + $0x208] sm:$0xff]  ;;  %v7520_v56 = vld [vmem:[#allocation9 + $0x2b0] sm:$0xff] }
 0xe9d   :  { %v7503_v37 = vld [vmem:[#allocation9 + $0x228] sm:$0xff]  ;;  %v14594_v2 = vpack.c.bf16 %v7520_v56, %v7516_v9  ;;  %v7554_v56 = vld [vmem:[#allocation9 + $0x3c0] sm:$0xff] }
 0xe9f   :  { %14463 = vmatpush3.bf16.msra.mxu1 %v14460_v49  ;;  %v7308_v49 = vld [vmem:[#allocation9 + $0x1b0] sm:$0xff] }
 0xea0   :  { %14473 = vmatprep.subr.bf16.mxu1 %v14472_v13  ;;  %v14546_v11 = vpack.c.bf16 %v7308_v49, %v7304_v10  ;;  %v7525_v10 = vld [vmem:[#allocation9 + $0x2d8] sm:$0xff] }
 0xea1   :  { %v7529_v49 = vld [vmem:[#allocation9 + $0x2f8] sm:$0xff] }
 0xea2   :  { %13289 = vmatmul.mubr.msk.f32.vlgmr.msra.gmra.mrb[64].mxu1 %vm5515_vm3, %v6902_v40  ;;  %v14552_v40 = vpack.c.bf16 %v7503_v37, %v7499_v36  ;;  %v7533_v36 = vld [vmem:[#allocation9 + $0x318] sm:$0xff] }
 0xea3   :  { %14475 = vmatpush3.bf16.msra.mxu1 %v14472_v13  ;;  %13291 = vmatprep.mubr.msk.f32.mxu1 %vm5515_vm3, %v6903_v42  ;;  %v7313_v13 = vld [vmem:[#allocation9 + $0x1d8] sm:$0xff] }
 0xea4   :  { %14477 = vmatprep.subr.bf16.mxu1 %v14476_v21  ;;  %v7505_v42 = vld [vmem:[#allocation9 + $0x238] sm:$0xff]  ;;  %14553 = vmatprep.subr.bf16.mxu0 %v14552_v40 }
 0xea5   :  { %v7537_v37 = vld [vmem:[#allocation9 + $0x338] sm:$0xff] }
 0xea6   :  { %13292 = vmatmul.mubr.msk.f32.gmra.mrb[66].mxu1 %vm5515_vm3, %v6904_v43 }
 0xea7   :  { %14479 = vmatpush3.bf16.msra.mxu1 %v14476_v21  ;;  %13330 = vmatprep.mubr.msk.f32.mxu1 %vm5515_vm3, %v7117_v45  ;;  %v14548_v21 = vpack.c.bf16 %v7317_v15, %v7313_v13  ;;  %v17235_v45 = vmov 0.0   ;;  %v7522_v13 = vld [vmem:[#allocation9 + $0x2c0] sm:$0xff] }
 0xea8   :  { %14481 = vmatprep.subr.bf16.mxu1 %v14480_v28  ;;  %7382 = vmatprep.mubr.f32.mxu0 %v17235_v45 }
 0xeab   :  { %14483 = vmatpush3.bf16.msra.mxu1 %v14480_v28  ;;  %v14550_v28 = vpack.c.bf16 %v7316_v27, %v7312_v26  ;;  %v14596_v27 = vpack.c.bf16 %v7529_v49, %v7525_v10  ;;  %v7560_v10 = vld [vmem:[#allocation9 + $0x3f0] sm:$0xff]  ;;  %v8034_v49 = vld [vmem:[#allocation9 + $0x408] sm:$0xff] }
 0xeac   :  { %14485 = vmatprep.subr.bf16.mxu1 %v14484_v39 }
 0xeaf   :  { %14487 = vmatpush3.bf16.msra.mxu1 %v14484_v39  ;;  %v7501_v39 = vld [vmem:[#allocation9 + $0x218] sm:$0xff] }
 0xeb0   :  { %14521 = vmatprep.subr.bf16.mxu1 %v14520_v48  ;;  %v14584_v43 = vpack.c.bf16 %v7505_v42, %v7501_v39  ;;  %v7502_v48 = vld [vmem:[#allocation9 + $0x220] sm:$0xff]  ;;  %v14566_v39 = vpack.c.bf16 %v7526_v14, %v7522_v13 }
 0xeb1   :  { %v14554_v0 = vpack.c.bf16 %v7502_v48, %v7498_v46  ;;  %v7530_v42 = vld [vmem:[#allocation9 + $0x300] sm:$0xff]  ;;  %v14600_v48 = vpack.c.bf16 %v7537_v37, %v7533_v36  ;;  %v8050_v36 = vld [vmem:[#allocation9 + $0x488] sm:$0xff] }
 0xeb2   :  { %13331 = vmatmul.mubr.msk.f32.vlgmr.msra.gmra.mrb[64].mxu1 %vm5515_vm3, %v7118_v54  ;;  %v7507_v54 = vld [vmem:[#allocation9 + $0x248] sm:$0xff]  ;;  %v8033_v14 = vld [vmem:[#allocation9 + $0x400] sm:$0xff] }
 0xeb3   :  { %13333 = vmatprep.mubr.msk.f32.mxu1 %vm5515_vm3, %v7119_v58  ;;  %14523 = vmatpush1.bf16.msra.mxu1 %v14522_v55  ;;  %v7511_v58 = vld [vmem:[#allocation9 + $0x268] sm:$0xff] }
 0xeb4   :  { %14525 = vmatprep.subr.bf16.mxu1 %v14524_v57  ;;  %v7509_v57 = vld [vmem:[#allocation9 + $0x258] sm:$0xff]  ;;  %v8054_v37 = vld [vmem:[#allocation9 + $0x4a8] sm:$0xff] }
 0xeb5   :  { %v14588_v1 = vpack.c.bf16 %v7513_v62, %v7509_v57  ;;  %v14602_v57 = vpack.c.bf16 %v7536_v51, %v7532_v50  ;;  %v7538_v62 = vld [vmem:[#allocation9 + $0x340] sm:$0xff] }
 0xeb6   :  { %13334 = vmatmul.mubr.msk.f32.gmra.mrb[66].mxu1 %vm5515_vm3, %v7120_v60  ;;  %v7506_v60 = vld [vmem:[#allocation9 + $0x240] sm:$0xff] }
 0xeb7   :  { %14527 = vmatpush1.bf16.msra.mxu1 %v14526_v24  ;;  %7471 = vmatprep.mubr.f32.mxu1 %v17235_v45  ;;  %v14558_v16 = vpack.c.bf16 %v7510_v29, %v7506_v60  ;;  %v7540_v60 = vld [vmem:[#allocation9 + $0x350] sm:$0xff]  ;;  %v7551_v29 = vld [vmem:[#allocation9 + $0x3a8] sm:$0xff] }
 0xeb8   :  { %14529 = vmatprep.subr.bf16.mxu1 %v14528_v3 }
 0xebb   :  { %14531 = vmatpush1.bf16.msra.mxu1 %v14530_v32 }
 0xebc   :  { %14533 = vmatprep.subr.bf16.mxu1 %v14532_v63  ;;  %v14556_v63 = vpack.c.bf16 %v7511_v58, %v7507_v54  ;;  %v7541_v54 = vld [vmem:[#allocation9 + $0x358] sm:$0xff] }
 0xebf   :  { %14535 = vmatpush1.bf16.msra.mxu1 %v14534_v41  ;;  %v7521_v41 = vld [vmem:[#allocation9 + $0x2b8] sm:$0xff] }
 0xec0   :  { %14537 = vmatprep.subr.bf16.mxu1 %v14536_v33  ;;  %v7239_v33 = vpop.permute.xlu0 %7238  ;;  %v14592_v52 = vpack.c.bf16 %v7521_v41, %v7517_v7  ;;  %v14608_v7 = vpack.c.bf16 %v7553_v38, %v7549_v4  ;;  %v7548_v41 = vld [vmem:[#allocation9 + $0x390] sm:$0xff]  ;;  %v8082_v4 = vld [vmem:[#allocation9 + $0x588] sm:$0xff] }
 0xec1   :  { %v8086_v38 = vld [vmem:[#allocation9 + $0x5a8] sm:$0xff] }
 0xec3   :  { %14539 = vmatpush1.bf16.msra.mxu1 %v14538_v22 }
 0xec4   :  { %14541 = vmatprep.subr.bf16.mxu1 %v14540_v8  ;;  %v7518_v8 = vld [vmem:[#allocation9 + $0x2a0] sm:$0xff] }
 0xec5   :  { %v14562_v12 = vpack.c.bf16 %v7518_v8, %v7514_v23  ;;  %v7557_v23 = vld [vmem:[#allocation9 + $0x3d8] sm:$0xff] }
 0xec7   :  { %14543 = vmatpush1.bf16.msra.mxu1 %v14542_v17  ;;  %v7523_v17 = vld [vmem:[#allocation9 + $0x2c8] sm:$0xff] }
 0xec8   :  { %14545 = vmatprep.subr.bf16.mxu1 %v14544_v19  ;;  %v7527_v19 = vld [vmem:[#allocation9 + $0x2e8] sm:$0xff] }
 0xec9   :  { %v14564_v26 = vpack.c.bf16 %v7527_v19, %v7523_v17  ;;  %v7558_v17 = vld [vmem:[#allocation9 + $0x3e0] sm:$0xff]  ;;  %v7556_v19 = vld [vmem:[#allocation9 + $0x3d0] sm:$0xff] }
 0xecb   :  { %14547 = vmatpush1.bf16.msra.mxu1 %v14546_v11  ;;  %v7244_v11 = vpop.permute.xlu1 %7243 }
 0xecc   :  { %14549 = vmatprep.subr.bf16.mxu1 %v14548_v21  ;;  %v7528_v21 = vld [vmem:[#allocation9 + $0x2f0] sm:$0xff] }
 0xecd   :  { %v14598_v40 = vpack.c.bf16 %v7528_v21, %v7524_v20  ;;  %v8042_v20 = vld [vmem:[#allocation9 + $0x448] sm:$0xff] }
 0xece   :  { %v8046_v21 = vld [vmem:[#allocation9 + $0x468] sm:$0xff] }
 0xecf   :  { %14551 = vmatpush1.bf16.msra.mxu1 %v14550_v28  ;;  %v7535_v28 = vld [vmem:[#allocation9 + $0x328] sm:$0xff] }
 0xed0   :  { %14585 = vmatprep.subr.bf16.mxu1 %v14584_v43  ;;  %v7534_v43 = vld [vmem:[#allocation9 + $0x320] sm:$0xff] }
 0xed1   :  { %v14570_v58 = vpack.c.bf16 %v7534_v43, %v7530_v42  ;;  %v8049_v42 = vld [vmem:[#allocation9 + $0x480] sm:$0xff] }
 0xed2   :  { %v8053_v43 = vld [vmem:[#allocation9 + $0x4a0] sm:$0xff] }
 0xed3   :  { %v14658_v50 = vpack.c.bf16 %v8053_v43, %v8049_v42  ;;  %v8459_v43 = vld [vmem:[#allocation9 + $0x700] sm:$0xff] }
 0xf85   :  { %v13332_v47 = vpop.f32.mrb[64].mxu1 }
 0xf86   :  { %v7199_v53 = vpop.f32.mrb[65].mxu1  ;;  %v7247_v24 = vadd.f32 %v13332_v47, %v7234_v30  ;;  %v14568_v47 = vpack.c.bf16 %v7535_v28, %v7531_v25  ;;  %v7542_v30 = vld [vmem:[#allocation9 + $0x360] sm:$0xff] }
 0xf87   :  { %v7246_v55 = vadd.f32 %v7229_v61, %v7199_v53  ;;  %v7539_v61 = vld [vmem:[#allocation9 + $0x348] sm:$0xff]  ;;  %v8045_v28 = vld [vmem:[#allocation9 + $0x460] sm:$0xff] }
 0xf88   :  { %v16627_v44 = vmax.f32 %v7247_v24, 0.0  ;;  %v7543_v53 = vld [vmem:[#allocation9 + $0x368] sm:$0xff]  ;;  %v7544_v24 = vld [vmem:[#allocation9 + $0x370] sm:$0xff] }
 0xf89   :  { %v16623_v3 = vmax.f32 %v7246_v55, 0.0  ;;  %v13335_v31 = vpop.f32.mrb[66].mxu1  ;;  %v7545_v55 = vld [vmem:[#allocation9 + $0x378] sm:$0xff] }
 0xf8a   :  { %v7209_v32 = vpop.f32.mrb[67].mxu1  ;;  %v7249_v15 = vadd.f32 %v13335_v31, %v7244_v11  ;;  %v7547_v31 = vld [vmem:[#allocation9 + $0x388] sm:$0xff] }
 0xf8b   :  { %7383 = vmatmul.mubr.f32.vlgmr.msra.gmra.mrb[104].mxu0 %v16623_v3  ;;  %7472 = vmatmul.mubr.f32.vlgmr.msra.gmra.mrb[68].mxu1 %v16623_v3  ;;  %v7248_v22 = vadd.f32 %v7239_v33, %v7209_v32  ;;  %v14574_v32 = vpack.c.bf16 %v7542_v30, %v7538_v62  ;;  %v14576_v6 = vpack.c.bf16 %v7551_v29, %v7547_v31  ;;  %v7552_v33 = vld [vmem:[#allocation9 + $0x3b0] sm:$0xff]  ;;  %v8038_v11 = vld [vmem:[#allocation9 + $0x428] sm:$0xff]  ;;  %v8065_v62 = vld [vmem:[#allocation9 + $0x500] sm:$0xff] }
 0xf8c   :  { %14555 = vmatpush1.bf16.msra.mxu0 %v14554_v0  ;;  %14587 = vmatpush1.bf16.msra.mxu1 %v14586_v59  ;;  %v16639_v46 = vmax.f32 %v7249_v15, 0.0  ;;  %v14572_v0 = vpack.c.bf16 %v7543_v53, %v7539_v61  ;;  %v14604_v59 = vpack.c.bf16 %v7545_v55, %v7541_v54  ;;  %v14610_v9 = vpack.c.bf16 %v7552_v33, %v7548_v41  ;;  %v8037_v15 = vld [vmem:[#allocation9 + $0x420] sm:$0xff]  ;;  %v8066_v54 = vld [vmem:[#allocation9 + $0x508] sm:$0xff] }
 0xf8d   :  { %7388 = vmatprep.mubr.f32.mxu0 %v17235_v45  ;;  %7477 = vmatprep.mubr.f32.mxu1 %v17235_v45  ;;  %v16633_v18 = vmax.f32 %v7248_v22, 0.0  ;;  %v7561_v22 = vld [vmem:[#allocation9 + $0x3f8] sm:$0xff]  ;;  %v14648_v13 = vpack.c.bf16 %v8038_v11, %v8034_v49  ;;  %v14650_v25 = vpack.c.bf16 %v8037_v15, %v8033_v14  ;;  %v8057_v61 = vld [vmem:[#allocation9 + $0x4c0] sm:$0xff]  ;;  %v8070_v55 = vld [vmem:[#allocation9 + $0x528] sm:$0xff] }
 0xf8e   :  { %14557 = vmatprep.subr.bf16.mxu0 %v14556_v63  ;;  %14589 = vmatprep.subr.bf16.mxu1 %v14588_v1  ;;  %v14606_v63 = vpack.c.bf16 %v7544_v24, %v7540_v60  ;;  %v7546_v1 = vld [vmem:[#allocation9 + $0x380] sm:$0xff] }
 0xf8f   :  { %7389 = vmatmul.mubr.f32.gmra.mrb[106].mxu0 %v16627_v44  ;;  %7478 = vmatmul.mubr.f32.gmra.mrb[70].mxu1 %v16627_v44  ;;  %v14578_v8 = vpack.c.bf16 %v7550_v5, %v7546_v1  ;;  %v8061_v53 = vld [vmem:[#allocation9 + $0x4e0] sm:$0xff] }
 0xf90   :  { %14559 = vmatpush1.bf16.msra.mxu0 %v14558_v16  ;;  %14591 = vmatpush1.bf16.msra.mxu1 %v14590_v34  ;;  %v7555_v16 = vld [vmem:[#allocation9 + $0x3c8] sm:$0xff]  ;;  %v8069_v30 = vld [vmem:[#allocation9 + $0x520] sm:$0xff] }
 0xf91   :  { %7394 = vmatprep.mubr.f32.mxu0 %v17235_v45  ;;  %7483 = vmatprep.mubr.f32.mxu1 %v17235_v45  ;;  %v7559_v34 = vld [vmem:[#allocation9 + $0x3e8] sm:$0xff]  ;;  %v14666_v60 = vpack.c.bf16 %v8069_v30, %v8065_v62  ;;  %v8073_v31 = vld [vmem:[#allocation9 + $0x540] sm:$0xff] }
 0xf92   :  { %14561 = vmatprep.subr.bf16.mxu0 %v14560_v35  ;;  %14593 = vmatprep.subr.bf16.mxu1 %v14592_v52  ;;  %v14580_v35 = vpack.c.bf16 %v7559_v34, %v7555_v16  ;;  %v14612_v52 = vpack.c.bf16 %v7561_v22, %v7557_v23  ;;  %v8077_v29 = vld [vmem:[#allocation9 + $0x560] sm:$0xff]  ;;  %v8428_v23 = vld [vmem:[#allocation9 + $0x608] sm:$0xff] }
 0xf93   :  { %7395 = vmatmul.mubr.f32.gmra.mrb[108].mxu0 %v16633_v18  ;;  %7484 = vmatmul.mubr.f32.gmra.mrb[72].mxu1 %v16633_v18  ;;  %v8081_v1 = vld [vmem:[#allocation9 + $0x580] sm:$0xff]  ;;  %v8432_v22 = vld [vmem:[#allocation9 + $0x628] sm:$0xff] }
 0xf94   :  { %14563 = vmatpush1.bf16.msra.mxu0 %v14562_v12  ;;  %14595 = vmatpush1.bf16.msra.mxu1 %v14594_v2  ;;  %v14582_v12 = vpack.c.bf16 %v7558_v17, %v7554_v56  ;;  %v14614_v2 = vpack.c.bf16 %v7560_v10, %v7556_v19  ;;  %v8085_v5 = vld [vmem:[#allocation9 + $0x5a0] sm:$0xff]  ;;  %v8440_v17 = vld [vmem:[#allocation9 + $0x668] sm:$0xff] }
 0xf95   :  { %7400 = vmatprep.mubr.f32.mxu0 %v17235_v45  ;;  %7489 = vmatprep.mubr.f32.mxu1 %v17235_v45  ;;  %v14674_v41 = vpack.c.bf16 %v8085_v5, %v8081_v1  ;;  %v8089_v16 = vld [vmem:[#allocation9 + $0x5c0] sm:$0xff]  ;;  %v8429_v5 = vld [vmem:[#allocation9 + $0x610] sm:$0xff] }
 0xf96   :  { %14565 = vmatprep.subr.bf16.mxu0 %v14564_v26  ;;  %14597 = vmatprep.subr.bf16.mxu1 %v14596_v27  ;;  %v14652_v26 = vpack.c.bf16 %v8046_v21, %v8042_v20  ;;  %v8041_v27 = vld [vmem:[#allocation9 + $0x440] sm:$0xff]  ;;  %v8452_v21 = vld [vmem:[#allocation9 + $0x6c8] sm:$0xff] }
 0xf97   :  { %7401 = vmatmul.mubr.f32.gmra.mrb[110].mxu0 %v16639_v46  ;;  %7490 = vmatmul.mubr.f32.gmra.mrb[74].mxu1 %v16639_v46  ;;  %v8093_v34 = vld [vmem:[#allocation9 + $0x5e0] sm:$0xff] }
 0xf98   :  { %14567 = vmatpush1.bf16.msra.mxu0 %v14566_v39  ;;  %14599 = vmatpush1.bf16.msra.mxu1 %v14598_v40  ;;  %v14654_v39 = vpack.c.bf16 %v8045_v28, %v8041_v27  ;;  %v14656_v40 = vpack.c.bf16 %v8054_v37, %v8050_v36  ;;  %v8427_v56 = vld [vmem:[#allocation9 + $0x600] sm:$0xff]  ;;  %v8460_v37 = vld [vmem:[#allocation9 + $0x708] sm:$0xff] }
 0xf99   :  { %14569 = vmatprep.subr.bf16.mxu0 %v14568_v47  ;;  %14601 = vmatprep.subr.bf16.mxu1 %v14600_v48  ;;  %v8058_v47 = vld [vmem:[#allocation9 + $0x4c8] sm:$0xff]  ;;  %v8435_v49 = vld [vmem:[#allocation9 + $0x640] sm:$0xff] }
 0xf9a   :  { %7626 = vmatprep.mubr.f32.mxu0 %v17235_v45  ;;  %7715 = vmatprep.mubr.f32.mxu1 %v17235_v45  ;;  %v8062_v48 = vld [vmem:[#allocation9 + $0x4e8] sm:$0xff]  ;;  %v8439_v11 = vld [vmem:[#allocation9 + $0x660] sm:$0xff] }
 0xf9b   :  { %v14660_v51 = vpack.c.bf16 %v8062_v48, %v8058_v47  ;;  %v8443_v15 = vld [vmem:[#allocation9 + $0x680] sm:$0xff]  ;;  %v8468_v48 = vld [vmem:[#allocation9 + $0x748] sm:$0xff] }
 0xf9c   :  { %14571 = vmatpush1.bf16.msra.mxu0 %v14570_v58  ;;  %14603 = vmatpush1.bf16.msra.mxu1 %v14602_v57  ;;  %v14662_v58 = vpack.c.bf16 %v8061_v53, %v8057_v61  ;;  %v14664_v57 = vpack.c.bf16 %v8070_v55, %v8066_v54  ;;  %v8447_v20 = vld [vmem:[#allocation9 + $0x6a0] sm:$0xff]  ;;  %v8476_v55 = vld [vmem:[#allocation9 + $0x788] sm:$0xff] }
 0xf9d   :  { %14573 = vmatprep.subr.bf16.mxu0 %v14572_v0  ;;  %14605 = vmatprep.subr.bf16.mxu1 %v14604_v59  ;;  %v8074_v0 = vld [vmem:[#allocation9 + $0x548] sm:$0xff]  ;;  %v8451_v28 = vld [vmem:[#allocation9 + $0x6c0] sm:$0xff] }
 0xf9e   :  { %v8078_v59 = vld [vmem:[#allocation9 + $0x568] sm:$0xff]  ;;  %v8455_v36 = vld [vmem:[#allocation9 + $0x6e0] sm:$0xff] }
 0xf9f   :  { %v14668_v24 = vpack.c.bf16 %v8078_v59, %v8074_v0  ;;  %v8463_v47 = vld [vmem:[#allocation9 + $0x720] sm:$0xff]  ;;  %v8484_v59 = vld [vmem:[#allocation9 + $0x7c8] sm:$0xff] }
 0xfa0   :  { %14575 = vmatpush1.bf16.msra.mxu0 %v14574_v32  ;;  %14607 = vmatpush1.bf16.msra.mxu1 %v14606_v63  ;;  %v14670_v32 = vpack.c.bf16 %v8077_v29, %v8073_v31  ;;  %v14672_v63 = vpack.c.bf16 %v8086_v38, %v8082_v4  ;;  %v8467_v53 = vld [vmem:[#allocation9 + $0x740] sm:$0xff]  ;;  %v8430_v38 = vld [vmem:[#allocation9 + $0x618] sm:$0xff] }
 0xfa1   :  { %14577 = vmatprep.subr.bf16.mxu0 %v14576_v6  ;;  %14609 = vmatprep.subr.bf16.mxu1 %v14608_v7  ;;  %v8090_v6 = vld [vmem:[#allocation9 + $0x5c8] sm:$0xff]  ;;  %v8471_v54 = vld [vmem:[#allocation9 + $0x760] sm:$0xff] }
 0xfa2   :  { %v8094_v7 = vld [vmem:[#allocation9 + $0x5e8] sm:$0xff]  ;;  %v8475_v30 = vld [vmem:[#allocation9 + $0x780] sm:$0xff] }
 0xfa3   :  { %v14676_v33 = vpack.c.bf16 %v8094_v7, %v8090_v6  ;;  %v8479_v0 = vld [vmem:[#allocation9 + $0x7a0] sm:$0xff]  ;;  %v8433_v6 = vld [vmem:[#allocation9 + $0x630] sm:$0xff]  ;;  %v8438_v7 = vld [vmem:[#allocation9 + $0x658] sm:$0xff] }
 0xfa4   :  { %14579 = vmatpush1.bf16.msra.mxu0 %v14578_v8  ;;  %14611 = vmatpush1.bf16.msra.mxu1 %v14610_v9  ;;  %v14678_v8 = vpack.c.bf16 %v8093_v34, %v8089_v16  ;;  %v14728_v9 = vpack.c.bf16 %v8432_v22, %v8428_v23  ;;  %v8483_v29 = vld [vmem:[#allocation9 + $0x7c0] sm:$0xff]  ;;  %v8437_v34 = vld [vmem:[#allocation9 + $0x650] sm:$0xff]  ;;  %v8446_v22 = vld [vmem:[#allocation9 + $0x698] sm:$0xff] }
 0xfa5   :  { %14581 = vmatprep.subr.bf16.mxu0 %v14580_v35  ;;  %14613 = vmatprep.subr.bf16.mxu1 %v14612_v52  ;;  %v8431_v35 = vld [vmem:[#allocation9 + $0x620] sm:$0xff]  ;;  %v8436_v52 = vld [vmem:[#allocation9 + $0x648] sm:$0xff]  ;;  %v8441_v23 = vld [vmem:[#allocation9 + $0x670] sm:$0xff] }
 0xfa6   :  { %v14730_v19 = vpack.c.bf16 %v8431_v35, %v8427_v56  ;;  %v14732_v10 = vpack.c.bf16 %v8440_v17, %v8436_v52  ;;  %v8487_v4 = vld [vmem:[#allocation9 + $0x7e0] sm:$0xff]  ;;  %v8445_v35 = vld [vmem:[#allocation9 + $0x690] sm:$0xff]  ;;  %v8454_v17 = vld [vmem:[#allocation9 + $0x6d8] sm:$0xff] }
 0xfa7   :  { %v8449_v52 = vld [vmem:[#allocation9 + $0x6b0] sm:$0xff] }
 0xfa8   :  { %14583 = vmatpush1.bf16.msra.mxu0 %v14582_v12  ;;  %14615 = vmatpush1.bf16.msra.mxu1 %v14614_v2  ;;  %v8444_v12 = vld [vmem:[#allocation9 + $0x688] sm:$0xff] }
 0xfa9   :  { %14649 = vmatprep.subr.bf16.mxu1 %v14648_v13  ;;  %v8448_v2 = vld [vmem:[#allocation9 + $0x6a8] sm:$0xff]  ;;  %v14734_v13 = vpack.c.bf16 %v8439_v11, %v8435_v49  ;;  %v8453_v11 = vld [vmem:[#allocation9 + $0x6d0] sm:$0xff] }
 0xfaa   :  { %v14736_v14 = vpack.c.bf16 %v8448_v2, %v8444_v12  ;;  %v8457_v12 = vld [vmem:[#allocation9 + $0x6f0] sm:$0xff]  ;;  %v8462_v2 = vld [vmem:[#allocation9 + $0x718] sm:$0xff] }
 0xfab   :  { %7627 = vmatmul.mubr.f32.vlgmr.msra.gmra.mrb[112].mxu0 %v16623_v3  ;;  %7716 = vmatmul.mubr.f32.vlgmr.msra.gmra.mrb[76].mxu1 %v16623_v3 }
 0xfac   :  { %14651 = vmatpush1.bf16.msra.mxu1 %v14650_v25  ;;  %7632 = vmatprep.mubr.f32.mxu0 %v17235_v45  ;;  %v8456_v25 = vld [vmem:[#allocation9 + $0x6e8] sm:$0xff] }
 0xfad   :  { %7721 = vmatprep.mubr.f32.mxu1 %v17235_v45  ;;  %14653 = vmatprep.subr.bf16.mxu1 %v14652_v26  ;;  %v14738_v26 = vpack.c.bf16 %v8447_v20, %v8443_v15  ;;  %v14740_v27 = vpack.c.bf16 %v8456_v25, %v8452_v21  ;;  %v8461_v20 = vld [vmem:[#allocation9 + $0x710] sm:$0xff]  ;;  %v8470_v25 = vld [vmem:[#allocation9 + $0x758] sm:$0xff] }
 0xfae   :  { %v8465_v21 = vld [vmem:[#allocation9 + $0x730] sm:$0xff] }
 0xfaf   :  { %7633 = vmatmul.mubr.f32.gmra.mrb[114].mxu0 %v16627_v44  ;;  %7722 = vmatmul.mubr.f32.gmra.mrb[78].mxu1 %v16627_v44 }
 0xfb0   :  { %14655 = vmatpush1.bf16.msra.mxu1 %v14654_v39  ;;  %7638 = vmatprep.mubr.f32.mxu0 %v17235_v45  ;;  %v8464_v39 = vld [vmem:[#allocation9 + $0x728] sm:$0xff] }
 0xfb1   :  { %7727 = vmatprep.mubr.f32.mxu1 %v17235_v45  ;;  %14657 = vmatprep.subr.bf16.mxu1 %v14656_v40  ;;  %v14742_v40 = vpack.c.bf16 %v8455_v36, %v8451_v28  ;;  %v14744_v42 = vpack.c.bf16 %v8464_v39, %v8460_v37  ;;  %v8469_v36 = vld [vmem:[#allocation9 + $0x750] sm:$0xff]  ;;  %v8478_v39 = vld [vmem:[#allocation9 + $0x798] sm:$0xff] }
 0xfb2   :  { %v8473_v37 = vld [vmem:[#allocation9 + $0x770] sm:$0xff] }
 0xfb3   :  { %7639 = vmatmul.mubr.f32.gmra.mrb[116].mxu0 %v16633_v18  ;;  %7728 = vmatmul.mubr.f32.gmra.mrb[80].mxu1 %v16633_v18 }
 0xfb4   :  { %14659 = vmatpush1.bf16.msra.mxu1 %v14658_v50  ;;  %7644 = vmatprep.mubr.f32.mxu0 %v17235_v45  ;;  %v8472_v50 = vld [vmem:[#allocation9 + $0x768] sm:$0xff] }
 0xfb5   :  { %7733 = vmatprep.mubr.f32.mxu1 %v17235_v45  ;;  %14661 = vmatprep.subr.bf16.mxu1 %v14660_v51  ;;  %v14746_v51 = vpack.c.bf16 %v8463_v47, %v8459_v43  ;;  %v14748_v61 = vpack.c.bf16 %v8472_v50, %v8468_v48  ;;  %v8477_v47 = vld [vmem:[#allocation9 + $0x790] sm:$0xff]  ;;  %v8486_v50 = vld [vmem:[#allocation9 + $0x7d8] sm:$0xff] }
 0xfb6   :  { %v8481_v48 = vld [vmem:[#allocation9 + $0x7b0] sm:$0xff] }
 0xfb7   :  { %7645 = vmatmul.mubr.f32.gmra.mrb[118].mxu0 %v16639_v46  ;;  %7734 = vmatmul.mubr.f32.gmra.mrb[82].mxu1 %v16639_v46 }
 0xfb8   :  { %14663 = vmatpush1.bf16.msra.mxu1 %v14662_v58  ;;  %8161 = vmatprep.mubr.f32.mxu1 %v17235_v45  ;;  %v8480_v58 = vld [vmem:[#allocation9 + $0x7a8] sm:$0xff] }
 0xfb9   :  { %14665 = vmatprep.subr.bf16.mxu1 %v14664_v57  ;;  %7809 = vmatprep.mubr.f32.mxu0 %v17235_v45  ;;  %v14750_v57 = vpack.c.bf16 %v8471_v54, %v8467_v53  ;;  %v14752_v62 = vpack.c.bf16 %v8480_v58, %v8476_v55  ;;  %v8485_v54 = vld [vmem:[#allocation9 + $0x7d0] sm:$0xff]  ;;  %v8824_v58 = vld [vmem:[#allocation9 + $0x818] sm:$0xff] }
 0xfba   :  { %v8489_v55 = vld [vmem:[#allocation9 + $0x7f0] sm:$0xff] }
 0xfbc   :  { %14667 = vmatpush1.bf16.msra.mxu1 %v14666_v60  ;;  %v8488_v60 = vld [vmem:[#allocation9 + $0x7e8] sm:$0xff] }
 0xfbd   :  { %14669 = vmatprep.subr.bf16.mxu1 %v14668_v24  ;;  %v14754_v24 = vpack.c.bf16 %v8479_v0, %v8475_v30  ;;  %v14756_v31 = vpack.c.bf16 %v8488_v60, %v8484_v59  ;;  %v8823_v0 = vld [vmem:[#allocation9 + $0x810] sm:$0xff]  ;;  %v8832_v60 = vld [vmem:[#allocation9 + $0x858] sm:$0xff] }
 0xfbe   :  { %v8827_v59 = vld [vmem:[#allocation9 + $0x830] sm:$0xff] }
 0xfc0   :  { %14671 = vmatpush1.bf16.msra.mxu1 %v14670_v32  ;;  %v8434_v32 = vld [vmem:[#allocation9 + $0x638] sm:$0xff] }
 0xfc1   :  { %14673 = vmatprep.subr.bf16.mxu1 %v14672_v63  ;;  %v14758_v63 = vpack.c.bf16 %v8487_v4, %v8483_v29  ;;  %v14760_v1 = vpack.c.bf16 %v8434_v32, %v8430_v38  ;;  %v8831_v4 = vld [vmem:[#allocation9 + $0x850] sm:$0xff]  ;;  %v8840_v32 = vld [vmem:[#allocation9 + $0x898] sm:$0xff] }
 0xfc2   :  { %v8835_v38 = vld [vmem:[#allocation9 + $0x870] sm:$0xff] }
 0xfc4   :  { %14675 = vmatpush1.bf16.msra.mxu1 %v14674_v41  ;;  %v8442_v41 = vld [vmem:[#allocation9 + $0x678] sm:$0xff] }
 0xfc5   :  { %14677 = vmatprep.subr.bf16.mxu1 %v14676_v33  ;;  %v14762_v33 = vpack.c.bf16 %v8433_v6, %v8429_v5  ;;  %v14764_v16 = vpack.c.bf16 %v8442_v41, %v8438_v7  ;;  %v8839_v6 = vld [vmem:[#allocation9 + $0x890] sm:$0xff]  ;;  %v8848_v41 = vld [vmem:[#allocation9 + $0x8d8] sm:$0xff] }
 0xfc6   :  { %v8843_v7 = vld [vmem:[#allocation9 + $0x8b0] sm:$0xff] }
 0xfc8   :  { %14679 = vmatpush1.bf16.msra.mxu1 %v14678_v8  ;;  %v8450_v8 = vld [vmem:[#allocation9 + $0x6b8] sm:$0xff] }
 0xfc9   :  { %14729 = vmatprep.subr.bf16.mxu1 %v14728_v9  ;;  %v14766_v9 = vpack.c.bf16 %v8441_v23, %v8437_v34  ;;  %v14768_v56 = vpack.c.bf16 %v8450_v8, %v8446_v22  ;;  %v8847_v23 = vld [vmem:[#allocation9 + $0x8d0] sm:$0xff]  ;;  %v8856_v8 = vld [vmem:[#allocation9 + $0x918] sm:$0xff] }
 0xfca   :  { %v8851_v22 = vld [vmem:[#allocation9 + $0x8f0] sm:$0xff] }
 0xfcb   :  { %8162 = vmatmul.mubr.f32.vlgmr.msra.gmra.mrb[84].mxu1 %v16623_v3 }
 0xfcc   :  { %14731 = vmatpush1.bf16.msra.mxu1 %v14730_v19  ;;  %8167 = vmatprep.mubr.f32.mxu1 %v17235_v45  ;;  %v8458_v19 = vld [vmem:[#allocation9 + $0x6f8] sm:$0xff] }
 0xfcd   :  { %14733 = vmatprep.subr.bf16.mxu1 %v14732_v10  ;;  %v14770_v10 = vpack.c.bf16 %v8449_v52, %v8445_v35  ;;  %v14772_v49 = vpack.c.bf16 %v8458_v19, %v8454_v17  ;;  %v8855_v52 = vld [vmem:[#allocation9 + $0x910] sm:$0xff]  ;;  %v8864_v19 = vld [vmem:[#allocation9 + $0x958] sm:$0xff] }
 0xfce   :  { %v8859_v17 = vld [vmem:[#allocation9 + $0x930] sm:$0xff] }
 0xfcf   :  { %8168 = vmatmul.mubr.f32.gmra.mrb[86].mxu1 %v16627_v44 }
 0xfd0   :  { %14735 = vmatpush1.bf16.msra.mxu1 %v14734_v13  ;;  %8173 = vmatprep.mubr.f32.mxu1 %v17235_v45  ;;  %v8466_v13 = vld [vmem:[#allocation9 + $0x738] sm:$0xff] }
 0xfd1   :  { %14737 = vmatprep.subr.bf16.mxu1 %v14736_v14  ;;  %v14774_v14 = vpack.c.bf16 %v8457_v12, %v8453_v11  ;;  %v14776_v15 = vpack.c.bf16 %v8466_v13, %v8462_v2  ;;  %v8863_v12 = vld [vmem:[#allocation9 + $0x950] sm:$0xff]  ;;  %v8872_v13 = vld [vmem:[#allocation9 + $0x998] sm:$0xff] }
 0xfd2   :  { %v8867_v2 = vld [vmem:[#allocation9 + $0x970] sm:$0xff] }
 0xfd3   :  { %8174 = vmatmul.mubr.f32.gmra.mrb[88].mxu1 %v16633_v18 }
 0xfd4   :  { %14739 = vmatpush1.bf16.msra.mxu1 %v14738_v26  ;;  %8179 = vmatprep.mubr.f32.mxu1 %v17235_v45  ;;  %v8474_v26 = vld [vmem:[#allocation9 + $0x778] sm:$0xff] }
 0xfd5   :  { %14741 = vmatprep.subr.bf16.mxu1 %v14740_v27  ;;  %v14778_v27 = vpack.c.bf16 %v8465_v21, %v8461_v20  ;;  %v14780_v28 = vpack.c.bf16 %v8474_v26, %v8470_v25  ;;  %v8871_v21 = vld [vmem:[#allocation9 + $0x990] sm:$0xff]  ;;  %v8880_v26 = vld [vmem:[#allocation9 + $0x9d8] sm:$0xff] }
 0xfd6   :  { %v8875_v25 = vld [vmem:[#allocation9 + $0x9b0] sm:$0xff] }
 0xfd7   :  { %8180 = vmatmul.mubr.f32.gmra.mrb[90].mxu1 %v16639_v46 }
 0xfd8   :  { %14743 = vmatpush1.bf16.msra.mxu1 %v14742_v40  ;;  %8555 = vmatprep.mubr.f32.mxu1 %v17235_v45  ;;  %v8482_v40 = vld [vmem:[#allocation9 + $0x7b8] sm:$0xff] }
 0xfd9   :  { %14745 = vmatprep.subr.bf16.mxu1 %v14744_v42  ;;  %v14782_v42 = vpack.c.bf16 %v8473_v37, %v8469_v36  ;;  %v14784_v43 = vpack.c.bf16 %v8482_v40, %v8478_v39  ;;  %v8879_v37 = vld [vmem:[#allocation9 + $0x9d0] sm:$0xff]  ;;  %v9216_v40 = vld [vmem:[#allocation9 + $0xa08] sm:$0xff] }
 0xfda   :  { %v8883_v39 = vld [vmem:[#allocation9 + $0x9f0] sm:$0xff] }
 0xfdc   :  { %14747 = vmatpush1.bf16.msra.mxu1 %v14746_v51  ;;  %v8490_v51 = vld [vmem:[#allocation9 + $0x7f8] sm:$0xff] }
 0xfdd   :  { %14749 = vmatprep.subr.bf16.mxu1 %v14748_v61  ;;  %v14786_v61 = vpack.c.bf16 %v8481_v48, %v8477_v47  ;;  %v14788_v53 = vpack.c.bf16 %v8490_v51, %v8486_v50  ;;  %v9215_v48 = vld [vmem:[#allocation9 + $0xa00] sm:$0xff]  ;;  %v9224_v51 = vld [vmem:[#allocation9 + $0xa48] sm:$0xff] }
 0xfde   :  { %v9219_v50 = vld [vmem:[#allocation9 + $0xa20] sm:$0xff] }
 0xfe0   :  { %14751 = vmatpush1.bf16.msra.mxu1 %v14750_v57  ;;  %v8828_v57 = vld [vmem:[#allocation9 + $0x838] sm:$0xff] }
 0xfe1   :  { %14753 = vmatprep.subr.bf16.mxu1 %v14752_v62  ;;  %v14790_v62 = vpack.c.bf16 %v8489_v55, %v8485_v54  ;;  %v14840_v30 = vpack.c.bf16 %v8828_v57, %v8824_v58  ;;  %v9223_v55 = vld [vmem:[#allocation9 + $0xa40] sm:$0xff]  ;;  %v9232_v57 = vld [vmem:[#allocation9 + $0xa88] sm:$0xff] }
 0xfe2   :  { %v9227_v58 = vld [vmem:[#allocation9 + $0xa60] sm:$0xff] }
 0xfe4   :  { %14755 = vmatpush1.bf16.msra.mxu1 %v14754_v24  ;;  %v8836_v24 = vld [vmem:[#allocation9 + $0x878] sm:$0xff] }
 0xfe5   :  { %14757 = vmatprep.subr.bf16.mxu1 %v14756_v31  ;;  %v14842_v31 = vpack.c.bf16 %v8827_v59, %v8823_v0  ;;  %v14844_v29 = vpack.c.bf16 %v8836_v24, %v8832_v60  ;;  %v9231_v59 = vld [vmem:[#allocation9 + $0xa80] sm:$0xff]  ;;  %v9240_v24 = vld [vmem:[#allocation9 + $0xac8] sm:$0xff] }
 0xfe6   :  { %v9235_v60 = vld [vmem:[#allocation9 + $0xaa0] sm:$0xff] }
 0xfe8   :  { %14759 = vmatpush1.bf16.msra.mxu1 %v14758_v63  ;;  %v8844_v63 = vld [vmem:[#allocation9 + $0x8b8] sm:$0xff] }
 0xfe9   :  { %14761 = vmatprep.subr.bf16.mxu1 %v14760_v1  ;;  %v14846_v1 = vpack.c.bf16 %v8835_v38, %v8831_v4  ;;  %v14848_v5 = vpack.c.bf16 %v8844_v63, %v8840_v32  ;;  %v9239_v38 = vld [vmem:[#allocation9 + $0xac0] sm:$0xff]  ;;  %v9248_v63 = vld [vmem:[#allocation9 + $0xb08] sm:$0xff] }
 0xfea   :  { %v9243_v32 = vld [vmem:[#allocation9 + $0xae0] sm:$0xff] }
 0xfeb   :  { %8556 = vmatmul.mubr.f32.vlgmr.msra.gmra.mrb[92].mxu1 %v16623_v3 }
 0xfec   :  { %14763 = vmatpush1.bf16.msra.mxu1 %v14762_v33  ;;  %8561 = vmatprep.mubr.f32.mxu1 %v17235_v45  ;;  %v8852_v33 = vld [vmem:[#allocation9 + $0x8f8] sm:$0xff] }
 0xfed   :  { %14765 = vmatprep.subr.bf16.mxu1 %v14764_v16  ;;  %v14850_v16 = vpack.c.bf16 %v8843_v7, %v8839_v6  ;;  %v14852_v34 = vpack.c.bf16 %v8852_v33, %v8848_v41  ;;  %v9247_v7 = vld [vmem:[#allocation9 + $0xb00] sm:$0xff]  ;;  %v9256_v33 = vld [vmem:[#allocation9 + $0xb48] sm:$0xff] }
 0xfee   :  { %v9251_v41 = vld [vmem:[#allocation9 + $0xb20] sm:$0xff] }
 0xfef   :  { %8562 = vmatmul.mubr.f32.gmra.mrb[94].mxu1 %v16627_v44 }
 0xff0   :  { %14767 = vmatpush1.bf16.msra.mxu1 %v14766_v9  ;;  %8567 = vmatprep.mubr.f32.mxu1 %v17235_v45  ;;  %v8860_v9 = vld [vmem:[#allocation9 + $0x938] sm:$0xff] }
 0xff1   :  { %14769 = vmatprep.subr.bf16.mxu1 %v14768_v56  ;;  %v14854_v56 = vpack.c.bf16 %v8851_v22, %v8847_v23  ;;  %v14856_v35 = vpack.c.bf16 %v8860_v9, %v8856_v8  ;;  %v9255_v22 = vld [vmem:[#allocation9 + $0xb40] sm:$0xff]  ;;  %v9264_v9 = vld [vmem:[#allocation9 + $0xb88] sm:$0xff] }
 0xff2   :  { %v9259_v8 = vld [vmem:[#allocation9 + $0xb60] sm:$0xff] }
 0xff3   :  { %8568 = vmatmul.mubr.f32.gmra.mrb[96].mxu1 %v16633_v18 }
 0xff4   :  { %14771 = vmatpush1.bf16.msra.mxu1 %v14770_v10  ;;  %8573 = vmatprep.mubr.f32.mxu1 %v17235_v45  ;;  %v8868_v10 = vld [vmem:[#allocation9 + $0x978] sm:$0xff] }
 0xff5   :  { %14773 = vmatprep.subr.bf16.mxu1 %v14772_v49  ;;  %v14858_v49 = vpack.c.bf16 %v8859_v17, %v8855_v52  ;;  %v14860_v11 = vpack.c.bf16 %v8868_v10, %v8864_v19  ;;  %v9263_v17 = vld [vmem:[#allocation9 + $0xb80] sm:$0xff]  ;;  %v9272_v10 = vld [vmem:[#allocation9 + $0xbc8] sm:$0xff] }
 0xff6   :  { %v9267_v19 = vld [vmem:[#allocation9 + $0xba0] sm:$0xff] }
 0xff7   :  { %8574 = vmatmul.mubr.f32.gmra.mrb[98].mxu1 %v16639_v46 }
 0xff8   :  { %14775 = vmatpush1.bf16.msra.mxu1 %v14774_v14  ;;  %8644 = vmatprep.mubr.f32.mxu1 %v17235_v45  ;;  %v8876_v14 = vld [vmem:[#allocation9 + $0x9b8] sm:$0xff] }
 0xff9   :  { %14777 = vmatprep.subr.bf16.mxu1 %v14776_v15  ;;  %v14862_v15 = vpack.c.bf16 %v8867_v2, %v8863_v12  ;;  %v14864_v20 = vpack.c.bf16 %v8876_v14, %v8872_v13  ;;  %v9271_v2 = vld [vmem:[#allocation9 + $0xbc0] sm:$0xff]  ;;  %v9610_v14 = vld [vmem:[#allocation9 + $0xc08] sm:$0xff] }
 0xffa   :  { %v9275_v13 = vld [vmem:[#allocation9 + $0xbe0] sm:$0xff] }
 0xffc   :  { %14779 = vmatpush1.bf16.msra.mxu1 %v14778_v27  ;;  %v8884_v27 = vld [vmem:[#allocation9 + $0x9f8] sm:$0xff] }
 0xffd   :  { %14781 = vmatprep.subr.bf16.mxu1 %v14780_v28  ;;  %v14866_v28 = vpack.c.bf16 %v8875_v25, %v8871_v21  ;;  %v14868_v36 = vpack.c.bf16 %v8884_v27, %v8880_v26  ;;  %v9609_v25 = vld [vmem:[#allocation9 + $0xc00] sm:$0xff]  ;;  %v9618_v27 = vld [vmem:[#allocation9 + $0xc48] sm:$0xff] }
 0xffe   :  { %v9613_v26 = vld [vmem:[#allocation9 + $0xc20] sm:$0xff] }
0x1000   :  { %14783 = vmatpush1.bf16.msra.mxu1 %v14782_v42  ;;  %v9220_v42 = vld [vmem:[#allocation9 + $0xa28] sm:$0xff] }
0x1001   :  { %14785 = vmatprep.subr.bf16.mxu1 %v14784_v43  ;;  %v14870_v43 = vpack.c.bf16 %v8883_v39, %v8879_v37  ;;  %v14888_v47 = vpack.c.bf16 %v9220_v42, %v9216_v40  ;;  %v9617_v39 = vld [vmem:[#allocation9 + $0xc40] sm:$0xff]  ;;  %v9626_v42 = vld [vmem:[#allocation9 + $0xc88] sm:$0xff] }
0x1002   :  { %v9621_v40 = vld [vmem:[#allocation9 + $0xc60] sm:$0xff] }
0x1004   :  { %14787 = vmatpush1.bf16.msra.mxu1 %v14786_v61  ;;  %v9228_v61 = vld [vmem:[#allocation9 + $0xa68] sm:$0xff] }
0x1005   :  { %14789 = vmatprep.subr.bf16.mxu1 %v14788_v53  ;;  %v14890_v53 = vpack.c.bf16 %v9219_v50, %v9215_v48  ;;  %v14892_v54 = vpack.c.bf16 %v9228_v61, %v9224_v51  ;;  %v9625_v50 = vld [vmem:[#allocation9 + $0xc80] sm:$0xff]  ;;  %v9634_v61 = vld [vmem:[#allocation9 + $0xcc8] sm:$0xff] }
0x1006   :  { %v9629_v51 = vld [vmem:[#allocation9 + $0xca0] sm:$0xff] }
0x1008   :  { %14791 = vmatpush1.bf16.msra.mxu1 %v14790_v62  ;;  %v9236_v62 = vld [vmem:[#allocation9 + $0xaa8] sm:$0xff] }
0x1009   :  { %14841 = vmatprep.subr.bf16.mxu1 %v14840_v30  ;;  %v14894_v30 = vpack.c.bf16 %v9227_v58, %v9223_v55  ;;  %v14896_v0 = vpack.c.bf16 %v9236_v62, %v9232_v57  ;;  %v9633_v58 = vld [vmem:[#allocation9 + $0xcc0] sm:$0xff]  ;;  %v9642_v62 = vld [vmem:[#allocation9 + $0xd08] sm:$0xff] }
0x100a   :  { %v9637_v57 = vld [vmem:[#allocation9 + $0xce0] sm:$0xff] }
0x100b   :  { %8645 = vmatmul.mubr.f32.vlgmr.msra.gmra.mrb[100].mxu1 %v16623_v3 }
0x100c   :  { %14843 = vmatpush1.bf16.msra.mxu1 %v14842_v31  ;;  %8650 = vmatprep.mubr.f32.mxu1 %v17235_v45  ;;  %v9244_v31 = vld [vmem:[#allocation9 + $0xae8] sm:$0xff] }
0x100d   :  { %14845 = vmatprep.subr.bf16.mxu1 %v14844_v29  ;;  %v14898_v29 = vpack.c.bf16 %v9235_v60, %v9231_v59  ;;  %v14900_v4 = vpack.c.bf16 %v9244_v31, %v9240_v24  ;;  %v9641_v60 = vld [vmem:[#allocation9 + $0xd00] sm:$0xff]  ;;  %v9650_v31 = vld [vmem:[#allocation9 + $0xd48] sm:$0xff] }
0x100e   :  { %v9645_v24 = vld [vmem:[#allocation9 + $0xd20] sm:$0xff] }
0x100f   :  { %8651 = vmatmul.mubr.f32.gmra.mrb[102].mxu1 %v16627_v44 }
0x1010   :  { %14847 = vmatpush1.bf16.msra.mxu1 %v14846_v1  ;;  %8656 = vmatprep.mubr.f32.mxu1 %v17235_v45  ;;  %v9252_v1 = vld [vmem:[#allocation9 + $0xb28] sm:$0xff] }
0x1011   :  { %14849 = vmatprep.subr.bf16.mxu1 %v14848_v5  ;;  %v14902_v5 = vpack.c.bf16 %v9243_v32, %v9239_v38  ;;  %v14904_v6 = vpack.c.bf16 %v9252_v1, %v9248_v63  ;;  %v9649_v32 = vld [vmem:[#allocation9 + $0xd40] sm:$0xff]  ;;  %v9658_v1 = vld [vmem:[#allocation9 + $0xd88] sm:$0xff] }
0x1012   :  { %v9653_v63 = vld [vmem:[#allocation9 + $0xd60] sm:$0xff] }
0x1013   :  { %8657 = vmatmul.mubr.f32.gmra.mrb[104].mxu1 %v16633_v18 }
0x1014   :  { %14851 = vmatpush1.bf16.msra.mxu1 %v14850_v16  ;;  %8662 = vmatprep.mubr.f32.mxu1 %v17235_v45  ;;  %v9260_v16 = vld [vmem:[#allocation9 + $0xb68] sm:$0xff] }
0x1015   :  { %14853 = vmatprep.subr.bf16.mxu1 %v14852_v34  ;;  %v14906_v34 = vpack.c.bf16 %v9251_v41, %v9247_v7  ;;  %v14908_v23 = vpack.c.bf16 %v9260_v16, %v9256_v33  ;;  %v9657_v41 = vld [vmem:[#allocation9 + $0xd80] sm:$0xff] }
0x1016   :  { %v9661_v33 = vld [vmem:[#allocation9 + $0xda0] sm:$0xff] }
0x1017   :  { %8663 = vmatmul.mubr.f32.gmra.mrb[106].mxu1 %v16639_v46 }
0x1018   :  { %14855 = vmatpush1.bf16.msra.mxu1 %v14854_v56  ;;  %9038 = vmatprep.mubr.f32.mxu1 %v17235_v45  ;;  %v9268_v56 = vld [vmem:[#allocation9 + $0xba8] sm:$0xff] }
0x1019   :  { %14857 = vmatprep.subr.bf16.mxu1 %v14856_v35  ;;  %v14910_v35 = vpack.c.bf16 %v9259_v8, %v9255_v22  ;;  %v14912_v52 = vpack.c.bf16 %v9268_v56, %v9264_v9  ;;  %v9670_v22 = vld [vmem:[#allocation9 + $0xde8] sm:$0xff]  ;;  %v14994_v56 = vpack.c.bf16 %v9661_v33, %v9657_v41  ;;  %v9643_v33 = vld [vmem:[#allocation9 + $0xd10] sm:$0xff] }
0x101c   :  { %14859 = vmatpush1.bf16.msra.mxu1 %v14858_v49  ;;  %v9276_v49 = vld [vmem:[#allocation9 + $0xbe8] sm:$0xff] }
0x101d   :  { %14861 = vmatprep.subr.bf16.mxu1 %v14860_v11  ;;  %v14914_v11 = vpack.c.bf16 %v9267_v19, %v9263_v17  ;;  %v14916_v12 = vpack.c.bf16 %v9276_v49, %v9272_v10  ;;  %v9669_v17 = vld [vmem:[#allocation9 + $0xde0] sm:$0xff]  ;;  %v9612_v49 = vld [vmem:[#allocation9 + $0xc18] sm:$0xff] }
0x1020   :  { %14863 = vmatpush1.bf16.msra.mxu1 %v14862_v15  ;;  %v9614_v15 = vld [vmem:[#allocation9 + $0xc28] sm:$0xff] }
0x1021   :  { %14865 = vmatprep.subr.bf16.mxu1 %v14864_v20  ;;  %v14918_v20 = vpack.c.bf16 %v9275_v13, %v9271_v2  ;;  %v14968_v21 = vpack.c.bf16 %v9614_v15, %v9610_v14 }
0x1024   :  { %14867 = vmatpush1.bf16.msra.mxu1 %v14866_v28  ;;  %v9622_v28 = vld [vmem:[#allocation9 + $0xc68] sm:$0xff] }
0x1025   :  { %14869 = vmatprep.subr.bf16.mxu1 %v14868_v36  ;;  %v14970_v36 = vpack.c.bf16 %v9613_v26, %v9609_v25  ;;  %v14972_v37 = vpack.c.bf16 %v9622_v28, %v9618_v27  ;;  %v9611_v26 = vld [vmem:[#allocation9 + $0xc10] sm:$0xff] }
0x1026   :  { %v9615_v27 = vld [vmem:[#allocation9 + $0xc30] sm:$0xff] }
0x1028   :  { %14871 = vmatpush1.bf16.msra.mxu1 %v14870_v43  ;;  %v9630_v43 = vld [vmem:[#allocation9 + $0xca8] sm:$0xff] }
0x1029   :  { %14889 = vmatprep.subr.bf16.mxu1 %v14888_v47  ;;  %v14974_v47 = vpack.c.bf16 %v9621_v40, %v9617_v39  ;;  %v14976_v48 = vpack.c.bf16 %v9630_v43, %v9626_v42  ;;  %v9624_v39 = vld [vmem:[#allocation9 + $0xc78] sm:$0xff]  ;;  %v15002_v43 = vpack.c.bf16 %v9615_v27, %v9611_v26  ;;  %v9659_v27 = vld [vmem:[#allocation9 + $0xd90] sm:$0xff] }
0x102b   :  { %9039 = vmatmul.mubr.f32.vlgmr.msra.gmra.mrb[108].mxu1 %v16623_v3 }
0x102c   :  { %14891 = vmatpush1.bf16.msra.mxu1 %v14890_v53  ;;  %9044 = vmatprep.mubr.f32.mxu1 %v17235_v45  ;;  %v9638_v53 = vld [vmem:[#allocation9 + $0xce8] sm:$0xff] }
0x102d   :  { %14893 = vmatprep.subr.bf16.mxu1 %v14892_v54  ;;  %v14978_v54 = vpack.c.bf16 %v9629_v51, %v9625_v50  ;;  %v14980_v55 = vpack.c.bf16 %v9638_v53, %v9634_v61  ;;  %v9623_v50 = vld [vmem:[#allocation9 + $0xc70] sm:$0xff]  ;;  %v9628_v53 = vld [vmem:[#allocation9 + $0xc98] sm:$0xff] }
0x102f   :  { %9045 = vmatmul.mubr.f32.gmra.mrb[110].mxu1 %v16627_v44 }
0x1030   :  { %14895 = vmatpush1.bf16.msra.mxu1 %v14894_v30  ;;  %9050 = vmatprep.mubr.f32.mxu1 %v17235_v45  ;;  %v9646_v30 = vld [vmem:[#allocation9 + $0xd28] sm:$0xff] }
0x1031   :  { %14897 = vmatprep.subr.bf16.mxu1 %v14896_v0  ;;  %v14982_v0 = vpack.c.bf16 %v9637_v57, %v9633_v58  ;;  %v14984_v59 = vpack.c.bf16 %v9646_v30, %v9642_v62 }
0x1033   :  { %9051 = vmatmul.mubr.f32.gmra.mrb[112].mxu1 %v16633_v18 }
0x1034   :  { %14899 = vmatpush1.bf16.msra.mxu1 %v14898_v29  ;;  %9056 = vmatprep.mubr.f32.mxu1 %v17235_v45  ;;  %v9654_v29 = vld [vmem:[#allocation9 + $0xd68] sm:$0xff] }
0x1035   :  { %14901 = vmatprep.subr.bf16.mxu1 %v14900_v4  ;;  %v14986_v4 = vpack.c.bf16 %v9645_v24, %v9641_v60  ;;  %v14988_v38 = vpack.c.bf16 %v9654_v29, %v9650_v31  ;;  %v9627_v24 = vld [vmem:[#allocation9 + $0xc90] sm:$0xff]  ;;  %v9636_v29 = vld [vmem:[#allocation9 + $0xcd8] sm:$0xff] }
0x1036   :  { %v9631_v31 = vld [vmem:[#allocation9 + $0xcb0] sm:$0xff] }
0x1037   :  { %9057 = vmatmul.mubr.f32.gmra.mrb[114].mxu1 %v16639_v46 }
0x1038   :  { %14903 = vmatpush1.bf16.msra.mxu1 %v14902_v5  ;;  %9343 = vmatprep.mubr.f32.mxu1 %v17235_v45  ;;  %v9662_v5 = vld [vmem:[#allocation9 + $0xda8] sm:$0xff] }
0x1039   :  { %14905 = vmatprep.subr.bf16.mxu1 %v14904_v6  ;;  %v14990_v6 = vpack.c.bf16 %v9653_v63, %v9649_v32  ;;  %v14992_v7 = vpack.c.bf16 %v9662_v5, %v9658_v1  ;;  %v9635_v63 = vld [vmem:[#allocation9 + $0xcd0] sm:$0xff]  ;;  %v9644_v5 = vld [vmem:[#allocation9 + $0xd18] sm:$0xff] }
0x103a   :  { %v9639_v1 = vld [vmem:[#allocation9 + $0xcf0] sm:$0xff] }
0x103c   :  { %14907 = vmatpush1.bf16.msra.mxu1 %v14906_v34 }
0x103d   :  { %14909 = vmatprep.subr.bf16.mxu1 %v14908_v23  ;;  %v9666_v23 = vld [vmem:[#allocation9 + $0xdc8] sm:$0xff] }
0x1040   :  { %14911 = vmatpush1.bf16.msra.mxu1 %v14910_v35  ;;  %v14996_v35 = vpack.c.bf16 %v9670_v22, %v9666_v23  ;;  %v9647_v23 = vld [vmem:[#allocation9 + $0xd30] sm:$0xff]  ;;  %v9652_v22 = vld [vmem:[#allocation9 + $0xd58] sm:$0xff] }
0x1041   :  { %14913 = vmatprep.subr.bf16.mxu1 %v14912_v52  ;;  %v9665_v52 = vld [vmem:[#allocation9 + $0xdc0] sm:$0xff] }
0x1044   :  { %14915 = vmatpush1.bf16.msra.mxu1 %v14914_v11  ;;  %v9616_v11 = vld [vmem:[#allocation9 + $0xc38] sm:$0xff] }
0x1045   :  { %14917 = vmatprep.subr.bf16.mxu1 %v14916_v12  ;;  %v15000_v25 = vpack.c.bf16 %v9616_v11, %v9612_v49  ;;  %v9655_v49 = vld [vmem:[#allocation9 + $0xd70] sm:$0xff]  ;;  %v9660_v11 = vld [vmem:[#allocation9 + $0xd98] sm:$0xff] }
0x1048   :  { %14919 = vmatpush1.bf16.msra.mxu1 %v14918_v20 }
0x1049   :  { %14969 = vmatprep.subr.bf16.mxu1 %v14968_v21  ;;  %v14998_v21 = vpack.c.bf16 %v9669_v17, %v9665_v52  ;;  %v9651_v17 = vld [vmem:[#allocation9 + $0xd50] sm:$0xff] }
0x104b   :  { %9344 = vmatmul.mubr.f32.vlgmr.msra.gmra.mrb[116].mxu1 %v16623_v3 }
0x104c   :  { %14971 = vmatpush1.bf16.msra.mxu1 %v14970_v36  ;;  %9349 = vmatprep.mubr.f32.mxu1 %v17235_v45 }
0x104d   :  { %14973 = vmatprep.subr.bf16.mxu1 %v14972_v37  ;;  %v9620_v37 = vld [vmem:[#allocation9 + $0xc58] sm:$0xff] }
0x104f   :  { %9350 = vmatmul.mubr.f32.gmra.mrb[118].mxu1 %v16627_v44 }
0x1050   :  { %14975 = vmatpush1.bf16.msra.mxu1 %v14974_v47  ;;  %9355 = vmatprep.mubr.f32.mxu1 %v17235_v45  ;;  %v15004_v47 = vpack.c.bf16 %v9624_v39, %v9620_v37  ;;  %v9663_v37 = vld [vmem:[#allocation9 + $0xdb0] sm:$0xff] }
0x1051   :  { %14977 = vmatprep.subr.bf16.mxu1 %v14976_v48  ;;  %v9619_v48 = vld [vmem:[#allocation9 + $0xc50] sm:$0xff] }
0x1053   :  { %9356 = vmatmul.mubr.f32.gmra.mrb[120].mxu1 %v16633_v18 }
0x1054   :  { %14979 = vmatpush1.bf16.msra.mxu1 %v14978_v54  ;;  %9361 = vmatprep.mubr.f32.mxu1 %v17235_v45  ;;  %v9632_v54 = vld [vmem:[#allocation9 + $0xcb8] sm:$0xff] }
0x1055   :  { %14981 = vmatprep.subr.bf16.mxu1 %v14980_v55  ;;  %v15008_v60 = vpack.c.bf16 %v9632_v54, %v9628_v53  ;;  %v15026_v54 = vpack.c.bf16 %v9663_v37, %v9659_v27  ;;  %v10017_v27 = vld [vmem:[#allocation9 + $0xe70] sm:$0xff] }
0x1057   :  { %9362 = vmatmul.mubr.f32.gmra.mrb[122].mxu1 %v16639_v46 }
0x1058   :  { %14983 = vmatpush1.bf16.msra.mxu1 %v14982_v0  ;;  %9737 = vmatprep.mubr.f32.mxu1 %v17235_v45 }
0x1059   :  { %14985 = vmatprep.subr.bf16.mxu1 %v14984_v59  ;;  %v15006_v59 = vpack.c.bf16 %v9623_v50, %v9619_v48  ;;  %v9672_v48 = vld [vmem:[#allocation9 + $0xdf8] sm:$0xff] }
0x105c   :  { %14987 = vmatpush1.bf16.msra.mxu1 %v14986_v4  ;;  %v9640_v4 = vld [vmem:[#allocation9 + $0xcf8] sm:$0xff] }
0x105d   :  { %14989 = vmatprep.subr.bf16.mxu1 %v14988_v38  ;;  %v15010_v38 = vpack.c.bf16 %v9631_v31, %v9627_v24  ;;  %v15012_v32 = vpack.c.bf16 %v9640_v4, %v9636_v29  ;;  %v9671_v24 = vld [vmem:[#allocation9 + $0xdf0] sm:$0xff]  ;;  %v10006_v4 = vld [vmem:[#allocation9 + $0xe18] sm:$0xff] }
0x105e   :  { %v16703_v16 = vpop.f32.mrb[104].mxu0  ;;  %v16705_v34 = vpop.f32.mrb[68].mxu1 }
0x105f   :  { %v16707_v8 = vpop.f32.mrb[105].mxu0  ;;  %v16709_v9 = vpop.f32.mrb[69].mxu1 }
0x1060   :  { %14991 = vmatpush1.bf16.msra.mxu1 %v14990_v6  ;;  %v9648_v6 = vld [vmem:[#allocation9 + $0xd38] sm:$0xff] }
0x1061   :  { %14993 = vmatprep.subr.bf16.mxu1 %v14992_v7  ;;  %v15014_v7 = vpack.c.bf16 %v9639_v1, %v9635_v63  ;;  %v15016_v41 = vpack.c.bf16 %v9648_v6, %v9644_v5 }
0x1062   :  { %v16711_v19 = vpop.f32.mrb[106].mxu0  ;;  %v16713_v10 = vpop.f32.mrb[70].mxu1 }
0x1063   :  { %v14634_v12 = vpack.c.bf16 %v16711_v19, %v16703_v16  ;;  %v14642_v2 = vpack.c.bf16 %v16713_v10, %v16705_v34  ;;  %v16719_v13 = vpop.f32.mrb[107].mxu0  ;;  %v16721_v14 = vpop.f32.mrb[71].mxu1  ;;  %v7496_v19 = vld [vmem:[#allocation10] sm:$0xf] }
0x1064   :  { %v14632_v15 = vpack.c.bf16 %v16719_v13, %v16707_v8  ;;  %v14640_v20 = vpack.c.bf16 %v16721_v14, %v16709_v9  ;;  %14995 = vmatpush1.bf16.msra.mxu1 %v14994_v56  ;;  %v9656_v56 = vld [vmem:[#allocation9 + $0xd78] sm:$0xff]  ;;  %v10401_v10 = vld [vmem:[#allocation9 + $0x1020] sm:$0xff] }
0x1065   :  { %14997 = vmatprep.subr.bf16.mxu1 %v14996_v35  ;;  %v15018_v35 = vpack.c.bf16 %v9647_v23, %v9643_v33  ;;  %v15020_v52 = vpack.c.bf16 %v9656_v56, %v9652_v22  ;;  %v10005_v23 = vld [vmem:[#allocation9 + $0xe10] sm:$0xff] }
0x1066   :  { %v16727_v28 = vpop.f32.mrb[108].mxu0  ;;  %v16729_v36 = vpop.f32.mrb[72].mxu1  ;;  %v10009_v22 = vld [vmem:[#allocation9 + $0xe30] sm:$0xff] }
0x1067   :  { %v16731_v40 = vpop.f32.mrb[109].mxu0  ;;  %v16733_v42 = vpop.f32.mrb[73].mxu1 }
0x1068   :  { %14999 = vmatpush1.bf16.msra.mxu1 %v14998_v21  ;;  %v9664_v21 = vld [vmem:[#allocation9 + $0xdb8] sm:$0xff] }
0x1069   :  { %15001 = vmatprep.subr.bf16.mxu1 %v15000_v25  ;;  %v15022_v25 = vpack.c.bf16 %v9655_v49, %v9651_v17  ;;  %v15024_v26 = vpack.c.bf16 %v9664_v21, %v9660_v11  ;;  %v10018_v17 = vld [vmem:[#allocation9 + $0xe78] sm:$0xff]  ;;  %v15082_v21 = vpack.c.bf16 %v10009_v22, %v10005_v23 }
0x106a   :  { %v16735_v51 = vpop.f32.mrb[110].mxu0  ;;  %v16737_v61 = vpop.f32.mrb[74].mxu1  ;;  %v10038_v23 = vld [vmem:[#allocation9 + $0xf18] sm:$0xff] }
0x106b   :  { %v14638_v55 = vpack.c.bf16 %v16735_v51, %v16727_v28  ;;  %v14646_v58 = vpack.c.bf16 %v16737_v61, %v16729_v36  ;;  %9738 = vmatmul.mubr.f32.vlgmr.msra.gmra.mrb[124].mxu1 %v16623_v3  ;;  %v16744_v57 = vpop.f32.mrb[111].mxu0  ;;  %v16746_v62 = vpop.f32.mrb[75].mxu1  ;;  %v10042_v22 = vld [vmem:[#allocation9 + $0xf38] sm:$0xff]  ;;  %v10398_v28 = vld [vmem:[#allocation9 + $0x1008] sm:$0xff] }
0x106c   :  { %v14636_v30 = vpack.c.bf16 %v16744_v57, %v16731_v40  ;;  %v14644_v0 = vpack.c.bf16 %v16746_v62, %v16733_v42  ;;  %15003 = vmatpush1.bf16.msra.mxu1 %v15002_v43  ;;  %9743 = vmatprep.mubr.f32.mxu1 %v17235_v45  ;;  %v10061_v40 = vld [vmem:[#allocation9 + $0xfd0] sm:$0xff]  ;;  %v10402_v51 = vld [vmem:[#allocation9 + $0x1028] sm:$0xff] }
0x106d   :  { %15005 = vmatprep.subr.bf16.mxu1 %v15004_v47  ;;  %v9668_v47 = vld [vmem:[#allocation9 + $0xdd8] sm:$0xff]  ;;  %v15128_v34 = vpack.c.bf16 %v10402_v51, %v10398_v28  ;;  %v10414_v36 = vld [vmem:[#allocation9 + $0x1088] sm:$0xff] }
0x106e   :  { %v10418_v61 = vld [vmem:[#allocation9 + $0x10a8] sm:$0xff] }
0x106f   :  { %9744 = vmatmul.mubr.f32.gmra.mrb[126].mxu1 %v16627_v44  ;;  %v10430_v28 = vld [vmem:[#allocation9 + $0x1108] sm:$0xff] }
0x1070   :  { %15007 = vmatpush1.bf16.msra.mxu1 %v15006_v59  ;;  %9749 = vmatprep.mubr.f32.mxu1 %v17235_v45  ;;  %v15028_v59 = vpack.c.bf16 %v9672_v48, %v9668_v47  ;;  %v10026_v47 = vld [vmem:[#allocation9 + $0xeb8] sm:$0xff]  ;;  %v10434_v51 = vld [vmem:[#allocation9 + $0x1128] sm:$0xff] }
0x1071   :  { %15009 = vmatprep.subr.bf16.mxu1 %v15008_v60  ;;  %v9667_v60 = vld [vmem:[#allocation9 + $0xdd0] sm:$0xff] }
0x1073   :  { %9750 = vmatmul.mubr.f32.gmra.mrb[128].mxu1 %v16633_v18 }
0x1074   :  { %15011 = vmatpush1.bf16.msra.mxu1 %v15010_v38  ;;  %9755 = vmatprep.mubr.f32.mxu1 %v17235_v45  ;;  %v10010_v38 = vld [vmem:[#allocation9 + $0xe38] sm:$0xff] }
0x1075   :  { %15013 = vmatprep.subr.bf16.mxu1 %v15012_v32  ;;  %v15080_v33 = vpack.c.bf16 %v10010_v38, %v10006_v4  ;;  %v10025_v4 = vld [vmem:[#allocation9 + $0xeb0] sm:$0xff]  ;;  %v10030_v38 = vld [vmem:[#allocation9 + $0xed8] sm:$0xff] }
0x1077   :  { %9756 = vmatmul.mubr.f32.gmra.mrb[130].mxu1 %v16639_v46 }
0x1078   :  { %15015 = vmatpush1.bf16.msra.mxu1 %v15014_v7  ;;  %9826 = vmatprep.mubr.f32.mxu1 %v17235_v45 }
0x1079   :  { %15017 = vmatprep.subr.bf16.mxu1 %v15016_v41  ;;  %v15030_v41 = vpack.c.bf16 %v9671_v24, %v9667_v60 }
0x107c   :  { %15019 = vmatpush1.bf16.msra.mxu1 %v15018_v35 }
0x107d   :  { %15021 = vmatprep.subr.bf16.mxu1 %v15020_v52  ;;  %v10014_v52 = vld [vmem:[#allocation9 + $0xe58] sm:$0xff] }
0x107e   :  { %v7628_v39 = vpop.f32.mrb[112].mxu0  ;;  %v16759_v43 = vpop.f32.mrb[76].mxu1 }
0x107f   :  { %v7630_v50 = vpop.f32.mrb[113].mxu0  ;;  %v7719_v53 = vpop.f32.mrb[77].mxu1 }
0x1080   :  { %15023 = vmatpush1.bf16.msra.mxu1 %v15022_v25  ;;  %v15084_v25 = vpack.c.bf16 %v10018_v17, %v10014_v52  ;;  %v10041_v52 = vld [vmem:[#allocation9 + $0xf30] sm:$0xff]  ;;  %v10046_v17 = vld [vmem:[#allocation9 + $0xf58] sm:$0xff] }
0x1081   :  { %15025 = vmatprep.subr.bf16.mxu1 %v15024_v26  ;;  %v10013_v26 = vld [vmem:[#allocation9 + $0xe50] sm:$0xff] }
0x1082   :  { %v7634_v31 = vpop.f32.mrb[114].mxu0  ;;  %v16761_v29 = vpop.f32.mrb[78].mxu1  ;;  %v15086_v24 = vpack.c.bf16 %v10017_v27, %v10013_v26  ;;  %v10054_v26 = vld [vmem:[#allocation9 + $0xf98] sm:$0xff] }
0x1083   :  { %v14618_v32 = vpack.c.bf16 %v7634_v31, %v7628_v39  ;;  %v14626_v63 = vpack.c.bf16 %v16761_v29, %v16759_v43  ;;  %v7636_v1 = vpop.f32.mrb[115].mxu0  ;;  %v7725_v5 = vpop.f32.mrb[79].mxu1  ;;  %v10022_v43 = vld [vmem:[#allocation9 + $0xe98] sm:$0xff]  ;;  %v10021_v29 = vld [vmem:[#allocation9 + $0xe90] sm:$0xff] }
0x1084   :  { %v14616_v6 = vpack.c.bf16 %v7636_v1, %v7630_v50  ;;  %v14624_v7 = vpack.c.bf16 %v7725_v5, %v7719_v53  ;;  %15027 = vmatpush1.bf16.msra.mxu1 %v15026_v54  ;;  %v15088_v31 = vpack.c.bf16 %v10026_v47, %v10022_v43  ;;  %v7741_v1 = vld [vmem:[#allocation10 + $0x4] sm:$0xf]  ;;  %v15090_v5 = vpack.c.bf16 %v10025_v4, %v10021_v29  ;;  %v10058_v27 = vld [vmem:[#allocation9 + $0xfb8] sm:$0xff]  ;;  %v10406_v4 = vld [vmem:[#allocation9 + $0x1048] sm:$0xff] }
0x1085   :  { %15029 = vmatprep.subr.bf16.mxu1 %v15028_v59  ;;  %v15104_v13 = vpack.c.bf16 %v10058_v27, %v10054_v26  ;;  %v10062_v43 = vld [vmem:[#allocation9 + $0xfd8] sm:$0xff]  ;;  %v10417_v26 = vld [vmem:[#allocation9 + $0x10a0] sm:$0xff] }
0x1086   :  { %v7640_v56 = vpop.f32.mrb[116].mxu0  ;;  %v7729_v35 = vpop.f32.mrb[80].mxu1  ;;  %14617 = vmatprep.subr.bf16.mxu0 %v14616_v6  ;;  %v10066_v47 = vld [vmem:[#allocation9 + $0xff8] sm:$0xff] }
0x1087   :  { %v7642_v49 = vpop.f32.mrb[117].mxu0  ;;  %v7731_v11 = vpop.f32.mrb[81].mxu1  ;;  %14619 = vmatpush1.bf16.msra.mxu0 %v14618_v32  ;;  %v10034_v32 = vld [vmem:[#allocation9 + $0xef8] sm:$0xff]  ;;  %v15108_v57 = vpack.c.bf16 %v10066_v47, %v10062_v43 }
0x1088   :  { %15031 = vmatpush1.bf16.msra.mxu1 %v15030_v41  ;;  %v15092_v6 = vpack.c.bf16 %v10034_v32, %v10030_v38  ;;  %v10029_v41 = vld [vmem:[#allocation9 + $0xed0] sm:$0xff]  ;;  %v10410_v38 = vld [vmem:[#allocation9 + $0x1068] sm:$0xff]  ;;  %v8060_v27 = vld [vmem:[#allocation9 + $0x4d8] sm:$0xff] }
0x1089   :  { %15081 = vmatprep.subr.bf16.mxu1 %v15080_v33  ;;  %v10033_v33 = vld [vmem:[#allocation9 + $0xef0] sm:$0xff] }
0x108a   :  { %v7646_v37 = vpop.f32.mrb[118].mxu0  ;;  %v7735_v39 = vpop.f32.mrb[82].mxu1 }
0x108b   :  { %v14622_v48 = vpack.c.bf16 %v7646_v37, %v7640_v56  ;;  %v14630_v50 = vpack.c.bf16 %v7735_v39, %v7729_v35  ;;  %v7648_v53 = vpop.f32.mrb[119].mxu0  ;;  %v7737_v54 = vpop.f32.mrb[83].mxu1  ;;  %9827 = vmatmul.mubr.f32.vlgmr.msra.gmra.mrb[132].mxu1 %v16623_v3  ;;  %v15094_v56 = vpack.c.bf16 %v10033_v33, %v10029_v41  ;;  %v10037_v35 = vld [vmem:[#allocation9 + $0xf10] sm:$0xff]  ;;  %v15132_v41 = vpack.c.bf16 %v10410_v38, %v10406_v4  ;;  %v10409_v33 = vld [vmem:[#allocation9 + $0x1060] sm:$0xff]  ;;  %v8080_v4 = vld [vmem:[#allocation9 + $0x578] sm:$0xff] }
0x108c   :  { %v14620_v59 = vpack.c.bf16 %v7648_v53, %v7642_v49  ;;  %v14628_v60 = vpack.c.bf16 %v7737_v54, %v7731_v11  ;;  %15083 = vmatpush1.bf16.msra.mxu1 %v15082_v21  ;;  %9832 = vmatprep.mubr.f32.mxu1 %v17235_v45  ;;  %v10050_v49 = vld [vmem:[#allocation9 + $0xf78] sm:$0xff]  ;;  %v10045_v21 = vld [vmem:[#allocation9 + $0xf50] sm:$0xff]  ;;  %v10438_v38 = vld [vmem:[#allocation9 + $0x1148] sm:$0xff] }
0x108d   :  { %15085 = vmatprep.subr.bf16.mxu1 %v15084_v25  ;;  %v15100_v11 = vpack.c.bf16 %v10050_v49, %v10046_v17  ;;  %v10049_v25 = vld [vmem:[#allocation9 + $0xf70] sm:$0xff] }
0x108e   :  { %14621 = vmatprep.subr.bf16.mxu0 %v14620_v59  ;;  %v15102_v8 = vpack.c.bf16 %v10049_v25, %v10045_v21  ;;  %v10057_v37 = vld [vmem:[#allocation9 + $0xfb0] sm:$0xff]  ;;  %v10413_v21 = vld [vmem:[#allocation9 + $0x1080] sm:$0xff]  ;;  %v15136_v25 = vpack.c.bf16 %v10418_v61, %v10414_v36  ;;  %v8088_v36 = vld [vmem:[#allocation9 + $0x5b8] sm:$0xff] }
0x108f   :  { %14623 = vmatpush1.bf16.msra.mxu0 %v14622_v48  ;;  %9833 = vmatmul.mubr.f32.gmra.mrb[134].mxu1 %v16627_v44  ;;  %v8036_v48 = vld [vmem:[#allocation9 + $0x418] sm:$0xff]  ;;  %v8035_v59 = vld [vmem:[#allocation9 + $0x410] sm:$0xff]  ;;  %v15138_v43 = vpack.c.bf16 %v10417_v26, %v10413_v21  ;;  %v10446_v61 = vld [vmem:[#allocation9 + $0x1188] sm:$0xff] }
0x1090   :  { %14625 = vmatprep.subr.bf16.mxu0 %v14624_v7  ;;  %15087 = vmatpush1.bf16.msra.mxu1 %v15086_v24  ;;  %v15096_v7 = vpack.c.bf16 %v10042_v22, %v10038_v23  ;;  %v10397_v24 = vld [vmem:[#allocation9 + $0x1000] sm:$0xff]  ;;  %v8052_v23 = vld [vmem:[#allocation9 + $0x498] sm:$0xff]  ;;  %v8087_v21 = vld [vmem:[#allocation9 + $0x5b0] sm:$0xff] }
0x1091   :  { %9838 = vmatprep.mubr.f32.mxu1 %v17235_v45  ;;  %15089 = vmatprep.subr.bf16.mxu1 %v15088_v31  ;;  %v8048_v31 = vld [vmem:[#allocation9 + $0x478] sm:$0xff] }
0x1092   :  { %11163 = vmatmul.mubr.msk.f32.vlgmr.msra.gmra.mrb[120].mxu0 %vm3204_vm2, %v7741_v1  ;;  %v8056_v22 = vld [vmem:[#allocation9 + $0x4b8] sm:$0xff] }
0x1093   :  { %14627 = vmatpush1.bf16.msra.mxu0 %v14626_v63  ;;  %9839 = vmatmul.mubr.f32.gmra.mrb[136].mxu1 %v16633_v18  ;;  %v15098_v63 = vpack.c.bf16 %v10041_v52, %v10037_v35  ;;  %v14688_v49 = vpack.c.bf16 %v8056_v22, %v8052_v23  ;;  %v10441_v23 = vld [vmem:[#allocation9 + $0x1160] sm:$0xff]  ;;  %v8084_v22 = vld [vmem:[#allocation9 + $0x598] sm:$0xff] }
0x1094   :  { %14629 = vmatprep.subr.bf16.mxu0 %v14628_v60  ;;  %15091 = vmatpush1.bf16.msra.mxu1 %v15090_v5  ;;  %v8039_v60 = vld [vmem:[#allocation9 + $0x430] sm:$0xff] }
0x1095   :  { %9844 = vmatprep.mubr.f32.mxu1 %v17235_v45  ;;  %15093 = vmatprep.subr.bf16.mxu1 %v15092_v6  ;;  %v14682_v62 = vpack.c.bf16 %v8039_v60, %v8035_v59  ;;  %v8047_v5 = vld [vmem:[#allocation9 + $0x470] sm:$0xff]  ;;  %v10405_v6 = vld [vmem:[#allocation9 + $0x1040] sm:$0xff] }
0x1096   :  { %7880 = vmatprep.mubr.f32.mxu0 %v17235_v45  ;;  %v15134_v17 = vpack.c.bf16 %v10409_v33, %v10405_v6  ;;  %v8067_v60 = vld [vmem:[#allocation9 + $0x510] sm:$0xff] }
0x1097   :  { %14631 = vmatpush1.bf16.msra.mxu0 %v14630_v50  ;;  %9845 = vmatmul.mubr.f32.gmra.mrb[138].mxu1 %v16639_v46  ;;  %v8040_v50 = vld [vmem:[#allocation9 + $0x438] sm:$0xff]  ;;  %v8079_v6 = vld [vmem:[#allocation9 + $0x570] sm:$0xff] }
0x1098   :  { %14633 = vmatprep.subr.bf16.mxu0 %v14632_v15  ;;  %15095 = vmatpush1.bf16.msra.mxu1 %v15094_v56  ;;  %v10053_v15 = vld [vmem:[#allocation9 + $0xf90] sm:$0xff]  ;;  %v14680_v54 = vpack.c.bf16 %v8040_v50, %v8036_v48  ;;  %v8068_v48 = vld [vmem:[#allocation9 + $0x518] sm:$0xff] }
0x1099   :  { %15097 = vmatprep.subr.bf16.mxu1 %v15096_v7  ;;  %10220 = vmatprep.mubr.f32.mxu1 %v17235_v45  ;;  %v8072_v50 = vld [vmem:[#allocation9 + $0x538] sm:$0xff] }
0x109a   :  { %11164 = vmatmul.mubr.msk.f32.vlgmr.msra.gmra.mrb[122].mxu0 %vm3204_vm2, %v7741_v1  ;;  %v8043_v1 = vld [vmem:[#allocation9 + $0x450] sm:$0xff]  ;;  %v14696_v59 = vpack.c.bf16 %v8072_v50, %v8068_v48  ;;  %v10453_v50 = vld [vmem:[#allocation9 + $0x11c0] sm:$0xff] }
0x109b   :  { %14635 = vmatpush1.bf16.msra.mxu0 %v14634_v12  ;;  %7954 = vmatprep.mubr.f32.mxu0 %v17235_v45  ;;  %v15106_v12 = vpack.c.bf16 %v10057_v37, %v10053_v15  ;;  %v14686_v35 = vpack.c.bf16 %v8047_v5, %v8043_v1  ;;  %v10426_v15 = vld [vmem:[#allocation9 + $0x10e8] sm:$0xff]  ;;  %v8075_v5 = vld [vmem:[#allocation9 + $0x550] sm:$0xff] }
0x109c   :  { %14637 = vmatprep.subr.bf16.mxu0 %v14636_v30  ;;  %15099 = vmatpush1.bf16.msra.mxu1 %v15098_v63  ;;  %v10065_v30 = vld [vmem:[#allocation9 + $0xff0] sm:$0xff] }
0x109d   :  { %15101 = vmatprep.subr.bf16.mxu1 %v15100_v11  ;;  %v8051_v63 = vld [vmem:[#allocation9 + $0x490] sm:$0xff] }
0x109e   :  { %v16786_v39 = vpop.f32.mrb[84].mxu1  ;;  %v8055_v11 = vld [vmem:[#allocation9 + $0x4b0] sm:$0xff] }
0x109f   :  { %14639 = vmatpush1.bf16.msra.mxu0 %v14638_v55  ;;  %v16791_v16 = vpop.f32.mrb[85].mxu1  ;;  %v14690_v37 = vpack.c.bf16 %v8055_v11, %v8051_v63  ;;  %v14704_v63 = vpack.c.bf16 %v8088_v36, %v8084_v22  ;;  %v8083_v11 = vld [vmem:[#allocation9 + $0x590] sm:$0xff] }
0x10a0   :  { %14641 = vmatprep.subr.bf16.mxu0 %v14640_v20  ;;  %15103 = vmatpush1.bf16.msra.mxu1 %v15102_v8  ;;  %v15110_v20 = vpack.c.bf16 %v10065_v30, %v10061_v40  ;;  %v8064_v8 = vld [vmem:[#allocation9 + $0x4f8] sm:$0xff]  ;;  %v10421_v40 = vld [vmem:[#allocation9 + $0x10c0] sm:$0xff] }
0x10a1   :  { %15105 = vmatprep.subr.bf16.mxu1 %v15104_v13  ;;  %v10422_v13 = vld [vmem:[#allocation9 + $0x10c8] sm:$0xff]  ;;  %v14692_v47 = vpack.c.bf16 %v8064_v8, %v8060_v27  ;;  %v10425_v30 = vld [vmem:[#allocation9 + $0x10e0] sm:$0xff]  ;;  %v8092_v8 = vld [vmem:[#allocation9 + $0x5d8] sm:$0xff] }
0x10a2   :  { %v16796_v53 = vpop.f32.mrb[86].mxu1  ;;  %11165 = vmatmul.mubr.msk.f32.vlgmr.msra.gmra.mrb[120].mxu0 %vm3204_vm2, %v7496_v19  ;;  %v10449_v27 = vld [vmem:[#allocation9 + $0x11a0] sm:$0xff] }
0x10a3   :  { %v14714_v55 = vpack.c.bf16 %v16796_v53, %v16786_v39  ;;  %14643 = vmatpush1.bf16.msra.mxu0 %v14642_v2  ;;  %v16804_v9 = vpop.f32.mrb[87].mxu1  ;;  %8025 = vmatprep.mubr.f32.mxu0 %v17235_v45  ;;  %v8044_v2 = vld [vmem:[#allocation9 + $0x458] sm:$0xff] }
0x10a4   :  { %v14712_v14 = vpack.c.bf16 %v16804_v9, %v16791_v16  ;;  %14645 = vmatprep.subr.bf16.mxu0 %v14644_v0  ;;  %15107 = vmatpush1.bf16.msra.mxu1 %v15106_v12  ;;  %v15130_v0 = vpack.c.bf16 %v10401_v10, %v10397_v24  ;;  %v14684_v32 = vpack.c.bf16 %v8048_v31, %v8044_v2  ;;  %v8063_v12 = vld [vmem:[#allocation9 + $0x4f0] sm:$0xff]  ;;  %v10433_v2 = vld [vmem:[#allocation9 + $0x1120] sm:$0xff]  ;;  %v8076_v31 = vld [vmem:[#allocation9 + $0x558] sm:$0xff] }
0x10a5   :  { %15109 = vmatprep.subr.bf16.mxu1 %v15108_v57  ;;  %v15140_v57 = vpack.c.bf16 %v10426_v15, %v10422_v13  ;;  %v8071_v24 = vld [vmem:[#allocation9 + $0x530] sm:$0xff]  ;;  %v15144_v10 = vpack.c.bf16 %v10434_v51, %v10430_v28  ;;  %v14700_v1 = vpack.c.bf16 %v8080_v4, %v8076_v31  ;;  %v8096_v13 = vld [vmem:[#allocation9 + $0x5f8] sm:$0xff]  ;;  %v10457_v28 = vld [vmem:[#allocation9 + $0x11e0] sm:$0xff] }
0x10a6   :  { %v16812_v29 = vpop.f32.mrb[88].mxu1 }
0x10a7   :  { %14647 = vmatpush1.bf16.msra.mxu0 %v14646_v58  ;;  %v16817_v42 = vpop.f32.mrb[89].mxu1 }
0x10a8   :  { %15111 = vmatpush1.bf16.msra.mxu1 %v15110_v20  ;;  %14681 = vmatprep.subr.bf16.mxu0 %v14680_v54  ;;  %v15142_v54 = vpack.c.bf16 %v10425_v30, %v10421_v40  ;;  %v14708_v40 = vpack.c.bf16 %v8096_v13, %v8092_v8  ;;  %v8095_v30 = vld [vmem:[#allocation9 + $0x5f0] sm:$0xff] }
0x10a9   :  { %15129 = vmatprep.subr.bf16.mxu1 %v15128_v34  ;;  %v10429_v34 = vld [vmem:[#allocation9 + $0x1100] sm:$0xff] }
0x10aa   :  { %v16819_v56 = vpop.f32.mrb[90].mxu1  ;;  %11166 = vmatmul.mubr.msk.f32.vlgmr.msra.gmra.mrb[122].mxu0 %vm3204_vm2, %v7496_v19  ;;  %v8059_v19 = vld [vmem:[#allocation9 + $0x4d0] sm:$0xff] }
0x10ab   :  { %v14718_v58 = vpack.c.bf16 %v16819_v56, %v16812_v29  ;;  %v16824_v7 = vpop.f32.mrb[91].mxu1  ;;  %14683 = vmatpush1.bf16.msra.mxu0 %v14682_v62  ;;  %10221 = vmatmul.mubr.f32.vlgmr.msra.gmra.mrb[140].mxu1 %v16623_v3  ;;  %v14694_v20 = vpack.c.bf16 %v8063_v12, %v8059_v19  ;;  %v10442_v62 = vld [vmem:[#allocation9 + $0x1168] sm:$0xff]  ;;  %v14706_v19 = vpack.c.bf16 %v8087_v21, %v8083_v11 }
0x10ac   :  { %v14716_v52 = vpack.c.bf16 %v16824_v7, %v16817_v42  ;;  %15131 = vmatpush1.bf16.msra.mxu1 %v15130_v0  ;;  %14685 = vmatprep.subr.bf16.mxu0 %v14684_v32  ;;  %v14698_v0 = vpack.c.bf16 %v8071_v24, %v8067_v60  ;;  %v15146_v32 = vpack.c.bf16 %v10433_v2, %v10429_v34 }
0x10ad   :  { %10226 = vmatprep.mubr.f32.mxu1 %v17235_v45  ;;  %15133 = vmatprep.subr.bf16.mxu1 %v15132_v41  ;;  %v10437_v41 = vld [vmem:[#allocation9 + $0x1140] sm:$0xff]  ;;  %v15148_v33 = vpack.c.bf16 %v10442_v62, %v10438_v38  ;;  %v15158_v24 = vpack.c.bf16 %v10457_v28, %v10453_v50 }
0x10ae   :  { %8250 = vmatprep.mubr.f32.mxu0 %v17235_v45 }
0x10af   :  { %14687 = vmatpush1.bf16.msra.mxu0 %v14686_v35  ;;  %10227 = vmatmul.mubr.f32.gmra.mrb[142].mxu1 %v16627_v44  ;;  %v10450_v35 = vld [vmem:[#allocation9 + $0x11a8] sm:$0xff] }
0x10b0   :  { %15135 = vmatpush1.bf16.msra.mxu1 %v15134_v17  ;;  %14689 = vmatprep.subr.bf16.mxu0 %v14688_v49  ;;  %v14702_v17 = vpack.c.bf16 %v8079_v6, %v8075_v5  ;;  %v15150_v49 = vpack.c.bf16 %v10441_v23, %v10437_v41  ;;  %v15152_v26 = vpack.c.bf16 %v10450_v35, %v10446_v61 }
0x10b1   :  { %10232 = vmatprep.mubr.f32.mxu1 %v17235_v45  ;;  %15137 = vmatprep.subr.bf16.mxu1 %v15136_v25  ;;  %v10445_v25 = vld [vmem:[#allocation9 + $0x1180] sm:$0xff] }
0x10b2   :  { %v15154_v12 = vpack.c.bf16 %v10449_v27, %v10445_v25  ;;  %v16948_v25 = vld [vmem:[#allocation10 + $0x8] sm:$0xf] }
0x10b3   :  { %14691 = vmatpush1.bf16.msra.mxu0 %v14690_v37  ;;  %10233 = vmatmul.mubr.f32.gmra.mrb[144].mxu1 %v16633_v18  ;;  %v10454_v37 = vld [vmem:[#allocation9 + $0x11c8] sm:$0xff] }
0x10b4   :  { %15139 = vmatpush1.bf16.msra.mxu1 %v15138_v43  ;;  %14693 = vmatprep.subr.bf16.mxu0 %v14692_v47  ;;  %v10458_v43 = vld [vmem:[#allocation9 + $0x11e8] sm:$0xff] }
0x10b5   :  { %10238 = vmatprep.mubr.f32.mxu1 %v17235_v45  ;;  %15141 = vmatprep.subr.bf16.mxu1 %v15140_v57  ;;  %v8091_v57 = vld [vmem:[#allocation9 + $0x5d0] sm:$0xff]  ;;  %v15156_v48 = vpack.c.bf16 %v10458_v43, %v10454_v37 }
0x10b7   :  { %14695 = vmatpush1.bf16.msra.mxu0 %v14694_v20  ;;  %10239 = vmatmul.mubr.f32.gmra.mrb[146].mxu1 %v16639_v46 }
0x10b8   :  { %15143 = vmatpush1.bf16.msra.mxu1 %v15142_v54  ;;  %14697 = vmatprep.subr.bf16.mxu0 %v14696_v59  ;;  %v14710_v59 = vpack.c.bf16 %v8095_v30, %v8091_v57 }
0x10b9   :  { %15145 = vmatprep.subr.bf16.mxu1 %v15144_v10  ;;  %10525 = vmatprep.mubr.f32.mxu1 %v17235_v45 }
0x10bb   :  { %14699 = vmatpush1.bf16.msra.mxu0 %v14698_v0 }
0x10bc   :  { %15147 = vmatpush1.bf16.msra.mxu1 %v15146_v32  ;;  %14701 = vmatprep.subr.bf16.mxu0 %v14700_v1 }
0x10bd   :  { %15149 = vmatprep.subr.bf16.mxu1 %v15148_v33 }
0x10be   :  { %v16837_v15 = vpop.f32.mrb[92].mxu1 }
0x10bf   :  { %14703 = vmatpush1.bf16.msra.mxu0 %v14702_v17  ;;  %v16839_v47 = vpop.f32.mrb[93].mxu1 }
0x10c0   :  { %15151 = vmatpush1.bf16.msra.mxu1 %v15150_v49  ;;  %14705 = vmatprep.subr.bf16.mxu0 %v14704_v63 }
0x10c1   :  { %15153 = vmatprep.subr.bf16.mxu1 %v15152_v26 }
0x10c2   :  { %v16841_v51 = vpop.f32.mrb[94].mxu1 }
0x10c3   :  { %14707 = vmatpush1.bf16.msra.mxu0 %v14706_v19  ;;  %v16845_v54 = vpop.f32.mrb[95].mxu1 }
0x10c4   :  { %15155 = vmatpush1.bf16.msra.mxu1 %v15154_v12  ;;  %14709 = vmatprep.subr.bf16.mxu0 %v14708_v40 }
0x10c5   :  { %15157 = vmatprep.subr.bf16.mxu1 %v15156_v48 }
0x10c6   :  { %v16849_v34 = vpop.f32.mrb[96].mxu1 }
0x10c7   :  { %14711 = vmatpush1.bf16.msra.mxu0 %v14710_v59  ;;  %v16851_v10 = vpop.f32.mrb[97].mxu1 }
0x10c8   :  { %14713 = vmatprep.subr.bf16.mxu0 %v14712_v14  ;;  %15159 = vmatpush1.bf16.msra.mxu1 %v15158_v24 }
0x10ca   :  { %8251 = vmatmul.mubr.f32.vlgmr.msra.gmra.mrb[124].mxu0 %v16623_v3  ;;  %v16857_v2 = vpop.f32.mrb[98].mxu1 }
0x10cb   :  { %14715 = vmatpush1.bf16.msra.mxu0 %v14714_v55  ;;  %v16864_v4 = vpop.f32.mrb[99].mxu1  ;;  %10526 = vmatmul.mubr.f32.vlgmr.msra.gmra.mrb[148].mxu1 %v16623_v3 }
0x10cc   :  { %14717 = vmatprep.subr.bf16.mxu0 %v14716_v52  ;;  %8256 = vmatprep.mubr.f32.mxu0 %v17235_v45 }
0x10cd   :  { %10531 = vmatprep.mubr.f32.mxu1 %v17235_v45 }
0x10ce   :  { %8257 = vmatmul.mubr.f32.gmra.mrb[126].mxu0 %v16627_v44 }
0x10cf   :  { %14719 = vmatpush1.bf16.msra.mxu0 %v14718_v58  ;;  %10532 = vmatmul.mubr.f32.gmra.mrb[150].mxu1 %v16627_v44 }
0x10d0   :  { %8262 = vmatprep.mubr.f32.mxu0 %v17235_v45  ;;  %10537 = vmatprep.mubr.f32.mxu1 %v17235_v45 }
0x10d2   :  { %8263 = vmatmul.mubr.f32.gmra.mrb[128].mxu0 %v16633_v18 }
0x10d3   :  { %10538 = vmatmul.mubr.f32.gmra.mrb[152].mxu1 %v16633_v18  ;;  %8268 = vmatprep.mubr.f32.mxu0 %v17235_v45 }
0x10d4   :  { %10543 = vmatprep.mubr.f32.mxu1 %v17235_v45 }
0x10d6   :  { %8269 = vmatmul.mubr.f32.gmra.mrb[130].mxu0 %v16639_v46 }
0x10d7   :  { %10544 = vmatmul.mubr.f32.gmra.mrb[154].mxu1 %v16639_v46  ;;  %8344 = vmatprep.mubr.f32.mxu0 %v17235_v45 }
0x10da   :  { %11167 = vmatmul.mubr.msk.f32.vlgmr.msra.gmra.mrb[120].mxu0 %vm3204_vm2, %v16948_v25 }
0x10db   :  { %8415 = vmatprep.mubr.f32.mxu0 %v17235_v45 }
0x10de   :  { %v16888_v39 = vpop.f32.mrb[100].mxu1 }
0x10df   :  { %v16890_v53 = vpop.f32.mrb[101].mxu1 }
0x10e2   :  { %v16892_v55 = vpop.f32.mrb[102].mxu1 }
0x10e3   :  { %v16896_v14 = vpop.f32.mrb[103].mxu1 }
0x10e6   :  { %v16900_v42 = vpop.f32.mrb[104].mxu1 }
0x10e7   :  { %v16902_v56 = vpop.f32.mrb[105].mxu1 }
0x10ea   :  { %v16904_v58 = vpop.f32.mrb[106].mxu1 }
0x10eb   :  { %v16908_v52 = vpop.f32.mrb[107].mxu1 }
0x10fe   :  { %v16912_v62 = vpop.f32.mrb[108].mxu1 }
0x10ff   :  { %v16914_v0 = vpop.f32.mrb[109].mxu1 }
0x1102   :  { %v16916_v32 = vpop.f32.mrb[110].mxu1 }
0x1103   :  { %v16920_v5 = vpop.f32.mrb[111].mxu1 }
0x1106   :  { %v16924_v41 = vpop.f32.mrb[112].mxu1 }
0x1107   :  { %v16926_v33 = vpop.f32.mrb[113].mxu1 }
0x110a   :  { %v16928_v23 = vpop.f32.mrb[114].mxu1 }
0x110b   :  { %v16932_v36 = vpop.f32.mrb[115].mxu1 }
0x111e   :  { %v16936_v35 = vpop.f32.mrb[116].mxu1 }
0x111f   :  { %v16938_v17 = vpop.f32.mrb[117].mxu1 }
0x1122   :  { %v16940_v49 = vpop.f32.mrb[118].mxu1 }
0x1123   :  { %v16944_v11 = vpop.f32.mrb[119].mxu1 }
0x1126   :  { %v16950_v26 = vpop.f32.mrb[120].mxu1 }
0x1127   :  { %v16954_v27 = vpop.f32.mrb[121].mxu1 }
0x112a   :  { %v16957_v8 = vpop.f32.mrb[122].mxu1 }
0x112b   :  { %v16961_v37 = vpop.f32.mrb[123].mxu1 }
0x113e   :  { %v16965_v19 = vpop.f32.mrb[124].mxu1 }
0x113f   :  { %v16967_v12 = vpop.f32.mrb[125].mxu1 }
0x1142   :  { %v16969_v40 = vpop.f32.mrb[126].mxu1 }
0x1143   :  { %v16973_v30 = vpop.f32.mrb[127].mxu1 }
0x1146   :  { %v16977_v50 = vpop.f32.mrb[128].mxu1 }
0x1147   :  { %v16979_v28 = vpop.f32.mrb[129].mxu1 }
0x114a   :  { %v16981_v59 = vpop.f32.mrb[130].mxu1 }
0x114b   :  { %v16985_v13 = vpop.f32.mrb[131].mxu1 }
0x115e   :  { %v16989_v57 = vpop.f32.mrb[132].mxu1 }
0x115f   :  { %17252 = vst [vmem:[#allocation16_spill] sm:$0xff] %v16989_v57  ;;  %v16991_v63 = vpop.f32.mrb[133].mxu1 }
0x1162   :  { %v16993_v21 = vpop.f32.mrb[134].mxu1 }
0x1163   :  { %17253 = vst [vmem:[#allocation17_spill] sm:$0xff] %v16993_v21  ;;  %v16997_v22 = vpop.f32.mrb[135].mxu1 }
0x1166   :  { %v17001_v24 = vpop.f32.mrb[136].mxu1 }
0x1167   :  { %17254 = vst [vmem:[#allocation18_spill] sm:$0xff] %v17001_v24  ;;  %v17003_v1 = vpop.f32.mrb[137].mxu1 }
0x1168   :  { %17255 = vst [vmem:[#allocation19_spill] sm:$0xff] %v17003_v1 }
0x116a   :  { %v17005_v6 = vpop.f32.mrb[138].mxu1 }
0x116b   :  { %17256 = vst [vmem:[#allocation20_spill] sm:$0xff] %v17005_v6  ;;  %v17009_v7 = vpop.f32.mrb[139].mxu1 }
0x116c   :  { %17257 = vst [vmem:[#allocation21_spill] sm:$0xff] %v17009_v7 }
0x117e   :  { %v17013_v48 = vpop.f32.mrb[140].mxu1 }
0x117f   :  { %17258 = vst [vmem:[#allocation22_spill] sm:$0xff] %v17013_v48  ;;  %v17015_v9 = vpop.f32.mrb[141].mxu1 }
0x1180   :  { %17259 = vst [vmem:[#allocation23_spill] sm:$0xff] %v17015_v9 }
0x1182   :  { %v17017_v29 = vpop.f32.mrb[142].mxu1 }
0x1183   :  { %17260 = vst [vmem:[#allocation24_spill] sm:$0xff] %v17017_v29  ;;  %v17021_v31 = vpop.f32.mrb[143].mxu1 }
0x1184   :  { %17261 = vst [vmem:[#allocation25_spill] sm:$0xff] %v17021_v31 }
0x1186   :  { %v17025_v43 = vpop.f32.mrb[144].mxu1 }
0x1187   :  { %17262 = vst [vmem:[#allocation26_spill] sm:$0xff] %v17025_v43  ;;  %v17027_v45 = vpop.f32.mrb[145].mxu1 }
0x1188   :  { %17263 = vst [vmem:[#allocation27_spill] sm:$0xff] %v17027_v45 }
0x118a   :  { %v17029_v20 = vpop.f32.mrb[146].mxu1 }
0x118b   :  { %17264 = vst [vmem:[#allocation28_spill] sm:$0xff] %v17029_v20  ;;  %v17033_v60 = vpop.f32.mrb[147].mxu1 }
0x118c   :  { %17265 = vst [vmem:[#allocation29_spill] sm:$0xff] %v17033_v60 }
0x119d   :  { %v8252_v61 = vpop.f32.mrb[124].mxu0 }
0x119e   :  { %v8254_v48 = vpop.f32.mrb[125].mxu0  ;;  %v17037_v29 = vpop.f32.mrb[148].mxu1 }
0x119f   :  { %17266 = vst [vmem:[#allocation30_spill] sm:$0xff] %v17037_v29  ;;  %v17039_v6 = vpop.f32.mrb[149].mxu1 }
0x11a1   :  { %v8258_v16 = vpop.f32.mrb[126].mxu0 }
0x11a2   :  { %v14722_v9 = vpack.c.bf16 %v8258_v16, %v8252_v61  ;;  %v8260_v31 = vpop.f32.mrb[127].mxu0  ;;  %v17041_v1 = vpop.f32.mrb[150].mxu1 }
0x11a3   :  { %v14720_v7 = vpack.c.bf16 %v8260_v31, %v8254_v48  ;;  %v17045_v43 = vpop.f32.mrb[151].mxu1 }
0x11a4   :  { %v15192_v24 = vpack.c.bf16 %v17045_v43, %v17039_v6 }
0x11a5   :  { %v8264_v20 = vpop.f32.mrb[128].mxu0  ;;  %14721 = vmatprep.subr.bf16.mxu0 %v14720_v7 }
0x11a6   :  { %v8266_v45 = vpop.f32.mrb[129].mxu0  ;;  %14723 = vmatpush1.bf16.msra.mxu0 %v14722_v9  ;;  %v17049_v60 = vpop.f32.mrb[152].mxu1  ;;  %v17267_v9 = vpack.c.bf16 %v16845_v54, %v16839_v47  ;;  %v17272_v47 = vpack.c.bf16 %v16896_v14, %v16890_v53  ;;  %v8822_v54 = vld [vmem:[#allocation9 + $0x808] sm:$0xff]  ;;  %v17275_v14 = vpack.c.bf16 %v16904_v58, %v16900_v42 }
0x11a7   :  { %v17051_v57 = vpop.f32.mrb[153].mxu1  ;;  %v8834_v53 = vld [vmem:[#allocation9 + $0x868] sm:$0xff] }
0x11a8   :  { %v8850_v42 = vld [vmem:[#allocation9 + $0x8e8] sm:$0xff] }
0x11a9   :  { %v8270_v16 = vpop.f32.mrb[130].mxu0 }
0x11aa   :  { %v14726_v61 = vpack.c.bf16 %v8270_v16, %v8264_v20  ;;  %v8272_v21 = vpop.f32.mrb[131].mxu0  ;;  %v17053_v31 = vpop.f32.mrb[154].mxu1  ;;  %v17269_v20 = vmov 0.0   ;;  %v17271_v16 = vpack.c.bf16 %v16857_v2, %v16849_v34  ;;  %v8825_v2 = vld [vmem:[#allocation9 + $0x820] sm:$0xff] }
0x11ab   :  { %v14724_v48 = vpack.c.bf16 %v8272_v21, %v8266_v45  ;;  %v15198_v38 = vpack.c.bf16 %v17053_v31, %v17049_v60  ;;  %v17057_v29 = vpop.f32.mrb[155].mxu1  ;;  %v17268_v45 = vpack.c.bf16 %v16841_v51, %v16837_v15  ;;  %v17270_v21 = vpack.c.bf16 %v16864_v4, %v16851_v10  ;;  %v8821_v10 = vld [vmem:[#allocation9 + $0x800] sm:$0xff]  ;;  %v8830_v4 = vld [vmem:[#allocation9 + $0x848] sm:$0xff] }
0x11ac   :  { %v15196_v7 = vpack.c.bf16 %v17057_v29, %v17051_v57  ;;  %v17273_v15 = vpack.c.bf16 %v16892_v55, %v16888_v39  ;;  %v17274_v51 = vpack.c.bf16 %v16908_v52, %v16902_v56  ;;  %v8829_v39 = vld [vmem:[#allocation9 + $0x840] sm:$0xff] }
0x11ad   :  { %14725 = vmatprep.subr.bf16.mxu0 %v14724_v48  ;;  %v14810_v48 = vpack.c.bf16 %v8825_v2, %v8821_v10  ;;  %v8833_v55 = vld [vmem:[#allocation9 + $0x860] sm:$0xff]  ;;  %v8858_v10 = vld [vmem:[#allocation9 + $0x928] sm:$0xff] }
0x11ae   :  { %14727 = vmatpush1.bf16.msra.mxu0 %v14726_v61  ;;  %v8670_v61 = vld [vmem:[#allocation10 + $0xc] sm:$0xf]  ;;  %v14814_v56 = vpack.c.bf16 %v8833_v55, %v8829_v39  ;;  %v8861_v55 = vld [vmem:[#allocation9 + $0x940] sm:$0xff] }
0x11af   :  { %14793 = vmatprep.subr.bf16.mxu0 %v17267_v9  ;;  %v14812_v9 = vpack.c.bf16 %v8834_v53, %v8830_v4  ;;  %v8853_v4 = vld [vmem:[#allocation9 + $0x900] sm:$0xff] }
0x11b0   :  { %v8857_v53 = vld [vmem:[#allocation9 + $0x920] sm:$0xff] }
0x11b1   :  { %11168 = vmatmul.mubr.msk.f32.vlgmr.msra.gmra.mrb[122].mxu0 %vm3204_vm2, %v16948_v25  ;;  %v8826_v25 = vld [vmem:[#allocation9 + $0x828] sm:$0xff] }
0x11b2   :  { %14795 = vmatpush1.bf16.msra.mxu0 %v17268_v45  ;;  %8738 = vmatprep.mubr.f32.mxu0 %v17269_v20  ;;  %v14808_v34 = vpack.c.bf16 %v8826_v25, %v8822_v54  ;;  %v8838_v45 = vld [vmem:[#allocation9 + $0x888] sm:$0xff] }
0x11b3   :  { %14797 = vmatprep.subr.bf16.mxu0 %v17270_v21  ;;  %v8842_v21 = vld [vmem:[#allocation9 + $0x8a8] sm:$0xff] }
0x11b4   :  { %v14816_v52 = vpack.c.bf16 %v8842_v21, %v8838_v45  ;;  %v8846_v54 = vld [vmem:[#allocation9 + $0x8c8] sm:$0xff]  ;;  %v8865_v45 = vld [vmem:[#allocation9 + $0x960] sm:$0xff] }
0x11b5   :  { %v14820_v25 = vpack.c.bf16 %v8850_v42, %v8846_v54  ;;  %v8870_v21 = vld [vmem:[#allocation9 + $0x988] sm:$0xff]  ;;  %v8873_v54 = vld [vmem:[#allocation9 + $0x9a0] sm:$0xff] }
0x11b6   :  { %14799 = vmatpush1.bf16.msra.mxu0 %v17271_v16  ;;  %v8837_v16 = vld [vmem:[#allocation9 + $0x880] sm:$0xff]  ;;  %v8878_v42 = vld [vmem:[#allocation9 + $0x9c8] sm:$0xff] }
0x11b7   :  { %14801 = vmatprep.subr.bf16.mxu0 %v17272_v47  ;;  %v8841_v47 = vld [vmem:[#allocation9 + $0x8a0] sm:$0xff] }
0x11b8   :  { %v14818_v58 = vpack.c.bf16 %v8841_v47, %v8837_v16  ;;  %v8869_v47 = vld [vmem:[#allocation9 + $0x980] sm:$0xff] }
0x11b9   :  { %11169 = vmatmul.mubr.msk.f32.vlgmr.msra.gmra.mrb[120].mxu0 %vm3204_vm2, %v8670_v61 }
0x11ba   :  { %14803 = vmatpush1.bf16.msra.mxu0 %v17273_v15  ;;  %8809 = vmatprep.mubr.f32.mxu0 %v17269_v20  ;;  %v8845_v15 = vld [vmem:[#allocation9 + $0x8c0] sm:$0xff] }
0x11bb   :  { %14805 = vmatprep.subr.bf16.mxu0 %v17274_v51  ;;  %v8849_v51 = vld [vmem:[#allocation9 + $0x8e0] sm:$0xff] }
0x11be   :  { %14807 = vmatpush1.bf16.msra.mxu0 %v17275_v14  ;;  %v8862_v14 = vld [vmem:[#allocation9 + $0x948] sm:$0xff] }
0x11bf   :  { %14809 = vmatprep.subr.bf16.mxu0 %v14808_v34  ;;  %v8854_v34 = vld [vmem:[#allocation9 + $0x908] sm:$0xff] }
0x11c0   :  { %v14824_v2 = vpack.c.bf16 %v8858_v10, %v8854_v34  ;;  %v8881_v34 = vld [vmem:[#allocation9 + $0x9e0] sm:$0xff] }
0x11c1   :  { %11170 = vmatmul.mubr.msk.f32.vlgmr.msra.gmra.mrb[122].mxu0 %vm3204_vm2, %v8670_v61  ;;  %v14822_v61 = vpack.c.bf16 %v8849_v51, %v8845_v15  ;;  %v8877_v51 = vld [vmem:[#allocation9 + $0x9c0] sm:$0xff] }
0x11c2   :  { %14811 = vmatpush1.bf16.msra.mxu0 %v14810_v48  ;;  %8949 = vmatprep.mubr.f32.mxu0 %v17269_v20  ;;  %v8866_v48 = vld [vmem:[#allocation9 + $0x968] sm:$0xff]  ;;  %v14838_v10 = vpack.c.bf16 %v8881_v34, %v8877_v51  ;;  %v9221_v51 = vld [vmem:[#allocation9 + $0xa30] sm:$0xff]  ;;  %v9226_v34 = vld [vmem:[#allocation9 + $0xa58] sm:$0xff] }
0x11c3   :  { %14813 = vmatprep.subr.bf16.mxu0 %v14812_v9  ;;  %v14826_v9 = vpack.c.bf16 %v8857_v53, %v8853_v4  ;;  %v14828_v39 = vpack.c.bf16 %v8866_v48, %v8862_v14 }
0x11c6   :  { %14815 = vmatpush1.bf16.msra.mxu0 %v14814_v56  ;;  %v8874_v56 = vld [vmem:[#allocation9 + $0x9a8] sm:$0xff] }
0x11c7   :  { %14817 = vmatprep.subr.bf16.mxu0 %v14816_v52  ;;  %v14830_v52 = vpack.c.bf16 %v8865_v45, %v8861_v55  ;;  %v14832_v16 = vpack.c.bf16 %v8874_v56, %v8870_v21 }
0x11ca   :  { %14819 = vmatpush1.bf16.msra.mxu0 %v14818_v58  ;;  %v8882_v58 = vld [vmem:[#allocation9 + $0x9e8] sm:$0xff] }
0x11cb   :  { %14821 = vmatprep.subr.bf16.mxu0 %v14820_v25  ;;  %v14834_v25 = vpack.c.bf16 %v8873_v54, %v8869_v47  ;;  %v14836_v15 = vpack.c.bf16 %v8882_v58, %v8878_v42  ;;  %v9218_v47 = vld [vmem:[#allocation9 + $0xa18] sm:$0xff]  ;;  %v17277_v42 = vpack.c.bf16 %v16916_v32, %v16912_v62  ;;  %v17278_v58 = vpack.c.bf16 %v16932_v36, %v16926_v33  ;;  %v9225_v62 = vld [vmem:[#allocation9 + $0xa50] sm:$0xff] }
0x11cc   :  { %v9222_v54 = vld [vmem:[#allocation9 + $0xa38] sm:$0xff]  ;;  %v9229_v32 = vld [vmem:[#allocation9 + $0xa70] sm:$0xff] }
0x11cd   :  { %v14926_v33 = vpack.c.bf16 %v9229_v32, %v9225_v62  ;;  %v9269_v62 = vld [vmem:[#allocation9 + $0xbb0] sm:$0xff]  ;;  %v9274_v32 = vld [vmem:[#allocation9 + $0xbd8] sm:$0xff] }
0x11ce   :  { %14823 = vmatpush1.bf16.msra.mxu0 %v14822_v61 }
0x11cf   :  { %14825 = vmatprep.subr.bf16.mxu0 %v14824_v2 }
0x11d2   :  { %14827 = vmatpush1.bf16.msra.mxu0 %v14826_v9 }
0x11d3   :  { %14829 = vmatprep.subr.bf16.mxu0 %v14828_v39 }
0x11d6   :  { %14831 = vmatpush1.bf16.msra.mxu0 %v14830_v52  ;;  %v9064_v52 = vld [vmem:[#allocation10 + $0x10] sm:$0xf] }
0x11d7   :  { %14833 = vmatprep.subr.bf16.mxu0 %v14832_v16  ;;  %v17276_v16 = vpack.c.bf16 %v16920_v5, %v16914_v0  ;;  %v9230_v0 = vld [vmem:[#allocation9 + $0xa78] sm:$0xff]  ;;  %v17279_v5 = vpack.c.bf16 %v16928_v23, %v16924_v41 }
0x11d8   :  { %v9246_v41 = vld [vmem:[#allocation9 + $0xaf8] sm:$0xff] }
0x11da   :  { %14835 = vmatpush1.bf16.msra.mxu0 %v14834_v25  ;;  %v14920_v25 = vpack.c.bf16 %v9222_v54, %v9218_v47  ;;  %v9253_v47 = vld [vmem:[#allocation9 + $0xb30] sm:$0xff]  ;;  %v9258_v54 = vld [vmem:[#allocation9 + $0xb58] sm:$0xff] }
0x11db   :  { %14837 = vmatprep.subr.bf16.mxu0 %v14836_v15  ;;  %v9217_v15 = vld [vmem:[#allocation9 + $0xa10] sm:$0xff] }
0x11de   :  { %14839 = vmatpush1.bf16.msra.mxu0 %v14838_v10  ;;  %v14922_v10 = vpack.c.bf16 %v9221_v51, %v9217_v15  ;;  %v9257_v15 = vld [vmem:[#allocation9 + $0xb50] sm:$0xff] }
0x11df   :  { %v9261_v51 = vld [vmem:[#allocation9 + $0xb70] sm:$0xff] }
0x11e1   :  { %8950 = vmatmul.mubr.f32.vlgmr.msra.gmra.mrb[132].mxu0 %v16623_v3 }
0x11e2   :  { %8955 = vmatprep.mubr.f32.mxu0 %v17269_v20 }
0x11e5   :  { %8956 = vmatmul.mubr.f32.gmra.mrb[134].mxu0 %v16627_v44 }
0x11e6   :  { %8961 = vmatprep.mubr.f32.mxu0 %v17269_v20 }
0x11e9   :  { %8962 = vmatmul.mubr.f32.gmra.mrb[136].mxu0 %v16633_v18 }
0x11ea   :  { %8967 = vmatprep.mubr.f32.mxu0 %v17269_v20 }
0x11ed   :  { %8968 = vmatmul.mubr.f32.gmra.mrb[138].mxu0 %v16639_v46 }
0x11ee   :  { %9132 = vmatprep.mubr.f32.mxu0 %v17269_v20 }
0x12b4   :  { %v8951_v61 = vpop.f32.mrb[132].mxu0 }
0x12b5   :  { %v8953_v2 = vpop.f32.mrb[133].mxu0 }
0x12b8   :  { %v8957_v4 = vpop.f32.mrb[134].mxu0 }
0x12b9   :  { %v14874_v53 = vpack.c.bf16 %v8957_v4, %v8951_v61  ;;  %v8959_v14 = vpop.f32.mrb[135].mxu0  ;;  %v14924_v61 = vpack.c.bf16 %v9230_v0, %v9226_v34  ;;  %v9238_v4 = vld [vmem:[#allocation9 + $0xab8] sm:$0xff] }
0x12ba   :  { %v14872_v48 = vpack.c.bf16 %v8959_v14, %v8953_v2  ;;  %v9234_v2 = vld [vmem:[#allocation9 + $0xa98] sm:$0xff]  ;;  %v9237_v14 = vld [vmem:[#allocation9 + $0xab0] sm:$0xff] }
0x12bb   :  { %v14928_v36 = vpack.c.bf16 %v9238_v4, %v9234_v2  ;;  %v9266_v34 = vld [vmem:[#allocation9 + $0xb98] sm:$0xff] }
0x12bc   :  { %v8963_v9 = vpop.f32.mrb[136].mxu0  ;;  %14873 = vmatprep.subr.bf16.mxu0 %v14872_v48  ;;  %v9242_v48 = vld [vmem:[#allocation9 + $0xad8] sm:$0xff] }
0x12bd   :  { %v8965_v39 = vpop.f32.mrb[137].mxu0  ;;  %14875 = vmatpush1.bf16.msra.mxu0 %v14874_v53  ;;  %v9233_v53 = vld [vmem:[#allocation9 + $0xa90] sm:$0xff]  ;;  %v9270_v0 = vld [vmem:[#allocation9 + $0xbb8] sm:$0xff] }
0x12be   :  { %v14930_v23 = vpack.c.bf16 %v9237_v14, %v9233_v53  ;;  %v9278_v2 = vld [vmem:[#allocation9 + $0xbf8] sm:$0xff]  ;;  %v9277_v53 = vld [vmem:[#allocation9 + $0xbf0] sm:$0xff] }
0x12c0   :  { %v8969_v55 = vpop.f32.mrb[138].mxu0 }
0x12c1   :  { %v14878_v45 = vpack.c.bf16 %v8969_v55, %v8963_v9  ;;  %v8971_v21 = vpop.f32.mrb[139].mxu0  ;;  %v14932_v9 = vpack.c.bf16 %v9246_v41, %v9242_v48  ;;  %v9245_v55 = vld [vmem:[#allocation9 + $0xaf0] sm:$0xff]  ;;  %v17280_v48 = vpack.c.bf16 %v16944_v11, %v16938_v17  ;;  %v17281_v41 = vpack.c.bf16 %v16940_v49, %v16936_v35 }
0x12c2   :  { %v14876_v56 = vpack.c.bf16 %v8971_v21, %v8965_v39  ;;  %v9241_v39 = vld [vmem:[#allocation9 + $0xad0] sm:$0xff]  ;;  %v9254_v21 = vld [vmem:[#allocation9 + $0xb38] sm:$0xff] }
0x12c3   :  { %v9458_v35 = vld [vmem:[#allocation10 + $0x14] sm:$0xf] }
0x12c4   :  { %14877 = vmatprep.subr.bf16.mxu0 %v14876_v56  ;;  %v14934_v56 = vpack.c.bf16 %v9245_v55, %v9241_v39 }
0x12c5   :  { %14879 = vmatpush1.bf16.msra.mxu0 %v14878_v45  ;;  %v9250_v45 = vld [vmem:[#allocation9 + $0xb18] sm:$0xff] }
0x12c6   :  { %14881 = vmatprep.subr.bf16.mxu0 %v17276_v16  ;;  %v9249_v16 = vld [vmem:[#allocation9 + $0xb10] sm:$0xff] }
0x12c8   :  { %11171 = vmatmul.mubr.msk.f32.vlgmr.msra.gmra.mrb[120].mxu0 %vm3204_vm2, %v9064_v52 }
0x12c9   :  { %14883 = vmatpush1.bf16.msra.mxu0 %v17277_v42  ;;  %9203 = vmatprep.mubr.f32.mxu0 %v17269_v20  ;;  %v9262_v42 = vld [vmem:[#allocation9 + $0xb78] sm:$0xff] }
0x12ca   :  { %14885 = vmatprep.subr.bf16.mxu0 %v17278_v58  ;;  %v14938_v58 = vpack.c.bf16 %v9253_v47, %v9249_v16  ;;  %v17285_v16 = vpack.c.bf16 %v16969_v40, %v16965_v19  ;;  %v17286_v47 = vpack.c.bf16 %v16985_v13, %v16979_v28  ;;  %v17289_v19 = vld [vmem:[#allocation17_spill] sm:$0xff]  ;;  %v17290_v40 = vld [vmem:[#allocation16_spill] sm:$0xff]  ;;  %v17293_v28 = vld [vmem:[#allocation19_spill] sm:$0xff] }
0x12cb   :  { %v17292_v13 = vld [vmem:[#allocation21_spill] sm:$0xff] }
0x12cd   :  { %14887 = vmatpush1.bf16.msra.mxu0 %v17279_v5  ;;  %v14942_v5 = vpack.c.bf16 %v9261_v51, %v9257_v15  ;;  %v17294_v15 = vpack.c.bf16 %v17292_v13, %v17293_v28  ;;  %v10007_v51 = vld [vmem:[#allocation9 + $0xe20] sm:$0xff] }
0x12ce   :  { %14921 = vmatprep.subr.bf16.mxu0 %v14920_v25  ;;  %v14940_v25 = vpack.c.bf16 %v9262_v42, %v9258_v54  ;;  %v17287_v54 = vpack.c.bf16 %v16981_v59, %v16977_v50  ;;  %v9852_v42 = vld [vmem:[#allocation10 + $0x18] sm:$0xf]  ;;  %v10003_v59 = vld [vmem:[#allocation9 + $0xe00] sm:$0xff] }
0x12cf   :  { %v10059_v13 = vld [vmem:[#allocation9 + $0xfc0] sm:$0xff] }
0x12d0   :  { %11172 = vmatmul.mubr.msk.f32.vlgmr.msra.gmra.mrb[122].mxu0 %vm3204_vm2, %v9064_v52  ;;  %v14936_v52 = vpack.c.bf16 %v9254_v21, %v9250_v45  ;;  %v10063_v28 = vld [vmem:[#allocation9 + $0xfe0] sm:$0xff] }
0x12d1   :  { %14923 = vmatpush1.bf16.msra.mxu0 %v14922_v10  ;;  %9432 = vmatprep.mubr.f32.mxu0 %v17269_v20  ;;  %v14944_v10 = vpack.c.bf16 %v9270_v0, %v9266_v34  ;;  %v10012_v34 = vld [vmem:[#allocation9 + $0xe48] sm:$0xff]  ;;  %v17296_v0 = vld [vmem:[#allocation18_spill] sm:$0xff] }
0x12d2   :  { %14925 = vmatprep.subr.bf16.mxu0 %v14924_v61  ;;  %v9265_v61 = vld [vmem:[#allocation9 + $0xb90] sm:$0xff] }
0x12d3   :  { %v14946_v4 = vpack.c.bf16 %v9269_v62, %v9265_v61  ;;  %v10011_v62 = vld [vmem:[#allocation9 + $0xe40] sm:$0xff] }
0x12d5   :  { %14927 = vmatpush1.bf16.msra.mxu0 %v14926_v33  ;;  %v14948_v33 = vpack.c.bf16 %v9278_v2, %v9274_v32  ;;  %v10015_v32 = vld [vmem:[#allocation9 + $0xe60] sm:$0xff]  ;;  %v10020_v2 = vld [vmem:[#allocation9 + $0xe88] sm:$0xff] }
0x12d6   :  { %14929 = vmatprep.subr.bf16.mxu0 %v14928_v36  ;;  %v9273_v36 = vld [vmem:[#allocation9 + $0xbd0] sm:$0xff] }
0x12d7   :  { %v14950_v14 = vpack.c.bf16 %v9277_v53, %v9273_v36  ;;  %v10019_v53 = vld [vmem:[#allocation9 + $0xe80] sm:$0xff] }
0x12d9   :  { %14931 = vmatpush1.bf16.msra.mxu0 %v14930_v23  ;;  %v17282_v23 = vpack.c.bf16 %v16961_v37, %v16954_v27 }
0x12da   :  { %14933 = vmatprep.subr.bf16.mxu0 %v14932_v9  ;;  %v17283_v9 = vpack.c.bf16 %v16957_v8, %v16950_v26 }
0x12dd   :  { %14935 = vmatpush1.bf16.msra.mxu0 %v14934_v56 }
0x12de   :  { %14937 = vmatprep.subr.bf16.mxu0 %v14936_v52  ;;  %v17284_v52 = vpack.c.bf16 %v16973_v30, %v16967_v12  ;;  %v17288_v12 = vpack.c.bf16 %v16997_v22, %v16991_v63  ;;  %v10004_v30 = vld [vmem:[#allocation9 + $0xe08] sm:$0xff] }
0x12df   :  { %v10016_v22 = vld [vmem:[#allocation9 + $0xe68] sm:$0xff] }
0x12e0   :  { %v17295_v63 = vld [vmem:[#allocation20_spill] sm:$0xff]  ;;  %v15052_v61 = vpack.c.bf16 %v10016_v22, %v10012_v34 }
0x12e1   :  { %14939 = vmatpush1.bf16.msra.mxu0 %v14938_v58  ;;  %v10008_v58 = vld [vmem:[#allocation9 + $0xe28] sm:$0xff] }
0x12e2   :  { %14941 = vmatprep.subr.bf16.mxu0 %v14940_v25  ;;  %v17291_v25 = vpack.c.bf16 %v17289_v19, %v17290_v40  ;;  %v15048_v50 = vpack.c.bf16 %v10008_v58, %v10004_v30  ;;  %v10055_v30 = vld [vmem:[#allocation9 + $0xfa0] sm:$0xff]  ;;  %v10060_v58 = vld [vmem:[#allocation9 + $0xfc8] sm:$0xff] }
0x12e3   :  { %v10064_v19 = vld [vmem:[#allocation9 + $0xfe8] sm:$0xff] }
0x12e5   :  { %14943 = vmatpush1.bf16.msra.mxu0 %v14942_v5  ;;  %v17297_v5 = vpack.c.bf16 %v17295_v63, %v17296_v0 }
0x12e6   :  { %14945 = vmatprep.subr.bf16.mxu0 %v14944_v10  ;;  %v15050_v10 = vpack.c.bf16 %v10007_v51, %v10003_v59 }
0x12e9   :  { %14947 = vmatpush1.bf16.msra.mxu0 %v14946_v4  ;;  %v10024_v4 = vld [vmem:[#allocation9 + $0xea8] sm:$0xff] }
0x12ea   :  { %14949 = vmatprep.subr.bf16.mxu0 %v14948_v33  ;;  %v15054_v33 = vpack.c.bf16 %v10015_v32, %v10011_v62  ;;  %v15056_v36 = vpack.c.bf16 %v10024_v4, %v10020_v2  ;;  %v10246_v2 = vld [vmem:[#allocation10 + $0x1c] sm:$0xf]  ;;  %v17298_v4 = vld [vmem:[#allocation25_spill] sm:$0xff] }
0x12ed   :  { %14951 = vmatpush1.bf16.msra.mxu0 %v14950_v14  ;;  %v10023_v14 = vld [vmem:[#allocation9 + $0xea0] sm:$0xff] }
0x12ee   :  { %14953 = vmatprep.subr.bf16.mxu0 %v17280_v48  ;;  %v10028_v48 = vld [vmem:[#allocation9 + $0xec8] sm:$0xff] }
0x12f0   :  { %9433 = vmatmul.mubr.f32.vlgmr.msra.gmra.mrb[140].mxu0 %v16623_v3 }
0x12f1   :  { %14955 = vmatpush1.bf16.msra.mxu0 %v17281_v41  ;;  %9438 = vmatprep.mubr.f32.mxu0 %v17269_v20  ;;  %v10032_v41 = vld [vmem:[#allocation9 + $0xee8] sm:$0xff] }
0x12f2   :  { %14957 = vmatprep.subr.bf16.mxu0 %v17282_v23  ;;  %v15058_v23 = vpack.c.bf16 %v10023_v14, %v10019_v53  ;;  %v10400_v53 = vld [vmem:[#allocation9 + $0x1018] sm:$0xff] }
0x12f3   :  { %v10404_v14 = vld [vmem:[#allocation9 + $0x1038] sm:$0xff] }
0x12f4   :  { %9439 = vmatmul.mubr.f32.gmra.mrb[142].mxu0 %v16627_v44 }
0x12f5   :  { %14959 = vmatpush1.bf16.msra.mxu0 %v17283_v9  ;;  %9444 = vmatprep.mubr.f32.mxu0 %v17269_v20  ;;  %v15060_v9 = vpack.c.bf16 %v10032_v41, %v10028_v48  ;;  %v17301_v48 = vld [vmem:[#allocation24_spill] sm:$0xff]  ;;  %v17302_v41 = vld [vmem:[#allocation22_spill] sm:$0xff] }
0x12f8   :  { %9445 = vmatmul.mubr.f32.gmra.mrb[144].mxu0 %v16633_v18 }
0x12f9   :  { %9450 = vmatprep.mubr.f32.mxu0 %v17269_v20 }
0x12fc   :  { %9451 = vmatmul.mubr.f32.gmra.mrb[146].mxu0 %v16639_v46 }
0x12fd   :  { %9526 = vmatprep.mubr.f32.mxu0 %v17269_v20 }
0x1300   :  { %11173 = vmatmul.mubr.msk.f32.vlgmr.msra.gmra.mrb[120].mxu0 %vm3204_vm2, %v9458_v35 }
0x1301   :  { %9597 = vmatprep.mubr.f32.mxu0 %v17269_v20 }
0x13c3   :  { %v9434_v17 = vpop.f32.mrb[140].mxu0 }
0x13c4   :  { %v9436_v49 = vpop.f32.mrb[141].mxu0 }
0x13c7   :  { %v9440_v11 = vpop.f32.mrb[142].mxu0 }
0x13c8   :  { %v14962_v26 = vpack.c.bf16 %v9440_v11, %v9434_v17  ;;  %v9442_v27 = vpop.f32.mrb[143].mxu0  ;;  %v10031_v17 = vld [vmem:[#allocation9 + $0xee0] sm:$0xff]  ;;  %v10040_v11 = vld [vmem:[#allocation9 + $0xf28] sm:$0xff] }
0x13c9   :  { %v14960_v8 = vpack.c.bf16 %v9442_v27, %v9436_v49  ;;  %v10036_v49 = vld [vmem:[#allocation9 + $0xf08] sm:$0xff] }
0x13ca   :  { %v15064_v27 = vpack.c.bf16 %v10040_v11, %v10036_v49  ;;  %v15160_v49 = vpack.c.bf16 %v10404_v14, %v10400_v53  ;;  %v10399_v11 = vld [vmem:[#allocation9 + $0x1010] sm:$0xff]  ;;  %v10456_v14 = vld [vmem:[#allocation9 + $0x11d8] sm:$0xff] }
0x13cb   :  { %v9446_v37 = vpop.f32.mrb[144].mxu0  ;;  %14961 = vmatprep.subr.bf16.mxu0 %v14960_v8  ;;  %v10035_v8 = vld [vmem:[#allocation9 + $0xf00] sm:$0xff]  ;;  %v10451_v53 = vld [vmem:[#allocation9 + $0x11b0] sm:$0xff] }
0x13cc   :  { %v9448_v39 = vpop.f32.mrb[145].mxu0  ;;  %14963 = vmatpush1.bf16.msra.mxu0 %v14962_v26 }
0x13cf   :  { %v9452_v55 = vpop.f32.mrb[146].mxu0 }
0x13d0   :  { %v14966_v45 = vpack.c.bf16 %v9452_v55, %v9446_v37  ;;  %v9454_v21 = vpop.f32.mrb[147].mxu0  ;;  %v10039_v37 = vld [vmem:[#allocation9 + $0xf20] sm:$0xff]  ;;  %v10048_v55 = vld [vmem:[#allocation9 + $0xf68] sm:$0xff] }
0x13d1   :  { %v14964_v56 = vpack.c.bf16 %v9454_v21, %v9448_v39  ;;  %v10044_v39 = vld [vmem:[#allocation9 + $0xf48] sm:$0xff] }
0x13d2   :  { %v15068_v21 = vpack.c.bf16 %v10048_v55, %v10044_v39  ;;  %v17308_v39 = vld [vmem:[#allocation26_spill] sm:$0xff] }
0x13d3   :  { %14965 = vmatprep.subr.bf16.mxu0 %v14964_v56  ;;  %v10043_v56 = vld [vmem:[#allocation9 + $0xf40] sm:$0xff] }
0x13d4   :  { %14967 = vmatpush1.bf16.msra.mxu0 %v14966_v45  ;;  %v15066_v45 = vpack.c.bf16 %v10039_v37, %v10035_v8  ;;  %v10412_v8 = vld [vmem:[#allocation9 + $0x1078] sm:$0xff]  ;;  %v17307_v37 = vld [vmem:[#allocation28_spill] sm:$0xff] }
0x13d5   :  { %15033 = vmatprep.subr.bf16.mxu0 %v17284_v52  ;;  %v10047_v52 = vld [vmem:[#allocation9 + $0xf60] sm:$0xff]  ;;  %v17309_v55 = vpack.c.bf16 %v17307_v37, %v17308_v39 }
0x13d7   :  { %11174 = vmatmul.mubr.msk.f32.vlgmr.msra.gmra.mrb[122].mxu0 %vm3204_vm2, %v9458_v35  ;;  %v10027_v35 = vld [vmem:[#allocation9 + $0xec0] sm:$0xff] }
0x13d8   :  { %15035 = vmatpush1.bf16.msra.mxu0 %v17285_v16  ;;  %9920 = vmatprep.mubr.f32.mxu0 %v17269_v20  ;;  %v15062_v26 = vpack.c.bf16 %v10031_v17, %v10027_v35  ;;  %v10052_v16 = vld [vmem:[#allocation9 + $0xf88] sm:$0xff]  ;;  %v17305_v35 = vld [vmem:[#allocation27_spill] sm:$0xff] }
0x13d9   :  { %15037 = vmatprep.subr.bf16.mxu0 %v17286_v47  ;;  %v10056_v47 = vld [vmem:[#allocation9 + $0xfa8] sm:$0xff] }
0x13dc   :  { %15039 = vmatpush1.bf16.msra.mxu0 %v17287_v54  ;;  %v15070_v54 = vpack.c.bf16 %v10047_v52, %v10043_v56  ;;  %v10407_v56 = vld [vmem:[#allocation9 + $0x1050] sm:$0xff] }
0x13dd   :  { %15041 = vmatprep.subr.bf16.mxu0 %v17288_v12  ;;  %v10051_v12 = vld [vmem:[#allocation9 + $0xf80] sm:$0xff]  ;;  %v10411_v52 = vld [vmem:[#allocation9 + $0x1070] sm:$0xff] }
0x13de   :  { %v15074_v40 = vpack.c.bf16 %v10055_v30, %v10051_v12  ;;  %v10415_v12 = vld [vmem:[#allocation9 + $0x1090] sm:$0xff] }
0x13df   :  { %11175 = vmatmul.mubr.msk.f32.vlgmr.msra.gmra.mrb[120].mxu0 %vm3204_vm2, %v9852_v42  ;;  %v10419_v30 = vld [vmem:[#allocation9 + $0x10b0] sm:$0xff] }
0x13e0   :  { %15043 = vmatpush1.bf16.msra.mxu0 %v17291_v25  ;;  %9991 = vmatprep.mubr.f32.mxu0 %v17269_v20  ;;  %v15076_v25 = vpack.c.bf16 %v10064_v19, %v10060_v58  ;;  %v10424_v58 = vld [vmem:[#allocation9 + $0x10d8] sm:$0xff] }
0x13e1   :  { %15045 = vmatprep.subr.bf16.mxu0 %v17294_v15  ;;  %v15078_v15 = vpack.c.bf16 %v10063_v28, %v10059_v13  ;;  %v10428_v19 = vld [vmem:[#allocation9 + $0x10f8] sm:$0xff]  ;;  %v10423_v13 = vld [vmem:[#allocation9 + $0x10d0] sm:$0xff] }
0x13e2   :  { %v10427_v28 = vld [vmem:[#allocation9 + $0x10f0] sm:$0xff] }
0x13e4   :  { %15047 = vmatpush1.bf16.msra.mxu0 %v17297_v5 }
0x13e5   :  { %15049 = vmatprep.subr.bf16.mxu0 %v15048_v50 }
0x13e7   :  { %11176 = vmatmul.mubr.msk.f32.vlgmr.msra.gmra.mrb[122].mxu0 %vm3204_vm2, %v9852_v42  ;;  %v15072_v42 = vpack.c.bf16 %v10056_v47, %v10052_v16  ;;  %v10416_v16 = vld [vmem:[#allocation9 + $0x1098] sm:$0xff] }
0x13e8   :  { %15051 = vmatpush1.bf16.msra.mxu0 %v15050_v10  ;;  %10131 = vmatprep.mubr.f32.mxu0 %v17269_v20  ;;  %v10420_v47 = vld [vmem:[#allocation9 + $0x10b8] sm:$0xff] }
0x13e9   :  { %15053 = vmatprep.subr.bf16.mxu0 %v15052_v61 }
0x13ec   :  { %15055 = vmatpush1.bf16.msra.mxu0 %v15054_v33  ;;  %v17299_v33 = vld [vmem:[#allocation23_spill] sm:$0xff] }
0x13ed   :  { %15057 = vmatprep.subr.bf16.mxu0 %v15056_v36  ;;  %v17300_v36 = vpack.c.bf16 %v17298_v4, %v17299_v33 }
0x13f0   :  { %15059 = vmatpush1.bf16.msra.mxu0 %v15058_v23  ;;  %v17303_v23 = vpack.c.bf16 %v17301_v48, %v17302_v41  ;;  %v10460_v48 = vld [vmem:[#allocation9 + $0x11f8] sm:$0xff] }
0x13f1   :  { %15061 = vmatprep.subr.bf16.mxu0 %v15060_v9  ;;  %v17304_v9 = vld [vmem:[#allocation29_spill] sm:$0xff] }
0x13f2   :  { %v17306_v17 = vpack.c.bf16 %v17304_v9, %v17305_v35  ;;  %v10455_v9 = vld [vmem:[#allocation9 + $0x11d0] sm:$0xff] }
0x13f3   :  { %v10459_v35 = vld [vmem:[#allocation9 + $0x11f0] sm:$0xff] }
0x13f4   :  { %15063 = vmatpush1.bf16.msra.mxu0 %v15062_v26  ;;  %v10403_v26 = vld [vmem:[#allocation9 + $0x1030] sm:$0xff] }
0x13f5   :  { %15065 = vmatprep.subr.bf16.mxu0 %v15064_v27  ;;  %v10408_v27 = vld [vmem:[#allocation9 + $0x1058] sm:$0xff] }
0x13f8   :  { %15067 = vmatpush1.bf16.msra.mxu0 %v15066_v45  ;;  %v15162_v45 = vpack.c.bf16 %v10403_v26, %v10399_v11 }
0x13f9   :  { %15069 = vmatprep.subr.bf16.mxu0 %v15068_v21  ;;  %v15164_v21 = vpack.c.bf16 %v10412_v8, %v10408_v27 }
0x13fc   :  { %15071 = vmatpush1.bf16.msra.mxu0 %v15070_v54  ;;  %v15166_v54 = vpack.c.bf16 %v10411_v52, %v10407_v56 }
0x13fd   :  { %15073 = vmatprep.subr.bf16.mxu0 %v15072_v42  ;;  %v15168_v42 = vpack.c.bf16 %v10420_v47, %v10416_v16 }
0x1400   :  { %15075 = vmatpush1.bf16.msra.mxu0 %v15074_v40  ;;  %v15170_v40 = vpack.c.bf16 %v10419_v30, %v10415_v12 }
0x1401   :  { %15077 = vmatprep.subr.bf16.mxu0 %v15076_v25  ;;  %v15172_v25 = vpack.c.bf16 %v10428_v19, %v10424_v58 }
0x1404   :  { %15079 = vmatpush1.bf16.msra.mxu0 %v15078_v15  ;;  %v10432_v15 = vld [vmem:[#allocation9 + $0x1118] sm:$0xff] }
0x1407   :  { %10132 = vmatmul.mubr.f32.vlgmr.msra.gmra.mrb[148].mxu0 %v16623_v3 }
0x1408   :  { %10137 = vmatprep.mubr.f32.mxu0 %v17269_v20 }
0x140b   :  { %10138 = vmatmul.mubr.f32.gmra.mrb[150].mxu0 %v16627_v44 }
0x140c   :  { %10143 = vmatprep.mubr.f32.mxu0 %v17269_v20 }
0x140f   :  { %10144 = vmatmul.mubr.f32.gmra.mrb[152].mxu0 %v16633_v18 }
0x1410   :  { %10149 = vmatprep.mubr.f32.mxu0 %v17269_v20 }
0x1413   :  { %10150 = vmatmul.mubr.f32.gmra.mrb[154].mxu0 %v16639_v46 }
0x1414   :  { %10314 = vmatprep.mubr.f32.mxu0 %v17269_v20 }
0x14da   :  { %v10133_v50 = vpop.f32.mrb[148].mxu0 }
0x14db   :  { %v10135_v59 = vpop.f32.mrb[149].mxu0 }
0x14de   :  { %v10139_v51 = vpop.f32.mrb[150].mxu0 }
0x14df   :  { %v15114_v34 = vpack.c.bf16 %v10139_v51, %v10133_v50  ;;  %v10141_v22 = vpop.f32.mrb[151].mxu0  ;;  %v10436_v50 = vld [vmem:[#allocation9 + $0x1138] sm:$0xff] }
0x14e0   :  { %v15112_v63 = vpack.c.bf16 %v10141_v22, %v10135_v59  ;;  %v15174_v59 = vpack.c.bf16 %v10427_v28, %v10423_v13  ;;  %v15176_v51 = vpack.c.bf16 %v10436_v50, %v10432_v15  ;;  %v10435_v22 = vld [vmem:[#allocation9 + $0x1130] sm:$0xff] }
0x14e2   :  { %v10145_v0 = vpop.f32.mrb[152].mxu0  ;;  %15113 = vmatprep.subr.bf16.mxu0 %v15112_v63  ;;  %v10440_v63 = vld [vmem:[#allocation9 + $0x1158] sm:$0xff] }
0x14e3   :  { %v10147_v5 = vpop.f32.mrb[153].mxu0  ;;  %15115 = vmatpush1.bf16.msra.mxu0 %v15114_v34  ;;  %v10431_v34 = vld [vmem:[#allocation9 + $0x1110] sm:$0xff] }
0x14e6   :  { %v10151_v10 = vpop.f32.mrb[154].mxu0 }
0x14e7   :  { %v15118_v61 = vpack.c.bf16 %v10151_v10, %v10145_v0  ;;  %v10153_v62 = vpop.f32.mrb[155].mxu0  ;;  %v10444_v0 = vld [vmem:[#allocation9 + $0x1178] sm:$0xff] }
0x14e8   :  { %v15116_v32 = vpack.c.bf16 %v10153_v62, %v10147_v5  ;;  %v15178_v5 = vpack.c.bf16 %v10435_v22, %v10431_v34  ;;  %v15180_v10 = vpack.c.bf16 %v10444_v0, %v10440_v63  ;;  %v10443_v62 = vld [vmem:[#allocation9 + $0x1170] sm:$0xff] }
0x14ea   :  { %15117 = vmatprep.subr.bf16.mxu0 %v15116_v32  ;;  %v10448_v32 = vld [vmem:[#allocation9 + $0x1198] sm:$0xff] }
0x14eb   :  { %15119 = vmatpush1.bf16.msra.mxu0 %v15118_v61  ;;  %v10439_v61 = vld [vmem:[#allocation9 + $0x1150] sm:$0xff] }
0x14ec   :  { %15121 = vmatprep.subr.bf16.mxu0 %v17300_v36  ;;  %v15182_v4 = vpack.c.bf16 %v10443_v62, %v10439_v61  ;;  %v10447_v36 = vld [vmem:[#allocation9 + $0x1190] sm:$0xff] }
0x14ed   :  { %v15186_v41 = vpack.c.bf16 %v10451_v53, %v10447_v36 }
0x14ee   :  { %11177 = vmatmul.mubr.msk.f32.vlgmr.msra.gmra.mrb[120].mxu0 %vm3204_vm2, %v10246_v2 }
0x14ef   :  { %15123 = vmatpush1.bf16.msra.mxu0 %v17303_v23  ;;  %10385 = vmatprep.mubr.f32.mxu0 %v17269_v20  ;;  %v15188_v23 = vpack.c.bf16 %v10460_v48, %v10456_v14 }
0x14f0   :  { %15125 = vmatprep.subr.bf16.mxu0 %v17306_v17  ;;  %v15190_v17 = vpack.c.bf16 %v10459_v35, %v10455_v9 }
0x14f3   :  { %15127 = vmatpush1.bf16.msra.mxu0 %v17309_v55 }
0x14f4   :  { %15161 = vmatprep.subr.bf16.mxu0 %v15160_v49  ;;  %v17310_v49 = vld [vmem:[#allocation30_spill] sm:$0xff] }
0x14f5   :  { %v17311_v11 = vpack.c.bf16 %v17041_v1, %v17310_v49 }
0x14f6   :  { %11178 = vmatmul.mubr.msk.f32.vlgmr.msra.gmra.mrb[122].mxu0 %vm3204_vm2, %v10246_v2  ;;  %v10452_v2 = vld [vmem:[#allocation9 + $0x11b8] sm:$0xff] }
0x14f7   :  { %15163 = vmatpush1.bf16.msra.mxu0 %v15162_v45  ;;  %10614 = vmatprep.mubr.f32.mxu0 %v17269_v20  ;;  %v15184_v33 = vpack.c.bf16 %v10452_v2, %v10448_v32 }
0x14f8   :  { %15165 = vmatprep.subr.bf16.mxu0 %v15164_v21 }
0x14fb   :  { %15167 = vmatpush1.bf16.msra.mxu0 %v15166_v54 }
0x14fc   :  { %15169 = vmatprep.subr.bf16.mxu0 %v15168_v42 }
0x14ff   :  { %15171 = vmatpush1.bf16.msra.mxu0 %v15170_v40 }
0x1500   :  { %15173 = vmatprep.subr.bf16.mxu0 %v15172_v25 }
0x1503   :  { %15175 = vmatpush1.bf16.msra.mxu0 %v15174_v59 }
0x1504   :  { %15177 = vmatprep.subr.bf16.mxu0 %v15176_v51 }
0x1507   :  { %15179 = vmatpush1.bf16.msra.mxu0 %v15178_v5 }
0x1508   :  { %15181 = vmatprep.subr.bf16.mxu0 %v15180_v10 }
0x150b   :  { %15183 = vmatpush1.bf16.msra.mxu0 %v15182_v4 }
0x150c   :  { %15185 = vmatprep.subr.bf16.mxu0 %v15184_v33 }
0x150f   :  { %15187 = vmatpush1.bf16.msra.mxu0 %v15186_v41 }
0x1510   :  { %15189 = vmatprep.subr.bf16.mxu0 %v15188_v23 }
0x1513   :  { %15191 = vmatpush1.bf16.msra.mxu0 %v15190_v17 }
0x1514   :  { %15193 = vmatprep.subr.bf16.mxu0 %v15192_v24 }
0x1516   :  { %10615 = vmatmul.mubr.f32.vlgmr.msra.gmra.mrb[156].mxu0 %v16623_v3  ;;  %v10640_v3 = vld [vmem:[#allocation10 + $0x20] sm:$0xf] }
0x1517   :  { %15195 = vmatpush1.bf16.msra.mxu0 %v17311_v11  ;;  %10620 = vmatprep.mubr.f32.mxu0 %v17269_v20 }
0x1518   :  { %15197 = vmatprep.subr.bf16.mxu0 %v15196_v7  ;;  %v10794_v7 = vpop.permute.xlu0 %10793 }
0x151a   :  { %10621 = vmatmul.mubr.f32.gmra.mrb[158].mxu0 %v16627_v44 }
0x151b   :  { %15199 = vmatpush1.bf16.msra.mxu0 %v15198_v38  ;;  %10626 = vmatprep.mubr.f32.mxu0 %v17269_v20 }
0x151e   :  { %10627 = vmatmul.mubr.f32.gmra.mrb[160].mxu0 %v16633_v18 }
0x151f   :  { %10632 = vmatprep.mubr.f32.mxu0 %v17269_v20 }
0x1522   :  { %10633 = vmatmul.mubr.f32.gmra.mrb[162].mxu0 %v16639_v46 }
0x1523   :  { %10708 = vmatprep.mubr.f32.mxu0 %v17269_v20 }
0x1526   :  { %11179 = vmatmul.mubr.msk.f32.vlgmr.msra.gmra.mrb[120].mxu0 %vm3204_vm2, %v10640_v3 }
0x1527   :  { %10779 = vmatprep.mubr.f32.mxu0 %v17269_v20 }
0x15e9   :  { %v10616_v44 = vpop.f32.mrb[156].mxu0 }
0x15ea   :  { %v10618_v29 = vpop.f32.mrb[157].mxu0 }
0x15ed   :  { %v10622_v1 = vpop.f32.mrb[158].mxu0 }
0x15ee   :  { %v15202_v60 = vpack.c.bf16 %v10622_v1, %v10616_v44  ;;  %v10624_v38 = vpop.f32.mrb[159].mxu0 }
0x15ef   :  { %v15200_v6 = vpack.c.bf16 %v10624_v38, %v10618_v29 }
0x15f1   :  { %v10628_v43 = vpop.f32.mrb[160].mxu0  ;;  %15201 = vmatprep.subr.bf16.mxu0 %v15200_v6 }
0x15f2   :  { %v10630_v18 = vpop.f32.mrb[161].mxu0  ;;  %15203 = vmatpush1.bf16.msra.mxu0 %v15202_v60 }
0x15f5   :  { %v10634_v57 = vpop.f32.mrb[162].mxu0 }
0x15f6   :  { %v15206_v24 = vpack.c.bf16 %v10634_v57, %v10628_v43  ;;  %v10636_v46 = vpop.f32.mrb[163].mxu0 }
0x15f7   :  { %v15204_v31 = vpack.c.bf16 %v10636_v46, %v10630_v18 }
0x15f9   :  { %v10710_v26 = vpop.f32.mrb[120].mxu0  ;;  %15205 = vmatprep.subr.bf16.mxu0 %v15204_v31 }
0x15fa   :  { %v10796_v27 = vadd.f32 %v10794_v7, %v10710_v26  ;;  %v10712_v8 = vpop.f32.mrb[121].mxu0  ;;  %15207 = vmatpush1.bf16.msra.mxu0 %v15206_v24 }
0x15fb   :  { %v10797_v20 = vadd.f32 %v10794_v7, %v10712_v8 }
0x15fc   :  { %v11181_v37 = vmul.f32 -1.442695, %v10796_v27 }
0x15fd   :  { %v11182_v39 = vmul.f32 -1.442695, %v10797_v20  ;;  %11180 = vmatmul.mubr.msk.f32.vlgmr.msra.gmra.mrb[122].mxu0 %vm3204_vm2, %v10640_v3 }
0x15fe   :  { %15386 = vpow2.f32 %v11181_v37 }
0x15ff   :  { %15388 = vpow2.f32 %v11182_v39 }
0x1608   :  { %v15387_v55 = vpop.eup %15386 }
0x1609   :  { %v15389_v45 = vpop.eup %15388  ;;  %v10812_v21 = vadd.f32 1.0, %v15387_v55 }
0x160a   :  { %v10813_v56 = vadd.f32 1.0, %v15389_v45 }
0x160b   :  { %15390 = vrcp.f32 %v10812_v21 }
0x160c   :  { %15392 = vrcp.f32 %v10813_v56 }
0x1615   :  { %v15391_v52 = vpop.eup %15390 }
0x1616   :  { %v15393_v16 = vpop.eup %15392 }
0x1617   :  { %v10828_v47 = vcombine.low %v15391_v52, %v15393_v16 }
0x1619   :  { %10832 = vst [vmem:[%s17234_s13] sm:$0xff] %v10828_v47 }
0x16d0   :  { %v10781_v54 = vpop.f32.mrb[122].mxu0 }
0x16d1   :  { %v10798_v42 = vadd.f32 %v10794_v7, %v10781_v54  ;;  %v10783_v12 = vpop.f32.mrb[123].mxu0 }
0x16d2   :  { %v10799_v30 = vadd.f32 %v10794_v7, %v10783_v12 }
0x16d3   :  { %v11183_v58 = vmul.f32 -1.442695, %v10798_v42 }
0x16d4   :  { %v11184_v19 = vmul.f32 -1.442695, %v10799_v30 }
0x16d5   :  { %15394 = vpow2.f32 %v11183_v58 }
0x16d6   :  { %15396 = vpow2.f32 %v11184_v19 }
0x16df   :  { %v15395_v40 = vpop.eup %15394 }
0x16e0   :  { %v15397_v25 = vpop.eup %15396  ;;  %v10814_v13 = vadd.f32 1.0, %v15395_v40 }
0x16e1   :  { %v10815_v28 = vadd.f32 1.0, %v15397_v25 }
0x16e2   :  { %15398 = vrcp.f32 %v10814_v13 }
0x16e3   :  { %15400 = vrcp.f32 %v10815_v28 }
0x16ec   :  { %v15399_v15 = vpop.eup %15398 }
0x16ed   :  { %v15401_v50 = vpop.eup %15400 }
0x16ee   :  { %v10829_v59 = vcombine.low %v15399_v15, %v15401_v50 }
0x16f0   :  { %10833 = vst [vmem:[%s17234_s13 + $0x8] sm:$0xff] %v10829_v59 }
0x16f1   :  { %10838 = vsyncpa [#allocation3], 1 }
0x16f2   :  { %10839 = vsyncpa [#allocation5], 1 }
0x16f3   :  { %10840 = vsyncpa [#allocation8], 1 }
0x16f4   :  { %10841 = vsyncpa [#allocation11], 1 }

</bundles_post_ra>
